<compile_context>
chip_gen: v7x
topology: tpu7x:2x2x1
jax: 0.10.0
libtpu: 0.0.40
codegen_flags: <defaults>
</compile_context>

<pallas_src>
import functools

import jax
import jax.numpy as jnp
from jax.experimental import pallas as pl
from jax.experimental.pallas import tpu as pltpu

NC = 3      # input channels
NDF = 64    # base feature width


# ---------------------------------------------------------------------------
# Pallas kernel: one (tm, K) x (K, tn) matmul per grid step, resident weight,
# fused LeakyReLU epilogue, bf16 output, f32 MXU accumulation.
# ---------------------------------------------------------------------------
def _conv_matmul_kernel(x_ref, w_ref, o_ref, *, act, slope):
    # w_ref holds the whole layer weight, tiled as (Ctiles, K, tn); pick the
    # slab for this output-channel tile with a dynamic leading-dim index.
    j = pl.program_id(1)
    acc = jnp.dot(x_ref[...], w_ref[j], preferred_element_type=jnp.float32)
    if act == "lrelu":
        acc = jnp.where(acc > 0, acc, slope * acc)
    o_ref[...] = acc.astype(o_ref.dtype)


def _pick_tm(Mp, cap):
    """Largest multiple-of-16 divisor of Mp (a multiple of 16) not exceeding cap."""
    start = min(cap, Mp)
    start -= start % 16
    start = max(start, 16)
    for cand in range(start, 15, -16):
        if Mp % cand == 0:
            return cand
    return 16


def _pallas_conv_matmul(patches, w3, act="lrelu"):
    """patches: (M, K) bf16, w3: (Ctiles, K, tn) bf16 -> (M, Ctiles*tn) bf16."""
    M, K = patches.shape
    Ctiles, K2, tn = w3.shape
    assert K == K2
    assert K % 128 == 0, "contraction dim must be lane-dense"
    assert tn % 128 == 0, "output blocks must be lane-dense"
    Cout = Ctiles * tn

    Mp = ((M + 15) // 16) * 16
    if Mp != M:  # never hit for this net's shapes; kept for generality
        patches = jnp.pad(patches, ((0, Mp - M), (0, 0)))

    # M-tile cap: keep the LHS block at <= 4 MiB (bf16) and <= 2048 rows.
    cap = min(2048, (4 * 1024 * 1024) // (2 * K))
    cap = max(16, cap - cap % 16)
    tm = _pick_tm(Mp, cap)

    out = pl.pallas_call(
        functools.partial(_conv_matmul_kernel, act=act, slope=0.2),
        out_shape=jax.ShapeDtypeStruct((Mp, Cout), patches.dtype),
        grid_spec=pltpu.PrefetchScalarGridSpec(
            num_scalar_prefetch=0,
            grid=(Mp // tm, Ctiles),                 # both axes independent
            in_specs=[
                # LHS tile: re-used across the Cout axis (index ignores j).
                pl.BlockSpec((tm, K), lambda i, j: (i, 0)),
                # Full weight resident in VMEM: fetched once, never re-DMA'd.
                pl.BlockSpec((Ctiles, K, tn), lambda i, j: (0, 0, 0)),
            ],
            out_specs=pl.BlockSpec((tm, tn), lambda i, j: (i, j)),
        ),
        compiler_params=pltpu.CompilerParams(
            dimension_semantics=("parallel", "parallel"),
            vmem_limit_bytes=32 * 1024 * 1024,
        ),
    )(patches, w3)
    if Mp != M:
        out = out[:M]
    return out


# ---------------------------------------------------------------------------
# Glue: NHWC im2col (K ordering = (KH, KW, Cin_padded)).
# ---------------------------------------------------------------------------
def _im2col_nhwc(x_nhwc, kh, kw, stride, pad, cin_pad=0):
    N, H, W, C = x_nhwc.shape
    xp = jnp.pad(x_nhwc, ((0, 0), (pad, pad), (pad, pad), (0, cin_pad)))
    Cp = C + cin_pad
    OH = (H + 2 * pad - kh) // stride + 1
    OW = (W + 2 * pad - kw) // stride + 1
    taps = []
    for ky in range(kh):
        for kx in range(kw):
            taps.append(xp[:, ky:ky + stride * OH:stride,
                           kx:kx + stride * OW:stride, :])
    p = jnp.stack(taps, axis=3)                      # (N, OH, OW, KH*KW, Cp)
    return p.reshape(N * OH * OW, kh * kw * Cp), (N, OH, OW)


def conv2d_lrelu_nhwc(x_nhwc, w3, kh, kw, stride, pad, cin_pad=0):
    """Conv2d(bias=False) + LeakyReLU(0.2), NHWC in / NHWC out (bf16)."""
    patches, (N, OH, OW) = _im2col_nhwc(x_nhwc, kh, kw, stride, pad, cin_pad)
    Ctiles, _, tn = w3.shape
    y = _pallas_conv_matmul(patches, w3, act="lrelu")
    return y.reshape(N, OH, OW, Ctiles * tn)


# ---------------------------------------------------------------------------
# D module: parameters (PyTorch layout), one-time weight prep, forward.
# ---------------------------------------------------------------------------
def init_params(key):
    shapes = [
        (NDF,     NC,      4, 4),   # main[0]
        (NDF * 2, NDF,     4, 4),   # main[2]
        (NDF * 4, NDF * 2, 4, 4),   # main[4]
        (NDF * 8, NDF * 4, 4, 4),   # main[6]
        (1,       NDF * 8, 4, 4),   # main[8]
    ]
    keys = jax.random.split(key, len(shapes))
    # deterministic DCGAN-style init: N(0, 0.02)
    return [0.02 * jax.random.normal(k, s, jnp.float32) for k, s in zip(keys, shapes)]


def _prep_conv_weight(w_oikk, cin_pad_to=None, cout_pad_to=None):
    """PyTorch (Cout, Cin, KH, KW) -> (Ctiles, KH*KW*Cin_p, tn) bf16 (Cout-tiled)."""
    Cout, Cin, KH, KW = w_oikk.shape
    if cin_pad_to is not None and cin_pad_to > Cin:
        w_oikk = jnp.pad(w_oikk, ((0, 0), (0, cin_pad_to - Cin), (0, 0), (0, 0)))
        Cin = cin_pad_to
    if cout_pad_to is not None and cout_pad_to > Cout:
        w_oikk = jnp.pad(w_oikk, ((0, cout_pad_to - Cout), (0, 0), (0, 0), (0, 0)))
        Cout = cout_pad_to
    tn = 256 if Cout % 256 == 0 else 128
    assert Cout % tn == 0
    K = KH * KW * Cin
    w_kc = w_oikk.transpose(2, 3, 1, 0).reshape(K, Cout)          # (K, Cout)
    w3 = w_kc.reshape(K, Cout // tn, tn).transpose(1, 0, 2)       # (Ctiles, K, tn)
    return w3.astype(jnp.bfloat16)


def prepare_params(params):
    """One-time weight prep (hoisted out of the forward, per perf review)."""
    w1, w2, w3, w4, w5 = params
    prepped = [
        _prep_conv_weight(w1, cin_pad_to=8, cout_pad_to=128),  # K 48->128, Cout 64->128
        _prep_conv_weight(w2),
        _prep_conv_weight(w3),
        _prep_conv_weight(w4),
    ]
    # Final 4x4 / stride 1 / pad 0 conv to 1 unit: (K, 1) f32 matrix for a plain dot.
    w5_kc = w5.transpose(2, 3, 1, 0).reshape(-1, 1).astype(jnp.float32)
    return prepped + [w5_kc]


def d_forward(x_nchw, prepared):
    w1, w2, w3, w4, w5_kc = prepared
    # single layout change, on the tiny 3-channel input only
    x = x_nchw.transpose(0, 2, 3, 1).astype(jnp.bfloat16)   # NCHW -> NHWC

    # layer 1: Cin padded 3->8 (K = 128) and Cout padded 64->128 for lane-dense
    # blocks; slice the real 64 channels back afterwards (exact: LeakyReLU(0)=0).
    x = conv2d_lrelu_nhwc(x, w1, 4, 4, 2, 1, cin_pad=8 - NC)
    x = x[..., :NDF]
    x = conv2d_lrelu_nhwc(x, w2, 4, 4, 2, 1)
    x = conv2d_lrelu_nhwc(x, w3, 4, 4, 2, 1)
    x = conv2d_lrelu_nhwc(x, w4, 4, 4, 2, 1)

    # final 4x4 / stride 1 / pad 0 conv to 1 unit + Sigmoid: M=N and Cout=1 is
    # degenerate for the MXU -> plain dot in the wrapper.
    N, H, W, C = x.shape
    assert H == 4 and W == 4, "D expects 64x64 inputs (final feature map 4x4)"
    logits = jnp.dot(x.reshape(N, H * W * C).astype(jnp.float32), w5_kc,
                     preferred_element_type=jnp.float32)
    return jax.nn.sigmoid(logits).reshape(-1, 1)     # == x.view((-1, 1))


if __name__ == "__main__":
    key = jax.random.PRNGKey(0)
    k_x, k_w = jax.random.split(key)
    # D requires 64x64 input so the final 4x4/s1/p0 conv yields a 1x1 map.
    x = jax.random.normal(k_x, (2, NC, 64, 64), jnp.float32)
    params = init_params(k_w)
    prepared = prepare_params(params)        # one-time weight prep

    fwd = jax.jit(d_forward)
    out = fwd(x, prepared)
    jax.block_until_ready(out)
    assert out.shape == (2, 1)
    assert bool(jnp.all(jnp.isfinite(out)))
    print("KERNEL_OK")
</pallas_src>

<mosaic_0001>
module attributes {stable_mosaic.version = 11 : i64} {
  func.func @_conv_matmul_kernel(%arg0: i32, %arg1: i32, %arg2: memref<2048x128xbf16, #tpu.memory_space<vmem>>, %arg3: memref<1x128x128xbf16, #tpu.memory_space<vmem>>, %arg4: memref<2048x128xbf16, #tpu.memory_space<vmem>>) attributes {dimension_semantics = [#tpu.dimension_semantics<parallel>, #tpu.dimension_semantics<parallel>], iteration_bounds = array<i64: 1, 1>, scalar_prefetch = 0 : i64, scratch_operands = 0 : i64, tpu.core_type = #tpu.core_type<tc>, window_params = [{transform_indices = @transform_0, window_bounds = array<i64: 2048, 128>}, {pipeline_mode = #tpu.pipeline_mode<synchronous>, transform_indices = @transform_1, window_bounds = array<i64: 1, 128, 128>}, {transform_indices = @transform_2, window_bounds = array<i64: 2048, 128>}]} {
    %c0 = arith.constant 0 : index
    %c0_0 = arith.constant 0 : index
    %0 = vector.load %arg2[%c0, %c0_0] : memref<2048x128xbf16, #tpu.memory_space<vmem>>, vector<2048x128xbf16>
    %1 = arith.index_cast %arg1 : i32 to index
    %c0_1 = arith.constant 0 : index
    %c0_2 = arith.constant 0 : index
    %2 = vector.load %arg3[%1, %c0_1, %c0_2] : memref<1x128x128xbf16, #tpu.memory_space<vmem>>, vector<1x128x128xbf16>
    %3 = vector.shape_cast %2 : vector<1x128x128xbf16> to vector<128x128xbf16>
    %cst = arith.constant dense<0.000000e+00> : vector<2048x128xf32>
    %4 = tpu.matmul %0, %3, %cst {dimension_numbers = #tpu.dot_dimension_numbers<[1], [0], [0], [1], [0, 0, 1, 1], [], []>} : vector<2048x128xbf16>, vector<128x128xbf16>, vector<2048x128xf32> -> vector<2048x128xf32>
    %cst_3 = arith.constant 0.000000e+00 : f32
    %5 = vector.broadcast %cst_3 : f32 to vector<2048x128xf32>
    %6 = arith.cmpf ogt, %4, %5 : vector<2048x128xf32>
    %cst_4 = arith.constant 2.000000e-01 : f32
    %7 = vector.broadcast %cst_4 : f32 to vector<2048x128xf32>
    %8 = arith.mulf %7, %4 : vector<2048x128xf32>
    %9 = arith.select %6, %4, %8 : vector<2048x128xi1>, vector<2048x128xf32>
    %10 = arith.truncf %9 : vector<2048x128xf32> to vector<2048x128xbf16>
    %c0_5 = arith.constant 0 : index
    %c0_6 = arith.constant 0 : index
    %11 = vector.load %arg4[%c0_5, %c0_6] : memref<2048x128xbf16, #tpu.memory_space<vmem>>, vector<2048x128xbf16>
    tpu.vector_store %arg4[%c0_5, %c0_6], %10 {strides = array<i32>} : memref<2048x128xbf16, #tpu.memory_space<vmem>>, vector<2048x128xbf16>,
    return
  }
  func.func @transform_0(%arg0: i32, %arg1: i32) -> (i32, i32) {
    %c0_i32 = arith.constant 0 : i32
    %c0_i32_0 = arith.constant 0 : i32
    return %arg0, %c0_i32 : i32, i32
  }
  func.func @transform_1(%arg0: i32, %arg1: i32) -> (i32, i32, i32) {
    %c0_i32 = arith.constant 0 : i32
    %c0_i32_0 = arith.constant 0 : i32
    %c0_i32_1 = arith.constant 0 : i32
    %c0_i32_2 = arith.constant 0 : i32
    return %c0_i32, %c0_i32_0, %c0_i32_1 : i32, i32, i32
  }
  func.func @transform_2(%arg0: i32, %arg1: i32) -> (i32, i32) {
    %c0_i32 = arith.constant 0 : i32
    return %arg0, %arg1 : i32, i32
  }
}

module attributes {stable_mosaic.version = 11 : i64} {
  func.func @_conv_matmul_kernel(%arg0: i32, %arg1: i32, %arg2: memref<512x1024xbf16, #tpu.memory_space<vmem>>, %arg3: memref<1x1024x128xbf16, #tpu.memory_space<vmem>>, %arg4: memref<512x128xbf16, #tpu.memory_space<vmem>>) attributes {dimension_semantics = [#tpu.dimension_semantics<parallel>, #tpu.dimension_semantics<parallel>], iteration_bounds = array<i64: 1, 1>, scalar_prefetch = 0 : i64, scratch_operands = 0 : i64, tpu.core_type = #tpu.core_type<tc>, window_params = [{transform_indices = @transform_0, window_bounds = array<i64: 512, 1024>}, {pipeline_mode = #tpu.pipeline_mode<synchronous>, transform_indices = @transform_1, window_bounds = array<i64: 1, 1024, 128>}, {transform_indices = @transform_2, window_bounds = array<i64: 512, 128>}]} {
    %c0 = arith.constant 0 : index
    %c0_0 = arith.constant 0 : index
    %0 = vector.load %arg2[%c0, %c0_0] : memref<512x1024xbf16, #tpu.memory_space<vmem>>, vector<512x1024xbf16>
    %1 = arith.index_cast %arg1 : i32 to index
    %c0_1 = arith.constant 0 : index
    %c0_2 = arith.constant 0 : index
    %2 = vector.load %arg3[%1, %c0_1, %c0_2] : memref<1x1024x128xbf16, #tpu.memory_space<vmem>>, vector<1x1024x128xbf16>
    %3 = vector.shape_cast %2 : vector<1x1024x128xbf16> to vector<1024x128xbf16>
    %cst = arith.constant dense<0.000000e+00> : vector<512x128xf32>
    %4 = tpu.matmul %0, %3, %cst {dimension_numbers = #tpu.dot_dimension_numbers<[1], [0], [0], [1], [0, 0, 1, 1], [], []>} : vector<512x1024xbf16>, vector<1024x128xbf16>, vector<512x128xf32> -> vector<512x128xf32>
    %cst_3 = arith.constant 0.000000e+00 : f32
    %5 = vector.broadcast %cst_3 : f32 to vector<512x128xf32>
    %6 = arith.cmpf ogt, %4, %5 : vector<512x128xf32>
    %cst_4 = arith.constant 2.000000e-01 : f32
    %7 = vector.broadcast %cst_4 : f32 to vector<512x128xf32>
    %8 = arith.mulf %7, %4 : vector<512x128xf32>
    %9 = arith.select %6, %4, %8 : vector<512x128xi1>, vector<512x128xf32>
    %10 = arith.truncf %9 : vector<512x128xf32> to vector<512x128xbf16>
    %c0_5 = arith.constant 0 : index
    %c0_6 = arith.constant 0 : index
    %11 = vector.load %arg4[%c0_5, %c0_6] : memref<512x128xbf16, #tpu.memory_space<vmem>>, vector<512x128xbf16>
    tpu.vector_store %arg4[%c0_5, %c0_6], %10 {strides = array<i32>} : memref<512x128xbf16, #tpu.memory_space<vmem>>, vector<512x128xbf16>,
    return
  }
  func.func @transform_0(%arg0: i32, %arg1: i32) -> (i32, i32) {
    %c0_i32 = arith.constant 0 : i32
    %c0_i32_0 = arith.constant 0 : i32
    return %arg0, %c0_i32 : i32, i32
  }
  func.func @transform_1(%arg0: i32, %arg1: i32) -> (i32, i32, i32) {
    %c0_i32 = arith.constant 0 : i32
    %c0_i32_0 = arith.constant 0 : i32
    %c0_i32_1 = arith.constant 0 : i32
    %c0_i32_2 = arith.constant 0 : i32
    return %c0_i32, %c0_i32_0, %c0_i32_1 : i32, i32, i32
  }
  func.func @transform_2(%arg0: i32, %arg1: i32) -> (i32, i32) {
    %c0_i32 = arith.constant 0 : i32
    return %arg0, %arg1 : i32, i32
  }
}

module attributes {stable_mosaic.version = 11 : i64} {
  func.func @_conv_matmul_kernel(%arg0: i32, %arg1: i32, %arg2: memref<128x2048xbf16, #tpu.memory_space<vmem>>, %arg3: memref<1x2048x256xbf16, #tpu.memory_space<vmem>>, %arg4: memref<128x256xbf16, #tpu.memory_space<vmem>>) attributes {dimension_semantics = [#tpu.dimension_semantics<parallel>, #tpu.dimension_semantics<parallel>], iteration_bounds = array<i64: 1, 1>, scalar_prefetch = 0 : i64, scratch_operands = 0 : i64, tpu.core_type = #tpu.core_type<tc>, window_params = [{transform_indices = @transform_0, window_bounds = array<i64: 128, 2048>}, {pipeline_mode = #tpu.pipeline_mode<synchronous>, transform_indices = @transform_1, window_bounds = array<i64: 1, 2048, 256>}, {transform_indices = @transform_2, window_bounds = array<i64: 128, 256>}]} {
    %c0 = arith.constant 0 : index
    %c0_0 = arith.constant 0 : index
    %0 = vector.load %arg2[%c0, %c0_0] : memref<128x2048xbf16, #tpu.memory_space<vmem>>, vector<128x2048xbf16>
    %1 = arith.index_cast %arg1 : i32 to index
    %c0_1 = arith.constant 0 : index
    %c0_2 = arith.constant 0 : index
    %2 = vector.load %arg3[%1, %c0_1, %c0_2] : memref<1x2048x256xbf16, #tpu.memory_space<vmem>>, vector<1x2048x256xbf16>
    %3 = vector.shape_cast %2 : vector<1x2048x256xbf16> to vector<2048x256xbf16>
    %cst = arith.constant dense<0.000000e+00> : vector<128x256xf32>
    %4 = tpu.matmul %0, %3, %cst {dimension_numbers = #tpu.dot_dimension_numbers<[1], [0], [0], [1], [0, 0, 1, 1], [], []>} : vector<128x2048xbf16>, vector<2048x256xbf16>, vector<128x256xf32> -> vector<128x256xf32>
    %cst_3 = arith.constant 0.000000e+00 : f32
    %5 = vector.broadcast %cst_3 : f32 to vector<128x256xf32>
    %6 = arith.cmpf ogt, %4, %5 : vector<128x256xf32>
    %cst_4 = arith.constant 2.000000e-01 : f32
    %7 = vector.broadcast %cst_4 : f32 to vector<128x256xf32>
    %8 = arith.mulf %7, %4 : vector<128x256xf32>
    %9 = arith.select %6, %4, %8 : vector<128x256xi1>, vector<128x256xf32>
    %10 = arith.truncf %9 : vector<128x256xf32> to vector<128x256xbf16>
    %c0_5 = arith.constant 0 : index
    %c0_6 = arith.constant 0 : index
    %11 = vector.load %arg4[%c0_5, %c0_6] : memref<128x256xbf16, #tpu.memory_space<vmem>>, vector<128x256xbf16>
    tpu.vector_store %arg4[%c0_5, %c0_6], %10 {strides = array<i32>} : memref<128x256xbf16, #tpu.memory_space<vmem>>, vector<128x256xbf16>,
    return
  }
  func.func @transform_0(%arg0: i32, %arg1: i32) -> (i32, i32) {
    %c0_i32 = arith.constant 0 : i32
    %c0_i32_0 = arith.constant 0 : i32
    return %arg0, %c0_i32 : i32, i32
  }
  func.func @transform_1(%arg0: i32, %arg1: i32) -> (i32, i32, i32) {
    %c0_i32 = arith.constant 0 : i32
    %c0_i32_0 = arith.constant 0 : i32
    %c0_i32_1 = arith.constant 0 : i32
    %c0_i32_2 = arith.constant 0 : i32
    return %c0_i32, %c0_i32_0, %c0_i32_1 : i32, i32, i32
  }
  func.func @transform_2(%arg0: i32, %arg1: i32) -> (i32, i32) {
    %c0_i32 = arith.constant 0 : i32
    return %arg0, %arg1 : i32, i32
  }
}

module attributes {stable_mosaic.version = 11 : i64} {
  func.func @_conv_matmul_kernel(%arg0: i32, %arg1: i32, %arg2: memref<32x4096xbf16, #tpu.memory_space<vmem>>, %arg3: memref<2x4096x256xbf16, #tpu.memory_space<vmem>>, %arg4: memref<32x256xbf16, #tpu.memory_space<vmem>>) attributes {dimension_semantics = [#tpu.dimension_semantics<parallel>, #tpu.dimension_semantics<parallel>], iteration_bounds = array<i64: 1, 2>, scalar_prefetch = 0 : i64, scratch_operands = 0 : i64, tpu.core_type = #tpu.core_type<tc>, window_params = [{transform_indices = @transform_0, window_bounds = array<i64: 32, 4096>}, {pipeline_mode = #tpu.pipeline_mode<synchronous>, transform_indices = @transform_1, window_bounds = array<i64: 2, 4096, 256>}, {transform_indices = @transform_2, window_bounds = array<i64: 32, 256>}]} {
    %c0 = arith.constant 0 : index
    %c0_0 = arith.constant 0 : index
    %0 = vector.load %arg2[%c0, %c0_0] : memref<32x4096xbf16, #tpu.memory_space<vmem>>, vector<32x4096xbf16>
    %1 = arith.index_cast %arg1 : i32 to index
    %c0_1 = arith.constant 0 : index
    %c0_2 = arith.constant 0 : index
    %2 = vector.load %arg3[%1, %c0_1, %c0_2] : memref<2x4096x256xbf16, #tpu.memory_space<vmem>>, vector<1x4096x256xbf16>
    %3 = vector.shape_cast %2 : vector<1x4096x256xbf16> to vector<4096x256xbf16>
    %cst = arith.constant dense<0.000000e+00> : vector<32x256xf32>
    %4 = tpu.matmul %0, %3, %cst {dimension_numbers = #tpu.dot_dimension_numbers<[1], [0], [0], [1], [0, 0, 1, 1], [], []>} : vector<32x4096xbf16>, vector<4096x256xbf16>, vector<32x256xf32> -> vector<32x256xf32>
    %cst_3 = arith.constant 0.000000e+00 : f32
    %5 = vector.broadcast %cst_3 : f32 to vector<32x256xf32>
    %6 = arith.cmpf ogt, %4, %5 : vector<32x256xf32>
    %cst_4 = arith.constant 2.000000e-01 : f32
    %7 = vector.broadcast %cst_4 : f32 to vector<32x256xf32>
    %8 = arith.mulf %7, %4 : vector<32x256xf32>
    %9 = arith.select %6, %4, %8 : vector<32x256xi1>, vector<32x256xf32>
    %10 = arith.truncf %9 : vector<32x256xf32> to vector<32x256xbf16>
    %c0_5 = arith.constant 0 : index
    %c0_6 = arith.constant 0 : index
    %11 = vector.load %arg4[%c0_5, %c0_6] : memref<32x256xbf16, #tpu.memory_space<vmem>>, vector<32x256xbf16>
    tpu.vector_store %arg4[%c0_5, %c0_6], %10 {strides = array<i32>} : memref<32x256xbf16, #tpu.memory_space<vmem>>, vector<32x256xbf16>,
    return
  }
  func.func @transform_0(%arg0: i32, %arg1: i32) -> (i32, i32) {
    %c0_i32 = arith.constant 0 : i32
    %c0_i32_0 = arith.constant 0 : i32
    return %arg0, %c0_i32 : i32, i32
  }
  func.func @transform_1(%arg0: i32, %arg1: i32) -> (i32, i32, i32) {
    %c0_i32 = arith.constant 0 : i32
    %c0_i32_0 = arith.constant 0 : i32
    %c0_i32_1 = arith.constant 0 : i32
    %c0_i32_2 = arith.constant 0 : i32
    return %c0_i32, %c0_i32_0, %c0_i32_1 : i32, i32, i32
  }
  func.func @transform_2(%arg0: i32, %arg1: i32) -> (i32, i32) {
    %c0_i32 = arith.constant 0 : i32
    return %arg0, %arg1 : i32, i32
  }
}

</mosaic_0001>

<bundles_post_ra>
// kernel: d_forward.4
= control target key start
LH: loop header
LB: loop body
LE: loop exit
PB: predicated region body
PF: predicated region fallthrough
CT: control target
= control target key end

     0   :  { %s7037_s1 = inlined_call_operand.vmem [shape: bf16[1,128,128], index: 1, kind: input, shape index: {}]   ;;  %s7038_s0 = inlined_call_operand.vmem [shape: bf16[2048,128], index: 0, kind: input, shape index: {}]   ;;  %s7039_s2 = inlined_call_operand.vmem [shape: bf16[2048,128], index: 2, kind: output, shape index: {}]  }
   0x1   :  { %v6051_v0 = vld [vmem:[%s7037_s1] sm:$0xff]   ;;  %v6052_v1 = vld [vmem:[%s7037_s1 + $0x8] sm:$0xff]   ;;  %v6053_v2 = vld [vmem:[%s7037_s1 + $0x10] sm:$0xff]  }
   0x2   :  { %5763 = vmatprep.subr.bf16.mxu0 %v6051_v0  ;;  %6035 = vmatprep.subr.bf16.mxu1 %v6051_v0  ;;  %v6054_v3 = vld [vmem:[%s7037_s1 + $0x18] sm:$0xff]   ;;  %v6059_v4 = vld [vmem:[%s7038_s0] sm:$0xff]   ;;  %v6056_v7 = vld [vmem:[%s7037_s1 + $0x28] sm:$0xff]  }
   0x3   :  { %5764 = vmatpush3.bf16.msra.mxu0 %v6051_v0  ;;  %6043 = vmatpush3.bf16.msra.mxu1 %v6051_v0  ;;  %v6060_v5 = vld [vmem:[%s7038_s0 + $0x200] sm:$0xff]   ;;  %v6057_v8 = vld [vmem:[%s7037_s1 + $0x30] sm:$0xff]   ;;  %v6058_v9 = vld [vmem:[%s7037_s1 + $0x38] sm:$0xff]  }
   0x4   :  { %5765 = vmatprep.subr.bf16.mxu0 %v6052_v1  ;;  %6036 = vmatprep.subr.bf16.mxu1 %v6052_v1  ;;  %v6055_v6 = vld [vmem:[%s7037_s1 + $0x20] sm:$0xff]   ;;  %v6061_v10 = vld [vmem:[%s7038_s0 + $0x8] sm:$0xff]   ;;  %v6063_v12 = vld [vmem:[%s7038_s0 + $0x10] sm:$0xff]  }
   0x5   :  { %5779 = vmatprep.mubr.bf16.mxu0 %v6059_v4  ;;  %5907 = vmatprep.mubr.bf16.mxu1 %v6060_v5  ;;  %v6062_v11 = vld [vmem:[%s7038_s0 + $0x208] sm:$0xff]   ;;  %v6064_v13 = vld [vmem:[%s7038_s0 + $0x210] sm:$0xff]   ;;  %v6065_v14 = vld [vmem:[%s7038_s0 + $0x18] sm:$0xff]  }
   0x6   :  { %v6066_v15 = vld [vmem:[%s7038_s0 + $0x218] sm:$0xff]   ;;  %v6067_v16 = vld [vmem:[%s7038_s0 + $0x20] sm:$0xff]   ;;  %v6069_v18 = vld [vmem:[%s7038_s0 + $0x28] sm:$0xff]  }
   0x7   :  { %5766 = vmatpush3.bf16.msra.mxu0 %v6052_v1  ;;  %6044 = vmatpush3.bf16.msra.mxu1 %v6052_v1  ;;  %v6068_v17 = vld [vmem:[%s7038_s0 + $0x220] sm:$0xff]   ;;  %v6070_v19 = vld [vmem:[%s7038_s0 + $0x228] sm:$0xff]   ;;  %v6071_v20 = vld [vmem:[%s7038_s0 + $0x30] sm:$0xff]  }
   0x8   :  { %5767 = vmatprep.subr.bf16.mxu0 %v6053_v2  ;;  %6037 = vmatprep.subr.bf16.mxu1 %v6053_v2  ;;  %v6072_v21 = vld [vmem:[%s7038_s0 + $0x230] sm:$0xff]   ;;  %v6073_v22 = vld [vmem:[%s7038_s0 + $0x38] sm:$0xff]   ;;  %v6075_v24 = vld [vmem:[%s7038_s0 + $0x40] sm:$0xff]  }
   0x9   :  { %v6074_v23 = vld [vmem:[%s7038_s0 + $0x238] sm:$0xff]   ;;  %v6076_v25 = vld [vmem:[%s7038_s0 + $0x240] sm:$0xff]   ;;  %v6077_v26 = vld [vmem:[%s7038_s0 + $0x48] sm:$0xff]  }
   0xa   :  { %v6078_v27 = vld [vmem:[%s7038_s0 + $0x248] sm:$0xff]   ;;  %v6079_v28 = vld [vmem:[%s7038_s0 + $0x50] sm:$0xff]   ;;  %v6081_v30 = vld [vmem:[%s7038_s0 + $0x58] sm:$0xff]  }
   0xb   :  { %5768 = vmatpush3.bf16.msra.mxu0 %v6053_v2  ;;  %6045 = vmatpush3.bf16.msra.mxu1 %v6053_v2  ;;  %v6080_v29 = vld [vmem:[%s7038_s0 + $0x250] sm:$0xff]   ;;  %v6082_v31 = vld [vmem:[%s7038_s0 + $0x258] sm:$0xff]   ;;  %v6083_v32 = vld [vmem:[%s7038_s0 + $0x60] sm:$0xff]  }
   0xc   :  { %5769 = vmatprep.subr.bf16.mxu0 %v6054_v3  ;;  %6038 = vmatprep.subr.bf16.mxu1 %v6054_v3  ;;  %v6084_v33 = vld [vmem:[%s7038_s0 + $0x260] sm:$0xff]   ;;  %v6085_v34 = vld [vmem:[%s7038_s0 + $0x68] sm:$0xff]   ;;  %v6087_v36 = vld [vmem:[%s7038_s0 + $0x70] sm:$0xff]  }
   0xd   :  { %v6086_v35 = vld [vmem:[%s7038_s0 + $0x268] sm:$0xff]   ;;  %v6088_v37 = vld [vmem:[%s7038_s0 + $0x270] sm:$0xff]   ;;  %v6089_v38 = vld [vmem:[%s7038_s0 + $0x78] sm:$0xff]  }
   0xe   :  { %v6090_v39 = vld [vmem:[%s7038_s0 + $0x278] sm:$0xff]   ;;  %v6091_v40 = vld [vmem:[%s7038_s0 + $0x80] sm:$0xff]   ;;  %v6093_v42 = vld [vmem:[%s7038_s0 + $0x88] sm:$0xff]  }
   0xf   :  { %5770 = vmatpush3.bf16.msra.mxu0 %v6054_v3  ;;  %6046 = vmatpush3.bf16.msra.mxu1 %v6054_v3  ;;  %v6092_v41 = vld [vmem:[%s7038_s0 + $0x280] sm:$0xff]   ;;  %v6094_v43 = vld [vmem:[%s7038_s0 + $0x288] sm:$0xff]   ;;  %v6095_v44 = vld [vmem:[%s7038_s0 + $0x90] sm:$0xff]  }
  0x10   :  { %5771 = vmatprep.subr.bf16.mxu0 %v6055_v6  ;;  %6039 = vmatprep.subr.bf16.mxu1 %v6055_v6  ;;  %v6096_v45 = vld [vmem:[%s7038_s0 + $0x290] sm:$0xff]   ;;  %v6097_v46 = vld [vmem:[%s7038_s0 + $0x98] sm:$0xff]   ;;  %v6099_v48 = vld [vmem:[%s7038_s0 + $0xa0] sm:$0xff]  }
  0x11   :  { %v6098_v47 = vld [vmem:[%s7038_s0 + $0x298] sm:$0xff]   ;;  %v6100_v49 = vld [vmem:[%s7038_s0 + $0x2a0] sm:$0xff]   ;;  %v6101_v50 = vld [vmem:[%s7038_s0 + $0xa8] sm:$0xff]  }
  0x12   :  { %v6102_v51 = vld [vmem:[%s7038_s0 + $0x2a8] sm:$0xff]   ;;  %v6103_v52 = vld [vmem:[%s7038_s0 + $0xb0] sm:$0xff]   ;;  %v6105_v54 = vld [vmem:[%s7038_s0 + $0xb8] sm:$0xff]  }
  0x13   :  { %5772 = vmatpush3.bf16.msra.mxu0 %v6055_v6  ;;  %6047 = vmatpush3.bf16.msra.mxu1 %v6055_v6  ;;  %v6104_v53 = vld [vmem:[%s7038_s0 + $0x2b0] sm:$0xff]   ;;  %v6106_v55 = vld [vmem:[%s7038_s0 + $0x2b8] sm:$0xff]   ;;  %v6107_v56 = vld [vmem:[%s7038_s0 + $0xc0] sm:$0xff]  }
  0x14   :  { %5773 = vmatprep.subr.bf16.mxu0 %v6056_v7  ;;  %6040 = vmatprep.subr.bf16.mxu1 %v6056_v7  ;;  %v6108_v57 = vld [vmem:[%s7038_s0 + $0x2c0] sm:$0xff]   ;;  %v6109_v58 = vld [vmem:[%s7038_s0 + $0xc8] sm:$0xff]   ;;  %v6111_v60 = vld [vmem:[%s7038_s0 + $0xd0] sm:$0xff]  }
  0x15   :  { %v6110_v59 = vld [vmem:[%s7038_s0 + $0x2c8] sm:$0xff]   ;;  %v6112_v61 = vld [vmem:[%s7038_s0 + $0x2d0] sm:$0xff]   ;;  %v6113_v62 = vld [vmem:[%s7038_s0 + $0xd8] sm:$0xff]  }
  0x16   :  { %v6114_v63 = vld [vmem:[%s7038_s0 + $0x2d8] sm:$0xff]   ;;  %v6115_v0 = vld [vmem:[%s7038_s0 + $0xe0] sm:$0xff]   ;;  %v6117_v2 = vld [vmem:[%s7038_s0 + $0xe8] sm:$0xff]  }
  0x17   :  { %5774 = vmatpush3.bf16.msra.mxu0 %v6056_v7  ;;  %6048 = vmatpush3.bf16.msra.mxu1 %v6056_v7  ;;  %v6116_v1 = vld [vmem:[%s7038_s0 + $0x2e0] sm:$0xff]   ;;  %v6118_v3 = vld [vmem:[%s7038_s0 + $0x2e8] sm:$0xff]   ;;  %v6119_v4 = vld [vmem:[%s7038_s0 + $0xf0] sm:$0xff]  }
  0x18   :  { %5775 = vmatprep.subr.bf16.mxu0 %v6057_v8  ;;  %6041 = vmatprep.subr.bf16.mxu1 %v6057_v8  ;;  %v6120_v5 = vld [vmem:[%s7038_s0 + $0x2f0] sm:$0xff]   ;;  %v6121_v6 = vld [vmem:[%s7038_s0 + $0xf8] sm:$0xff]  }
  0x19   :  { %v6122_v7 = vld [vmem:[%s7038_s0 + $0x2f8] sm:$0xff]  }
  0x1b   :  { %5776 = vmatpush3.bf16.msra.mxu0 %v6057_v8  ;;  %6049 = vmatpush3.bf16.msra.mxu1 %v6057_v8  ;;  %v6123_v8 = vld [vmem:[%s7038_s0 + $0x100] sm:$0xff]  }
  0x1c   :  { %5777 = vmatprep.subr.bf16.mxu0 %v6058_v9  ;;  %6042 = vmatprep.subr.bf16.mxu1 %v6058_v9 }
  0x1f   :  { %5778 = vmatpush3.bf16.msra.mxu0 %v6058_v9  ;;  %6050 = vmatpush3.bf16.msra.mxu1 %v6058_v9  ;;  %v6124_v9 = vld [vmem:[%s7038_s0 + $0x300] sm:$0xff]  }
  0x22   :  { %5780 = vmatmul.mubr.bf16.vlgmr.msra.gmra.mrb[0].mxu0 %v6061_v10  ;;  %5908 = vmatmul.mubr.bf16.vlgmr.msra.gmra.mrb[0].mxu1 %v6062_v11  ;;  %v6125_v10 = vld [vmem:[%s7038_s0 + $0x108] sm:$0xff]  }
  0x23   :  { %5783 = vmatprep.mubr.bf16.mxu0 %v6063_v12  ;;  %5911 = vmatprep.mubr.bf16.mxu1 %v6064_v13  ;;  %v6126_v11 = vld [vmem:[%s7038_s0 + $0x308] sm:$0xff]   ;;  %v6127_v12 = vld [vmem:[%s7038_s0 + $0x110] sm:$0xff]  }
  0x24   :  { %v6128_v13 = vld [vmem:[%s7038_s0 + $0x310] sm:$0xff]  }
  0x2a   :  { %5784 = vmatmul.mubr.bf16.gmra.mrb[4].mxu0 %v6065_v14  ;;  %5912 = vmatmul.mubr.bf16.gmra.mrb[4].mxu1 %v6066_v15  ;;  %v6129_v14 = vld [vmem:[%s7038_s0 + $0x118] sm:$0xff]  }
  0x2b   :  { %5787 = vmatprep.mubr.bf16.mxu0 %v6067_v16  ;;  %5915 = vmatprep.mubr.bf16.mxu1 %v6068_v17  ;;  %v6130_v15 = vld [vmem:[%s7038_s0 + $0x318] sm:$0xff]   ;;  %v6131_v16 = vld [vmem:[%s7038_s0 + $0x120] sm:$0xff]  }
  0x2c   :  { %v6132_v17 = vld [vmem:[%s7038_s0 + $0x320] sm:$0xff]  }
  0x32   :  { %5788 = vmatmul.mubr.bf16.gmra.mrb[8].mxu0 %v6069_v18  ;;  %5916 = vmatmul.mubr.bf16.gmra.mrb[8].mxu1 %v6070_v19  ;;  %v6133_v18 = vld [vmem:[%s7038_s0 + $0x128] sm:$0xff]  }
  0x33   :  { %5791 = vmatprep.mubr.bf16.mxu0 %v6071_v20  ;;  %5919 = vmatprep.mubr.bf16.mxu1 %v6072_v21  ;;  %v6134_v19 = vld [vmem:[%s7038_s0 + $0x328] sm:$0xff]   ;;  %v6135_v20 = vld [vmem:[%s7038_s0 + $0x130] sm:$0xff]  }
  0x34   :  { %v6136_v21 = vld [vmem:[%s7038_s0 + $0x330] sm:$0xff]  }
  0x3a   :  { %5792 = vmatmul.mubr.bf16.gmra.mrb[12].mxu0 %v6073_v22  ;;  %5920 = vmatmul.mubr.bf16.gmra.mrb[12].mxu1 %v6074_v23  ;;  %v6137_v22 = vld [vmem:[%s7038_s0 + $0x138] sm:$0xff]  }
  0x3b   :  { %5795 = vmatprep.mubr.bf16.mxu0 %v6075_v24  ;;  %5923 = vmatprep.mubr.bf16.mxu1 %v6076_v25  ;;  %v6138_v23 = vld [vmem:[%s7038_s0 + $0x338] sm:$0xff]   ;;  %v6139_v24 = vld [vmem:[%s7038_s0 + $0x140] sm:$0xff]  }
  0x3c   :  { %v6140_v25 = vld [vmem:[%s7038_s0 + $0x340] sm:$0xff]  }
  0x42   :  { %5796 = vmatmul.mubr.bf16.gmra.mrb[16].mxu0 %v6077_v26  ;;  %5924 = vmatmul.mubr.bf16.gmra.mrb[16].mxu1 %v6078_v27  ;;  %v6141_v26 = vld [vmem:[%s7038_s0 + $0x148] sm:$0xff]  }
  0x43   :  { %5799 = vmatprep.mubr.bf16.mxu0 %v6079_v28  ;;  %5927 = vmatprep.mubr.bf16.mxu1 %v6080_v29  ;;  %v6142_v27 = vld [vmem:[%s7038_s0 + $0x348] sm:$0xff]   ;;  %v6143_v28 = vld [vmem:[%s7038_s0 + $0x150] sm:$0xff]  }
  0x44   :  { %v6144_v29 = vld [vmem:[%s7038_s0 + $0x350] sm:$0xff]  }
  0x4a   :  { %5800 = vmatmul.mubr.bf16.gmra.mrb[20].mxu0 %v6081_v30  ;;  %5928 = vmatmul.mubr.bf16.gmra.mrb[20].mxu1 %v6082_v31  ;;  %v6145_v30 = vld [vmem:[%s7038_s0 + $0x158] sm:$0xff]  }
  0x4b   :  { %5803 = vmatprep.mubr.bf16.mxu0 %v6083_v32  ;;  %5931 = vmatprep.mubr.bf16.mxu1 %v6084_v33  ;;  %v6146_v31 = vld [vmem:[%s7038_s0 + $0x358] sm:$0xff]   ;;  %v6147_v32 = vld [vmem:[%s7038_s0 + $0x160] sm:$0xff]  }
  0x4c   :  { %v6148_v33 = vld [vmem:[%s7038_s0 + $0x360] sm:$0xff]  }
  0x52   :  { %5804 = vmatmul.mubr.bf16.gmra.mrb[24].mxu0 %v6085_v34  ;;  %5932 = vmatmul.mubr.bf16.gmra.mrb[24].mxu1 %v6086_v35  ;;  %v6149_v34 = vld [vmem:[%s7038_s0 + $0x168] sm:$0xff]  }
  0x53   :  { %5807 = vmatprep.mubr.bf16.mxu0 %v6087_v36  ;;  %5935 = vmatprep.mubr.bf16.mxu1 %v6088_v37  ;;  %v6150_v35 = vld [vmem:[%s7038_s0 + $0x368] sm:$0xff]   ;;  %v6151_v36 = vld [vmem:[%s7038_s0 + $0x170] sm:$0xff]  }
  0x54   :  { %v6152_v37 = vld [vmem:[%s7038_s0 + $0x370] sm:$0xff]  }
  0x5a   :  { %5808 = vmatmul.mubr.bf16.gmra.mrb[28].mxu0 %v6089_v38  ;;  %5936 = vmatmul.mubr.bf16.gmra.mrb[28].mxu1 %v6090_v39  ;;  %v6153_v38 = vld [vmem:[%s7038_s0 + $0x178] sm:$0xff]  }
  0x5b   :  { %5811 = vmatprep.mubr.bf16.mxu0 %v6091_v40  ;;  %5939 = vmatprep.mubr.bf16.mxu1 %v6092_v41  ;;  %v6154_v39 = vld [vmem:[%s7038_s0 + $0x378] sm:$0xff]   ;;  %v6155_v40 = vld [vmem:[%s7038_s0 + $0x180] sm:$0xff]  }
  0x5c   :  { %v6156_v41 = vld [vmem:[%s7038_s0 + $0x380] sm:$0xff]  }
  0x62   :  { %5812 = vmatmul.mubr.bf16.gmra.mrb[32].mxu0 %v6093_v42  ;;  %5940 = vmatmul.mubr.bf16.gmra.mrb[32].mxu1 %v6094_v43  ;;  %v6157_v42 = vld [vmem:[%s7038_s0 + $0x188] sm:$0xff]  }
  0x63   :  { %5815 = vmatprep.mubr.bf16.mxu0 %v6095_v44  ;;  %5943 = vmatprep.mubr.bf16.mxu1 %v6096_v45  ;;  %v6158_v43 = vld [vmem:[%s7038_s0 + $0x388] sm:$0xff]   ;;  %v6159_v44 = vld [vmem:[%s7038_s0 + $0x190] sm:$0xff]  }
  0x64   :  { %v6160_v45 = vld [vmem:[%s7038_s0 + $0x390] sm:$0xff]  }
  0x6a   :  { %5816 = vmatmul.mubr.bf16.gmra.mrb[36].mxu0 %v6097_v46  ;;  %5944 = vmatmul.mubr.bf16.gmra.mrb[36].mxu1 %v6098_v47  ;;  %v6161_v46 = vld [vmem:[%s7038_s0 + $0x198] sm:$0xff]  }
  0x6b   :  { %5819 = vmatprep.mubr.bf16.mxu0 %v6099_v48  ;;  %5947 = vmatprep.mubr.bf16.mxu1 %v6100_v49  ;;  %v6162_v47 = vld [vmem:[%s7038_s0 + $0x398] sm:$0xff]   ;;  %v6163_v48 = vld [vmem:[%s7038_s0 + $0x1a0] sm:$0xff]  }
  0x6c   :  { %v6164_v49 = vld [vmem:[%s7038_s0 + $0x3a0] sm:$0xff]  }
  0x72   :  { %5820 = vmatmul.mubr.bf16.gmra.mrb[40].mxu0 %v6101_v50  ;;  %5948 = vmatmul.mubr.bf16.gmra.mrb[40].mxu1 %v6102_v51  ;;  %v6165_v50 = vld [vmem:[%s7038_s0 + $0x1a8] sm:$0xff]  }
  0x73   :  { %5823 = vmatprep.mubr.bf16.mxu0 %v6103_v52  ;;  %5951 = vmatprep.mubr.bf16.mxu1 %v6104_v53  ;;  %v6166_v51 = vld [vmem:[%s7038_s0 + $0x3a8] sm:$0xff]   ;;  %v6167_v52 = vld [vmem:[%s7038_s0 + $0x1b0] sm:$0xff]  }
  0x74   :  { %v6168_v53 = vld [vmem:[%s7038_s0 + $0x3b0] sm:$0xff]  }
  0x7a   :  { %5824 = vmatmul.mubr.bf16.gmra.mrb[44].mxu0 %v6105_v54  ;;  %5952 = vmatmul.mubr.bf16.gmra.mrb[44].mxu1 %v6106_v55 }
  0x7b   :  { %5827 = vmatprep.mubr.bf16.mxu0 %v6107_v56  ;;  %5955 = vmatprep.mubr.bf16.mxu1 %v6108_v57  ;;  %v6169_v56 = vld [vmem:[%s7038_s0 + $0x1b8] sm:$0xff]  }
  0x82   :  { %5828 = vmatmul.mubr.bf16.gmra.mrb[48].mxu0 %v6109_v58  ;;  %5956 = vmatmul.mubr.bf16.gmra.mrb[48].mxu1 %v6110_v59  ;;  %v6170_v59 = vld [vmem:[%s7038_s0 + $0x3b8] sm:$0xff]  }
  0x83   :  { %5831 = vmatprep.mubr.bf16.mxu0 %v6111_v60  ;;  %5959 = vmatprep.mubr.bf16.mxu1 %v6112_v61 }
  0x8a   :  { %5832 = vmatmul.mubr.bf16.gmra.mrb[52].mxu0 %v6113_v62  ;;  %5960 = vmatmul.mubr.bf16.gmra.mrb[52].mxu1 %v6114_v63  ;;  %v6171_v62 = vld [vmem:[%s7038_s0 + $0x1c0] sm:$0xff]  }
  0x8b   :  { %5835 = vmatprep.mubr.bf16.mxu0 %v6115_v0  ;;  %5963 = vmatprep.mubr.bf16.mxu1 %v6116_v1  ;;  %v6172_v63 = vld [vmem:[%s7038_s0 + $0x3c0] sm:$0xff]  }
  0x92   :  { %5836 = vmatmul.mubr.bf16.gmra.mrb[56].mxu0 %v6117_v2  ;;  %5964 = vmatmul.mubr.bf16.gmra.mrb[56].mxu1 %v6118_v3 }
  0x93   :  { %5839 = vmatprep.mubr.bf16.mxu0 %v6119_v4  ;;  %5967 = vmatprep.mubr.bf16.mxu1 %v6120_v5 }
  0x9a   :  { %5840 = vmatmul.mubr.bf16.gmra.mrb[60].mxu0 %v6121_v6  ;;  %5968 = vmatmul.mubr.bf16.gmra.mrb[60].mxu1 %v6122_v7 }
  0x9b   :  { %5843 = vmatprep.mubr.bf16.mxu0 %v6123_v8  ;;  %5971 = vmatprep.mubr.bf16.mxu1 %v6124_v9 }
  0xa2   :  { %5844 = vmatmul.mubr.bf16.gmra.mrb[64].mxu0 %v6125_v10  ;;  %5972 = vmatmul.mubr.bf16.gmra.mrb[64].mxu1 %v6126_v11 }
  0xa3   :  { %5847 = vmatprep.mubr.bf16.mxu0 %v6127_v12  ;;  %5975 = vmatprep.mubr.bf16.mxu1 %v6128_v13 }
  0xaa   :  { %5848 = vmatmul.mubr.bf16.gmra.mrb[68].mxu0 %v6129_v14  ;;  %5976 = vmatmul.mubr.bf16.gmra.mrb[68].mxu1 %v6130_v15 }
  0xab   :  { %5851 = vmatprep.mubr.bf16.mxu0 %v6131_v16  ;;  %5979 = vmatprep.mubr.bf16.mxu1 %v6132_v17 }
  0xb2   :  { %5852 = vmatmul.mubr.bf16.gmra.mrb[72].mxu0 %v6133_v18  ;;  %5980 = vmatmul.mubr.bf16.gmra.mrb[72].mxu1 %v6134_v19 }
  0xb3   :  { %5855 = vmatprep.mubr.bf16.mxu0 %v6135_v20  ;;  %5983 = vmatprep.mubr.bf16.mxu1 %v6136_v21  ;;  %v6173_v20 = vld [vmem:[%s7038_s0 + $0x1c8] sm:$0xff]  }
  0xba   :  { %5856 = vmatmul.mubr.bf16.gmra.mrb[76].mxu0 %v6137_v22  ;;  %5984 = vmatmul.mubr.bf16.gmra.mrb[76].mxu1 %v6138_v23 }
  0xbb   :  { %5859 = vmatprep.mubr.bf16.mxu0 %v6139_v24  ;;  %5987 = vmatprep.mubr.bf16.mxu1 %v6140_v25 }
  0xc2   :  { %5860 = vmatmul.mubr.bf16.gmra.mrb[80].mxu0 %v6141_v26  ;;  %5988 = vmatmul.mubr.bf16.gmra.mrb[80].mxu1 %v6142_v27  ;;  %v6174_v27 = vld [vmem:[%s7038_s0 + $0x3c8] sm:$0xff]  }
  0xc3   :  { %5863 = vmatprep.mubr.bf16.mxu0 %v6143_v28  ;;  %5991 = vmatprep.mubr.bf16.mxu1 %v6144_v29  ;;  %v6175_v28 = vld [vmem:[%s7038_s0 + $0x1d0] sm:$0xff]  }
  0xca   :  { %5864 = vmatmul.mubr.bf16.gmra.mrb[84].mxu0 %v6145_v30  ;;  %5992 = vmatmul.mubr.bf16.gmra.mrb[84].mxu1 %v6146_v31 }
  0xcb   :  { %5867 = vmatprep.mubr.bf16.mxu0 %v6147_v32  ;;  %5995 = vmatprep.mubr.bf16.mxu1 %v6148_v33  ;;  %v6176_v33 = vld [vmem:[%s7038_s0 + $0x3d0] sm:$0xff]  }
  0xd2   :  { %5868 = vmatmul.mubr.bf16.gmra.mrb[88].mxu0 %v6149_v34  ;;  %5996 = vmatmul.mubr.bf16.gmra.mrb[88].mxu1 %v6150_v35 }
  0xd3   :  { %5871 = vmatprep.mubr.bf16.mxu0 %v6151_v36  ;;  %5999 = vmatprep.mubr.bf16.mxu1 %v6152_v37 }
  0xda   :  { %5872 = vmatmul.mubr.bf16.gmra.mrb[92].mxu0 %v6153_v38  ;;  %6000 = vmatmul.mubr.bf16.gmra.mrb[92].mxu1 %v6154_v39 }
  0xdb   :  { %5875 = vmatprep.mubr.bf16.mxu0 %v6155_v40  ;;  %6003 = vmatprep.mubr.bf16.mxu1 %v6156_v41 }
  0xe2   :  { %5876 = vmatmul.mubr.bf16.gmra.mrb[96].mxu0 %v6157_v42  ;;  %6004 = vmatmul.mubr.bf16.gmra.mrb[96].mxu1 %v6158_v43 }
  0xe3   :  { %5879 = vmatprep.mubr.bf16.mxu0 %v6159_v44  ;;  %6007 = vmatprep.mubr.bf16.mxu1 %v6160_v45 }
  0xea   :  { %5880 = vmatmul.mubr.bf16.gmra.mrb[100].mxu0 %v6161_v46  ;;  %6008 = vmatmul.mubr.bf16.gmra.mrb[100].mxu1 %v6162_v47 }
  0xeb   :  { %5883 = vmatprep.mubr.bf16.mxu0 %v6163_v48  ;;  %6011 = vmatprep.mubr.bf16.mxu1 %v6164_v49 }
  0xf2   :  { %5884 = vmatmul.mubr.bf16.gmra.mrb[104].mxu0 %v6165_v50  ;;  %6012 = vmatmul.mubr.bf16.gmra.mrb[104].mxu1 %v6166_v51 }
  0xf3   :  { %5887 = vmatprep.mubr.bf16.mxu0 %v6167_v52  ;;  %6015 = vmatprep.mubr.bf16.mxu1 %v6168_v53 }
  0xf5   :  { %v5781_v54 = vpop.f32.mrb[0].mxu0  ;;  %v5909_v55 = vpop.f32.mrb[0].mxu1 }
  0xf6   :  { %vm2162_vm0 = vcmp.gt.f32.partialorder %v5781_v54, 0.0  ;;  %v2418_v57 = vmul.f32 0.2, %v5781_v54  ;;  %v2546_v58 = vmul.f32 0.2, %v5909_v55  ;;  %vm2290_vm1 = vcmp.gt.f32.partialorder %v5909_v55, 0.0 }
  0xf7   :  { %v1137_v60 = vpop.f32.mrb[1].mxu0  ;;  %v1649_v61 = vpop.f32.mrb[1].mxu1 }
  0xf8   :  { %v2416_v0 = vmul.f32 0.2, %v1137_v60  ;;  %v5782_v1 = vpop.f32.mrb[2].mxu0  ;;  %v5910_v2 = vpop.f32.mrb[2].mxu1  ;;  %v2674_v3 = vsel %vm2162_vm0, %v5781_v54, %v2418_v57  ;;  %v2544_v4 = vmul.f32 0.2, %v1649_v61  ;;  %v2802_v6 = vsel %vm2290_vm1, %v5909_v55, %v2546_v58 }
  0xf9   :  { %vm2163_vm2 = vcmp.gt.f32.partialorder %v5782_v1, 0.0  ;;  %v2419_v5 = vmul.f32 0.2, %v5782_v1  ;;  %vm2160_vm3 = vcmp.gt.f32.partialorder %v1137_v60, 0.0  ;;  %vm2291_vm4 = vcmp.gt.f32.partialorder %v5910_v2, 0.0  ;;  %v1140_v8 = vpop.f32.mrb[3].mxu0 }
  0xfa   :  { %v2547_v7 = vmul.f32 0.2, %v5910_v2  ;;  %v1652_v9 = vpop.f32.mrb[3].mxu1  ;;  %5888 = vmatmul.mubr.bf16.gmra.mrb[108].mxu0 %v6169_v56  ;;  %6016 = vmatmul.mubr.bf16.gmra.mrb[108].mxu1 %v6170_v59  ;;  %vm2288_vm5 = vcmp.gt.f32.partialorder %v1649_v61, 0.0  ;;  %vm2161_vm6 = vcmp.gt.f32.partialorder %v1140_v8, 0.0  ;;  %v2672_v15 = vsel %vm2160_vm3, %v1137_v60, %v2416_v0  ;;  %v6177_v54 = vld [vmem:[%s7038_s0 + $0x1d8] sm:$0xff]  }
  0xfb   :  { %v2675_v10 = vsel %vm2163_vm2, %v5782_v1, %v2419_v5  ;;  %v2417_v11 = vmul.f32 0.2, %v1140_v8  ;;  %5891 = vmatprep.mubr.bf16.mxu0 %v6171_v62  ;;  %6019 = vmatprep.mubr.bf16.mxu1 %v6172_v63  ;;  %vm2289_vm7 = vcmp.gt.f32.partialorder %v1652_v9, 0.0  ;;  %v2545_v14 = vmul.f32 0.2, %v1652_v9  ;;  %v6178_v60 = vld [vmem:[%s7038_s0 + $0x3d8] sm:$0xff]  }
  0xfc   :  { %v4868_v12 = vpack.c.bf16 %v2675_v10, %v2674_v3  ;;  %v2803_v13 = vsel %vm2291_vm4, %v5910_v2, %v2547_v7  ;;  %v2800_v21 = vsel %vm2288_vm5, %v1649_v61, %v2544_v4  ;;  %v6179_v62 = vld [vmem:[%s7038_s0 + $0x1e0] sm:$0xff]  }
  0xfd   :  { %v5188_v16 = vpack.c.bf16 %v2803_v13, %v2802_v6  ;;  %v2673_v17 = vsel %vm2161_vm6, %v1140_v8, %v2417_v11  ;;  %v5785_v18 = vpop.f32.mrb[4].mxu0  ;;  %v5913_v19 = vpop.f32.mrb[4].mxu1  ;;  %v2801_v23 = vsel %vm2289_vm7, %v1652_v9, %v2545_v14  ;;  %v6180_v63 = vld [vmem:[%s7038_s0 + $0x3e0] sm:$0xff]  }
  0xfe   :  { %5500 = vst [vmem:[%s7039_s2 + $0x8] sm:$0xff] %v4868_v12   ;;  %v4863_v22 = vpack.c.bf16 %v2673_v17, %v2672_v15  ;;  %v2422_v24 = vmul.f32 0.2, %v5785_v18  ;;  %v1153_v25 = vpop.f32.mrb[5].mxu0  ;;  %v1665_v26 = vpop.f32.mrb[5].mxu1  ;;  %v5183_v29 = vpack.c.bf16 %v2801_v23, %v2800_v21  ;;  %vm2166_vm8 = vcmp.gt.f32.partialorder %v5785_v18, 0.0 }
  0xff   :  { %5564 = vst [vmem:[%s7039_s2 + $0x208] sm:$0xff] %v5188_v16   ;;  %v2550_v30 = vmul.f32 0.2, %v5913_v19  ;;  %v5786_v31 = vpop.f32.mrb[6].mxu0  ;;  %v5914_v32 = vpop.f32.mrb[6].mxu1  ;;  %vm2294_vm9 = vcmp.gt.f32.partialorder %v5913_v19, 0.0 }
 0x100   :  { %4864 = vst [vmem:[%s7039_s2] sm:$0xff] %v4863_v22   ;;  %v2420_v34 = vmul.f32 0.2, %v1153_v25  ;;  %v2548_v35 = vmul.f32 0.2, %v1665_v26  ;;  %v1156_v36 = vpop.f32.mrb[7].mxu0  ;;  %5563 = vst [vmem:[%s7039_s2 + $0x200] sm:$0xff] %v5183_v29   ;;  %v2678_v39 = vsel %vm2166_vm8, %v5785_v18, %v2422_v24 }
 0x101   :  { %vm2164_vm10 = vcmp.gt.f32.partialorder %v1153_v25, 0.0  ;;  %vm2167_vm11 = vcmp.gt.f32.partialorder %v5786_v31, 0.0  ;;  %v2423_v37 = vmul.f32 0.2, %v5786_v31  ;;  %vm2295_vm12 = vcmp.gt.f32.partialorder %v5914_v32, 0.0  ;;  %v1668_v38 = vpop.f32.mrb[7].mxu1 }
 0x102   :  { %vm2292_vm13 = vcmp.gt.f32.partialorder %v1665_v26, 0.0  ;;  %v2551_v40 = vmul.f32 0.2, %v5914_v32  ;;  %vm2165_vm14 = vcmp.gt.f32.partialorder %v1156_v36, 0.0  ;;  %5892 = vmatmul.mubr.bf16.gmra.mrb[112].mxu0 %v6173_v20  ;;  %6020 = vmatmul.mubr.bf16.gmra.mrb[112].mxu1 %v6174_v27  ;;  %v2421_v42 = vmul.f32 0.2, %v1156_v36 }
 0x103   :  { %v2679_v41 = vsel %vm2167_vm11, %v5786_v31, %v2423_v37  ;;  %vm2293_vm15 = vcmp.gt.f32.partialorder %v1668_v38, 0.0  ;;  %v2549_v43 = vmul.f32 0.2, %v1668_v38  ;;  %5895 = vmatprep.mubr.bf16.mxu0 %v6175_v28  ;;  %6023 = vmatprep.mubr.bf16.mxu1 %v6176_v33  ;;  %v2806_v44 = vsel %vm2294_vm9, %v5913_v19, %v2550_v30  ;;  %v6181_v22 = vld [vmem:[%s7038_s0 + $0x1e8] sm:$0xff]   ;;  %v6183_v30 = vld [vmem:[%s7038_s0 + $0x1f0] sm:$0xff]  }
 0x104   :  { %v2676_v45 = vsel %vm2164_vm10, %v1153_v25, %v2420_v34  ;;  %v4878_v46 = vpack.c.bf16 %v2679_v41, %v2678_v39  ;;  %v2807_v47 = vsel %vm2295_vm12, %v5914_v32, %v2551_v40  ;;  %v2804_v48 = vsel %vm2292_vm13, %v1665_v26, %v2548_v35  ;;  %v6182_v28 = vld [vmem:[%s7038_s0 + $0x3e8] sm:$0xff]   ;;  %v6184_v31 = vld [vmem:[%s7038_s0 + $0x3f0] sm:$0xff]  }
 0x105   :  { %v5198_v49 = vpack.c.bf16 %v2807_v47, %v2806_v44  ;;  %v2677_v50 = vsel %vm2165_vm14, %v1156_v36, %v2421_v42  ;;  %v2805_v51 = vsel %vm2293_vm15, %v1668_v38, %v2549_v43  ;;  %v5789_v52 = vpop.f32.mrb[8].mxu0  ;;  %v5917_v53 = vpop.f32.mrb[8].mxu1 }
 0x106   :  { %5502 = vst [vmem:[%s7039_s2 + $0x18] sm:$0xff] %v4878_v46   ;;  %v4873_v55 = vpack.c.bf16 %v2677_v50, %v2676_v45  ;;  %v5193_v56 = vpack.c.bf16 %v2805_v51, %v2804_v48  ;;  %vm2170_vm0 = vcmp.gt.f32.partialorder %v5789_v52, 0.0  ;;  %v2426_v57 = vmul.f32 0.2, %v5789_v52  ;;  %v1169_v58 = vpop.f32.mrb[9].mxu0  ;;  %v1681_v59 = vpop.f32.mrb[9].mxu1 }
 0x107   :  { %5566 = vst [vmem:[%s7039_s2 + $0x218] sm:$0xff] %v5198_v49   ;;  %vm2298_vm1 = vcmp.gt.f32.partialorder %v5917_v53, 0.0  ;;  %v2554_v61 = vmul.f32 0.2, %v5917_v53  ;;  %v2424_v0 = vmul.f32 0.2, %v1169_v58 }
 0x108   :  { %5501 = vst [vmem:[%s7039_s2 + $0x10] sm:$0xff] %v4873_v55   ;;  %5565 = vst [vmem:[%s7039_s2 + $0x210] sm:$0xff] %v5193_v56   ;;  %v2552_v1 = vmul.f32 0.2, %v1681_v59  ;;  %v5790_v2 = vpop.f32.mrb[10].mxu0  ;;  %v5918_v3 = vpop.f32.mrb[10].mxu1  ;;  %v2682_v4 = vsel %vm2170_vm0, %v5789_v52, %v2426_v57 }
 0x109   :  { %vm2168_vm2 = vcmp.gt.f32.partialorder %v1169_v58, 0.0  ;;  %vm2171_vm3 = vcmp.gt.f32.partialorder %v5790_v2, 0.0  ;;  %v2427_v5 = vmul.f32 0.2, %v5790_v2  ;;  %v1172_v6 = vpop.f32.mrb[11].mxu0  ;;  %v1684_v7 = vpop.f32.mrb[11].mxu1  ;;  %v2810_v12 = vsel %vm2298_vm1, %v5917_v53, %v2554_v61 }
 0x10a   :  { %vm2296_vm4 = vcmp.gt.f32.partialorder %v1681_v59, 0.0  ;;  %vm2299_vm5 = vcmp.gt.f32.partialorder %v5918_v3, 0.0  ;;  %v2555_v8 = vmul.f32 0.2, %v5918_v3  ;;  %vm2169_vm6 = vcmp.gt.f32.partialorder %v1172_v6, 0.0  ;;  %5896 = vmatmul.mubr.bf16.gmra.mrb[116].mxu0 %v6177_v54  ;;  %6024 = vmatmul.mubr.bf16.gmra.mrb[116].mxu1 %v6178_v60  ;;  %v6185_v54 = vld [vmem:[%s7038_s0 + $0x1f8] sm:$0xff]  }
 0x10b   :  { %v2683_v9 = vsel %vm2171_vm3, %v5790_v2, %v2427_v5  ;;  %v2425_v10 = vmul.f32 0.2, %v1172_v6  ;;  %vm2297_vm7 = vcmp.gt.f32.partialorder %v1684_v7, 0.0  ;;  %v2553_v11 = vmul.f32 0.2, %v1684_v7  ;;  %5899 = vmatprep.mubr.bf16.mxu0 %v6179_v62  ;;  %6027 = vmatprep.mubr.bf16.mxu1 %v6180_v63  ;;  %v6186_v60 = vld [vmem:[%s7038_s0 + $0x3f8] sm:$0xff]  }
 0x10c   :  { %v2680_v13 = vsel %vm2168_vm2, %v1169_v58, %v2424_v0  ;;  %v4888_v14 = vpack.c.bf16 %v2683_v9, %v2682_v4  ;;  %v2811_v15 = vsel %vm2299_vm5, %v5918_v3, %v2555_v8  ;;  %v2808_v16 = vsel %vm2296_vm4, %v1681_v59, %v2552_v1 }
 0x10d   :  { %v5208_v17 = vpack.c.bf16 %v2811_v15, %v2810_v12  ;;  %v2681_v18 = vsel %vm2169_vm6, %v1172_v6, %v2425_v10  ;;  %v2809_v19 = vsel %vm2297_vm7, %v1684_v7, %v2553_v11  ;;  %v5793_v20 = vpop.f32.mrb[12].mxu0  ;;  %v5921_v21 = vpop.f32.mrb[12].mxu1 }
 0x10e   :  { %5504 = vst [vmem:[%s7039_s2 + $0x28] sm:$0xff] %v4888_v14   ;;  %v4883_v23 = vpack.c.bf16 %v2681_v18, %v2680_v13  ;;  %v5203_v24 = vpack.c.bf16 %v2809_v19, %v2808_v16  ;;  %vm2174_vm8 = vcmp.gt.f32.partialorder %v5793_v20, 0.0  ;;  %v2430_v25 = vmul.f32 0.2, %v5793_v20  ;;  %v1185_v26 = vpop.f32.mrb[13].mxu0  ;;  %v1697_v27 = vpop.f32.mrb[13].mxu1 }
 0x10f   :  { %5568 = vst [vmem:[%s7039_s2 + $0x228] sm:$0xff] %v5208_v17   ;;  %vm2302_vm9 = vcmp.gt.f32.partialorder %v5921_v21, 0.0  ;;  %v2558_v29 = vmul.f32 0.2, %v5921_v21  ;;  %v2428_v32 = vmul.f32 0.2, %v1185_v26 }
 0x110   :  { %5503 = vst [vmem:[%s7039_s2 + $0x20] sm:$0xff] %v4883_v23   ;;  %5567 = vst [vmem:[%s7039_s2 + $0x220] sm:$0xff] %v5203_v24   ;;  %v2556_v33 = vmul.f32 0.2, %v1697_v27  ;;  %v5794_v34 = vpop.f32.mrb[14].mxu0  ;;  %v5922_v35 = vpop.f32.mrb[14].mxu1  ;;  %v2686_v36 = vsel %vm2174_vm8, %v5793_v20, %v2430_v25 }
 0x111   :  { %vm2172_vm10 = vcmp.gt.f32.partialorder %v1185_v26, 0.0  ;;  %vm2175_vm11 = vcmp.gt.f32.partialorder %v5794_v34, 0.0  ;;  %v2431_v37 = vmul.f32 0.2, %v5794_v34  ;;  %v1188_v38 = vpop.f32.mrb[15].mxu0  ;;  %v1700_v39 = vpop.f32.mrb[15].mxu1  ;;  %v2814_v44 = vsel %vm2302_vm9, %v5921_v21, %v2558_v29 }
 0x112   :  { %vm2300_vm12 = vcmp.gt.f32.partialorder %v1697_v27, 0.0  ;;  %vm2303_vm13 = vcmp.gt.f32.partialorder %v5922_v35, 0.0  ;;  %v2559_v40 = vmul.f32 0.2, %v5922_v35  ;;  %vm2173_vm14 = vcmp.gt.f32.partialorder %v1188_v38, 0.0  ;;  %5900 = vmatmul.mubr.bf16.gmra.mrb[120].mxu0 %v6181_v22  ;;  %6028 = vmatmul.mubr.bf16.gmra.mrb[120].mxu1 %v6182_v28 }
 0x113   :  { %v2687_v41 = vsel %vm2175_vm11, %v5794_v34, %v2431_v37  ;;  %v2429_v42 = vmul.f32 0.2, %v1188_v38  ;;  %vm2301_vm15 = vcmp.gt.f32.partialorder %v1700_v39, 0.0  ;;  %v2557_v43 = vmul.f32 0.2, %v1700_v39  ;;  %5903 = vmatprep.mubr.bf16.mxu0 %v6183_v30  ;;  %6031 = vmatprep.mubr.bf16.mxu1 %v6184_v31 }
 0x114   :  { %v2684_v45 = vsel %vm2172_vm10, %v1185_v26, %v2428_v32  ;;  %v4898_v46 = vpack.c.bf16 %v2687_v41, %v2686_v36  ;;  %v2815_v47 = vsel %vm2303_vm13, %v5922_v35, %v2559_v40  ;;  %v2812_v48 = vsel %vm2300_vm12, %v1697_v27, %v2556_v33 }
 0x115   :  { %v5218_v49 = vpack.c.bf16 %v2815_v47, %v2814_v44  ;;  %v2685_v50 = vsel %vm2173_vm14, %v1188_v38, %v2429_v42  ;;  %v2813_v51 = vsel %vm2301_vm15, %v1700_v39, %v2557_v43  ;;  %v5797_v52 = vpop.f32.mrb[16].mxu0  ;;  %v5925_v53 = vpop.f32.mrb[16].mxu1 }
 0x116   :  { %5506 = vst [vmem:[%s7039_s2 + $0x38] sm:$0xff] %v4898_v46   ;;  %v4893_v55 = vpack.c.bf16 %v2685_v50, %v2684_v45  ;;  %v5213_v56 = vpack.c.bf16 %v2813_v51, %v2812_v48  ;;  %vm2178_vm0 = vcmp.gt.f32.partialorder %v5797_v52, 0.0  ;;  %v2434_v57 = vmul.f32 0.2, %v5797_v52  ;;  %v1201_v58 = vpop.f32.mrb[17].mxu0  ;;  %v1713_v59 = vpop.f32.mrb[17].mxu1 }
 0x117   :  { %5570 = vst [vmem:[%s7039_s2 + $0x238] sm:$0xff] %v5218_v49   ;;  %vm2306_vm1 = vcmp.gt.f32.partialorder %v5925_v53, 0.0  ;;  %v2562_v61 = vmul.f32 0.2, %v5925_v53  ;;  %v2432_v62 = vmul.f32 0.2, %v1201_v58 }
 0x118   :  { %5505 = vst [vmem:[%s7039_s2 + $0x30] sm:$0xff] %v4893_v55   ;;  %5569 = vst [vmem:[%s7039_s2 + $0x230] sm:$0xff] %v5213_v56   ;;  %v2560_v63 = vmul.f32 0.2, %v1713_v59  ;;  %v5798_v0 = vpop.f32.mrb[18].mxu0  ;;  %v5926_v1 = vpop.f32.mrb[18].mxu1  ;;  %v2690_v2 = vsel %vm2178_vm0, %v5797_v52, %v2434_v57 }
 0x119   :  { %vm2176_vm2 = vcmp.gt.f32.partialorder %v1201_v58, 0.0  ;;  %vm2179_vm3 = vcmp.gt.f32.partialorder %v5798_v0, 0.0  ;;  %v2435_v3 = vmul.f32 0.2, %v5798_v0  ;;  %v1204_v4 = vpop.f32.mrb[19].mxu0  ;;  %v1716_v5 = vpop.f32.mrb[19].mxu1  ;;  %v2818_v10 = vsel %vm2306_vm1, %v5925_v53, %v2562_v61 }
 0x11a   :  { %vm2304_vm4 = vcmp.gt.f32.partialorder %v1713_v59, 0.0  ;;  %vm2307_vm5 = vcmp.gt.f32.partialorder %v5926_v1, 0.0  ;;  %v2563_v6 = vmul.f32 0.2, %v5926_v1  ;;  %vm2177_vm6 = vcmp.gt.f32.partialorder %v1204_v4, 0.0  ;;  %5904 = vmatmul.mubr.bf16.gmra.mrb[124].mxu0 %v6185_v54  ;;  %6032 = vmatmul.mubr.bf16.gmra.mrb[124].mxu1 %v6186_v60 }
 0x11b   :  { %v2691_v7 = vsel %vm2179_vm3, %v5798_v0, %v2435_v3  ;;  %v2433_v8 = vmul.f32 0.2, %v1204_v4  ;;  %vm2305_vm7 = vcmp.gt.f32.partialorder %v1716_v5, 0.0  ;;  %v2561_v9 = vmul.f32 0.2, %v1716_v5 }
 0x11c   :  { %v2688_v11 = vsel %vm2176_vm2, %v1201_v58, %v2432_v62  ;;  %v4908_v12 = vpack.c.bf16 %v2691_v7, %v2690_v2  ;;  %v2819_v13 = vsel %vm2307_vm5, %v5926_v1, %v2563_v6  ;;  %v2816_v14 = vsel %vm2304_vm4, %v1713_v59, %v2560_v63 }
 0x11d   :  { %v5228_v15 = vpack.c.bf16 %v2819_v13, %v2818_v10  ;;  %v2689_v16 = vsel %vm2177_vm6, %v1204_v4, %v2433_v8  ;;  %v2817_v17 = vsel %vm2305_vm7, %v1716_v5, %v2561_v9  ;;  %v5801_v18 = vpop.f32.mrb[20].mxu0  ;;  %v5929_v19 = vpop.f32.mrb[20].mxu1 }
 0x11e   :  { %5508 = vst [vmem:[%s7039_s2 + $0x48] sm:$0xff] %v4908_v12   ;;  %v4903_v20 = vpack.c.bf16 %v2689_v16, %v2688_v11  ;;  %v5223_v21 = vpack.c.bf16 %v2817_v17, %v2816_v14  ;;  %vm2182_vm8 = vcmp.gt.f32.partialorder %v5801_v18, 0.0  ;;  %v2438_v22 = vmul.f32 0.2, %v5801_v18  ;;  %v1217_v23 = vpop.f32.mrb[21].mxu0  ;;  %v1729_v24 = vpop.f32.mrb[21].mxu1 }
 0x11f   :  { %5572 = vst [vmem:[%s7039_s2 + $0x248] sm:$0xff] %v5228_v15   ;;  %vm2310_vm9 = vcmp.gt.f32.partialorder %v5929_v19, 0.0  ;;  %v2566_v25 = vmul.f32 0.2, %v5929_v19  ;;  %v2436_v26 = vmul.f32 0.2, %v1217_v23 }
 0x120   :  { %5507 = vst [vmem:[%s7039_s2 + $0x40] sm:$0xff] %v4903_v20   ;;  %5571 = vst [vmem:[%s7039_s2 + $0x240] sm:$0xff] %v5223_v21   ;;  %v2564_v27 = vmul.f32 0.2, %v1729_v24  ;;  %v5802_v28 = vpop.f32.mrb[22].mxu0  ;;  %v5930_v29 = vpop.f32.mrb[22].mxu1  ;;  %v2694_v30 = vsel %vm2182_vm8, %v5801_v18, %v2438_v22 }
 0x121   :  { %vm2180_vm10 = vcmp.gt.f32.partialorder %v1217_v23, 0.0  ;;  %vm2183_vm11 = vcmp.gt.f32.partialorder %v5802_v28, 0.0  ;;  %v2439_v31 = vmul.f32 0.2, %v5802_v28  ;;  %v1220_v32 = vpop.f32.mrb[23].mxu0  ;;  %v1732_v33 = vpop.f32.mrb[23].mxu1  ;;  %v2822_v38 = vsel %vm2310_vm9, %v5929_v19, %v2566_v25 }
 0x122   :  { %vm2308_vm12 = vcmp.gt.f32.partialorder %v1729_v24, 0.0  ;;  %vm2311_vm13 = vcmp.gt.f32.partialorder %v5930_v29, 0.0  ;;  %v2567_v34 = vmul.f32 0.2, %v5930_v29  ;;  %vm2181_vm14 = vcmp.gt.f32.partialorder %v1220_v32, 0.0 }
 0x123   :  { %v2695_v35 = vsel %vm2183_vm11, %v5802_v28, %v2439_v31  ;;  %v2437_v36 = vmul.f32 0.2, %v1220_v32  ;;  %vm2309_vm15 = vcmp.gt.f32.partialorder %v1732_v33, 0.0  ;;  %v2565_v37 = vmul.f32 0.2, %v1732_v33 }
 0x124   :  { %v2692_v39 = vsel %vm2180_vm10, %v1217_v23, %v2436_v26  ;;  %v4918_v40 = vpack.c.bf16 %v2695_v35, %v2694_v30  ;;  %v2823_v41 = vsel %vm2311_vm13, %v5930_v29, %v2567_v34  ;;  %v2820_v42 = vsel %vm2308_vm12, %v1729_v24, %v2564_v27 }
 0x125   :  { %v5238_v43 = vpack.c.bf16 %v2823_v41, %v2822_v38  ;;  %v2693_v44 = vsel %vm2181_vm14, %v1220_v32, %v2437_v36  ;;  %v2821_v45 = vsel %vm2309_vm15, %v1732_v33, %v2565_v37  ;;  %v5805_v46 = vpop.f32.mrb[24].mxu0  ;;  %v5933_v47 = vpop.f32.mrb[24].mxu1 }
 0x126   :  { %5510 = vst [vmem:[%s7039_s2 + $0x58] sm:$0xff] %v4918_v40   ;;  %v4913_v48 = vpack.c.bf16 %v2693_v44, %v2692_v39  ;;  %v5233_v49 = vpack.c.bf16 %v2821_v45, %v2820_v42  ;;  %vm2186_vm0 = vcmp.gt.f32.partialorder %v5805_v46, 0.0  ;;  %v2442_v50 = vmul.f32 0.2, %v5805_v46  ;;  %v1233_v51 = vpop.f32.mrb[25].mxu0  ;;  %v1745_v52 = vpop.f32.mrb[25].mxu1 }
 0x127   :  { %5574 = vst [vmem:[%s7039_s2 + $0x258] sm:$0xff] %v5238_v43   ;;  %vm2314_vm1 = vcmp.gt.f32.partialorder %v5933_v47, 0.0  ;;  %v2570_v53 = vmul.f32 0.2, %v5933_v47  ;;  %v2440_v54 = vmul.f32 0.2, %v1233_v51 }
 0x128   :  { %5509 = vst [vmem:[%s7039_s2 + $0x50] sm:$0xff] %v4913_v48   ;;  %5573 = vst [vmem:[%s7039_s2 + $0x250] sm:$0xff] %v5233_v49   ;;  %v2568_v55 = vmul.f32 0.2, %v1745_v52  ;;  %v5806_v56 = vpop.f32.mrb[26].mxu0  ;;  %v5934_v57 = vpop.f32.mrb[26].mxu1  ;;  %v2698_v58 = vsel %vm2186_vm0, %v5805_v46, %v2442_v50 }
 0x129   :  { %vm2184_vm2 = vcmp.gt.f32.partialorder %v1233_v51, 0.0  ;;  %vm2187_vm3 = vcmp.gt.f32.partialorder %v5806_v56, 0.0  ;;  %v2443_v59 = vmul.f32 0.2, %v5806_v56  ;;  %v1236_v60 = vpop.f32.mrb[27].mxu0  ;;  %v1748_v61 = vpop.f32.mrb[27].mxu1  ;;  %v2826_v2 = vsel %vm2314_vm1, %v5933_v47, %v2570_v53 }
 0x12a   :  { %vm2312_vm4 = vcmp.gt.f32.partialorder %v1745_v52, 0.0  ;;  %vm2315_vm5 = vcmp.gt.f32.partialorder %v5934_v57, 0.0  ;;  %v2571_v62 = vmul.f32 0.2, %v5934_v57  ;;  %vm2185_vm6 = vcmp.gt.f32.partialorder %v1236_v60, 0.0 }
 0x12b   :  { %v2699_v63 = vsel %vm2187_vm3, %v5806_v56, %v2443_v59  ;;  %v2441_v0 = vmul.f32 0.2, %v1236_v60  ;;  %vm2313_vm7 = vcmp.gt.f32.partialorder %v1748_v61, 0.0  ;;  %v2569_v1 = vmul.f32 0.2, %v1748_v61 }
 0x12c   :  { %v2696_v3 = vsel %vm2184_vm2, %v1233_v51, %v2440_v54  ;;  %v4928_v4 = vpack.c.bf16 %v2699_v63, %v2698_v58  ;;  %v2827_v5 = vsel %vm2315_vm5, %v5934_v57, %v2571_v62  ;;  %v2824_v6 = vsel %vm2312_vm4, %v1745_v52, %v2568_v55 }
 0x12d   :  { %v5248_v7 = vpack.c.bf16 %v2827_v5, %v2826_v2  ;;  %v2697_v8 = vsel %vm2185_vm6, %v1236_v60, %v2441_v0  ;;  %v2825_v9 = vsel %vm2313_vm7, %v1748_v61, %v2569_v1  ;;  %v5809_v10 = vpop.f32.mrb[28].mxu0  ;;  %v5937_v11 = vpop.f32.mrb[28].mxu1 }
 0x12e   :  { %5512 = vst [vmem:[%s7039_s2 + $0x68] sm:$0xff] %v4928_v4   ;;  %v4923_v12 = vpack.c.bf16 %v2697_v8, %v2696_v3  ;;  %v5243_v13 = vpack.c.bf16 %v2825_v9, %v2824_v6  ;;  %vm2190_vm8 = vcmp.gt.f32.partialorder %v5809_v10, 0.0  ;;  %v2446_v14 = vmul.f32 0.2, %v5809_v10  ;;  %v1249_v15 = vpop.f32.mrb[29].mxu0  ;;  %v1761_v16 = vpop.f32.mrb[29].mxu1 }
 0x12f   :  { %5576 = vst [vmem:[%s7039_s2 + $0x268] sm:$0xff] %v5248_v7   ;;  %vm2318_vm9 = vcmp.gt.f32.partialorder %v5937_v11, 0.0  ;;  %v2574_v17 = vmul.f32 0.2, %v5937_v11  ;;  %v2444_v18 = vmul.f32 0.2, %v1249_v15 }
 0x130   :  { %5511 = vst [vmem:[%s7039_s2 + $0x60] sm:$0xff] %v4923_v12   ;;  %5575 = vst [vmem:[%s7039_s2 + $0x260] sm:$0xff] %v5243_v13   ;;  %v2572_v19 = vmul.f32 0.2, %v1761_v16  ;;  %v5810_v20 = vpop.f32.mrb[30].mxu0  ;;  %v5938_v21 = vpop.f32.mrb[30].mxu1  ;;  %v2702_v22 = vsel %vm2190_vm8, %v5809_v10, %v2446_v14 }
 0x131   :  { %vm2188_vm10 = vcmp.gt.f32.partialorder %v1249_v15, 0.0  ;;  %vm2191_vm11 = vcmp.gt.f32.partialorder %v5810_v20, 0.0  ;;  %v2447_v23 = vmul.f32 0.2, %v5810_v20  ;;  %v1252_v24 = vpop.f32.mrb[31].mxu0  ;;  %v1764_v25 = vpop.f32.mrb[31].mxu1  ;;  %v2830_v30 = vsel %vm2318_vm9, %v5937_v11, %v2574_v17 }
 0x132   :  { %vm2316_vm12 = vcmp.gt.f32.partialorder %v1761_v16, 0.0  ;;  %vm2319_vm13 = vcmp.gt.f32.partialorder %v5938_v21, 0.0  ;;  %v2575_v26 = vmul.f32 0.2, %v5938_v21  ;;  %vm2189_vm14 = vcmp.gt.f32.partialorder %v1252_v24, 0.0 }
 0x133   :  { %v2703_v27 = vsel %vm2191_vm11, %v5810_v20, %v2447_v23  ;;  %v2445_v28 = vmul.f32 0.2, %v1252_v24  ;;  %vm2317_vm15 = vcmp.gt.f32.partialorder %v1764_v25, 0.0  ;;  %v2573_v29 = vmul.f32 0.2, %v1764_v25 }
 0x134   :  { %v2700_v31 = vsel %vm2188_vm10, %v1249_v15, %v2444_v18  ;;  %v4938_v32 = vpack.c.bf16 %v2703_v27, %v2702_v22  ;;  %v2831_v33 = vsel %vm2319_vm13, %v5938_v21, %v2575_v26  ;;  %v2828_v34 = vsel %vm2316_vm12, %v1761_v16, %v2572_v19 }
 0x135   :  { %v5258_v35 = vpack.c.bf16 %v2831_v33, %v2830_v30  ;;  %v2701_v36 = vsel %vm2189_vm14, %v1252_v24, %v2445_v28  ;;  %v2829_v37 = vsel %vm2317_vm15, %v1764_v25, %v2573_v29  ;;  %v5813_v38 = vpop.f32.mrb[32].mxu0  ;;  %v5941_v39 = vpop.f32.mrb[32].mxu1 }
 0x136   :  { %5514 = vst [vmem:[%s7039_s2 + $0x78] sm:$0xff] %v4938_v32   ;;  %v4933_v40 = vpack.c.bf16 %v2701_v36, %v2700_v31  ;;  %v5253_v41 = vpack.c.bf16 %v2829_v37, %v2828_v34  ;;  %vm2194_vm0 = vcmp.gt.f32.partialorder %v5813_v38, 0.0  ;;  %v2450_v42 = vmul.f32 0.2, %v5813_v38  ;;  %v1265_v43 = vpop.f32.mrb[33].mxu0  ;;  %v1777_v44 = vpop.f32.mrb[33].mxu1 }
 0x137   :  { %5578 = vst [vmem:[%s7039_s2 + $0x278] sm:$0xff] %v5258_v35   ;;  %vm2322_vm1 = vcmp.gt.f32.partialorder %v5941_v39, 0.0  ;;  %v2578_v45 = vmul.f32 0.2, %v5941_v39  ;;  %v2448_v46 = vmul.f32 0.2, %v1265_v43 }
 0x138   :  { %5513 = vst [vmem:[%s7039_s2 + $0x70] sm:$0xff] %v4933_v40   ;;  %5577 = vst [vmem:[%s7039_s2 + $0x270] sm:$0xff] %v5253_v41   ;;  %v2576_v47 = vmul.f32 0.2, %v1777_v44  ;;  %v5814_v48 = vpop.f32.mrb[34].mxu0  ;;  %v5942_v49 = vpop.f32.mrb[34].mxu1  ;;  %v2706_v50 = vsel %vm2194_vm0, %v5813_v38, %v2450_v42 }
 0x139   :  { %vm2192_vm2 = vcmp.gt.f32.partialorder %v1265_v43, 0.0  ;;  %vm2195_vm3 = vcmp.gt.f32.partialorder %v5814_v48, 0.0  ;;  %v2451_v51 = vmul.f32 0.2, %v5814_v48  ;;  %v1268_v52 = vpop.f32.mrb[35].mxu0  ;;  %v1780_v53 = vpop.f32.mrb[35].mxu1  ;;  %v2834_v58 = vsel %vm2322_vm1, %v5941_v39, %v2578_v45 }
 0x13a   :  { %vm2320_vm4 = vcmp.gt.f32.partialorder %v1777_v44, 0.0  ;;  %vm2323_vm5 = vcmp.gt.f32.partialorder %v5942_v49, 0.0  ;;  %v2579_v54 = vmul.f32 0.2, %v5942_v49  ;;  %vm2193_vm6 = vcmp.gt.f32.partialorder %v1268_v52, 0.0 }
 0x13b   :  { %v2707_v55 = vsel %vm2195_vm3, %v5814_v48, %v2451_v51  ;;  %v2449_v56 = vmul.f32 0.2, %v1268_v52  ;;  %vm2321_vm7 = vcmp.gt.f32.partialorder %v1780_v53, 0.0  ;;  %v2577_v57 = vmul.f32 0.2, %v1780_v53 }
 0x13c   :  { %v2704_v59 = vsel %vm2192_vm2, %v1265_v43, %v2448_v46  ;;  %v4948_v60 = vpack.c.bf16 %v2707_v55, %v2706_v50  ;;  %v2835_v61 = vsel %vm2323_vm5, %v5942_v49, %v2579_v54  ;;  %v2832_v62 = vsel %vm2320_vm4, %v1777_v44, %v2576_v47 }
 0x13d   :  { %v5268_v63 = vpack.c.bf16 %v2835_v61, %v2834_v58  ;;  %v2705_v0 = vsel %vm2193_vm6, %v1268_v52, %v2449_v56  ;;  %v2833_v1 = vsel %vm2321_vm7, %v1780_v53, %v2577_v57  ;;  %v5817_v2 = vpop.f32.mrb[36].mxu0  ;;  %v5945_v3 = vpop.f32.mrb[36].mxu1 }
 0x13e   :  { %5516 = vst [vmem:[%s7039_s2 + $0x88] sm:$0xff] %v4948_v60   ;;  %v4943_v4 = vpack.c.bf16 %v2705_v0, %v2704_v59  ;;  %v5263_v5 = vpack.c.bf16 %v2833_v1, %v2832_v62  ;;  %vm2198_vm8 = vcmp.gt.f32.partialorder %v5817_v2, 0.0  ;;  %v2454_v6 = vmul.f32 0.2, %v5817_v2  ;;  %v1281_v7 = vpop.f32.mrb[37].mxu0  ;;  %v1793_v8 = vpop.f32.mrb[37].mxu1 }
 0x13f   :  { %5580 = vst [vmem:[%s7039_s2 + $0x288] sm:$0xff] %v5268_v63   ;;  %vm2326_vm9 = vcmp.gt.f32.partialorder %v5945_v3, 0.0  ;;  %v2582_v9 = vmul.f32 0.2, %v5945_v3  ;;  %v2452_v10 = vmul.f32 0.2, %v1281_v7 }
 0x140   :  { %5515 = vst [vmem:[%s7039_s2 + $0x80] sm:$0xff] %v4943_v4   ;;  %5579 = vst [vmem:[%s7039_s2 + $0x280] sm:$0xff] %v5263_v5   ;;  %v2580_v11 = vmul.f32 0.2, %v1793_v8  ;;  %v5818_v12 = vpop.f32.mrb[38].mxu0  ;;  %v5946_v13 = vpop.f32.mrb[38].mxu1  ;;  %v2710_v14 = vsel %vm2198_vm8, %v5817_v2, %v2454_v6 }
 0x141   :  { %vm2196_vm10 = vcmp.gt.f32.partialorder %v1281_v7, 0.0  ;;  %vm2199_vm11 = vcmp.gt.f32.partialorder %v5818_v12, 0.0  ;;  %v2455_v15 = vmul.f32 0.2, %v5818_v12  ;;  %v1284_v16 = vpop.f32.mrb[39].mxu0  ;;  %v1796_v17 = vpop.f32.mrb[39].mxu1  ;;  %v2838_v22 = vsel %vm2326_vm9, %v5945_v3, %v2582_v9 }
 0x142   :  { %vm2324_vm12 = vcmp.gt.f32.partialorder %v1793_v8, 0.0  ;;  %vm2327_vm13 = vcmp.gt.f32.partialorder %v5946_v13, 0.0  ;;  %v2583_v18 = vmul.f32 0.2, %v5946_v13  ;;  %vm2197_vm14 = vcmp.gt.f32.partialorder %v1284_v16, 0.0 }
 0x143   :  { %v2711_v19 = vsel %vm2199_vm11, %v5818_v12, %v2455_v15  ;;  %v2453_v20 = vmul.f32 0.2, %v1284_v16  ;;  %vm2325_vm15 = vcmp.gt.f32.partialorder %v1796_v17, 0.0  ;;  %v2581_v21 = vmul.f32 0.2, %v1796_v17 }
 0x144   :  { %v2708_v23 = vsel %vm2196_vm10, %v1281_v7, %v2452_v10  ;;  %v4958_v24 = vpack.c.bf16 %v2711_v19, %v2710_v14  ;;  %v2839_v25 = vsel %vm2327_vm13, %v5946_v13, %v2583_v18  ;;  %v2836_v26 = vsel %vm2324_vm12, %v1793_v8, %v2580_v11 }
 0x145   :  { %v5278_v27 = vpack.c.bf16 %v2839_v25, %v2838_v22  ;;  %v2709_v28 = vsel %vm2197_vm14, %v1284_v16, %v2453_v20  ;;  %v2837_v29 = vsel %vm2325_vm15, %v1796_v17, %v2581_v21  ;;  %v5821_v30 = vpop.f32.mrb[40].mxu0  ;;  %v5949_v31 = vpop.f32.mrb[40].mxu1 }
 0x146   :  { %5518 = vst [vmem:[%s7039_s2 + $0x98] sm:$0xff] %v4958_v24   ;;  %v4953_v32 = vpack.c.bf16 %v2709_v28, %v2708_v23  ;;  %v5273_v33 = vpack.c.bf16 %v2837_v29, %v2836_v26  ;;  %vm2202_vm0 = vcmp.gt.f32.partialorder %v5821_v30, 0.0  ;;  %v2458_v34 = vmul.f32 0.2, %v5821_v30  ;;  %v1297_v35 = vpop.f32.mrb[41].mxu0  ;;  %v1809_v36 = vpop.f32.mrb[41].mxu1 }
 0x147   :  { %5582 = vst [vmem:[%s7039_s2 + $0x298] sm:$0xff] %v5278_v27   ;;  %vm2330_vm1 = vcmp.gt.f32.partialorder %v5949_v31, 0.0  ;;  %v2586_v37 = vmul.f32 0.2, %v5949_v31  ;;  %v2456_v38 = vmul.f32 0.2, %v1297_v35 }
 0x148   :  { %5517 = vst [vmem:[%s7039_s2 + $0x90] sm:$0xff] %v4953_v32   ;;  %5581 = vst [vmem:[%s7039_s2 + $0x290] sm:$0xff] %v5273_v33   ;;  %v2584_v39 = vmul.f32 0.2, %v1809_v36  ;;  %v5822_v40 = vpop.f32.mrb[42].mxu0  ;;  %v5950_v41 = vpop.f32.mrb[42].mxu1  ;;  %v2714_v42 = vsel %vm2202_vm0, %v5821_v30, %v2458_v34 }
 0x149   :  { %vm2200_vm2 = vcmp.gt.f32.partialorder %v1297_v35, 0.0  ;;  %vm2203_vm3 = vcmp.gt.f32.partialorder %v5822_v40, 0.0  ;;  %v2459_v43 = vmul.f32 0.2, %v5822_v40  ;;  %v1300_v44 = vpop.f32.mrb[43].mxu0  ;;  %v1812_v45 = vpop.f32.mrb[43].mxu1  ;;  %v2842_v50 = vsel %vm2330_vm1, %v5949_v31, %v2586_v37 }
 0x14a   :  { %vm2328_vm4 = vcmp.gt.f32.partialorder %v1809_v36, 0.0  ;;  %vm2331_vm5 = vcmp.gt.f32.partialorder %v5950_v41, 0.0  ;;  %v2587_v46 = vmul.f32 0.2, %v5950_v41  ;;  %vm2201_vm6 = vcmp.gt.f32.partialorder %v1300_v44, 0.0 }
 0x14b   :  { %v2715_v47 = vsel %vm2203_vm3, %v5822_v40, %v2459_v43  ;;  %v2457_v48 = vmul.f32 0.2, %v1300_v44  ;;  %vm2329_vm7 = vcmp.gt.f32.partialorder %v1812_v45, 0.0  ;;  %v2585_v49 = vmul.f32 0.2, %v1812_v45 }
 0x14c   :  { %v2712_v51 = vsel %vm2200_vm2, %v1297_v35, %v2456_v38  ;;  %v4968_v52 = vpack.c.bf16 %v2715_v47, %v2714_v42  ;;  %v2843_v53 = vsel %vm2331_vm5, %v5950_v41, %v2587_v46  ;;  %v2840_v54 = vsel %vm2328_vm4, %v1809_v36, %v2584_v39 }
 0x14d   :  { %v5288_v55 = vpack.c.bf16 %v2843_v53, %v2842_v50  ;;  %v2713_v56 = vsel %vm2201_vm6, %v1300_v44, %v2457_v48  ;;  %v2841_v57 = vsel %vm2329_vm7, %v1812_v45, %v2585_v49  ;;  %v5825_v58 = vpop.f32.mrb[44].mxu0  ;;  %v5953_v59 = vpop.f32.mrb[44].mxu1 }
 0x14e   :  { %5520 = vst [vmem:[%s7039_s2 + $0xa8] sm:$0xff] %v4968_v52   ;;  %v4963_v60 = vpack.c.bf16 %v2713_v56, %v2712_v51  ;;  %v5283_v61 = vpack.c.bf16 %v2841_v57, %v2840_v54  ;;  %vm2206_vm8 = vcmp.gt.f32.partialorder %v5825_v58, 0.0  ;;  %v2462_v62 = vmul.f32 0.2, %v5825_v58  ;;  %v1313_v63 = vpop.f32.mrb[45].mxu0  ;;  %v1825_v0 = vpop.f32.mrb[45].mxu1 }
 0x14f   :  { %5584 = vst [vmem:[%s7039_s2 + $0x2a8] sm:$0xff] %v5288_v55   ;;  %vm2334_vm9 = vcmp.gt.f32.partialorder %v5953_v59, 0.0  ;;  %v2590_v1 = vmul.f32 0.2, %v5953_v59  ;;  %v2460_v2 = vmul.f32 0.2, %v1313_v63 }
 0x150   :  { %5519 = vst [vmem:[%s7039_s2 + $0xa0] sm:$0xff] %v4963_v60   ;;  %5583 = vst [vmem:[%s7039_s2 + $0x2a0] sm:$0xff] %v5283_v61   ;;  %v2588_v3 = vmul.f32 0.2, %v1825_v0  ;;  %v5826_v4 = vpop.f32.mrb[46].mxu0  ;;  %v5954_v5 = vpop.f32.mrb[46].mxu1  ;;  %v2718_v6 = vsel %vm2206_vm8, %v5825_v58, %v2462_v62 }
 0x151   :  { %vm2204_vm10 = vcmp.gt.f32.partialorder %v1313_v63, 0.0  ;;  %vm2207_vm11 = vcmp.gt.f32.partialorder %v5826_v4, 0.0  ;;  %v2463_v7 = vmul.f32 0.2, %v5826_v4  ;;  %v1316_v8 = vpop.f32.mrb[47].mxu0  ;;  %v1828_v9 = vpop.f32.mrb[47].mxu1  ;;  %v2846_v14 = vsel %vm2334_vm9, %v5953_v59, %v2590_v1 }
 0x152   :  { %vm2332_vm12 = vcmp.gt.f32.partialorder %v1825_v0, 0.0  ;;  %vm2335_vm13 = vcmp.gt.f32.partialorder %v5954_v5, 0.0  ;;  %v2591_v10 = vmul.f32 0.2, %v5954_v5  ;;  %vm2205_vm14 = vcmp.gt.f32.partialorder %v1316_v8, 0.0 }
 0x153   :  { %v2719_v11 = vsel %vm2207_vm11, %v5826_v4, %v2463_v7  ;;  %v2461_v12 = vmul.f32 0.2, %v1316_v8  ;;  %vm2333_vm15 = vcmp.gt.f32.partialorder %v1828_v9, 0.0  ;;  %v2589_v13 = vmul.f32 0.2, %v1828_v9 }
 0x154   :  { %v2716_v15 = vsel %vm2204_vm10, %v1313_v63, %v2460_v2  ;;  %v4978_v16 = vpack.c.bf16 %v2719_v11, %v2718_v6  ;;  %v2847_v17 = vsel %vm2335_vm13, %v5954_v5, %v2591_v10  ;;  %v2844_v18 = vsel %vm2332_vm12, %v1825_v0, %v2588_v3 }
 0x155   :  { %v5298_v19 = vpack.c.bf16 %v2847_v17, %v2846_v14  ;;  %v2717_v20 = vsel %vm2205_vm14, %v1316_v8, %v2461_v12  ;;  %v2845_v21 = vsel %vm2333_vm15, %v1828_v9, %v2589_v13  ;;  %v5829_v22 = vpop.f32.mrb[48].mxu0  ;;  %v5957_v23 = vpop.f32.mrb[48].mxu1 }
 0x156   :  { %5522 = vst [vmem:[%s7039_s2 + $0xb8] sm:$0xff] %v4978_v16   ;;  %v4973_v24 = vpack.c.bf16 %v2717_v20, %v2716_v15  ;;  %v5293_v25 = vpack.c.bf16 %v2845_v21, %v2844_v18  ;;  %vm2210_vm0 = vcmp.gt.f32.partialorder %v5829_v22, 0.0  ;;  %v2466_v26 = vmul.f32 0.2, %v5829_v22  ;;  %v1329_v27 = vpop.f32.mrb[49].mxu0  ;;  %v1841_v28 = vpop.f32.mrb[49].mxu1 }
 0x157   :  { %5586 = vst [vmem:[%s7039_s2 + $0x2b8] sm:$0xff] %v5298_v19   ;;  %vm2338_vm1 = vcmp.gt.f32.partialorder %v5957_v23, 0.0  ;;  %v2594_v29 = vmul.f32 0.2, %v5957_v23  ;;  %v2464_v30 = vmul.f32 0.2, %v1329_v27 }
 0x158   :  { %5521 = vst [vmem:[%s7039_s2 + $0xb0] sm:$0xff] %v4973_v24   ;;  %5585 = vst [vmem:[%s7039_s2 + $0x2b0] sm:$0xff] %v5293_v25   ;;  %v2592_v31 = vmul.f32 0.2, %v1841_v28  ;;  %v5830_v32 = vpop.f32.mrb[50].mxu0  ;;  %v5958_v33 = vpop.f32.mrb[50].mxu1  ;;  %v2722_v34 = vsel %vm2210_vm0, %v5829_v22, %v2466_v26 }
 0x159   :  { %vm2208_vm2 = vcmp.gt.f32.partialorder %v1329_v27, 0.0  ;;  %vm2211_vm3 = vcmp.gt.f32.partialorder %v5830_v32, 0.0  ;;  %v2467_v35 = vmul.f32 0.2, %v5830_v32  ;;  %v1332_v36 = vpop.f32.mrb[51].mxu0  ;;  %v1844_v37 = vpop.f32.mrb[51].mxu1  ;;  %v2850_v42 = vsel %vm2338_vm1, %v5957_v23, %v2594_v29 }
 0x15a   :  { %vm2336_vm4 = vcmp.gt.f32.partialorder %v1841_v28, 0.0  ;;  %vm2339_vm5 = vcmp.gt.f32.partialorder %v5958_v33, 0.0  ;;  %v2595_v38 = vmul.f32 0.2, %v5958_v33  ;;  %vm2209_vm6 = vcmp.gt.f32.partialorder %v1332_v36, 0.0 }
 0x15b   :  { %v2723_v39 = vsel %vm2211_vm3, %v5830_v32, %v2467_v35  ;;  %v2465_v40 = vmul.f32 0.2, %v1332_v36  ;;  %vm2337_vm7 = vcmp.gt.f32.partialorder %v1844_v37, 0.0  ;;  %v2593_v41 = vmul.f32 0.2, %v1844_v37 }
 0x15c   :  { %v2720_v43 = vsel %vm2208_vm2, %v1329_v27, %v2464_v30  ;;  %v4988_v44 = vpack.c.bf16 %v2723_v39, %v2722_v34  ;;  %v2851_v45 = vsel %vm2339_vm5, %v5958_v33, %v2595_v38  ;;  %v2848_v46 = vsel %vm2336_vm4, %v1841_v28, %v2592_v31 }
 0x15d   :  { %v5308_v47 = vpack.c.bf16 %v2851_v45, %v2850_v42  ;;  %v2721_v48 = vsel %vm2209_vm6, %v1332_v36, %v2465_v40  ;;  %v2849_v49 = vsel %vm2337_vm7, %v1844_v37, %v2593_v41  ;;  %v5833_v50 = vpop.f32.mrb[52].mxu0  ;;  %v5961_v51 = vpop.f32.mrb[52].mxu1 }
 0x15e   :  { %5524 = vst [vmem:[%s7039_s2 + $0xc8] sm:$0xff] %v4988_v44   ;;  %v4983_v52 = vpack.c.bf16 %v2721_v48, %v2720_v43  ;;  %v5303_v53 = vpack.c.bf16 %v2849_v49, %v2848_v46  ;;  %vm2214_vm8 = vcmp.gt.f32.partialorder %v5833_v50, 0.0  ;;  %v2470_v54 = vmul.f32 0.2, %v5833_v50  ;;  %v1345_v55 = vpop.f32.mrb[53].mxu0  ;;  %v1857_v56 = vpop.f32.mrb[53].mxu1 }
 0x15f   :  { %5588 = vst [vmem:[%s7039_s2 + $0x2c8] sm:$0xff] %v5308_v47   ;;  %vm2342_vm9 = vcmp.gt.f32.partialorder %v5961_v51, 0.0  ;;  %v2598_v57 = vmul.f32 0.2, %v5961_v51  ;;  %v2468_v58 = vmul.f32 0.2, %v1345_v55 }
 0x160   :  { %5523 = vst [vmem:[%s7039_s2 + $0xc0] sm:$0xff] %v4983_v52   ;;  %5587 = vst [vmem:[%s7039_s2 + $0x2c0] sm:$0xff] %v5303_v53   ;;  %v2596_v59 = vmul.f32 0.2, %v1857_v56  ;;  %v5834_v60 = vpop.f32.mrb[54].mxu0  ;;  %v5962_v61 = vpop.f32.mrb[54].mxu1  ;;  %v2726_v62 = vsel %vm2214_vm8, %v5833_v50, %v2470_v54 }
 0x161   :  { %vm2212_vm10 = vcmp.gt.f32.partialorder %v1345_v55, 0.0  ;;  %vm2215_vm11 = vcmp.gt.f32.partialorder %v5834_v60, 0.0  ;;  %v2471_v63 = vmul.f32 0.2, %v5834_v60  ;;  %v1348_v0 = vpop.f32.mrb[55].mxu0  ;;  %v1860_v1 = vpop.f32.mrb[55].mxu1  ;;  %v2854_v6 = vsel %vm2342_vm9, %v5961_v51, %v2598_v57 }
 0x162   :  { %vm2340_vm12 = vcmp.gt.f32.partialorder %v1857_v56, 0.0  ;;  %vm2343_vm13 = vcmp.gt.f32.partialorder %v5962_v61, 0.0  ;;  %v2599_v2 = vmul.f32 0.2, %v5962_v61  ;;  %vm2213_vm14 = vcmp.gt.f32.partialorder %v1348_v0, 0.0 }
 0x163   :  { %v2727_v3 = vsel %vm2215_vm11, %v5834_v60, %v2471_v63  ;;  %v2469_v4 = vmul.f32 0.2, %v1348_v0  ;;  %vm2341_vm15 = vcmp.gt.f32.partialorder %v1860_v1, 0.0  ;;  %v2597_v5 = vmul.f32 0.2, %v1860_v1 }
 0x164   :  { %v2724_v7 = vsel %vm2212_vm10, %v1345_v55, %v2468_v58  ;;  %v4998_v8 = vpack.c.bf16 %v2727_v3, %v2726_v62  ;;  %v2855_v9 = vsel %vm2343_vm13, %v5962_v61, %v2599_v2  ;;  %v2852_v10 = vsel %vm2340_vm12, %v1857_v56, %v2596_v59 }
 0x165   :  { %v5318_v11 = vpack.c.bf16 %v2855_v9, %v2854_v6  ;;  %v2725_v12 = vsel %vm2213_vm14, %v1348_v0, %v2469_v4  ;;  %v2853_v13 = vsel %vm2341_vm15, %v1860_v1, %v2597_v5  ;;  %v5837_v14 = vpop.f32.mrb[56].mxu0  ;;  %v5965_v15 = vpop.f32.mrb[56].mxu1 }
 0x166   :  { %5526 = vst [vmem:[%s7039_s2 + $0xd8] sm:$0xff] %v4998_v8   ;;  %v4993_v16 = vpack.c.bf16 %v2725_v12, %v2724_v7  ;;  %v5313_v17 = vpack.c.bf16 %v2853_v13, %v2852_v10  ;;  %vm2218_vm0 = vcmp.gt.f32.partialorder %v5837_v14, 0.0  ;;  %v2474_v18 = vmul.f32 0.2, %v5837_v14  ;;  %v1361_v19 = vpop.f32.mrb[57].mxu0  ;;  %v1873_v20 = vpop.f32.mrb[57].mxu1 }
 0x167   :  { %5590 = vst [vmem:[%s7039_s2 + $0x2d8] sm:$0xff] %v5318_v11   ;;  %vm2346_vm1 = vcmp.gt.f32.partialorder %v5965_v15, 0.0  ;;  %v2602_v21 = vmul.f32 0.2, %v5965_v15  ;;  %v2472_v22 = vmul.f32 0.2, %v1361_v19 }
 0x168   :  { %5525 = vst [vmem:[%s7039_s2 + $0xd0] sm:$0xff] %v4993_v16   ;;  %5589 = vst [vmem:[%s7039_s2 + $0x2d0] sm:$0xff] %v5313_v17   ;;  %v2600_v23 = vmul.f32 0.2, %v1873_v20  ;;  %v5838_v24 = vpop.f32.mrb[58].mxu0  ;;  %v5966_v25 = vpop.f32.mrb[58].mxu1  ;;  %v2730_v26 = vsel %vm2218_vm0, %v5837_v14, %v2474_v18 }
 0x169   :  { %vm2216_vm2 = vcmp.gt.f32.partialorder %v1361_v19, 0.0  ;;  %vm2219_vm3 = vcmp.gt.f32.partialorder %v5838_v24, 0.0  ;;  %v2475_v27 = vmul.f32 0.2, %v5838_v24  ;;  %v1364_v28 = vpop.f32.mrb[59].mxu0  ;;  %v1876_v29 = vpop.f32.mrb[59].mxu1  ;;  %v2858_v34 = vsel %vm2346_vm1, %v5965_v15, %v2602_v21 }
 0x16a   :  { %vm2344_vm4 = vcmp.gt.f32.partialorder %v1873_v20, 0.0  ;;  %vm2347_vm5 = vcmp.gt.f32.partialorder %v5966_v25, 0.0  ;;  %v2603_v30 = vmul.f32 0.2, %v5966_v25  ;;  %vm2217_vm6 = vcmp.gt.f32.partialorder %v1364_v28, 0.0 }
 0x16b   :  { %v2731_v31 = vsel %vm2219_vm3, %v5838_v24, %v2475_v27  ;;  %v2473_v32 = vmul.f32 0.2, %v1364_v28  ;;  %vm2345_vm7 = vcmp.gt.f32.partialorder %v1876_v29, 0.0  ;;  %v2601_v33 = vmul.f32 0.2, %v1876_v29 }
 0x16c   :  { %v2728_v35 = vsel %vm2216_vm2, %v1361_v19, %v2472_v22  ;;  %v5008_v36 = vpack.c.bf16 %v2731_v31, %v2730_v26  ;;  %v2859_v37 = vsel %vm2347_vm5, %v5966_v25, %v2603_v30  ;;  %v2856_v38 = vsel %vm2344_vm4, %v1873_v20, %v2600_v23 }
 0x16d   :  { %v5328_v39 = vpack.c.bf16 %v2859_v37, %v2858_v34  ;;  %v2729_v40 = vsel %vm2217_vm6, %v1364_v28, %v2473_v32  ;;  %v2857_v41 = vsel %vm2345_vm7, %v1876_v29, %v2601_v33  ;;  %v5841_v42 = vpop.f32.mrb[60].mxu0  ;;  %v5969_v43 = vpop.f32.mrb[60].mxu1 }
 0x16e   :  { %5528 = vst [vmem:[%s7039_s2 + $0xe8] sm:$0xff] %v5008_v36   ;;  %v5003_v44 = vpack.c.bf16 %v2729_v40, %v2728_v35  ;;  %v5323_v45 = vpack.c.bf16 %v2857_v41, %v2856_v38  ;;  %vm2222_vm8 = vcmp.gt.f32.partialorder %v5841_v42, 0.0  ;;  %v2478_v46 = vmul.f32 0.2, %v5841_v42  ;;  %v1377_v47 = vpop.f32.mrb[61].mxu0  ;;  %v1889_v48 = vpop.f32.mrb[61].mxu1 }
 0x16f   :  { %5592 = vst [vmem:[%s7039_s2 + $0x2e8] sm:$0xff] %v5328_v39   ;;  %vm2350_vm9 = vcmp.gt.f32.partialorder %v5969_v43, 0.0  ;;  %v2606_v49 = vmul.f32 0.2, %v5969_v43  ;;  %v2476_v50 = vmul.f32 0.2, %v1377_v47 }
 0x170   :  { %5527 = vst [vmem:[%s7039_s2 + $0xe0] sm:$0xff] %v5003_v44   ;;  %5591 = vst [vmem:[%s7039_s2 + $0x2e0] sm:$0xff] %v5323_v45   ;;  %v2604_v51 = vmul.f32 0.2, %v1889_v48  ;;  %v5842_v52 = vpop.f32.mrb[62].mxu0  ;;  %v5970_v53 = vpop.f32.mrb[62].mxu1  ;;  %v2734_v54 = vsel %vm2222_vm8, %v5841_v42, %v2478_v46 }
 0x171   :  { %vm2220_vm10 = vcmp.gt.f32.partialorder %v1377_v47, 0.0  ;;  %vm2223_vm11 = vcmp.gt.f32.partialorder %v5842_v52, 0.0  ;;  %v2479_v55 = vmul.f32 0.2, %v5842_v52  ;;  %v1380_v56 = vpop.f32.mrb[63].mxu0  ;;  %v1892_v57 = vpop.f32.mrb[63].mxu1  ;;  %v2862_v62 = vsel %vm2350_vm9, %v5969_v43, %v2606_v49 }
 0x172   :  { %vm2348_vm12 = vcmp.gt.f32.partialorder %v1889_v48, 0.0  ;;  %vm2351_vm13 = vcmp.gt.f32.partialorder %v5970_v53, 0.0  ;;  %v2607_v58 = vmul.f32 0.2, %v5970_v53  ;;  %vm2221_vm14 = vcmp.gt.f32.partialorder %v1380_v56, 0.0 }
 0x173   :  { %v2735_v59 = vsel %vm2223_vm11, %v5842_v52, %v2479_v55  ;;  %v2477_v60 = vmul.f32 0.2, %v1380_v56  ;;  %vm2349_vm15 = vcmp.gt.f32.partialorder %v1892_v57, 0.0  ;;  %v2605_v61 = vmul.f32 0.2, %v1892_v57 }
 0x174   :  { %v2732_v63 = vsel %vm2220_vm10, %v1377_v47, %v2476_v50  ;;  %v5018_v0 = vpack.c.bf16 %v2735_v59, %v2734_v54  ;;  %v2863_v1 = vsel %vm2351_vm13, %v5970_v53, %v2607_v58  ;;  %v2860_v2 = vsel %vm2348_vm12, %v1889_v48, %v2604_v51 }
 0x175   :  { %v5338_v3 = vpack.c.bf16 %v2863_v1, %v2862_v62  ;;  %v2733_v4 = vsel %vm2221_vm14, %v1380_v56, %v2477_v60  ;;  %v2861_v5 = vsel %vm2349_vm15, %v1892_v57, %v2605_v61  ;;  %v5845_v6 = vpop.f32.mrb[64].mxu0  ;;  %v5973_v7 = vpop.f32.mrb[64].mxu1 }
 0x176   :  { %5530 = vst [vmem:[%s7039_s2 + $0xf8] sm:$0xff] %v5018_v0   ;;  %v5013_v8 = vpack.c.bf16 %v2733_v4, %v2732_v63  ;;  %v5333_v9 = vpack.c.bf16 %v2861_v5, %v2860_v2  ;;  %vm2226_vm0 = vcmp.gt.f32.partialorder %v5845_v6, 0.0  ;;  %v2482_v10 = vmul.f32 0.2, %v5845_v6  ;;  %v1393_v11 = vpop.f32.mrb[65].mxu0  ;;  %v1905_v12 = vpop.f32.mrb[65].mxu1 }
 0x177   :  { %5594 = vst [vmem:[%s7039_s2 + $0x2f8] sm:$0xff] %v5338_v3   ;;  %vm2354_vm1 = vcmp.gt.f32.partialorder %v5973_v7, 0.0  ;;  %v2610_v13 = vmul.f32 0.2, %v5973_v7  ;;  %v2480_v14 = vmul.f32 0.2, %v1393_v11 }
 0x178   :  { %5529 = vst [vmem:[%s7039_s2 + $0xf0] sm:$0xff] %v5013_v8   ;;  %5593 = vst [vmem:[%s7039_s2 + $0x2f0] sm:$0xff] %v5333_v9   ;;  %v2608_v15 = vmul.f32 0.2, %v1905_v12  ;;  %v5846_v16 = vpop.f32.mrb[66].mxu0  ;;  %v5974_v17 = vpop.f32.mrb[66].mxu1  ;;  %v2738_v18 = vsel %vm2226_vm0, %v5845_v6, %v2482_v10 }
 0x179   :  { %vm2224_vm2 = vcmp.gt.f32.partialorder %v1393_v11, 0.0  ;;  %vm2227_vm3 = vcmp.gt.f32.partialorder %v5846_v16, 0.0  ;;  %v2483_v19 = vmul.f32 0.2, %v5846_v16  ;;  %v1396_v20 = vpop.f32.mrb[67].mxu0  ;;  %v1908_v21 = vpop.f32.mrb[67].mxu1  ;;  %v2866_v26 = vsel %vm2354_vm1, %v5973_v7, %v2610_v13 }
 0x17a   :  { %vm2352_vm4 = vcmp.gt.f32.partialorder %v1905_v12, 0.0  ;;  %vm2355_vm5 = vcmp.gt.f32.partialorder %v5974_v17, 0.0  ;;  %v2611_v22 = vmul.f32 0.2, %v5974_v17  ;;  %vm2225_vm6 = vcmp.gt.f32.partialorder %v1396_v20, 0.0 }
 0x17b   :  { %v2739_v23 = vsel %vm2227_vm3, %v5846_v16, %v2483_v19  ;;  %v2481_v24 = vmul.f32 0.2, %v1396_v20  ;;  %vm2353_vm7 = vcmp.gt.f32.partialorder %v1908_v21, 0.0  ;;  %v2609_v25 = vmul.f32 0.2, %v1908_v21 }
 0x17c   :  { %v2736_v27 = vsel %vm2224_vm2, %v1393_v11, %v2480_v14  ;;  %v5028_v28 = vpack.c.bf16 %v2739_v23, %v2738_v18  ;;  %v2867_v29 = vsel %vm2355_vm5, %v5974_v17, %v2611_v22  ;;  %v2864_v30 = vsel %vm2352_vm4, %v1905_v12, %v2608_v15 }
 0x17d   :  { %v5348_v31 = vpack.c.bf16 %v2867_v29, %v2866_v26  ;;  %v2737_v32 = vsel %vm2225_vm6, %v1396_v20, %v2481_v24  ;;  %v2865_v33 = vsel %vm2353_vm7, %v1908_v21, %v2609_v25  ;;  %v5849_v34 = vpop.f32.mrb[68].mxu0  ;;  %v5977_v35 = vpop.f32.mrb[68].mxu1 }
 0x17e   :  { %5532 = vst [vmem:[%s7039_s2 + $0x108] sm:$0xff] %v5028_v28   ;;  %v5023_v36 = vpack.c.bf16 %v2737_v32, %v2736_v27  ;;  %v5343_v37 = vpack.c.bf16 %v2865_v33, %v2864_v30  ;;  %vm2230_vm8 = vcmp.gt.f32.partialorder %v5849_v34, 0.0  ;;  %v2486_v38 = vmul.f32 0.2, %v5849_v34  ;;  %v1409_v39 = vpop.f32.mrb[69].mxu0  ;;  %v1921_v40 = vpop.f32.mrb[69].mxu1 }
 0x17f   :  { %5596 = vst [vmem:[%s7039_s2 + $0x308] sm:$0xff] %v5348_v31   ;;  %vm2358_vm9 = vcmp.gt.f32.partialorder %v5977_v35, 0.0  ;;  %v2614_v41 = vmul.f32 0.2, %v5977_v35  ;;  %v2484_v42 = vmul.f32 0.2, %v1409_v39 }
 0x180   :  { %5531 = vst [vmem:[%s7039_s2 + $0x100] sm:$0xff] %v5023_v36   ;;  %5595 = vst [vmem:[%s7039_s2 + $0x300] sm:$0xff] %v5343_v37   ;;  %v2612_v43 = vmul.f32 0.2, %v1921_v40  ;;  %v5850_v44 = vpop.f32.mrb[70].mxu0  ;;  %v5978_v45 = vpop.f32.mrb[70].mxu1  ;;  %v2742_v46 = vsel %vm2230_vm8, %v5849_v34, %v2486_v38 }
 0x181   :  { %vm2228_vm10 = vcmp.gt.f32.partialorder %v1409_v39, 0.0  ;;  %vm2231_vm11 = vcmp.gt.f32.partialorder %v5850_v44, 0.0  ;;  %v2487_v47 = vmul.f32 0.2, %v5850_v44  ;;  %v1412_v48 = vpop.f32.mrb[71].mxu0  ;;  %v1924_v49 = vpop.f32.mrb[71].mxu1  ;;  %v2870_v54 = vsel %vm2358_vm9, %v5977_v35, %v2614_v41 }
 0x182   :  { %vm2356_vm12 = vcmp.gt.f32.partialorder %v1921_v40, 0.0  ;;  %vm2359_vm13 = vcmp.gt.f32.partialorder %v5978_v45, 0.0  ;;  %v2615_v50 = vmul.f32 0.2, %v5978_v45  ;;  %vm2229_vm14 = vcmp.gt.f32.partialorder %v1412_v48, 0.0 }
 0x183   :  { %v2743_v51 = vsel %vm2231_vm11, %v5850_v44, %v2487_v47  ;;  %v2485_v52 = vmul.f32 0.2, %v1412_v48  ;;  %vm2357_vm15 = vcmp.gt.f32.partialorder %v1924_v49, 0.0  ;;  %v2613_v53 = vmul.f32 0.2, %v1924_v49 }
 0x184   :  { %v2740_v55 = vsel %vm2228_vm10, %v1409_v39, %v2484_v42  ;;  %v5038_v56 = vpack.c.bf16 %v2743_v51, %v2742_v46  ;;  %v2871_v57 = vsel %vm2359_vm13, %v5978_v45, %v2615_v50  ;;  %v2868_v58 = vsel %vm2356_vm12, %v1921_v40, %v2612_v43 }
 0x185   :  { %v5358_v59 = vpack.c.bf16 %v2871_v57, %v2870_v54  ;;  %v2741_v60 = vsel %vm2229_vm14, %v1412_v48, %v2485_v52  ;;  %v2869_v61 = vsel %vm2357_vm15, %v1924_v49, %v2613_v53  ;;  %v5853_v62 = vpop.f32.mrb[72].mxu0  ;;  %v5981_v63 = vpop.f32.mrb[72].mxu1 }
 0x186   :  { %5534 = vst [vmem:[%s7039_s2 + $0x118] sm:$0xff] %v5038_v56   ;;  %v5033_v0 = vpack.c.bf16 %v2741_v60, %v2740_v55  ;;  %v5353_v1 = vpack.c.bf16 %v2869_v61, %v2868_v58  ;;  %vm2234_vm0 = vcmp.gt.f32.partialorder %v5853_v62, 0.0  ;;  %v2490_v2 = vmul.f32 0.2, %v5853_v62  ;;  %v1425_v3 = vpop.f32.mrb[73].mxu0  ;;  %v1937_v4 = vpop.f32.mrb[73].mxu1 }
 0x187   :  { %5598 = vst [vmem:[%s7039_s2 + $0x318] sm:$0xff] %v5358_v59   ;;  %vm2362_vm1 = vcmp.gt.f32.partialorder %v5981_v63, 0.0  ;;  %v2618_v5 = vmul.f32 0.2, %v5981_v63  ;;  %v2488_v6 = vmul.f32 0.2, %v1425_v3 }
 0x188   :  { %5533 = vst [vmem:[%s7039_s2 + $0x110] sm:$0xff] %v5033_v0   ;;  %5597 = vst [vmem:[%s7039_s2 + $0x310] sm:$0xff] %v5353_v1   ;;  %v2616_v7 = vmul.f32 0.2, %v1937_v4  ;;  %v5854_v8 = vpop.f32.mrb[74].mxu0  ;;  %v5982_v9 = vpop.f32.mrb[74].mxu1  ;;  %v2746_v10 = vsel %vm2234_vm0, %v5853_v62, %v2490_v2 }
 0x189   :  { %vm2232_vm2 = vcmp.gt.f32.partialorder %v1425_v3, 0.0  ;;  %vm2235_vm3 = vcmp.gt.f32.partialorder %v5854_v8, 0.0  ;;  %v2491_v11 = vmul.f32 0.2, %v5854_v8  ;;  %v1428_v12 = vpop.f32.mrb[75].mxu0  ;;  %v1940_v13 = vpop.f32.mrb[75].mxu1  ;;  %v2874_v18 = vsel %vm2362_vm1, %v5981_v63, %v2618_v5 }
 0x18a   :  { %vm2360_vm4 = vcmp.gt.f32.partialorder %v1937_v4, 0.0  ;;  %vm2363_vm5 = vcmp.gt.f32.partialorder %v5982_v9, 0.0  ;;  %v2619_v14 = vmul.f32 0.2, %v5982_v9  ;;  %vm2233_vm6 = vcmp.gt.f32.partialorder %v1428_v12, 0.0 }
 0x18b   :  { %v2747_v15 = vsel %vm2235_vm3, %v5854_v8, %v2491_v11  ;;  %v2489_v16 = vmul.f32 0.2, %v1428_v12  ;;  %vm2361_vm7 = vcmp.gt.f32.partialorder %v1940_v13, 0.0  ;;  %v2617_v17 = vmul.f32 0.2, %v1940_v13 }
 0x18c   :  { %v2744_v19 = vsel %vm2232_vm2, %v1425_v3, %v2488_v6  ;;  %v5048_v20 = vpack.c.bf16 %v2747_v15, %v2746_v10  ;;  %v2875_v21 = vsel %vm2363_vm5, %v5982_v9, %v2619_v14  ;;  %v2872_v22 = vsel %vm2360_vm4, %v1937_v4, %v2616_v7 }
 0x18d   :  { %v5368_v23 = vpack.c.bf16 %v2875_v21, %v2874_v18  ;;  %v2745_v24 = vsel %vm2233_vm6, %v1428_v12, %v2489_v16  ;;  %v2873_v25 = vsel %vm2361_vm7, %v1940_v13, %v2617_v17  ;;  %v5857_v26 = vpop.f32.mrb[76].mxu0  ;;  %v5985_v27 = vpop.f32.mrb[76].mxu1 }
 0x18e   :  { %5536 = vst [vmem:[%s7039_s2 + $0x128] sm:$0xff] %v5048_v20   ;;  %v5043_v28 = vpack.c.bf16 %v2745_v24, %v2744_v19  ;;  %v5363_v29 = vpack.c.bf16 %v2873_v25, %v2872_v22  ;;  %vm2238_vm8 = vcmp.gt.f32.partialorder %v5857_v26, 0.0  ;;  %v2494_v30 = vmul.f32 0.2, %v5857_v26  ;;  %v1441_v31 = vpop.f32.mrb[77].mxu0  ;;  %v1953_v32 = vpop.f32.mrb[77].mxu1 }
 0x18f   :  { %5600 = vst [vmem:[%s7039_s2 + $0x328] sm:$0xff] %v5368_v23   ;;  %vm2366_vm9 = vcmp.gt.f32.partialorder %v5985_v27, 0.0  ;;  %v2622_v33 = vmul.f32 0.2, %v5985_v27  ;;  %v2492_v34 = vmul.f32 0.2, %v1441_v31 }
 0x190   :  { %5535 = vst [vmem:[%s7039_s2 + $0x120] sm:$0xff] %v5043_v28   ;;  %5599 = vst [vmem:[%s7039_s2 + $0x320] sm:$0xff] %v5363_v29   ;;  %v2620_v35 = vmul.f32 0.2, %v1953_v32  ;;  %v5858_v36 = vpop.f32.mrb[78].mxu0  ;;  %v5986_v37 = vpop.f32.mrb[78].mxu1  ;;  %v2750_v38 = vsel %vm2238_vm8, %v5857_v26, %v2494_v30 }
 0x191   :  { %vm2236_vm10 = vcmp.gt.f32.partialorder %v1441_v31, 0.0  ;;  %vm2239_vm11 = vcmp.gt.f32.partialorder %v5858_v36, 0.0  ;;  %v2495_v39 = vmul.f32 0.2, %v5858_v36  ;;  %v1444_v40 = vpop.f32.mrb[79].mxu0  ;;  %v1956_v41 = vpop.f32.mrb[79].mxu1  ;;  %v2878_v46 = vsel %vm2366_vm9, %v5985_v27, %v2622_v33 }
 0x192   :  { %vm2364_vm12 = vcmp.gt.f32.partialorder %v1953_v32, 0.0  ;;  %vm2367_vm13 = vcmp.gt.f32.partialorder %v5986_v37, 0.0  ;;  %v2623_v42 = vmul.f32 0.2, %v5986_v37  ;;  %vm2237_vm14 = vcmp.gt.f32.partialorder %v1444_v40, 0.0 }
 0x193   :  { %v2751_v43 = vsel %vm2239_vm11, %v5858_v36, %v2495_v39  ;;  %v2493_v44 = vmul.f32 0.2, %v1444_v40  ;;  %vm2365_vm15 = vcmp.gt.f32.partialorder %v1956_v41, 0.0  ;;  %v2621_v45 = vmul.f32 0.2, %v1956_v41 }
 0x194   :  { %v2748_v47 = vsel %vm2236_vm10, %v1441_v31, %v2492_v34  ;;  %v5058_v48 = vpack.c.bf16 %v2751_v43, %v2750_v38  ;;  %v2879_v49 = vsel %vm2367_vm13, %v5986_v37, %v2623_v42  ;;  %v2876_v50 = vsel %vm2364_vm12, %v1953_v32, %v2620_v35 }
 0x195   :  { %v5378_v51 = vpack.c.bf16 %v2879_v49, %v2878_v46  ;;  %v2749_v52 = vsel %vm2237_vm14, %v1444_v40, %v2493_v44  ;;  %v2877_v53 = vsel %vm2365_vm15, %v1956_v41, %v2621_v45  ;;  %v5861_v54 = vpop.f32.mrb[80].mxu0  ;;  %v5989_v55 = vpop.f32.mrb[80].mxu1 }
 0x196   :  { %5538 = vst [vmem:[%s7039_s2 + $0x138] sm:$0xff] %v5058_v48   ;;  %v5053_v56 = vpack.c.bf16 %v2749_v52, %v2748_v47  ;;  %v5373_v57 = vpack.c.bf16 %v2877_v53, %v2876_v50  ;;  %vm2242_vm0 = vcmp.gt.f32.partialorder %v5861_v54, 0.0  ;;  %v2498_v58 = vmul.f32 0.2, %v5861_v54  ;;  %v1457_v59 = vpop.f32.mrb[81].mxu0  ;;  %v1969_v60 = vpop.f32.mrb[81].mxu1 }
 0x197   :  { %5602 = vst [vmem:[%s7039_s2 + $0x338] sm:$0xff] %v5378_v51   ;;  %vm2370_vm1 = vcmp.gt.f32.partialorder %v5989_v55, 0.0  ;;  %v2626_v61 = vmul.f32 0.2, %v5989_v55  ;;  %v2496_v62 = vmul.f32 0.2, %v1457_v59 }
 0x198   :  { %5537 = vst [vmem:[%s7039_s2 + $0x130] sm:$0xff] %v5053_v56   ;;  %5601 = vst [vmem:[%s7039_s2 + $0x330] sm:$0xff] %v5373_v57   ;;  %v2624_v63 = vmul.f32 0.2, %v1969_v60  ;;  %v5862_v0 = vpop.f32.mrb[82].mxu0  ;;  %v5990_v1 = vpop.f32.mrb[82].mxu1  ;;  %v2754_v2 = vsel %vm2242_vm0, %v5861_v54, %v2498_v58 }
 0x199   :  { %vm2240_vm2 = vcmp.gt.f32.partialorder %v1457_v59, 0.0  ;;  %vm2243_vm3 = vcmp.gt.f32.partialorder %v5862_v0, 0.0  ;;  %v2499_v3 = vmul.f32 0.2, %v5862_v0  ;;  %v1460_v4 = vpop.f32.mrb[83].mxu0  ;;  %v1972_v5 = vpop.f32.mrb[83].mxu1  ;;  %v2882_v10 = vsel %vm2370_vm1, %v5989_v55, %v2626_v61 }
 0x19a   :  { %vm2368_vm4 = vcmp.gt.f32.partialorder %v1969_v60, 0.0  ;;  %vm2371_vm5 = vcmp.gt.f32.partialorder %v5990_v1, 0.0  ;;  %v2627_v6 = vmul.f32 0.2, %v5990_v1  ;;  %vm2241_vm6 = vcmp.gt.f32.partialorder %v1460_v4, 0.0 }
 0x19b   :  { %v2755_v7 = vsel %vm2243_vm3, %v5862_v0, %v2499_v3  ;;  %v2497_v8 = vmul.f32 0.2, %v1460_v4  ;;  %vm2369_vm7 = vcmp.gt.f32.partialorder %v1972_v5, 0.0  ;;  %v2625_v9 = vmul.f32 0.2, %v1972_v5 }
 0x19c   :  { %v2752_v11 = vsel %vm2240_vm2, %v1457_v59, %v2496_v62  ;;  %v5068_v12 = vpack.c.bf16 %v2755_v7, %v2754_v2  ;;  %v2883_v13 = vsel %vm2371_vm5, %v5990_v1, %v2627_v6  ;;  %v2880_v14 = vsel %vm2368_vm4, %v1969_v60, %v2624_v63 }
 0x19d   :  { %v5388_v15 = vpack.c.bf16 %v2883_v13, %v2882_v10  ;;  %v2753_v16 = vsel %vm2241_vm6, %v1460_v4, %v2497_v8  ;;  %v2881_v17 = vsel %vm2369_vm7, %v1972_v5, %v2625_v9  ;;  %v5865_v18 = vpop.f32.mrb[84].mxu0  ;;  %v5993_v19 = vpop.f32.mrb[84].mxu1 }
 0x19e   :  { %5540 = vst [vmem:[%s7039_s2 + $0x148] sm:$0xff] %v5068_v12   ;;  %v5063_v20 = vpack.c.bf16 %v2753_v16, %v2752_v11  ;;  %v5383_v21 = vpack.c.bf16 %v2881_v17, %v2880_v14  ;;  %vm2246_vm8 = vcmp.gt.f32.partialorder %v5865_v18, 0.0  ;;  %v2502_v22 = vmul.f32 0.2, %v5865_v18  ;;  %v1473_v23 = vpop.f32.mrb[85].mxu0  ;;  %v1985_v24 = vpop.f32.mrb[85].mxu1 }
 0x19f   :  { %5604 = vst [vmem:[%s7039_s2 + $0x348] sm:$0xff] %v5388_v15   ;;  %vm2374_vm9 = vcmp.gt.f32.partialorder %v5993_v19, 0.0  ;;  %v2630_v25 = vmul.f32 0.2, %v5993_v19  ;;  %v2500_v26 = vmul.f32 0.2, %v1473_v23 }
 0x1a0   :  { %5539 = vst [vmem:[%s7039_s2 + $0x140] sm:$0xff] %v5063_v20   ;;  %5603 = vst [vmem:[%s7039_s2 + $0x340] sm:$0xff] %v5383_v21   ;;  %v2628_v27 = vmul.f32 0.2, %v1985_v24  ;;  %v5866_v28 = vpop.f32.mrb[86].mxu0  ;;  %v5994_v29 = vpop.f32.mrb[86].mxu1  ;;  %v2758_v30 = vsel %vm2246_vm8, %v5865_v18, %v2502_v22 }
 0x1a1   :  { %vm2244_vm10 = vcmp.gt.f32.partialorder %v1473_v23, 0.0  ;;  %vm2247_vm11 = vcmp.gt.f32.partialorder %v5866_v28, 0.0  ;;  %v2503_v31 = vmul.f32 0.2, %v5866_v28  ;;  %v1476_v32 = vpop.f32.mrb[87].mxu0  ;;  %v1988_v33 = vpop.f32.mrb[87].mxu1  ;;  %v2886_v38 = vsel %vm2374_vm9, %v5993_v19, %v2630_v25 }
 0x1a2   :  { %vm2372_vm12 = vcmp.gt.f32.partialorder %v1985_v24, 0.0  ;;  %vm2375_vm13 = vcmp.gt.f32.partialorder %v5994_v29, 0.0  ;;  %v2631_v34 = vmul.f32 0.2, %v5994_v29  ;;  %vm2245_vm14 = vcmp.gt.f32.partialorder %v1476_v32, 0.0 }
 0x1a3   :  { %v2759_v35 = vsel %vm2247_vm11, %v5866_v28, %v2503_v31  ;;  %v2501_v36 = vmul.f32 0.2, %v1476_v32  ;;  %vm2373_vm15 = vcmp.gt.f32.partialorder %v1988_v33, 0.0  ;;  %v2629_v37 = vmul.f32 0.2, %v1988_v33 }
 0x1a4   :  { %v2756_v39 = vsel %vm2244_vm10, %v1473_v23, %v2500_v26  ;;  %v5078_v40 = vpack.c.bf16 %v2759_v35, %v2758_v30  ;;  %v2887_v41 = vsel %vm2375_vm13, %v5994_v29, %v2631_v34  ;;  %v2884_v42 = vsel %vm2372_vm12, %v1985_v24, %v2628_v27 }
 0x1a5   :  { %v5398_v43 = vpack.c.bf16 %v2887_v41, %v2886_v38  ;;  %v2757_v44 = vsel %vm2245_vm14, %v1476_v32, %v2501_v36  ;;  %v2885_v45 = vsel %vm2373_vm15, %v1988_v33, %v2629_v37  ;;  %v5869_v46 = vpop.f32.mrb[88].mxu0  ;;  %v5997_v47 = vpop.f32.mrb[88].mxu1 }
 0x1a6   :  { %5542 = vst [vmem:[%s7039_s2 + $0x158] sm:$0xff] %v5078_v40   ;;  %v5073_v48 = vpack.c.bf16 %v2757_v44, %v2756_v39  ;;  %v5393_v49 = vpack.c.bf16 %v2885_v45, %v2884_v42  ;;  %vm2250_vm0 = vcmp.gt.f32.partialorder %v5869_v46, 0.0  ;;  %v2506_v50 = vmul.f32 0.2, %v5869_v46  ;;  %v1489_v51 = vpop.f32.mrb[89].mxu0  ;;  %v2001_v52 = vpop.f32.mrb[89].mxu1 }
 0x1a7   :  { %5606 = vst [vmem:[%s7039_s2 + $0x358] sm:$0xff] %v5398_v43   ;;  %vm2378_vm1 = vcmp.gt.f32.partialorder %v5997_v47, 0.0  ;;  %v2634_v53 = vmul.f32 0.2, %v5997_v47  ;;  %v2504_v54 = vmul.f32 0.2, %v1489_v51 }
 0x1a8   :  { %5541 = vst [vmem:[%s7039_s2 + $0x150] sm:$0xff] %v5073_v48   ;;  %5605 = vst [vmem:[%s7039_s2 + $0x350] sm:$0xff] %v5393_v49   ;;  %v2632_v55 = vmul.f32 0.2, %v2001_v52  ;;  %v5870_v56 = vpop.f32.mrb[90].mxu0  ;;  %v5998_v57 = vpop.f32.mrb[90].mxu1  ;;  %v2762_v58 = vsel %vm2250_vm0, %v5869_v46, %v2506_v50 }
 0x1a9   :  { %vm2248_vm2 = vcmp.gt.f32.partialorder %v1489_v51, 0.0  ;;  %vm2251_vm3 = vcmp.gt.f32.partialorder %v5870_v56, 0.0  ;;  %v2507_v59 = vmul.f32 0.2, %v5870_v56  ;;  %v1492_v60 = vpop.f32.mrb[91].mxu0  ;;  %v2004_v61 = vpop.f32.mrb[91].mxu1  ;;  %v2890_v2 = vsel %vm2378_vm1, %v5997_v47, %v2634_v53 }
 0x1aa   :  { %vm2376_vm4 = vcmp.gt.f32.partialorder %v2001_v52, 0.0  ;;  %vm2379_vm5 = vcmp.gt.f32.partialorder %v5998_v57, 0.0  ;;  %v2635_v62 = vmul.f32 0.2, %v5998_v57  ;;  %vm2249_vm6 = vcmp.gt.f32.partialorder %v1492_v60, 0.0 }
 0x1ab   :  { %v2763_v63 = vsel %vm2251_vm3, %v5870_v56, %v2507_v59  ;;  %v2505_v0 = vmul.f32 0.2, %v1492_v60  ;;  %vm2377_vm7 = vcmp.gt.f32.partialorder %v2004_v61, 0.0  ;;  %v2633_v1 = vmul.f32 0.2, %v2004_v61 }
 0x1ac   :  { %v2760_v3 = vsel %vm2248_vm2, %v1489_v51, %v2504_v54  ;;  %v5088_v4 = vpack.c.bf16 %v2763_v63, %v2762_v58  ;;  %v2891_v5 = vsel %vm2379_vm5, %v5998_v57, %v2635_v62  ;;  %v2888_v6 = vsel %vm2376_vm4, %v2001_v52, %v2632_v55 }
 0x1ad   :  { %v5408_v7 = vpack.c.bf16 %v2891_v5, %v2890_v2  ;;  %v2761_v8 = vsel %vm2249_vm6, %v1492_v60, %v2505_v0  ;;  %v2889_v9 = vsel %vm2377_vm7, %v2004_v61, %v2633_v1  ;;  %v5873_v10 = vpop.f32.mrb[92].mxu0  ;;  %v6001_v11 = vpop.f32.mrb[92].mxu1 }
 0x1ae   :  { %5544 = vst [vmem:[%s7039_s2 + $0x168] sm:$0xff] %v5088_v4   ;;  %v5083_v12 = vpack.c.bf16 %v2761_v8, %v2760_v3  ;;  %v5403_v13 = vpack.c.bf16 %v2889_v9, %v2888_v6  ;;  %vm2254_vm8 = vcmp.gt.f32.partialorder %v5873_v10, 0.0  ;;  %v2510_v14 = vmul.f32 0.2, %v5873_v10  ;;  %v1505_v15 = vpop.f32.mrb[93].mxu0  ;;  %v2017_v16 = vpop.f32.mrb[93].mxu1 }
 0x1af   :  { %5608 = vst [vmem:[%s7039_s2 + $0x368] sm:$0xff] %v5408_v7   ;;  %vm2382_vm9 = vcmp.gt.f32.partialorder %v6001_v11, 0.0  ;;  %v2638_v17 = vmul.f32 0.2, %v6001_v11  ;;  %v2508_v18 = vmul.f32 0.2, %v1505_v15 }
 0x1b0   :  { %5543 = vst [vmem:[%s7039_s2 + $0x160] sm:$0xff] %v5083_v12   ;;  %5607 = vst [vmem:[%s7039_s2 + $0x360] sm:$0xff] %v5403_v13   ;;  %v2636_v19 = vmul.f32 0.2, %v2017_v16  ;;  %v5874_v20 = vpop.f32.mrb[94].mxu0  ;;  %v6002_v21 = vpop.f32.mrb[94].mxu1  ;;  %v2766_v22 = vsel %vm2254_vm8, %v5873_v10, %v2510_v14 }
 0x1b1   :  { %vm2252_vm10 = vcmp.gt.f32.partialorder %v1505_v15, 0.0  ;;  %vm2255_vm11 = vcmp.gt.f32.partialorder %v5874_v20, 0.0  ;;  %v2511_v23 = vmul.f32 0.2, %v5874_v20  ;;  %v1508_v24 = vpop.f32.mrb[95].mxu0  ;;  %v2020_v25 = vpop.f32.mrb[95].mxu1  ;;  %v2894_v30 = vsel %vm2382_vm9, %v6001_v11, %v2638_v17 }
 0x1b2   :  { %vm2380_vm12 = vcmp.gt.f32.partialorder %v2017_v16, 0.0  ;;  %vm2383_vm13 = vcmp.gt.f32.partialorder %v6002_v21, 0.0  ;;  %v2639_v26 = vmul.f32 0.2, %v6002_v21  ;;  %vm2253_vm14 = vcmp.gt.f32.partialorder %v1508_v24, 0.0 }
 0x1b3   :  { %v2767_v27 = vsel %vm2255_vm11, %v5874_v20, %v2511_v23  ;;  %v2509_v28 = vmul.f32 0.2, %v1508_v24  ;;  %vm2381_vm15 = vcmp.gt.f32.partialorder %v2020_v25, 0.0  ;;  %v2637_v29 = vmul.f32 0.2, %v2020_v25 }
 0x1b4   :  { %v2764_v31 = vsel %vm2252_vm10, %v1505_v15, %v2508_v18  ;;  %v5098_v32 = vpack.c.bf16 %v2767_v27, %v2766_v22  ;;  %v2895_v33 = vsel %vm2383_vm13, %v6002_v21, %v2639_v26  ;;  %v2892_v34 = vsel %vm2380_vm12, %v2017_v16, %v2636_v19 }
 0x1b5   :  { %v5418_v35 = vpack.c.bf16 %v2895_v33, %v2894_v30  ;;  %v2765_v36 = vsel %vm2253_vm14, %v1508_v24, %v2509_v28  ;;  %v2893_v37 = vsel %vm2381_vm15, %v2020_v25, %v2637_v29  ;;  %v5877_v38 = vpop.f32.mrb[96].mxu0  ;;  %v6005_v39 = vpop.f32.mrb[96].mxu1 }
 0x1b6   :  { %5546 = vst [vmem:[%s7039_s2 + $0x178] sm:$0xff] %v5098_v32   ;;  %v5093_v40 = vpack.c.bf16 %v2765_v36, %v2764_v31  ;;  %v5413_v41 = vpack.c.bf16 %v2893_v37, %v2892_v34  ;;  %vm2258_vm0 = vcmp.gt.f32.partialorder %v5877_v38, 0.0  ;;  %v2514_v42 = vmul.f32 0.2, %v5877_v38  ;;  %v1521_v43 = vpop.f32.mrb[97].mxu0  ;;  %v2033_v44 = vpop.f32.mrb[97].mxu1 }
 0x1b7   :  { %5610 = vst [vmem:[%s7039_s2 + $0x378] sm:$0xff] %v5418_v35   ;;  %vm2386_vm1 = vcmp.gt.f32.partialorder %v6005_v39, 0.0  ;;  %v2642_v45 = vmul.f32 0.2, %v6005_v39  ;;  %v2512_v46 = vmul.f32 0.2, %v1521_v43 }
 0x1b8   :  { %5545 = vst [vmem:[%s7039_s2 + $0x170] sm:$0xff] %v5093_v40   ;;  %5609 = vst [vmem:[%s7039_s2 + $0x370] sm:$0xff] %v5413_v41   ;;  %v2640_v47 = vmul.f32 0.2, %v2033_v44  ;;  %v5878_v48 = vpop.f32.mrb[98].mxu0  ;;  %v6006_v49 = vpop.f32.mrb[98].mxu1  ;;  %v2770_v50 = vsel %vm2258_vm0, %v5877_v38, %v2514_v42 }
 0x1b9   :  { %vm2256_vm2 = vcmp.gt.f32.partialorder %v1521_v43, 0.0  ;;  %vm2259_vm3 = vcmp.gt.f32.partialorder %v5878_v48, 0.0  ;;  %v2515_v51 = vmul.f32 0.2, %v5878_v48  ;;  %v1524_v52 = vpop.f32.mrb[99].mxu0  ;;  %v2036_v53 = vpop.f32.mrb[99].mxu1  ;;  %v2898_v58 = vsel %vm2386_vm1, %v6005_v39, %v2642_v45 }
 0x1ba   :  { %vm2384_vm4 = vcmp.gt.f32.partialorder %v2033_v44, 0.0  ;;  %vm2387_vm5 = vcmp.gt.f32.partialorder %v6006_v49, 0.0  ;;  %v2643_v54 = vmul.f32 0.2, %v6006_v49  ;;  %vm2257_vm6 = vcmp.gt.f32.partialorder %v1524_v52, 0.0 }
 0x1bb   :  { %v2771_v55 = vsel %vm2259_vm3, %v5878_v48, %v2515_v51  ;;  %v2513_v56 = vmul.f32 0.2, %v1524_v52  ;;  %vm2385_vm7 = vcmp.gt.f32.partialorder %v2036_v53, 0.0  ;;  %v2641_v57 = vmul.f32 0.2, %v2036_v53 }
 0x1bc   :  { %v2768_v59 = vsel %vm2256_vm2, %v1521_v43, %v2512_v46  ;;  %v5108_v60 = vpack.c.bf16 %v2771_v55, %v2770_v50  ;;  %v2899_v61 = vsel %vm2387_vm5, %v6006_v49, %v2643_v54  ;;  %v2896_v62 = vsel %vm2384_vm4, %v2033_v44, %v2640_v47 }
 0x1bd   :  { %v5428_v63 = vpack.c.bf16 %v2899_v61, %v2898_v58  ;;  %v2769_v0 = vsel %vm2257_vm6, %v1524_v52, %v2513_v56  ;;  %v2897_v1 = vsel %vm2385_vm7, %v2036_v53, %v2641_v57  ;;  %v5881_v2 = vpop.f32.mrb[100].mxu0  ;;  %v6009_v3 = vpop.f32.mrb[100].mxu1 }
 0x1be   :  { %5548 = vst [vmem:[%s7039_s2 + $0x188] sm:$0xff] %v5108_v60   ;;  %v5103_v4 = vpack.c.bf16 %v2769_v0, %v2768_v59  ;;  %v5423_v5 = vpack.c.bf16 %v2897_v1, %v2896_v62  ;;  %vm2262_vm8 = vcmp.gt.f32.partialorder %v5881_v2, 0.0  ;;  %v2518_v6 = vmul.f32 0.2, %v5881_v2  ;;  %v1537_v7 = vpop.f32.mrb[101].mxu0  ;;  %v2049_v8 = vpop.f32.mrb[101].mxu1 }
 0x1bf   :  { %5612 = vst [vmem:[%s7039_s2 + $0x388] sm:$0xff] %v5428_v63   ;;  %vm2390_vm9 = vcmp.gt.f32.partialorder %v6009_v3, 0.0  ;;  %v2646_v9 = vmul.f32 0.2, %v6009_v3  ;;  %v2516_v10 = vmul.f32 0.2, %v1537_v7 }
 0x1c0   :  { %5547 = vst [vmem:[%s7039_s2 + $0x180] sm:$0xff] %v5103_v4   ;;  %5611 = vst [vmem:[%s7039_s2 + $0x380] sm:$0xff] %v5423_v5   ;;  %v2644_v11 = vmul.f32 0.2, %v2049_v8  ;;  %v5882_v12 = vpop.f32.mrb[102].mxu0  ;;  %v6010_v13 = vpop.f32.mrb[102].mxu1  ;;  %v2774_v14 = vsel %vm2262_vm8, %v5881_v2, %v2518_v6 }
 0x1c1   :  { %vm2260_vm10 = vcmp.gt.f32.partialorder %v1537_v7, 0.0  ;;  %vm2263_vm11 = vcmp.gt.f32.partialorder %v5882_v12, 0.0  ;;  %v2519_v15 = vmul.f32 0.2, %v5882_v12  ;;  %v1540_v16 = vpop.f32.mrb[103].mxu0  ;;  %v2052_v17 = vpop.f32.mrb[103].mxu1  ;;  %v2902_v22 = vsel %vm2390_vm9, %v6009_v3, %v2646_v9 }
 0x1c2   :  { %vm2388_vm12 = vcmp.gt.f32.partialorder %v2049_v8, 0.0  ;;  %vm2391_vm13 = vcmp.gt.f32.partialorder %v6010_v13, 0.0  ;;  %v2647_v18 = vmul.f32 0.2, %v6010_v13  ;;  %vm2261_vm14 = vcmp.gt.f32.partialorder %v1540_v16, 0.0 }
 0x1c3   :  { %v2775_v19 = vsel %vm2263_vm11, %v5882_v12, %v2519_v15  ;;  %v2517_v20 = vmul.f32 0.2, %v1540_v16  ;;  %vm2389_vm15 = vcmp.gt.f32.partialorder %v2052_v17, 0.0  ;;  %v2645_v21 = vmul.f32 0.2, %v2052_v17 }
 0x1c4   :  { %v2772_v23 = vsel %vm2260_vm10, %v1537_v7, %v2516_v10  ;;  %v5118_v24 = vpack.c.bf16 %v2775_v19, %v2774_v14  ;;  %v2903_v25 = vsel %vm2391_vm13, %v6010_v13, %v2647_v18  ;;  %v2900_v26 = vsel %vm2388_vm12, %v2049_v8, %v2644_v11 }
 0x1c5   :  { %v5438_v27 = vpack.c.bf16 %v2903_v25, %v2902_v22  ;;  %v2773_v28 = vsel %vm2261_vm14, %v1540_v16, %v2517_v20  ;;  %v2901_v29 = vsel %vm2389_vm15, %v2052_v17, %v2645_v21  ;;  %v5885_v30 = vpop.f32.mrb[104].mxu0  ;;  %v6013_v31 = vpop.f32.mrb[104].mxu1 }
 0x1c6   :  { %5550 = vst [vmem:[%s7039_s2 + $0x198] sm:$0xff] %v5118_v24   ;;  %v5113_v32 = vpack.c.bf16 %v2773_v28, %v2772_v23  ;;  %v5433_v33 = vpack.c.bf16 %v2901_v29, %v2900_v26  ;;  %vm2266_vm0 = vcmp.gt.f32.partialorder %v5885_v30, 0.0  ;;  %v2522_v34 = vmul.f32 0.2, %v5885_v30  ;;  %v1553_v35 = vpop.f32.mrb[105].mxu0  ;;  %v2065_v36 = vpop.f32.mrb[105].mxu1 }
 0x1c7   :  { %5614 = vst [vmem:[%s7039_s2 + $0x398] sm:$0xff] %v5438_v27   ;;  %vm2394_vm1 = vcmp.gt.f32.partialorder %v6013_v31, 0.0  ;;  %v2650_v37 = vmul.f32 0.2, %v6013_v31  ;;  %v2520_v38 = vmul.f32 0.2, %v1553_v35 }
 0x1c8   :  { %5549 = vst [vmem:[%s7039_s2 + $0x190] sm:$0xff] %v5113_v32   ;;  %5613 = vst [vmem:[%s7039_s2 + $0x390] sm:$0xff] %v5433_v33   ;;  %v2648_v39 = vmul.f32 0.2, %v2065_v36  ;;  %v5886_v40 = vpop.f32.mrb[106].mxu0  ;;  %v6014_v41 = vpop.f32.mrb[106].mxu1  ;;  %v2778_v42 = vsel %vm2266_vm0, %v5885_v30, %v2522_v34 }
 0x1c9   :  { %vm2264_vm2 = vcmp.gt.f32.partialorder %v1553_v35, 0.0  ;;  %vm2267_vm3 = vcmp.gt.f32.partialorder %v5886_v40, 0.0  ;;  %v2523_v43 = vmul.f32 0.2, %v5886_v40  ;;  %v1556_v44 = vpop.f32.mrb[107].mxu0  ;;  %v2068_v45 = vpop.f32.mrb[107].mxu1  ;;  %v2906_v50 = vsel %vm2394_vm1, %v6013_v31, %v2650_v37 }
 0x1ca   :  { %vm2392_vm4 = vcmp.gt.f32.partialorder %v2065_v36, 0.0  ;;  %vm2395_vm5 = vcmp.gt.f32.partialorder %v6014_v41, 0.0  ;;  %v2651_v46 = vmul.f32 0.2, %v6014_v41  ;;  %vm2265_vm6 = vcmp.gt.f32.partialorder %v1556_v44, 0.0 }
 0x1cb   :  { %v2779_v47 = vsel %vm2267_vm3, %v5886_v40, %v2523_v43  ;;  %v2521_v48 = vmul.f32 0.2, %v1556_v44  ;;  %vm2393_vm7 = vcmp.gt.f32.partialorder %v2068_v45, 0.0  ;;  %v2649_v49 = vmul.f32 0.2, %v2068_v45 }
 0x1cc   :  { %v2776_v51 = vsel %vm2264_vm2, %v1553_v35, %v2520_v38  ;;  %v5128_v52 = vpack.c.bf16 %v2779_v47, %v2778_v42  ;;  %v2907_v53 = vsel %vm2395_vm5, %v6014_v41, %v2651_v46  ;;  %v2904_v54 = vsel %vm2392_vm4, %v2065_v36, %v2648_v39 }
 0x1cd   :  { %v5448_v55 = vpack.c.bf16 %v2907_v53, %v2906_v50  ;;  %v2777_v56 = vsel %vm2265_vm6, %v1556_v44, %v2521_v48  ;;  %v2905_v57 = vsel %vm2393_vm7, %v2068_v45, %v2649_v49  ;;  %v5889_v58 = vpop.f32.mrb[108].mxu0  ;;  %v6017_v59 = vpop.f32.mrb[108].mxu1 }
 0x1ce   :  { %5552 = vst [vmem:[%s7039_s2 + $0x1a8] sm:$0xff] %v5128_v52   ;;  %v5123_v60 = vpack.c.bf16 %v2777_v56, %v2776_v51  ;;  %v5443_v61 = vpack.c.bf16 %v2905_v57, %v2904_v54  ;;  %vm2270_vm8 = vcmp.gt.f32.partialorder %v5889_v58, 0.0  ;;  %v2526_v62 = vmul.f32 0.2, %v5889_v58  ;;  %v1569_v63 = vpop.f32.mrb[109].mxu0  ;;  %v2081_v0 = vpop.f32.mrb[109].mxu1 }
 0x1cf   :  { %5616 = vst [vmem:[%s7039_s2 + $0x3a8] sm:$0xff] %v5448_v55   ;;  %vm2398_vm9 = vcmp.gt.f32.partialorder %v6017_v59, 0.0  ;;  %v2654_v1 = vmul.f32 0.2, %v6017_v59  ;;  %v2524_v2 = vmul.f32 0.2, %v1569_v63 }
 0x1d0   :  { %5551 = vst [vmem:[%s7039_s2 + $0x1a0] sm:$0xff] %v5123_v60   ;;  %5615 = vst [vmem:[%s7039_s2 + $0x3a0] sm:$0xff] %v5443_v61   ;;  %v2652_v3 = vmul.f32 0.2, %v2081_v0  ;;  %v5890_v4 = vpop.f32.mrb[110].mxu0  ;;  %v6018_v5 = vpop.f32.mrb[110].mxu1  ;;  %v2782_v6 = vsel %vm2270_vm8, %v5889_v58, %v2526_v62 }
 0x1d1   :  { %vm2268_vm10 = vcmp.gt.f32.partialorder %v1569_v63, 0.0  ;;  %vm2271_vm11 = vcmp.gt.f32.partialorder %v5890_v4, 0.0  ;;  %v2527_v7 = vmul.f32 0.2, %v5890_v4  ;;  %v1572_v8 = vpop.f32.mrb[111].mxu0  ;;  %v2084_v9 = vpop.f32.mrb[111].mxu1  ;;  %v2910_v14 = vsel %vm2398_vm9, %v6017_v59, %v2654_v1 }
 0x1d2   :  { %vm2396_vm12 = vcmp.gt.f32.partialorder %v2081_v0, 0.0  ;;  %vm2399_vm13 = vcmp.gt.f32.partialorder %v6018_v5, 0.0  ;;  %v2655_v10 = vmul.f32 0.2, %v6018_v5  ;;  %vm2269_vm14 = vcmp.gt.f32.partialorder %v1572_v8, 0.0 }
 0x1d3   :  { %v2783_v11 = vsel %vm2271_vm11, %v5890_v4, %v2527_v7  ;;  %v2525_v12 = vmul.f32 0.2, %v1572_v8  ;;  %vm2397_vm15 = vcmp.gt.f32.partialorder %v2084_v9, 0.0  ;;  %v2653_v13 = vmul.f32 0.2, %v2084_v9 }
 0x1d4   :  { %v2780_v15 = vsel %vm2268_vm10, %v1569_v63, %v2524_v2  ;;  %v5138_v16 = vpack.c.bf16 %v2783_v11, %v2782_v6  ;;  %v2911_v17 = vsel %vm2399_vm13, %v6018_v5, %v2655_v10  ;;  %v2908_v18 = vsel %vm2396_vm12, %v2081_v0, %v2652_v3 }
 0x1d5   :  { %v5458_v19 = vpack.c.bf16 %v2911_v17, %v2910_v14  ;;  %v2781_v20 = vsel %vm2269_vm14, %v1572_v8, %v2525_v12  ;;  %v2909_v21 = vsel %vm2397_vm15, %v2084_v9, %v2653_v13  ;;  %v5893_v22 = vpop.f32.mrb[112].mxu0  ;;  %v6021_v23 = vpop.f32.mrb[112].mxu1 }
 0x1d6   :  { %5554 = vst [vmem:[%s7039_s2 + $0x1b8] sm:$0xff] %v5138_v16   ;;  %v5133_v24 = vpack.c.bf16 %v2781_v20, %v2780_v15  ;;  %v5453_v25 = vpack.c.bf16 %v2909_v21, %v2908_v18  ;;  %vm2274_vm0 = vcmp.gt.f32.partialorder %v5893_v22, 0.0  ;;  %v2530_v26 = vmul.f32 0.2, %v5893_v22  ;;  %v1585_v27 = vpop.f32.mrb[113].mxu0  ;;  %v2097_v28 = vpop.f32.mrb[113].mxu1 }
 0x1d7   :  { %5618 = vst [vmem:[%s7039_s2 + $0x3b8] sm:$0xff] %v5458_v19   ;;  %vm2402_vm1 = vcmp.gt.f32.partialorder %v6021_v23, 0.0  ;;  %v2658_v29 = vmul.f32 0.2, %v6021_v23  ;;  %v2528_v30 = vmul.f32 0.2, %v1585_v27 }
 0x1d8   :  { %5553 = vst [vmem:[%s7039_s2 + $0x1b0] sm:$0xff] %v5133_v24   ;;  %5617 = vst [vmem:[%s7039_s2 + $0x3b0] sm:$0xff] %v5453_v25   ;;  %v2656_v31 = vmul.f32 0.2, %v2097_v28  ;;  %v5894_v32 = vpop.f32.mrb[114].mxu0  ;;  %v6022_v33 = vpop.f32.mrb[114].mxu1  ;;  %v2786_v34 = vsel %vm2274_vm0, %v5893_v22, %v2530_v26 }
 0x1d9   :  { %vm2272_vm2 = vcmp.gt.f32.partialorder %v1585_v27, 0.0  ;;  %vm2275_vm3 = vcmp.gt.f32.partialorder %v5894_v32, 0.0  ;;  %v2531_v35 = vmul.f32 0.2, %v5894_v32  ;;  %v1588_v36 = vpop.f32.mrb[115].mxu0  ;;  %v2100_v37 = vpop.f32.mrb[115].mxu1  ;;  %v2914_v42 = vsel %vm2402_vm1, %v6021_v23, %v2658_v29 }
 0x1da   :  { %vm2400_vm4 = vcmp.gt.f32.partialorder %v2097_v28, 0.0  ;;  %vm2403_vm5 = vcmp.gt.f32.partialorder %v6022_v33, 0.0  ;;  %v2659_v38 = vmul.f32 0.2, %v6022_v33  ;;  %vm2273_vm6 = vcmp.gt.f32.partialorder %v1588_v36, 0.0 }
 0x1db   :  { %v2787_v39 = vsel %vm2275_vm3, %v5894_v32, %v2531_v35  ;;  %v2529_v40 = vmul.f32 0.2, %v1588_v36  ;;  %vm2401_vm7 = vcmp.gt.f32.partialorder %v2100_v37, 0.0  ;;  %v2657_v41 = vmul.f32 0.2, %v2100_v37 }
 0x1dc   :  { %v2784_v43 = vsel %vm2272_vm2, %v1585_v27, %v2528_v30  ;;  %v5148_v44 = vpack.c.bf16 %v2787_v39, %v2786_v34  ;;  %v2915_v45 = vsel %vm2403_vm5, %v6022_v33, %v2659_v38  ;;  %v2912_v46 = vsel %vm2400_vm4, %v2097_v28, %v2656_v31 }
 0x1dd   :  { %v5468_v47 = vpack.c.bf16 %v2915_v45, %v2914_v42  ;;  %v2785_v48 = vsel %vm2273_vm6, %v1588_v36, %v2529_v40  ;;  %v2913_v49 = vsel %vm2401_vm7, %v2100_v37, %v2657_v41  ;;  %v5897_v50 = vpop.f32.mrb[116].mxu0  ;;  %v6025_v51 = vpop.f32.mrb[116].mxu1 }
 0x1de   :  { %5556 = vst [vmem:[%s7039_s2 + $0x1c8] sm:$0xff] %v5148_v44   ;;  %v5143_v52 = vpack.c.bf16 %v2785_v48, %v2784_v43  ;;  %v5463_v53 = vpack.c.bf16 %v2913_v49, %v2912_v46  ;;  %vm2278_vm8 = vcmp.gt.f32.partialorder %v5897_v50, 0.0  ;;  %v2534_v54 = vmul.f32 0.2, %v5897_v50  ;;  %v1601_v55 = vpop.f32.mrb[117].mxu0  ;;  %v2113_v56 = vpop.f32.mrb[117].mxu1 }
 0x1df   :  { %5620 = vst [vmem:[%s7039_s2 + $0x3c8] sm:$0xff] %v5468_v47   ;;  %vm2406_vm9 = vcmp.gt.f32.partialorder %v6025_v51, 0.0  ;;  %v2662_v57 = vmul.f32 0.2, %v6025_v51  ;;  %v2532_v58 = vmul.f32 0.2, %v1601_v55 }
 0x1e0   :  { %5555 = vst [vmem:[%s7039_s2 + $0x1c0] sm:$0xff] %v5143_v52   ;;  %5619 = vst [vmem:[%s7039_s2 + $0x3c0] sm:$0xff] %v5463_v53   ;;  %v2660_v59 = vmul.f32 0.2, %v2113_v56  ;;  %v5898_v60 = vpop.f32.mrb[118].mxu0  ;;  %v6026_v61 = vpop.f32.mrb[118].mxu1  ;;  %v2790_v62 = vsel %vm2278_vm8, %v5897_v50, %v2534_v54 }
 0x1e1   :  { %vm2276_vm10 = vcmp.gt.f32.partialorder %v1601_v55, 0.0  ;;  %vm2279_vm11 = vcmp.gt.f32.partialorder %v5898_v60, 0.0  ;;  %v2535_v63 = vmul.f32 0.2, %v5898_v60  ;;  %v1604_v0 = vpop.f32.mrb[119].mxu0  ;;  %v2116_v1 = vpop.f32.mrb[119].mxu1  ;;  %v2918_v6 = vsel %vm2406_vm9, %v6025_v51, %v2662_v57 }
 0x1e2   :  { %vm2404_vm12 = vcmp.gt.f32.partialorder %v2113_v56, 0.0  ;;  %vm2407_vm13 = vcmp.gt.f32.partialorder %v6026_v61, 0.0  ;;  %v2663_v2 = vmul.f32 0.2, %v6026_v61  ;;  %vm2277_vm14 = vcmp.gt.f32.partialorder %v1604_v0, 0.0 }
 0x1e3   :  { %v2791_v3 = vsel %vm2279_vm11, %v5898_v60, %v2535_v63  ;;  %v2533_v4 = vmul.f32 0.2, %v1604_v0  ;;  %vm2405_vm15 = vcmp.gt.f32.partialorder %v2116_v1, 0.0  ;;  %v2661_v5 = vmul.f32 0.2, %v2116_v1 }
 0x1e4   :  { %v2788_v7 = vsel %vm2276_vm10, %v1601_v55, %v2532_v58  ;;  %v5158_v8 = vpack.c.bf16 %v2791_v3, %v2790_v62  ;;  %v2919_v9 = vsel %vm2407_vm13, %v6026_v61, %v2663_v2  ;;  %v2916_v10 = vsel %vm2404_vm12, %v2113_v56, %v2660_v59 }
 0x1e5   :  { %v5478_v11 = vpack.c.bf16 %v2919_v9, %v2918_v6  ;;  %v2789_v12 = vsel %vm2277_vm14, %v1604_v0, %v2533_v4  ;;  %v2917_v13 = vsel %vm2405_vm15, %v2116_v1, %v2661_v5  ;;  %v5901_v14 = vpop.f32.mrb[120].mxu0  ;;  %v6029_v15 = vpop.f32.mrb[120].mxu1 }
 0x1e6   :  { %5558 = vst [vmem:[%s7039_s2 + $0x1d8] sm:$0xff] %v5158_v8   ;;  %v5153_v16 = vpack.c.bf16 %v2789_v12, %v2788_v7  ;;  %v5473_v17 = vpack.c.bf16 %v2917_v13, %v2916_v10  ;;  %vm2282_vm0 = vcmp.gt.f32.partialorder %v5901_v14, 0.0  ;;  %v2538_v18 = vmul.f32 0.2, %v5901_v14  ;;  %v1617_v19 = vpop.f32.mrb[121].mxu0  ;;  %v2129_v20 = vpop.f32.mrb[121].mxu1 }
 0x1e7   :  { %5622 = vst [vmem:[%s7039_s2 + $0x3d8] sm:$0xff] %v5478_v11   ;;  %vm2410_vm1 = vcmp.gt.f32.partialorder %v6029_v15, 0.0  ;;  %v2666_v21 = vmul.f32 0.2, %v6029_v15  ;;  %v2536_v22 = vmul.f32 0.2, %v1617_v19 }
 0x1e8   :  { %5557 = vst [vmem:[%s7039_s2 + $0x1d0] sm:$0xff] %v5153_v16   ;;  %5621 = vst [vmem:[%s7039_s2 + $0x3d0] sm:$0xff] %v5473_v17   ;;  %v2664_v23 = vmul.f32 0.2, %v2129_v20  ;;  %v5902_v24 = vpop.f32.mrb[122].mxu0  ;;  %v6030_v25 = vpop.f32.mrb[122].mxu1  ;;  %v2794_v26 = vsel %vm2282_vm0, %v5901_v14, %v2538_v18 }
 0x1e9   :  { %vm2280_vm2 = vcmp.gt.f32.partialorder %v1617_v19, 0.0  ;;  %vm2283_vm3 = vcmp.gt.f32.partialorder %v5902_v24, 0.0  ;;  %v2539_v27 = vmul.f32 0.2, %v5902_v24  ;;  %v1620_v28 = vpop.f32.mrb[123].mxu0  ;;  %v2132_v29 = vpop.f32.mrb[123].mxu1  ;;  %v2922_v34 = vsel %vm2410_vm1, %v6029_v15, %v2666_v21 }
 0x1ea   :  { %vm2408_vm4 = vcmp.gt.f32.partialorder %v2129_v20, 0.0  ;;  %vm2411_vm5 = vcmp.gt.f32.partialorder %v6030_v25, 0.0  ;;  %v2667_v30 = vmul.f32 0.2, %v6030_v25  ;;  %vm2281_vm6 = vcmp.gt.f32.partialorder %v1620_v28, 0.0 }
 0x1eb   :  { %v2795_v31 = vsel %vm2283_vm3, %v5902_v24, %v2539_v27  ;;  %v2537_v32 = vmul.f32 0.2, %v1620_v28  ;;  %vm2409_vm7 = vcmp.gt.f32.partialorder %v2132_v29, 0.0  ;;  %v2665_v33 = vmul.f32 0.2, %v2132_v29 }
 0x1ec   :  { %v2792_v35 = vsel %vm2280_vm2, %v1617_v19, %v2536_v22  ;;  %v5168_v36 = vpack.c.bf16 %v2795_v31, %v2794_v26  ;;  %v2923_v37 = vsel %vm2411_vm5, %v6030_v25, %v2667_v30  ;;  %v2920_v38 = vsel %vm2408_vm4, %v2129_v20, %v2664_v23 }
 0x1ed   :  { %v5488_v39 = vpack.c.bf16 %v2923_v37, %v2922_v34  ;;  %v2793_v40 = vsel %vm2281_vm6, %v1620_v28, %v2537_v32  ;;  %v2921_v41 = vsel %vm2409_vm7, %v2132_v29, %v2665_v33  ;;  %v5905_v42 = vpop.f32.mrb[124].mxu0  ;;  %v6033_v43 = vpop.f32.mrb[124].mxu1 }
 0x1ee   :  { %5560 = vst [vmem:[%s7039_s2 + $0x1e8] sm:$0xff] %v5168_v36   ;;  %v5163_v44 = vpack.c.bf16 %v2793_v40, %v2792_v35  ;;  %v5483_v45 = vpack.c.bf16 %v2921_v41, %v2920_v38  ;;  %vm2286_vm8 = vcmp.gt.f32.partialorder %v5905_v42, 0.0  ;;  %v2542_v46 = vmul.f32 0.2, %v5905_v42  ;;  %v1633_v47 = vpop.f32.mrb[125].mxu0  ;;  %v2145_v48 = vpop.f32.mrb[125].mxu1 }
 0x1ef   :  { %5624 = vst [vmem:[%s7039_s2 + $0x3e8] sm:$0xff] %v5488_v39   ;;  %vm2414_vm9 = vcmp.gt.f32.partialorder %v6033_v43, 0.0  ;;  %v2670_v49 = vmul.f32 0.2, %v6033_v43  ;;  %v2540_v50 = vmul.f32 0.2, %v1633_v47 }
 0x1f0   :  { %5559 = vst [vmem:[%s7039_s2 + $0x1e0] sm:$0xff] %v5163_v44   ;;  %5623 = vst [vmem:[%s7039_s2 + $0x3e0] sm:$0xff] %v5483_v45   ;;  %v2668_v51 = vmul.f32 0.2, %v2145_v48  ;;  %v5906_v52 = vpop.f32.mrb[126].mxu0  ;;  %v6034_v53 = vpop.f32.mrb[126].mxu1  ;;  %v2798_v54 = vsel %vm2286_vm8, %v5905_v42, %v2542_v46 }
 0x1f1   :  { %vm2284_vm10 = vcmp.gt.f32.partialorder %v1633_v47, 0.0  ;;  %vm2287_vm11 = vcmp.gt.f32.partialorder %v5906_v52, 0.0  ;;  %v2543_v55 = vmul.f32 0.2, %v5906_v52  ;;  %v1636_v56 = vpop.f32.mrb[127].mxu0  ;;  %v2148_v57 = vpop.f32.mrb[127].mxu1  ;;  %v2926_v62 = vsel %vm2414_vm9, %v6033_v43, %v2670_v49 }
 0x1f2   :  { %vm2412_vm12 = vcmp.gt.f32.partialorder %v2145_v48, 0.0  ;;  %vm2415_vm13 = vcmp.gt.f32.partialorder %v6034_v53, 0.0  ;;  %v2671_v58 = vmul.f32 0.2, %v6034_v53  ;;  %vm2285_vm14 = vcmp.gt.f32.partialorder %v1636_v56, 0.0 }
 0x1f3   :  { %v2799_v59 = vsel %vm2287_vm11, %v5906_v52, %v2543_v55  ;;  %v2541_v60 = vmul.f32 0.2, %v1636_v56  ;;  %vm2413_vm15 = vcmp.gt.f32.partialorder %v2148_v57, 0.0  ;;  %v2669_v61 = vmul.f32 0.2, %v2148_v57 }
 0x1f4   :  { %v2796_v63 = vsel %vm2284_vm10, %v1633_v47, %v2540_v50  ;;  %v5178_v0 = vpack.c.bf16 %v2799_v59, %v2798_v54  ;;  %v2927_v1 = vsel %vm2415_vm13, %v6034_v53, %v2671_v58  ;;  %v2924_v2 = vsel %vm2412_vm12, %v2145_v48, %v2668_v51 }
 0x1f5   :  { %v5498_v3 = vpack.c.bf16 %v2927_v1, %v2926_v62  ;;  %v2797_v4 = vsel %vm2285_vm14, %v1636_v56, %v2541_v60  ;;  %v2925_v5 = vsel %vm2413_vm15, %v2148_v57, %v2669_v61 }
 0x1f6   :  { %5562 = vst [vmem:[%s7039_s2 + $0x1f8] sm:$0xff] %v5178_v0   ;;  %v5173_v6 = vpack.c.bf16 %v2797_v4, %v2796_v63  ;;  %v5493_v7 = vpack.c.bf16 %v2925_v5, %v2924_v2 }
 0x1f7   :  { %5626 = vst [vmem:[%s7039_s2 + $0x3f8] sm:$0xff] %v5498_v3  }
 0x1f8   :  { %5561 = vst [vmem:[%s7039_s2 + $0x1f0] sm:$0xff] %v5173_v6   ;;  %5625 = vst [vmem:[%s7039_s2 + $0x3f0] sm:$0xff] %v5493_v7  }

// kernel: d_forward.5
= control target key start
LH: loop header
LB: loop body
LE: loop exit
PB: predicated region body
PF: predicated region fallthrough
CT: control target
= control target key end

     0   :  { %v4759_v0 = vmov 0   ;;  %s5911_s1 = inlined_call_operand.vmem [shape: bf16[1,1024,128], index: 1, kind: input, shape index: {}]   ;;  %s5912_s0 = inlined_call_operand.vmem [shape: bf16[512,1024], index: 0, kind: input, shape index: {}]   ;;  %s5913_s2 = inlined_call_operand.vmem [shape: bf16[512,128], index: 2, kind: output, shape index: {}]  }
   0x1   :  { %2063 = vmatprep.subr.bf16.mxu1 %v4759_v0  ;;  %2641 = vmatprep.subr.bf16.mxu0 %v4759_v0  ;;  %v4695_v1 = vld [vmem:[%s5911_s1] sm:$0xff]   ;;  %v4697_v3 = vld [vmem:[%s5911_s1 + $0x8] sm:$0xff]   ;;  %v4699_v5 = vld [vmem:[%s5911_s1 + $0x10] sm:$0xff]  }
   0x2   :  { %v4696_v2 = vld [vmem:[%s5911_s1 + $0x100] sm:$0xff]   ;;  %2064 = vmatpush1.bf16.msra.mxu1 %v4695_v1  ;;  %v4698_v4 = vld [vmem:[%s5911_s1 + $0x108] sm:$0xff]   ;;  %v4700_v6 = vld [vmem:[%s5911_s1 + $0x110] sm:$0xff]  }
   0x3   :  { %2642 = vmatpush1.bf16.msra.mxu0 %v4696_v2  ;;  %2065 = vmatprep.subr.bf16.mxu1 %v4759_v0  ;;  %v4701_v7 = vld [vmem:[%s5911_s1 + $0x18] sm:$0xff]   ;;  %v4703_v9 = vld [vmem:[%s5911_s1 + $0x20] sm:$0xff]   ;;  %v4705_v11 = vld [vmem:[%s5911_s1 + $0x28] sm:$0xff]  }
   0x4   :  { %2643 = vmatprep.subr.bf16.mxu0 %v4759_v0  ;;  %v4702_v8 = vld [vmem:[%s5911_s1 + $0x118] sm:$0xff]   ;;  %v4704_v10 = vld [vmem:[%s5911_s1 + $0x120] sm:$0xff]   ;;  %v4706_v12 = vld [vmem:[%s5911_s1 + $0x128] sm:$0xff]  }
   0x5   :  { %v4707_v13 = vld [vmem:[%s5911_s1 + $0x30] sm:$0xff]   ;;  %v4709_v15 = vld [vmem:[%s5911_s1 + $0x38] sm:$0xff]   ;;  %v4711_v17 = vld [vmem:[%s5911_s1 + $0x40] sm:$0xff]  }
   0x6   :  { %2066 = vmatpush1.bf16.msra.mxu1 %v4697_v3  ;;  %v4708_v14 = vld [vmem:[%s5911_s1 + $0x130] sm:$0xff]   ;;  %v4710_v16 = vld [vmem:[%s5911_s1 + $0x138] sm:$0xff]   ;;  %v4712_v18 = vld [vmem:[%s5911_s1 + $0x140] sm:$0xff]  }
   0x7   :  { %2644 = vmatpush1.bf16.msra.mxu0 %v4698_v4  ;;  %2067 = vmatprep.subr.bf16.mxu1 %v4759_v0  ;;  %v4850_v19 = vld [vmem:[%s5912_s0] sm:$0xff]  ;;  %v4860_v21 = vld [vmem:[%s5912_s0 + $0x10] sm:$0xff]  ;;  %v4713_v24 = vld [vmem:[%s5911_s1 + $0x48] sm:$0xff]  }
   0x8   :  { %2645 = vmatprep.subr.bf16.mxu0 %v4759_v0  ;;  %v4855_v20 = vld [vmem:[%s5912_s0 + $0x20] sm:$0xff]  ;;  %v4867_v23 = vld [vmem:[%s5912_s0 + $0x30] sm:$0xff]  ;;  %v4714_v26 = vld [vmem:[%s5911_s1 + $0x148] sm:$0xff]  }
   0x9   :  { %v3736_v22 = vcombine.high %v4850_v19, %v4855_v20  ;;  %v3740_v25 = vcombine.high %v4860_v21, %v4867_v23  ;;  %v4715_v27 = vld [vmem:[%s5911_s1 + $0x50] sm:$0xff]   ;;  %v4717_v29 = vld [vmem:[%s5911_s1 + $0x58] sm:$0xff]   ;;  %v4719_v31 = vld [vmem:[%s5911_s1 + $0x60] sm:$0xff]   ;;  %v3735_v42 = vcombine.low %v4850_v19, %v4855_v20  ;;  %v3739_v44 = vcombine.low %v4860_v21, %v4867_v23 }
   0xa   :  { %2068 = vmatpush1.bf16.msra.mxu1 %v4699_v5  ;;  %v4716_v28 = vld [vmem:[%s5911_s1 + $0x150] sm:$0xff]   ;;  %v4718_v30 = vld [vmem:[%s5911_s1 + $0x158] sm:$0xff]   ;;  %v4720_v32 = vld [vmem:[%s5911_s1 + $0x160] sm:$0xff]  }
   0xb   :  { %2646 = vmatpush1.bf16.msra.mxu0 %v4700_v6  ;;  %2069 = vmatprep.subr.bf16.mxu1 %v4759_v0  ;;  %v4721_v33 = vld [vmem:[%s5911_s1 + $0x68] sm:$0xff]   ;;  %v4723_v35 = vld [vmem:[%s5911_s1 + $0x70] sm:$0xff]   ;;  %v4725_v37 = vld [vmem:[%s5911_s1 + $0x78] sm:$0xff]  }
   0xc   :  { %2647 = vmatprep.subr.bf16.mxu0 %v4759_v0  ;;  %2095 = vmatprep.mubr.bf16.mxu1 %v3736_v22  ;;  %v4722_v34 = vld [vmem:[%s5911_s1 + $0x168] sm:$0xff]   ;;  %v4724_v36 = vld [vmem:[%s5911_s1 + $0x170] sm:$0xff]   ;;  %v4726_v38 = vld [vmem:[%s5911_s1 + $0x178] sm:$0xff]  }
   0xd   :  { %2673 = vmatprep.mubr.bf16.mxu0 %v3740_v25  ;;  %v20_v39 = vld [vmem:[%s5912_s0 + $0x40] sm:$0xff]  ;;  %v22_v41 = vld [vmem:[%s5912_s0 + $0x50] sm:$0xff]  ;;  %v4729_v51 = vld [vmem:[%s5911_s1 + $0x88] sm:$0xff]  }
   0xe   :  { %2070 = vmatpush1.bf16.msra.mxu1 %v4701_v7  ;;  %v24_v40 = vld [vmem:[%s5912_s0 + $0x60] sm:$0xff]  ;;  %v26_v43 = vld [vmem:[%s5912_s0 + $0x70] sm:$0xff]  ;;  %v4730_v52 = vld [vmem:[%s5911_s1 + $0x188] sm:$0xff]  }
   0xf   :  { %2648 = vmatpush1.bf16.msra.mxu0 %v4702_v8  ;;  %2071 = vmatprep.subr.bf16.mxu1 %v4759_v0  ;;  %v4727_v45 = vld [vmem:[%s5911_s1 + $0x80] sm:$0xff]   ;;  %v3744_v47 = vcombine.high %v20_v39, %v24_v40  ;;  %v3748_v48 = vcombine.high %v22_v41, %v26_v43  ;;  %v30_v53 = vld [vmem:[%s5912_s0 + $0x90] sm:$0xff]  ;;  %v3743_v55 = vcombine.low %v20_v39, %v24_v40  ;;  %v4733_v2 = vld [vmem:[%s5911_s1 + $0x98] sm:$0xff]  }
  0x10   :  { %2649 = vmatprep.subr.bf16.mxu0 %v4759_v0  ;;  %v4728_v46 = vld [vmem:[%s5911_s1 + $0x180] sm:$0xff]   ;;  %v34_v54 = vld [vmem:[%s5912_s0 + $0xb0] sm:$0xff]  ;;  %v3747_v56 = vcombine.low %v22_v41, %v26_v43  ;;  %v4734_v3 = vld [vmem:[%s5911_s1 + $0x198] sm:$0xff]  }
  0x11   :  { %v28_v49 = vld [vmem:[%s5912_s0 + $0x80] sm:$0xff]  ;;  %v3756_v58 = vcombine.high %v30_v53, %v34_v54  ;;  %v4731_v59 = vld [vmem:[%s5911_s1 + $0x90] sm:$0xff]   ;;  %v3755_v6 = vcombine.low %v30_v53, %v34_v54  ;;  %v4746_v39 = vld [vmem:[%s5911_s1 + $0x1c8] sm:$0xff]  }
  0x12   :  { %2072 = vmatpush1.bf16.msra.mxu1 %v4703_v9  ;;  %v32_v50 = vld [vmem:[%s5912_s0 + $0xa0] sm:$0xff]  ;;  %v4732_v60 = vld [vmem:[%s5911_s1 + $0x190] sm:$0xff]   ;;  %v4749_v54 = vld [vmem:[%s5911_s1 + $0xd8] sm:$0xff]  }
  0x13   :  { %2650 = vmatpush1.bf16.msra.mxu0 %v4704_v10  ;;  %2073 = vmatprep.subr.bf16.mxu1 %v4759_v0  ;;  %v3752_v57 = vcombine.high %v28_v49, %v32_v50  ;;  %v36_v61 = vld [vmem:[%s5912_s0 + $0xc0] sm:$0xff]  ;;  %v38_v63 = vld [vmem:[%s5912_s0 + $0xd0] sm:$0xff]  ;;  %v3751_v4 = vcombine.low %v28_v49, %v32_v50 }
  0x14   :  { %2651 = vmatprep.subr.bf16.mxu0 %v4759_v0  ;;  %v40_v62 = vld [vmem:[%s5912_s0 + $0xe0] sm:$0xff]  ;;  %v42_v1 = vld [vmem:[%s5912_s0 + $0xf0] sm:$0xff] }
  0x15   :  { %v4735_v5 = vld [vmem:[%s5911_s1 + $0xa0] sm:$0xff]   ;;  %v3760_v7 = vcombine.high %v36_v61, %v40_v62  ;;  %v3764_v9 = vcombine.high %v38_v63, %v42_v1  ;;  %v4739_v20 = vld [vmem:[%s5911_s1 + $0xb0] sm:$0xff]  }
  0x16   :  { %2074 = vmatpush1.bf16.msra.mxu1 %v4705_v11  ;;  %v4736_v8 = vld [vmem:[%s5911_s1 + $0x1a0] sm:$0xff]   ;;  %v4740_v21 = vld [vmem:[%s5911_s1 + $0x1b0] sm:$0xff]  }
  0x17   :  { %2652 = vmatpush1.bf16.msra.mxu0 %v4706_v12  ;;  %2075 = vmatprep.subr.bf16.mxu1 %v4759_v0  ;;  %v44_v10 = vld [vmem:[%s5912_s0 + $0x100] sm:$0xff]  ;;  %v46_v12 = vld [vmem:[%s5912_s0 + $0x110] sm:$0xff] }
  0x18   :  { %2653 = vmatprep.subr.bf16.mxu0 %v4759_v0  ;;  %v48_v11 = vld [vmem:[%s5912_s0 + $0x120] sm:$0xff]  ;;  %v54_v25 = vld [vmem:[%s5912_s0 + $0x150] sm:$0xff] }
  0x19   :  { %v52_v22 = vld [vmem:[%s5912_s0 + $0x140] sm:$0xff]  ;;  %v74_v49 = vld [vmem:[%s5912_s0 + $0x1f0] sm:$0xff] }
  0x1a   :  { %2076 = vmatpush1.bf16.msra.mxu1 %v4707_v13  ;;  %v50_v13 = vld [vmem:[%s5912_s0 + $0x130] sm:$0xff]  ;;  %v56_v23 = vld [vmem:[%s5912_s0 + $0x160] sm:$0xff] }
  0x1b   :  { %2654 = vmatpush1.bf16.msra.mxu0 %v4708_v14  ;;  %2077 = vmatprep.subr.bf16.mxu1 %v4759_v0  ;;  %v4737_v14 = vld [vmem:[%s5911_s1 + $0xa8] sm:$0xff]   ;;  %v3772_v19 = vcombine.high %v46_v12, %v50_v13  ;;  %v3775_v40 = vcombine.low %v52_v22, %v56_v23 }
  0x1c   :  { %2655 = vmatprep.subr.bf16.mxu0 %v4759_v0 }
  0x1e   :  { %2078 = vmatpush1.bf16.msra.mxu1 %v4709_v15  ;;  %v4738_v15 = vld [vmem:[%s5911_s1 + $0x1a8] sm:$0xff]  }
  0x1f   :  { %2656 = vmatpush1.bf16.msra.mxu0 %v4710_v16  ;;  %2079 = vmatprep.subr.bf16.mxu1 %v4759_v0  ;;  %v3759_v16 = vcombine.low %v36_v61, %v40_v62 }
  0x20   :  { %2657 = vmatprep.subr.bf16.mxu0 %v4759_v0 }
  0x22   :  { %2080 = vmatpush1.bf16.msra.mxu1 %v4711_v17  ;;  %v3763_v17 = vcombine.low %v38_v63, %v42_v1  ;;  %v84_v1 = vld [vmem:[%s5912_s0 + $0x240] sm:$0xff] }
  0x23   :  { %2658 = vmatpush1.bf16.msra.mxu0 %v4712_v18  ;;  %2081 = vmatprep.subr.bf16.mxu1 %v4759_v0  ;;  %v3768_v18 = vcombine.high %v44_v10, %v48_v11 }
  0x24   :  { %2659 = vmatprep.subr.bf16.mxu0 %v4759_v0 }
  0x26   :  { %2082 = vmatpush1.bf16.msra.mxu1 %v4713_v24  ;;  %v4741_v24 = vld [vmem:[%s5911_s1 + $0xb8] sm:$0xff]  }
  0x27   :  { %2660 = vmatpush1.bf16.msra.mxu0 %v4714_v26  ;;  %2083 = vmatprep.subr.bf16.mxu1 %v4759_v0  ;;  %v58_v26 = vld [vmem:[%s5912_s0 + $0x170] sm:$0xff] }
  0x28   :  { %2661 = vmatprep.subr.bf16.mxu0 %v4759_v0  ;;  %v3779_v41 = vcombine.low %v54_v25, %v58_v26 }
  0x2a   :  { %2084 = vmatpush1.bf16.msra.mxu1 %v4715_v27  ;;  %v4742_v27 = vld [vmem:[%s5911_s1 + $0x1b8] sm:$0xff]  }
  0x2b   :  { %2662 = vmatpush1.bf16.msra.mxu0 %v4716_v28  ;;  %2085 = vmatprep.subr.bf16.mxu1 %v4759_v0  ;;  %v3767_v28 = vcombine.low %v44_v10, %v48_v11  ;;  %v4752_v10 = vld [vmem:[%s5911_s1 + $0x1e0] sm:$0xff]  }
  0x2c   :  { %2663 = vmatprep.subr.bf16.mxu0 %v4759_v0  ;;  %v92_v11 = vld [vmem:[%s5912_s0 + $0x280] sm:$0xff] }
  0x2e   :  { %2086 = vmatpush1.bf16.msra.mxu1 %v4717_v29  ;;  %v3771_v29 = vcombine.low %v46_v12, %v50_v13  ;;  %v96_v12 = vld [vmem:[%s5912_s0 + $0x2a0] sm:$0xff]  ;;  %v94_v13 = vld [vmem:[%s5912_s0 + $0x290] sm:$0xff] }
  0x2f   :  { %2664 = vmatpush1.bf16.msra.mxu0 %v4718_v30  ;;  %2087 = vmatprep.subr.bf16.mxu1 %v4759_v0  ;;  %v3776_v30 = vcombine.high %v52_v22, %v56_v23  ;;  %v106_v22 = vld [vmem:[%s5912_s0 + $0x2f0] sm:$0xff]  ;;  %v3815_v23 = vcombine.low %v92_v11, %v96_v12 }
  0x30   :  { %2665 = vmatprep.subr.bf16.mxu0 %v4759_v0 }
  0x32   :  { %2088 = vmatpush1.bf16.msra.mxu1 %v4719_v31  ;;  %v3780_v31 = vcombine.high %v54_v25, %v58_v26 }
  0x33   :  { %2666 = vmatpush1.bf16.msra.mxu0 %v4720_v32  ;;  %2089 = vmatprep.subr.bf16.mxu1 %v4759_v0  ;;  %v4743_v32 = vld [vmem:[%s5911_s1 + $0xc0] sm:$0xff]  }
  0x34   :  { %2667 = vmatprep.subr.bf16.mxu0 %v4759_v0 }
  0x36   :  { %2090 = vmatpush1.bf16.msra.mxu1 %v4721_v33  ;;  %v4744_v33 = vld [vmem:[%s5911_s1 + $0x1c0] sm:$0xff]  }
  0x37   :  { %2668 = vmatpush1.bf16.msra.mxu0 %v4722_v34  ;;  %2091 = vmatprep.subr.bf16.mxu1 %v4759_v0  ;;  %v60_v34 = vld [vmem:[%s5912_s0 + $0x180] sm:$0xff] }
  0x38   :  { %2669 = vmatprep.subr.bf16.mxu0 %v4759_v0 }
  0x3a   :  { %2092 = vmatpush1.bf16.msra.mxu1 %v4723_v35  ;;  %v64_v35 = vld [vmem:[%s5912_s0 + $0x1a0] sm:$0xff] }
  0x3b   :  { %2670 = vmatpush1.bf16.msra.mxu0 %v4724_v36  ;;  %2093 = vmatprep.subr.bf16.mxu1 %v4759_v0  ;;  %v4745_v36 = vld [vmem:[%s5911_s1 + $0xc8] sm:$0xff]   ;;  %v3783_v50 = vcombine.low %v60_v34, %v64_v35 }
  0x3c   :  { %2671 = vmatprep.subr.bf16.mxu0 %v4759_v0 }
  0x3e   :  { %2094 = vmatpush1.bf16.msra.mxu1 %v4725_v37  ;;  %v62_v37 = vld [vmem:[%s5912_s0 + $0x190] sm:$0xff] }
  0x3f   :  { %2672 = vmatpush1.bf16.msra.mxu0 %v4726_v38  ;;  %2352 = vmatprep.subr.bf16.mxu1 %v4759_v0  ;;  %v66_v38 = vld [vmem:[%s5912_s0 + $0x1b0] sm:$0xff] }
  0x40   :  { %2930 = vmatprep.subr.bf16.mxu0 %v4759_v0  ;;  %v3788_v43 = vcombine.high %v62_v37, %v66_v38 }
  0x41   :  { %2096 = vmatmul.mubr.bf16.vlgmr.msra.gmra.mrb[0].mxu1 %v3735_v42  ;;  %v3784_v42 = vcombine.high %v60_v34, %v64_v35 }
  0x42   :  { %2674 = vmatmul.mubr.bf16.vlgmr.msra.gmra.mrb[0].mxu0 %v3739_v44  ;;  %2353 = vmatpush1.bf16.msra.mxu1 %v4727_v45  ;;  %v4747_v44 = vld [vmem:[%s5911_s1 + $0xd0] sm:$0xff]  }
  0x43   :  { %2931 = vmatpush1.bf16.msra.mxu0 %v4728_v46  ;;  %2103 = vmatprep.mubr.bf16.mxu1 %v3744_v47  ;;  %v4748_v45 = vld [vmem:[%s5911_s1 + $0x1d0] sm:$0xff]   ;;  %v68_v46 = vld [vmem:[%s5912_s0 + $0x1c0] sm:$0xff] }
  0x44   :  { %2681 = vmatprep.mubr.bf16.mxu0 %v3748_v48  ;;  %2354 = vmatprep.subr.bf16.mxu1 %v4759_v0  ;;  %v72_v47 = vld [vmem:[%s5912_s0 + $0x1e0] sm:$0xff]  ;;  %v70_v48 = vld [vmem:[%s5912_s0 + $0x1d0] sm:$0xff] }
  0x45   :  { %2932 = vmatprep.subr.bf16.mxu0 %v4759_v0  ;;  %v3796_v53 = vcombine.high %v70_v48, %v74_v49  ;;  %v3795_v61 = vcombine.low %v70_v48, %v74_v49  ;;  %v128_v48 = vld [vmem:[%s5912_s0 + $0x3a0] sm:$0xff]  ;;  %v126_v49 = vld [vmem:[%s5912_s0 + $0x390] sm:$0xff] }
  0x46   :  { %2355 = vmatpush1.bf16.msra.mxu1 %v4729_v51  ;;  %v3787_v51 = vcombine.low %v62_v37, %v66_v38  ;;  %v116_v37 = vld [vmem:[%s5912_s0 + $0x340] sm:$0xff] }
  0x47   :  { %2933 = vmatpush1.bf16.msra.mxu0 %v4730_v52  ;;  %2356 = vmatprep.subr.bf16.mxu1 %v4759_v0  ;;  %v3792_v52 = vcombine.high %v68_v46, %v72_v47  ;;  %v120_v38 = vld [vmem:[%s5912_s0 + $0x360] sm:$0xff] }
  0x48   :  { %2934 = vmatprep.subr.bf16.mxu0 %v4759_v0 }
  0x49   :  { %2104 = vmatmul.mubr.bf16.gmra.mrb[4].mxu1 %v3743_v55  ;;  %v4750_v55 = vld [vmem:[%s5911_s1 + $0x1d8] sm:$0xff]  }
  0x4a   :  { %2682 = vmatmul.mubr.bf16.gmra.mrb[4].mxu0 %v3747_v56  ;;  %2111 = vmatprep.mubr.bf16.mxu1 %v3752_v57  ;;  %v76_v56 = vld [vmem:[%s5912_s0 + $0x200] sm:$0xff] }
  0x4b   :  { %2689 = vmatprep.mubr.bf16.mxu0 %v3756_v58  ;;  %2357 = vmatpush1.bf16.msra.mxu1 %v4731_v59  ;;  %v80_v57 = vld [vmem:[%s5912_s0 + $0x220] sm:$0xff]  ;;  %v78_v58 = vld [vmem:[%s5912_s0 + $0x210] sm:$0xff] }
  0x4c   :  { %2935 = vmatpush1.bf16.msra.mxu0 %v4732_v60  ;;  %2358 = vmatprep.subr.bf16.mxu1 %v4759_v0  ;;  %v82_v59 = vld [vmem:[%s5912_s0 + $0x230] sm:$0xff]  ;;  %v3791_v60 = vcombine.low %v68_v46, %v72_v47  ;;  %v3800_v62 = vcombine.high %v76_v56, %v80_v57  ;;  %v124_v47 = vld [vmem:[%s5912_s0 + $0x380] sm:$0xff] }
  0x4d   :  { %2936 = vmatprep.subr.bf16.mxu0 %v4759_v0  ;;  %v3804_v63 = vcombine.high %v78_v58, %v82_v59  ;;  %v4756_v46 = vld [vmem:[%s5911_s1 + $0x1f0] sm:$0xff]  }
  0x4f   :  { %2359 = vmatpush1.bf16.msra.mxu1 %v4733_v2  ;;  %v88_v2 = vld [vmem:[%s5912_s0 + $0x260] sm:$0xff] }
  0x50   :  { %2937 = vmatpush1.bf16.msra.mxu0 %v4734_v3  ;;  %2360 = vmatprep.subr.bf16.mxu1 %v4759_v0  ;;  %v86_v3 = vld [vmem:[%s5912_s0 + $0x250] sm:$0xff] }
  0x51   :  { %2112 = vmatmul.mubr.bf16.gmra.mrb[8].mxu1 %v3751_v4  ;;  %2938 = vmatprep.subr.bf16.mxu0 %v4759_v0  ;;  %v90_v4 = vld [vmem:[%s5912_s0 + $0x270] sm:$0xff] }
  0x52   :  { %2690 = vmatmul.mubr.bf16.gmra.mrb[8].mxu0 %v3755_v6  ;;  %2119 = vmatprep.mubr.bf16.mxu1 %v3760_v7  ;;  %v3803_v6 = vcombine.low %v78_v58, %v82_v59  ;;  %v3808_v7 = vcombine.high %v84_v1, %v88_v2  ;;  %v3847_v58 = vcombine.low %v124_v47, %v128_v48 }
  0x53   :  { %2697 = vmatprep.mubr.bf16.mxu0 %v3764_v9  ;;  %2361 = vmatpush1.bf16.msra.mxu1 %v4735_v5  ;;  %v3799_v5 = vcombine.low %v76_v56, %v80_v57  ;;  %v4751_v9 = vld [vmem:[%s5911_s1 + $0xe0] sm:$0xff]   ;;  %v134_v57 = vld [vmem:[%s5912_s0 + $0x3d0] sm:$0xff] }
  0x54   :  { %2939 = vmatpush1.bf16.msra.mxu0 %v4736_v8  ;;  %2362 = vmatprep.subr.bf16.mxu1 %v4759_v0  ;;  %v3812_v8 = vcombine.high %v86_v3, %v90_v4  ;;  %v136_v56 = vld [vmem:[%s5912_s0 + $0x3e0] sm:$0xff] }
  0x55   :  { %2940 = vmatprep.subr.bf16.mxu0 %v4759_v0 }
  0x57   :  { %2363 = vmatpush1.bf16.msra.mxu1 %v4737_v14  ;;  %v98_v14 = vld [vmem:[%s5912_s0 + $0x2b0] sm:$0xff] }
  0x58   :  { %2941 = vmatpush1.bf16.msra.mxu0 %v4738_v15  ;;  %2364 = vmatprep.subr.bf16.mxu1 %v4759_v0  ;;  %v3807_v15 = vcombine.low %v84_v1, %v88_v2  ;;  %v140_v1 = vld [vmem:[%s5912_s0 + $0x400] sm:$0xff] }
  0x59   :  { %2120 = vmatmul.mubr.bf16.gmra.mrb[12].mxu1 %v3759_v16  ;;  %2942 = vmatprep.subr.bf16.mxu0 %v4759_v0  ;;  %v3811_v16 = vcombine.low %v86_v3, %v90_v4  ;;  %v144_v2 = vld [vmem:[%s5912_s0 + $0x420] sm:$0xff]  ;;  %v142_v3 = vld [vmem:[%s5912_s0 + $0x410] sm:$0xff] }
  0x5a   :  { %2698 = vmatmul.mubr.bf16.gmra.mrb[12].mxu0 %v3763_v17  ;;  %2127 = vmatprep.mubr.bf16.mxu1 %v3768_v18  ;;  %v3816_v17 = vcombine.high %v92_v11, %v96_v12  ;;  %v3820_v18 = vcombine.high %v94_v13, %v98_v14  ;;  %v146_v4 = vld [vmem:[%s5912_s0 + $0x430] sm:$0xff] }
  0x5b   :  { %2705 = vmatprep.mubr.bf16.mxu0 %v3772_v19  ;;  %2365 = vmatpush1.bf16.msra.mxu1 %v4739_v20  ;;  %v100_v19 = vld [vmem:[%s5912_s0 + $0x2c0] sm:$0xff]  ;;  %v150_v11 = vld [vmem:[%s5912_s0 + $0x450] sm:$0xff] }
  0x5c   :  { %2943 = vmatpush1.bf16.msra.mxu0 %v4740_v21  ;;  %2366 = vmatprep.subr.bf16.mxu1 %v4759_v0  ;;  %v104_v20 = vld [vmem:[%s5912_s0 + $0x2e0] sm:$0xff]  ;;  %v102_v21 = vld [vmem:[%s5912_s0 + $0x2d0] sm:$0xff] }
  0x5d   :  { %2944 = vmatprep.subr.bf16.mxu0 %v4759_v0  ;;  %v3824_v25 = vcombine.high %v100_v19, %v104_v20  ;;  %v3828_v26 = vcombine.high %v102_v21, %v106_v22  ;;  %v3827_v34 = vcombine.low %v102_v21, %v106_v22  ;;  %v154_v12 = vld [vmem:[%s5912_s0 + $0x470] sm:$0xff] }
  0x5e   :  { %v3875_v22 = vcombine.low %v150_v11, %v154_v12 }
  0x5f   :  { %2367 = vmatpush1.bf16.msra.mxu1 %v4741_v24  ;;  %v3819_v24 = vcombine.low %v94_v13, %v98_v14  ;;  %v3863_v13 = vcombine.low %v140_v1, %v144_v2  ;;  %v3867_v14 = vcombine.low %v142_v3, %v146_v4 }
  0x60   :  { %2945 = vmatpush1.bf16.msra.mxu0 %v4742_v27  ;;  %2368 = vmatprep.subr.bf16.mxu1 %v4759_v0  ;;  %v4753_v27 = vld [vmem:[%s5911_s1 + $0xe8] sm:$0xff]  }
  0x61   :  { %2128 = vmatmul.mubr.bf16.gmra.mrb[16].mxu1 %v3767_v28  ;;  %2946 = vmatprep.subr.bf16.mxu0 %v4759_v0  ;;  %v4754_v28 = vld [vmem:[%s5911_s1 + $0x1e8] sm:$0xff]  }
  0x62   :  { %2706 = vmatmul.mubr.bf16.gmra.mrb[16].mxu0 %v3771_v29  ;;  %2135 = vmatprep.mubr.bf16.mxu1 %v3776_v30  ;;  %v108_v29 = vld [vmem:[%s5912_s0 + $0x300] sm:$0xff] }
  0x63   :  { %2713 = vmatprep.mubr.bf16.mxu0 %v3780_v31  ;;  %2369 = vmatpush1.bf16.msra.mxu1 %v4743_v32  ;;  %v112_v30 = vld [vmem:[%s5912_s0 + $0x320] sm:$0xff]  ;;  %v110_v31 = vld [vmem:[%s5912_s0 + $0x310] sm:$0xff] }
  0x64   :  { %2947 = vmatpush1.bf16.msra.mxu0 %v4744_v33  ;;  %2370 = vmatprep.subr.bf16.mxu1 %v4759_v0  ;;  %v114_v32 = vld [vmem:[%s5912_s0 + $0x330] sm:$0xff]  ;;  %v3823_v33 = vcombine.low %v100_v19, %v104_v20  ;;  %v3832_v35 = vcombine.high %v108_v29, %v112_v30 }
  0x65   :  { %2948 = vmatprep.subr.bf16.mxu0 %v4759_v0  ;;  %v158_v19 = vld [vmem:[%s5912_s0 + $0x490] sm:$0xff] }
  0x66   :  { %v162_v20 = vld [vmem:[%s5912_s0 + $0x4b0] sm:$0xff] }
  0x67   :  { %2371 = vmatpush1.bf16.msra.mxu1 %v4745_v36  ;;  %v3836_v36 = vcombine.high %v110_v31, %v114_v32 }
  0x68   :  { %2949 = vmatpush1.bf16.msra.mxu0 %v4746_v39  ;;  %2372 = vmatprep.subr.bf16.mxu1 %v4759_v0  ;;  %v118_v39 = vld [vmem:[%s5912_s0 + $0x350] sm:$0xff] }
  0x69   :  { %2136 = vmatmul.mubr.bf16.gmra.mrb[20].mxu1 %v3775_v40  ;;  %2950 = vmatprep.subr.bf16.mxu0 %v4759_v0  ;;  %v122_v40 = vld [vmem:[%s5912_s0 + $0x370] sm:$0xff] }
  0x6a   :  { %2714 = vmatmul.mubr.bf16.gmra.mrb[20].mxu0 %v3779_v41  ;;  %2143 = vmatprep.mubr.bf16.mxu1 %v3784_v42  ;;  %v3831_v41 = vcombine.low %v108_v29, %v112_v30  ;;  %v3835_v42 = vcombine.low %v110_v31, %v114_v32  ;;  %v3883_v30 = vcombine.low %v158_v19, %v162_v20 }
  0x6b   :  { %2721 = vmatprep.mubr.bf16.mxu0 %v3788_v43  ;;  %2373 = vmatpush1.bf16.msra.mxu1 %v4747_v44  ;;  %v3840_v43 = vcombine.high %v116_v37, %v120_v38  ;;  %v3844_v44 = vcombine.high %v118_v39, %v122_v40 }
  0x6c   :  { %2951 = vmatpush1.bf16.msra.mxu0 %v4748_v45  ;;  %2374 = vmatprep.subr.bf16.mxu1 %v4759_v0  ;;  %v4755_v45 = vld [vmem:[%s5911_s1 + $0xf0] sm:$0xff]  }
  0x6d   :  { %2952 = vmatprep.subr.bf16.mxu0 %v4759_v0 }
  0x6f   :  { %2375 = vmatpush1.bf16.msra.mxu1 %v4749_v54 }
  0x70   :  { %2953 = vmatpush1.bf16.msra.mxu0 %v4750_v55  ;;  %2376 = vmatprep.subr.bf16.mxu1 %v4759_v0  ;;  %v132_v55 = vld [vmem:[%s5912_s0 + $0x3c0] sm:$0xff] }
  0x71   :  { %2144 = vmatmul.mubr.bf16.gmra.mrb[24].mxu1 %v3783_v50  ;;  %2954 = vmatprep.subr.bf16.mxu0 %v4759_v0  ;;  %v130_v50 = vld [vmem:[%s5912_s0 + $0x3b0] sm:$0xff] }
  0x72   :  { %2722 = vmatmul.mubr.bf16.gmra.mrb[24].mxu0 %v3787_v51  ;;  %2151 = vmatprep.mubr.bf16.mxu1 %v3792_v52  ;;  %v3839_v51 = vcombine.low %v116_v37, %v120_v38  ;;  %v3843_v52 = vcombine.low %v118_v39, %v122_v40  ;;  %v3852_v54 = vcombine.high %v126_v49, %v130_v50 }
  0x73   :  { %2729 = vmatprep.mubr.bf16.mxu0 %v3796_v53  ;;  %2377 = vmatpush1.bf16.msra.mxu1 %v4751_v9  ;;  %v3848_v53 = vcombine.high %v124_v47, %v128_v48  ;;  %v3851_v59 = vcombine.low %v126_v49, %v130_v50  ;;  %v148_v9 = vld [vmem:[%s5912_s0 + $0x440] sm:$0xff] }
  0x74   :  { %2955 = vmatpush1.bf16.msra.mxu0 %v4752_v10  ;;  %2378 = vmatprep.subr.bf16.mxu1 %v4759_v0  ;;  %v152_v10 = vld [vmem:[%s5912_s0 + $0x460] sm:$0xff] }
  0x75   :  { %2956 = vmatprep.subr.bf16.mxu0 %v4759_v0  ;;  %v3871_v21 = vcombine.low %v148_v9, %v152_v10  ;;  %v188_v49 = vld [vmem:[%s5912_s0 + $0x580] sm:$0xff] }
  0x76   :  { %v192_v50 = vld [vmem:[%s5912_s0 + $0x5a0] sm:$0xff] }
  0x77   :  { %2379 = vmatpush1.bf16.msra.mxu1 %v4753_v27  ;;  %v166_v27 = vld [vmem:[%s5912_s0 + $0x4d0] sm:$0xff] }
  0x78   :  { %2957 = vmatpush1.bf16.msra.mxu0 %v4754_v28  ;;  %2380 = vmatprep.subr.bf16.mxu1 %v4759_v0  ;;  %v170_v28 = vld [vmem:[%s5912_s0 + $0x4f0] sm:$0xff] }
  0x79   :  { %2152 = vmatmul.mubr.bf16.gmra.mrb[28].mxu1 %v3791_v60  ;;  %2958 = vmatprep.subr.bf16.mxu0 %v4759_v0  ;;  %v3856_v60 = vcombine.high %v132_v55, %v136_v56  ;;  %v3892_v32 = vcombine.high %v166_v27, %v170_v28  ;;  %v3891_v38 = vcombine.low %v166_v27, %v170_v28  ;;  %v230_v27 = vld [vmem:[%s5912_s0 + $0x6d0] sm:$0xff] }
  0x7a   :  { %2730 = vmatmul.mubr.bf16.gmra.mrb[28].mxu0 %v3795_v61  ;;  %2159 = vmatprep.mubr.bf16.mxu1 %v3800_v62  ;;  %v4757_v62 = vld [vmem:[%s5911_s1 + $0xf8] sm:$0xff]   ;;  %v234_v28 = vld [vmem:[%s5912_s0 + $0x6f0] sm:$0xff] }
  0x7b   :  { %2737 = vmatprep.mubr.bf16.mxu0 %v3804_v63  ;;  %2381 = vmatpush1.bf16.msra.mxu1 %v4755_v45  ;;  %v4758_v63 = vld [vmem:[%s5911_s1 + $0x1f8] sm:$0xff]  }
  0x7c   :  { %2959 = vmatpush1.bf16.msra.mxu0 %v4756_v46  ;;  %2382 = vmatprep.subr.bf16.mxu1 %v4759_v0 }
  0x7d   :  { %2960 = vmatprep.subr.bf16.mxu0 %v4759_v0  ;;  %v138_v0 = vld [vmem:[%s5912_s0 + $0x3f0] sm:$0xff] }
  0x7e   :  { %v3860_v61 = vcombine.high %v134_v57, %v138_v0 }
  0x7f   :  { %2383 = vmatpush1.bf16.msra.mxu1 %v4757_v62 }
  0x80   :  { %2961 = vmatpush1.bf16.msra.mxu0 %v4758_v63 }
  0x81   :  { %2160 = vmatmul.mubr.bf16.gmra.mrb[32].mxu1 %v3799_v5  ;;  %v3855_v5 = vcombine.low %v132_v55, %v136_v56  ;;  %v3912_v55 = vcombine.high %v188_v49, %v192_v50 }
  0x82   :  { %2738 = vmatmul.mubr.bf16.gmra.mrb[32].mxu0 %v3803_v6  ;;  %2167 = vmatprep.mubr.bf16.mxu1 %v3808_v7  ;;  %v3859_v6 = vcombine.low %v134_v57, %v138_v0  ;;  %v3864_v7 = vcombine.high %v140_v1, %v144_v2  ;;  %v196_v57 = vld [vmem:[%s5912_s0 + $0x5c0] sm:$0xff] }
  0x83   :  { %2745 = vmatprep.mubr.bf16.mxu0 %v3812_v8  ;;  %v3868_v8 = vcombine.high %v142_v3, %v146_v4  ;;  %v200_v0 = vld [vmem:[%s5912_s0 + $0x5e0] sm:$0xff]  ;;  %v206_v3 = vld [vmem:[%s5912_s0 + $0x610] sm:$0xff] }
  0x84   :  { %v3920_v62 = vcombine.high %v196_v57, %v200_v0  ;;  %v204_v1 = vld [vmem:[%s5912_s0 + $0x600] sm:$0xff]  ;;  %v210_v4 = vld [vmem:[%s5912_s0 + $0x630] sm:$0xff] }
  0x85   :  { %v208_v2 = vld [vmem:[%s5912_s0 + $0x620] sm:$0xff] }
  0x89   :  { %2168 = vmatmul.mubr.bf16.gmra.mrb[36].mxu1 %v3807_v15  ;;  %v3872_v15 = vcombine.high %v148_v9, %v152_v10  ;;  %v212_v9 = vld [vmem:[%s5912_s0 + $0x640] sm:$0xff] }
  0x8a   :  { %2746 = vmatmul.mubr.bf16.gmra.mrb[36].mxu0 %v3811_v16  ;;  %2175 = vmatprep.mubr.bf16.mxu1 %v3816_v17  ;;  %v3876_v16 = vcombine.high %v150_v11, %v154_v12  ;;  %v156_v17 = vld [vmem:[%s5912_s0 + $0x480] sm:$0xff]  ;;  %v214_v11 = vld [vmem:[%s5912_s0 + $0x650] sm:$0xff] }
  0x8b   :  { %2753 = vmatprep.mubr.bf16.mxu0 %v3820_v18  ;;  %v160_v18 = vld [vmem:[%s5912_s0 + $0x4a0] sm:$0xff]  ;;  %v218_v12 = vld [vmem:[%s5912_s0 + $0x670] sm:$0xff] }
  0x8c   :  { %v3879_v29 = vcombine.low %v156_v17, %v160_v18  ;;  %v216_v10 = vld [vmem:[%s5912_s0 + $0x660] sm:$0xff] }
  0x91   :  { %2176 = vmatmul.mubr.bf16.gmra.mrb[40].mxu1 %v3815_v23  ;;  %v3880_v23 = vcombine.high %v156_v17, %v160_v18  ;;  %v220_v17 = vld [vmem:[%s5912_s0 + $0x680] sm:$0xff] }
  0x92   :  { %2754 = vmatmul.mubr.bf16.gmra.mrb[40].mxu0 %v3819_v24  ;;  %2183 = vmatprep.mubr.bf16.mxu1 %v3824_v25  ;;  %v3884_v24 = vcombine.high %v158_v19, %v162_v20  ;;  %v164_v25 = vld [vmem:[%s5912_s0 + $0x4c0] sm:$0xff]  ;;  %v222_v19 = vld [vmem:[%s5912_s0 + $0x690] sm:$0xff] }
  0x93   :  { %2761 = vmatprep.mubr.bf16.mxu0 %v3828_v26  ;;  %v168_v26 = vld [vmem:[%s5912_s0 + $0x4e0] sm:$0xff]  ;;  %v226_v20 = vld [vmem:[%s5912_s0 + $0x6b0] sm:$0xff] }
  0x94   :  { %v3888_v31 = vcombine.high %v164_v25, %v168_v26  ;;  %v3887_v37 = vcombine.low %v164_v25, %v168_v26  ;;  %v224_v18 = vld [vmem:[%s5912_s0 + $0x6a0] sm:$0xff] }
  0x95   :  { %v228_v25 = vld [vmem:[%s5912_s0 + $0x6c0] sm:$0xff] }
  0x96   :  { %v232_v26 = vld [vmem:[%s5912_s0 + $0x6e0] sm:$0xff] }
  0x99   :  { %2184 = vmatmul.mubr.bf16.gmra.mrb[44].mxu1 %v3823_v33  ;;  %v172_v33 = vld [vmem:[%s5912_s0 + $0x500] sm:$0xff] }
  0x9a   :  { %2762 = vmatmul.mubr.bf16.gmra.mrb[44].mxu0 %v3827_v34  ;;  %2191 = vmatprep.mubr.bf16.mxu1 %v3832_v35  ;;  %v176_v34 = vld [vmem:[%s5912_s0 + $0x520] sm:$0xff]  ;;  %v174_v35 = vld [vmem:[%s5912_s0 + $0x510] sm:$0xff] }
  0x9b   :  { %2769 = vmatprep.mubr.bf16.mxu0 %v3836_v36  ;;  %v178_v36 = vld [vmem:[%s5912_s0 + $0x530] sm:$0xff]  ;;  %v3896_v39 = vcombine.high %v172_v33, %v176_v34  ;;  %v3895_v45 = vcombine.low %v172_v33, %v176_v34  ;;  %v236_v33 = vld [vmem:[%s5912_s0 + $0x700] sm:$0xff] }
  0x9c   :  { %v3900_v40 = vcombine.high %v174_v35, %v178_v36  ;;  %v3899_v46 = vcombine.low %v174_v35, %v178_v36  ;;  %v240_v34 = vld [vmem:[%s5912_s0 + $0x720] sm:$0xff]  ;;  %v238_v35 = vld [vmem:[%s5912_s0 + $0x710] sm:$0xff] }
  0x9d   :  { %v242_v36 = vld [vmem:[%s5912_s0 + $0x730] sm:$0xff] }
  0xa1   :  { %2192 = vmatmul.mubr.bf16.gmra.mrb[48].mxu1 %v3831_v41  ;;  %v180_v41 = vld [vmem:[%s5912_s0 + $0x540] sm:$0xff] }
  0xa2   :  { %2770 = vmatmul.mubr.bf16.gmra.mrb[48].mxu0 %v3835_v42  ;;  %2199 = vmatprep.mubr.bf16.mxu1 %v3840_v43  ;;  %v184_v42 = vld [vmem:[%s5912_s0 + $0x560] sm:$0xff]  ;;  %v182_v43 = vld [vmem:[%s5912_s0 + $0x550] sm:$0xff] }
  0xa3   :  { %2777 = vmatprep.mubr.bf16.mxu0 %v3844_v44  ;;  %v186_v44 = vld [vmem:[%s5912_s0 + $0x570] sm:$0xff]  ;;  %v3904_v47 = vcombine.high %v180_v41, %v184_v42 }
  0xa4   :  { %v3908_v48 = vcombine.high %v182_v43, %v186_v44 }
  0xa9   :  { %2200 = vmatmul.mubr.bf16.gmra.mrb[52].mxu1 %v3839_v51  ;;  %v190_v51 = vld [vmem:[%s5912_s0 + $0x590] sm:$0xff] }
  0xaa   :  { %2778 = vmatmul.mubr.bf16.gmra.mrb[52].mxu0 %v3843_v52  ;;  %2207 = vmatprep.mubr.bf16.mxu1 %v3848_v53  ;;  %v194_v52 = vld [vmem:[%s5912_s0 + $0x5b0] sm:$0xff]  ;;  %v3903_v53 = vcombine.low %v180_v41, %v184_v42  ;;  %v244_v41 = vld [vmem:[%s5912_s0 + $0x740] sm:$0xff] }
  0xab   :  { %2785 = vmatprep.mubr.bf16.mxu0 %v3852_v54  ;;  %v3907_v54 = vcombine.low %v182_v43, %v186_v44  ;;  %v3916_v56 = vcombine.high %v190_v51, %v194_v52  ;;  %v248_v42 = vld [vmem:[%s5912_s0 + $0x760] sm:$0xff]  ;;  %v246_v43 = vld [vmem:[%s5912_s0 + $0x750] sm:$0xff] }
  0xac   :  { %v250_v44 = vld [vmem:[%s5912_s0 + $0x770] sm:$0xff] }
  0xb1   :  { %2208 = vmatmul.mubr.bf16.gmra.mrb[56].mxu1 %v3847_v58  ;;  %v198_v58 = vld [vmem:[%s5912_s0 + $0x5d0] sm:$0xff] }
  0xb2   :  { %2786 = vmatmul.mubr.bf16.gmra.mrb[56].mxu0 %v3851_v59  ;;  %2215 = vmatprep.mubr.bf16.mxu1 %v3856_v60  ;;  %v202_v59 = vld [vmem:[%s5912_s0 + $0x5f0] sm:$0xff]  ;;  %v3911_v60 = vcombine.low %v188_v49, %v192_v50  ;;  %v252_v49 = vld [vmem:[%s5912_s0 + $0x780] sm:$0xff] }
  0xb3   :  { %2793 = vmatprep.mubr.bf16.mxu0 %v3860_v61  ;;  %v3915_v61 = vcombine.low %v190_v51, %v194_v52  ;;  %v3924_v63 = vcombine.high %v198_v58, %v202_v59  ;;  %v256_v50 = vld [vmem:[%s5912_s0 + $0x7a0] sm:$0xff]  ;;  %v254_v51 = vld [vmem:[%s5912_s0 + $0x790] sm:$0xff] }
  0xb4   :  { %v258_v52 = vld [vmem:[%s5912_s0 + $0x7b0] sm:$0xff] }
  0xb9   :  { %2216 = vmatmul.mubr.bf16.gmra.mrb[60].mxu1 %v3855_v5  ;;  %v3919_v5 = vcombine.low %v196_v57, %v200_v0  ;;  %v260_v57 = vld [vmem:[%s5912_s0 + $0x7c0] sm:$0xff] }
  0xba   :  { %2794 = vmatmul.mubr.bf16.gmra.mrb[60].mxu0 %v3859_v6  ;;  %2223 = vmatprep.mubr.bf16.mxu1 %v3864_v7  ;;  %v3923_v6 = vcombine.low %v198_v58, %v202_v59  ;;  %v3928_v7 = vcombine.high %v204_v1, %v208_v2  ;;  %v264_v0 = vld [vmem:[%s5912_s0 + $0x7e0] sm:$0xff]  ;;  %v262_v58 = vld [vmem:[%s5912_s0 + $0x7d0] sm:$0xff] }
  0xbb   :  { %2801 = vmatprep.mubr.bf16.mxu0 %v3868_v8  ;;  %v3932_v8 = vcombine.high %v206_v3, %v210_v4  ;;  %v266_v59 = vld [vmem:[%s5912_s0 + $0x7f0] sm:$0xff] }
  0xc1   :  { %2224 = vmatmul.mubr.bf16.gmra.mrb[64].mxu1 %v3863_v13  ;;  %v3927_v13 = vcombine.low %v204_v1, %v208_v2  ;;  %v13_v1 = vld [vmem:[%s5912_s0 + $0x8] sm:$0xff] }
  0xc2   :  { %2802 = vmatmul.mubr.bf16.gmra.mrb[64].mxu0 %v3867_v14  ;;  %2231 = vmatprep.mubr.bf16.mxu1 %v3872_v15  ;;  %v3931_v14 = vcombine.low %v206_v3, %v210_v4  ;;  %v3936_v15 = vcombine.high %v212_v9, %v216_v10  ;;  %v17_v2 = vld [vmem:[%s5912_s0 + $0x28] sm:$0xff]  ;;  %v15_v3 = vld [vmem:[%s5912_s0 + $0x18] sm:$0xff] }
  0xc3   :  { %2809 = vmatprep.mubr.bf16.mxu0 %v3876_v16  ;;  %v3940_v16 = vcombine.high %v214_v11, %v218_v12  ;;  %v19_v4 = vld [vmem:[%s5912_s0 + $0x38] sm:$0xff] }
  0xc9   :  { %2232 = vmatmul.mubr.bf16.gmra.mrb[68].mxu1 %v3871_v21  ;;  %v3935_v21 = vcombine.low %v212_v9, %v216_v10  ;;  %v21_v9 = vld [vmem:[%s5912_s0 + $0x48] sm:$0xff] }
  0xca   :  { %2810 = vmatmul.mubr.bf16.gmra.mrb[68].mxu0 %v3875_v22  ;;  %2239 = vmatprep.mubr.bf16.mxu1 %v3880_v23  ;;  %v3939_v22 = vcombine.low %v214_v11, %v218_v12  ;;  %v3944_v23 = vcombine.high %v220_v17, %v224_v18  ;;  %v25_v10 = vld [vmem:[%s5912_s0 + $0x68] sm:$0xff]  ;;  %v23_v11 = vld [vmem:[%s5912_s0 + $0x58] sm:$0xff] }
  0xcb   :  { %2817 = vmatprep.mubr.bf16.mxu0 %v3884_v24  ;;  %v3948_v24 = vcombine.high %v222_v19, %v226_v20  ;;  %v27_v12 = vld [vmem:[%s5912_s0 + $0x78] sm:$0xff] }
  0xd1   :  { %2240 = vmatmul.mubr.bf16.gmra.mrb[72].mxu1 %v3879_v29  ;;  %v3943_v29 = vcombine.low %v220_v17, %v224_v18  ;;  %v29_v17 = vld [vmem:[%s5912_s0 + $0x88] sm:$0xff] }
  0xd2   :  { %2818 = vmatmul.mubr.bf16.gmra.mrb[72].mxu0 %v3883_v30  ;;  %2247 = vmatprep.mubr.bf16.mxu1 %v3888_v31  ;;  %v3947_v30 = vcombine.low %v222_v19, %v226_v20  ;;  %v3952_v31 = vcombine.high %v228_v25, %v232_v26  ;;  %v33_v18 = vld [vmem:[%s5912_s0 + $0xa8] sm:$0xff]  ;;  %v31_v19 = vld [vmem:[%s5912_s0 + $0x98] sm:$0xff] }
  0xd3   :  { %2825 = vmatprep.mubr.bf16.mxu0 %v3892_v32  ;;  %v3956_v32 = vcombine.high %v230_v27, %v234_v28  ;;  %v35_v20 = vld [vmem:[%s5912_s0 + $0xb8] sm:$0xff] }
  0xd9   :  { %2248 = vmatmul.mubr.bf16.gmra.mrb[76].mxu1 %v3887_v37  ;;  %v3951_v37 = vcombine.low %v228_v25, %v232_v26  ;;  %v37_v25 = vld [vmem:[%s5912_s0 + $0xc8] sm:$0xff] }
  0xda   :  { %2826 = vmatmul.mubr.bf16.gmra.mrb[76].mxu0 %v3891_v38  ;;  %2255 = vmatprep.mubr.bf16.mxu1 %v3896_v39  ;;  %v3955_v38 = vcombine.low %v230_v27, %v234_v28  ;;  %v3960_v39 = vcombine.high %v236_v33, %v240_v34  ;;  %v41_v26 = vld [vmem:[%s5912_s0 + $0xe8] sm:$0xff]  ;;  %v39_v27 = vld [vmem:[%s5912_s0 + $0xd8] sm:$0xff] }
  0xdb   :  { %2833 = vmatprep.mubr.bf16.mxu0 %v3900_v40  ;;  %v3964_v40 = vcombine.high %v238_v35, %v242_v36  ;;  %v43_v28 = vld [vmem:[%s5912_s0 + $0xf8] sm:$0xff] }
  0xe1   :  { %2256 = vmatmul.mubr.bf16.gmra.mrb[80].mxu1 %v3895_v45  ;;  %v3959_v45 = vcombine.low %v236_v33, %v240_v34  ;;  %v45_v33 = vld [vmem:[%s5912_s0 + $0x108] sm:$0xff] }
  0xe2   :  { %2834 = vmatmul.mubr.bf16.gmra.mrb[80].mxu0 %v3899_v46  ;;  %2263 = vmatprep.mubr.bf16.mxu1 %v3904_v47  ;;  %v3963_v46 = vcombine.low %v238_v35, %v242_v36  ;;  %v3968_v47 = vcombine.high %v244_v41, %v248_v42  ;;  %v49_v34 = vld [vmem:[%s5912_s0 + $0x128] sm:$0xff]  ;;  %v47_v35 = vld [vmem:[%s5912_s0 + $0x118] sm:$0xff] }
  0xe3   :  { %2841 = vmatprep.mubr.bf16.mxu0 %v3908_v48  ;;  %v3972_v48 = vcombine.high %v246_v43, %v250_v44  ;;  %v51_v36 = vld [vmem:[%s5912_s0 + $0x138] sm:$0xff] }
  0xe9   :  { %2264 = vmatmul.mubr.bf16.gmra.mrb[84].mxu1 %v3903_v53  ;;  %v3967_v53 = vcombine.low %v244_v41, %v248_v42  ;;  %v53_v41 = vld [vmem:[%s5912_s0 + $0x148] sm:$0xff] }
  0xea   :  { %2842 = vmatmul.mubr.bf16.gmra.mrb[84].mxu0 %v3907_v54  ;;  %2271 = vmatprep.mubr.bf16.mxu1 %v3912_v55  ;;  %v3971_v54 = vcombine.low %v246_v43, %v250_v44  ;;  %v3976_v55 = vcombine.high %v252_v49, %v256_v50  ;;  %v57_v42 = vld [vmem:[%s5912_s0 + $0x168] sm:$0xff]  ;;  %v55_v43 = vld [vmem:[%s5912_s0 + $0x158] sm:$0xff] }
  0xeb   :  { %2849 = vmatprep.mubr.bf16.mxu0 %v3916_v56  ;;  %v3980_v56 = vcombine.high %v254_v51, %v258_v52  ;;  %v59_v44 = vld [vmem:[%s5912_s0 + $0x178] sm:$0xff] }
  0xf1   :  { %2272 = vmatmul.mubr.bf16.gmra.mrb[88].mxu1 %v3911_v60  ;;  %v3975_v60 = vcombine.low %v252_v49, %v256_v50  ;;  %v61_v49 = vld [vmem:[%s5912_s0 + $0x188] sm:$0xff] }
  0xf2   :  { %2850 = vmatmul.mubr.bf16.gmra.mrb[88].mxu0 %v3915_v61  ;;  %2279 = vmatprep.mubr.bf16.mxu1 %v3920_v62  ;;  %v3979_v61 = vcombine.low %v254_v51, %v258_v52  ;;  %v3984_v62 = vcombine.high %v260_v57, %v264_v0  ;;  %v65_v50 = vld [vmem:[%s5912_s0 + $0x1a8] sm:$0xff]  ;;  %v63_v51 = vld [vmem:[%s5912_s0 + $0x198] sm:$0xff] }
  0xf3   :  { %2857 = vmatprep.mubr.bf16.mxu0 %v3924_v63  ;;  %v3988_v63 = vcombine.high %v262_v58, %v266_v59  ;;  %v67_v52 = vld [vmem:[%s5912_s0 + $0x1b8] sm:$0xff] }
  0xf9   :  { %2280 = vmatmul.mubr.bf16.gmra.mrb[92].mxu1 %v3919_v5  ;;  %v3983_v5 = vcombine.low %v260_v57, %v264_v0  ;;  %v69_v57 = vld [vmem:[%s5912_s0 + $0x1c8] sm:$0xff] }
  0xfa   :  { %2858 = vmatmul.mubr.bf16.gmra.mrb[92].mxu0 %v3923_v6  ;;  %2287 = vmatprep.mubr.bf16.mxu1 %v3928_v7  ;;  %v3987_v6 = vcombine.low %v262_v58, %v266_v59  ;;  %v3738_v7 = vcombine.high %v13_v1, %v17_v2  ;;  %v73_v0 = vld [vmem:[%s5912_s0 + $0x1e8] sm:$0xff]  ;;  %v71_v58 = vld [vmem:[%s5912_s0 + $0x1d8] sm:$0xff] }
  0xfb   :  { %2865 = vmatprep.mubr.bf16.mxu0 %v3932_v8  ;;  %v3742_v8 = vcombine.high %v15_v3, %v19_v4  ;;  %v75_v59 = vld [vmem:[%s5912_s0 + $0x1f8] sm:$0xff] }
 0x101   :  { %2288 = vmatmul.mubr.bf16.gmra.mrb[96].mxu1 %v3927_v13  ;;  %v3737_v13 = vcombine.low %v13_v1, %v17_v2  ;;  %v77_v1 = vld [vmem:[%s5912_s0 + $0x208] sm:$0xff] }
 0x102   :  { %2866 = vmatmul.mubr.bf16.gmra.mrb[96].mxu0 %v3931_v14  ;;  %2295 = vmatprep.mubr.bf16.mxu1 %v3936_v15  ;;  %v3741_v14 = vcombine.low %v15_v3, %v19_v4  ;;  %v3746_v15 = vcombine.high %v21_v9, %v25_v10  ;;  %v81_v2 = vld [vmem:[%s5912_s0 + $0x228] sm:$0xff]  ;;  %v79_v3 = vld [vmem:[%s5912_s0 + $0x218] sm:$0xff] }
 0x103   :  { %2873 = vmatprep.mubr.bf16.mxu0 %v3940_v16  ;;  %v3750_v16 = vcombine.high %v23_v11, %v27_v12  ;;  %v83_v4 = vld [vmem:[%s5912_s0 + $0x238] sm:$0xff] }
 0x109   :  { %2296 = vmatmul.mubr.bf16.gmra.mrb[100].mxu1 %v3935_v21  ;;  %v3745_v21 = vcombine.low %v21_v9, %v25_v10  ;;  %v85_v9 = vld [vmem:[%s5912_s0 + $0x248] sm:$0xff] }
 0x10a   :  { %2874 = vmatmul.mubr.bf16.gmra.mrb[100].mxu0 %v3939_v22  ;;  %2303 = vmatprep.mubr.bf16.mxu1 %v3944_v23  ;;  %v3749_v22 = vcombine.low %v23_v11, %v27_v12  ;;  %v3754_v23 = vcombine.high %v29_v17, %v33_v18  ;;  %v89_v10 = vld [vmem:[%s5912_s0 + $0x268] sm:$0xff]  ;;  %v87_v11 = vld [vmem:[%s5912_s0 + $0x258] sm:$0xff] }
 0x10b   :  { %2881 = vmatprep.mubr.bf16.mxu0 %v3948_v24  ;;  %v3758_v24 = vcombine.high %v31_v19, %v35_v20  ;;  %v91_v12 = vld [vmem:[%s5912_s0 + $0x278] sm:$0xff] }
 0x111   :  { %2304 = vmatmul.mubr.bf16.gmra.mrb[104].mxu1 %v3943_v29  ;;  %v3753_v29 = vcombine.low %v29_v17, %v33_v18  ;;  %v93_v17 = vld [vmem:[%s5912_s0 + $0x288] sm:$0xff] }
 0x112   :  { %2882 = vmatmul.mubr.bf16.gmra.mrb[104].mxu0 %v3947_v30  ;;  %2311 = vmatprep.mubr.bf16.mxu1 %v3952_v31  ;;  %v3757_v30 = vcombine.low %v31_v19, %v35_v20  ;;  %v3762_v31 = vcombine.high %v37_v25, %v41_v26  ;;  %v97_v18 = vld [vmem:[%s5912_s0 + $0x2a8] sm:$0xff]  ;;  %v95_v19 = vld [vmem:[%s5912_s0 + $0x298] sm:$0xff] }
 0x113   :  { %2889 = vmatprep.mubr.bf16.mxu0 %v3956_v32  ;;  %v3766_v32 = vcombine.high %v39_v27, %v43_v28  ;;  %v99_v20 = vld [vmem:[%s5912_s0 + $0x2b8] sm:$0xff] }
 0x119   :  { %2312 = vmatmul.mubr.bf16.gmra.mrb[108].mxu1 %v3951_v37  ;;  %v3761_v37 = vcombine.low %v37_v25, %v41_v26  ;;  %v101_v25 = vld [vmem:[%s5912_s0 + $0x2c8] sm:$0xff] }
 0x11a   :  { %2890 = vmatmul.mubr.bf16.gmra.mrb[108].mxu0 %v3955_v38  ;;  %2319 = vmatprep.mubr.bf16.mxu1 %v3960_v39  ;;  %v3765_v38 = vcombine.low %v39_v27, %v43_v28  ;;  %v3770_v39 = vcombine.high %v45_v33, %v49_v34  ;;  %v105_v26 = vld [vmem:[%s5912_s0 + $0x2e8] sm:$0xff]  ;;  %v103_v27 = vld [vmem:[%s5912_s0 + $0x2d8] sm:$0xff] }
 0x11b   :  { %2897 = vmatprep.mubr.bf16.mxu0 %v3964_v40  ;;  %v3774_v40 = vcombine.high %v47_v35, %v51_v36  ;;  %v107_v28 = vld [vmem:[%s5912_s0 + $0x2f8] sm:$0xff] }
 0x121   :  { %2320 = vmatmul.mubr.bf16.gmra.mrb[112].mxu1 %v3959_v45  ;;  %v3769_v45 = vcombine.low %v45_v33, %v49_v34  ;;  %v109_v33 = vld [vmem:[%s5912_s0 + $0x308] sm:$0xff] }
 0x122   :  { %2898 = vmatmul.mubr.bf16.gmra.mrb[112].mxu0 %v3963_v46  ;;  %2327 = vmatprep.mubr.bf16.mxu1 %v3968_v47  ;;  %v3773_v46 = vcombine.low %v47_v35, %v51_v36  ;;  %v3778_v47 = vcombine.high %v53_v41, %v57_v42  ;;  %v113_v34 = vld [vmem:[%s5912_s0 + $0x328] sm:$0xff]  ;;  %v111_v35 = vld [vmem:[%s5912_s0 + $0x318] sm:$0xff] }
 0x123   :  { %2905 = vmatprep.mubr.bf16.mxu0 %v3972_v48  ;;  %v3782_v48 = vcombine.high %v55_v43, %v59_v44  ;;  %v115_v36 = vld [vmem:[%s5912_s0 + $0x338] sm:$0xff] }
 0x129   :  { %2328 = vmatmul.mubr.bf16.gmra.mrb[116].mxu1 %v3967_v53  ;;  %v3777_v53 = vcombine.low %v53_v41, %v57_v42  ;;  %v117_v41 = vld [vmem:[%s5912_s0 + $0x348] sm:$0xff] }
 0x12a   :  { %2906 = vmatmul.mubr.bf16.gmra.mrb[116].mxu0 %v3971_v54  ;;  %2335 = vmatprep.mubr.bf16.mxu1 %v3976_v55  ;;  %v3781_v54 = vcombine.low %v55_v43, %v59_v44  ;;  %v3786_v55 = vcombine.high %v61_v49, %v65_v50  ;;  %v121_v42 = vld [vmem:[%s5912_s0 + $0x368] sm:$0xff]  ;;  %v119_v43 = vld [vmem:[%s5912_s0 + $0x358] sm:$0xff] }
 0x12b   :  { %2913 = vmatprep.mubr.bf16.mxu0 %v3980_v56  ;;  %v3790_v56 = vcombine.high %v63_v51, %v67_v52  ;;  %v123_v44 = vld [vmem:[%s5912_s0 + $0x378] sm:$0xff] }
 0x131   :  { %2336 = vmatmul.mubr.bf16.gmra.mrb[120].mxu1 %v3975_v60  ;;  %v3785_v60 = vcombine.low %v61_v49, %v65_v50  ;;  %v125_v49 = vld [vmem:[%s5912_s0 + $0x388] sm:$0xff] }
 0x132   :  { %2914 = vmatmul.mubr.bf16.gmra.mrb[120].mxu0 %v3979_v61  ;;  %2343 = vmatprep.mubr.bf16.mxu1 %v3984_v62  ;;  %v3789_v61 = vcombine.low %v63_v51, %v67_v52  ;;  %v3794_v62 = vcombine.high %v69_v57, %v73_v0  ;;  %v129_v50 = vld [vmem:[%s5912_s0 + $0x3a8] sm:$0xff]  ;;  %v127_v51 = vld [vmem:[%s5912_s0 + $0x398] sm:$0xff] }
 0x133   :  { %2921 = vmatprep.mubr.bf16.mxu0 %v3988_v63  ;;  %v3798_v63 = vcombine.high %v71_v58, %v75_v59  ;;  %v131_v52 = vld [vmem:[%s5912_s0 + $0x3b8] sm:$0xff] }
 0x139   :  { %2344 = vmatmul.mubr.bf16.gmra.mrb[124].mxu1 %v3983_v5  ;;  %v3793_v5 = vcombine.low %v69_v57, %v73_v0  ;;  %v133_v57 = vld [vmem:[%s5912_s0 + $0x3c8] sm:$0xff] }
 0x13a   :  { %2922 = vmatmul.mubr.bf16.gmra.mrb[124].mxu0 %v3987_v6  ;;  %2384 = vmatprep.mubr.bf16.mxu1 %v3738_v7  ;;  %v3797_v6 = vcombine.low %v71_v58, %v75_v59  ;;  %v3802_v7 = vcombine.high %v77_v1, %v81_v2  ;;  %v137_v0 = vld [vmem:[%s5912_s0 + $0x3e8] sm:$0xff]  ;;  %v135_v58 = vld [vmem:[%s5912_s0 + $0x3d8] sm:$0xff] }
 0x13b   :  { %2962 = vmatprep.mubr.bf16.mxu0 %v3742_v8  ;;  %v3806_v8 = vcombine.high %v79_v3, %v83_v4  ;;  %v139_v59 = vld [vmem:[%s5912_s0 + $0x3f8] sm:$0xff] }
 0x141   :  { %2385 = vmatmul.mubr.bf16.vlgmr.msra.gmra.mrb[0].mxu1 %v3737_v13  ;;  %v3801_v13 = vcombine.low %v77_v1, %v81_v2  ;;  %v141_v1 = vld [vmem:[%s5912_s0 + $0x408] sm:$0xff] }
 0x142   :  { %2963 = vmatmul.mubr.bf16.vlgmr.msra.gmra.mrb[0].mxu0 %v3741_v14  ;;  %2392 = vmatprep.mubr.bf16.mxu1 %v3746_v15  ;;  %v3805_v14 = vcombine.low %v79_v3, %v83_v4  ;;  %v3810_v15 = vcombine.high %v85_v9, %v89_v10  ;;  %v145_v2 = vld [vmem:[%s5912_s0 + $0x428] sm:$0xff]  ;;  %v143_v3 = vld [vmem:[%s5912_s0 + $0x418] sm:$0xff] }
 0x143   :  { %2970 = vmatprep.mubr.bf16.mxu0 %v3750_v16  ;;  %v3814_v16 = vcombine.high %v87_v11, %v91_v12  ;;  %v147_v4 = vld [vmem:[%s5912_s0 + $0x438] sm:$0xff] }
 0x149   :  { %2393 = vmatmul.mubr.bf16.gmra.mrb[4].mxu1 %v3745_v21  ;;  %v3809_v21 = vcombine.low %v85_v9, %v89_v10  ;;  %v149_v9 = vld [vmem:[%s5912_s0 + $0x448] sm:$0xff] }
 0x14a   :  { %2971 = vmatmul.mubr.bf16.gmra.mrb[4].mxu0 %v3749_v22  ;;  %2400 = vmatprep.mubr.bf16.mxu1 %v3754_v23  ;;  %v3813_v22 = vcombine.low %v87_v11, %v91_v12  ;;  %v3818_v23 = vcombine.high %v93_v17, %v97_v18  ;;  %v153_v10 = vld [vmem:[%s5912_s0 + $0x468] sm:$0xff]  ;;  %v151_v11 = vld [vmem:[%s5912_s0 + $0x458] sm:$0xff] }
 0x14b   :  { %2978 = vmatprep.mubr.bf16.mxu0 %v3758_v24  ;;  %v3822_v24 = vcombine.high %v95_v19, %v99_v20  ;;  %v155_v12 = vld [vmem:[%s5912_s0 + $0x478] sm:$0xff] }
 0x151   :  { %2401 = vmatmul.mubr.bf16.gmra.mrb[8].mxu1 %v3753_v29  ;;  %v3817_v29 = vcombine.low %v93_v17, %v97_v18  ;;  %v157_v17 = vld [vmem:[%s5912_s0 + $0x488] sm:$0xff] }
 0x152   :  { %2979 = vmatmul.mubr.bf16.gmra.mrb[8].mxu0 %v3757_v30  ;;  %2408 = vmatprep.mubr.bf16.mxu1 %v3762_v31  ;;  %v3821_v30 = vcombine.low %v95_v19, %v99_v20  ;;  %v3826_v31 = vcombine.high %v101_v25, %v105_v26  ;;  %v161_v18 = vld [vmem:[%s5912_s0 + $0x4a8] sm:$0xff]  ;;  %v159_v19 = vld [vmem:[%s5912_s0 + $0x498] sm:$0xff] }
 0x153   :  { %2986 = vmatprep.mubr.bf16.mxu0 %v3766_v32  ;;  %v3830_v32 = vcombine.high %v103_v27, %v107_v28  ;;  %v163_v20 = vld [vmem:[%s5912_s0 + $0x4b8] sm:$0xff] }
 0x159   :  { %2409 = vmatmul.mubr.bf16.gmra.mrb[12].mxu1 %v3761_v37  ;;  %v3825_v37 = vcombine.low %v101_v25, %v105_v26  ;;  %v165_v25 = vld [vmem:[%s5912_s0 + $0x4c8] sm:$0xff] }
 0x15a   :  { %2987 = vmatmul.mubr.bf16.gmra.mrb[12].mxu0 %v3765_v38  ;;  %2416 = vmatprep.mubr.bf16.mxu1 %v3770_v39  ;;  %v3829_v38 = vcombine.low %v103_v27, %v107_v28  ;;  %v3834_v39 = vcombine.high %v109_v33, %v113_v34  ;;  %v169_v26 = vld [vmem:[%s5912_s0 + $0x4e8] sm:$0xff]  ;;  %v167_v27 = vld [vmem:[%s5912_s0 + $0x4d8] sm:$0xff] }
 0x15b   :  { %2994 = vmatprep.mubr.bf16.mxu0 %v3774_v40  ;;  %v3838_v40 = vcombine.high %v111_v35, %v115_v36  ;;  %v171_v28 = vld [vmem:[%s5912_s0 + $0x4f8] sm:$0xff] }
 0x161   :  { %2417 = vmatmul.mubr.bf16.gmra.mrb[16].mxu1 %v3769_v45  ;;  %v3833_v45 = vcombine.low %v109_v33, %v113_v34  ;;  %v173_v33 = vld [vmem:[%s5912_s0 + $0x508] sm:$0xff] }
 0x162   :  { %2995 = vmatmul.mubr.bf16.gmra.mrb[16].mxu0 %v3773_v46  ;;  %2424 = vmatprep.mubr.bf16.mxu1 %v3778_v47  ;;  %v3837_v46 = vcombine.low %v111_v35, %v115_v36  ;;  %v3842_v47 = vcombine.high %v117_v41, %v121_v42  ;;  %v177_v34 = vld [vmem:[%s5912_s0 + $0x528] sm:$0xff]  ;;  %v175_v35 = vld [vmem:[%s5912_s0 + $0x518] sm:$0xff] }
 0x163   :  { %3002 = vmatprep.mubr.bf16.mxu0 %v3782_v48  ;;  %v3846_v48 = vcombine.high %v119_v43, %v123_v44  ;;  %v179_v36 = vld [vmem:[%s5912_s0 + $0x538] sm:$0xff] }
 0x169   :  { %2425 = vmatmul.mubr.bf16.gmra.mrb[20].mxu1 %v3777_v53  ;;  %v3841_v53 = vcombine.low %v117_v41, %v121_v42  ;;  %v181_v41 = vld [vmem:[%s5912_s0 + $0x548] sm:$0xff] }
 0x16a   :  { %3003 = vmatmul.mubr.bf16.gmra.mrb[20].mxu0 %v3781_v54  ;;  %2432 = vmatprep.mubr.bf16.mxu1 %v3786_v55  ;;  %v3845_v54 = vcombine.low %v119_v43, %v123_v44  ;;  %v3850_v55 = vcombine.high %v125_v49, %v129_v50  ;;  %v185_v42 = vld [vmem:[%s5912_s0 + $0x568] sm:$0xff]  ;;  %v183_v43 = vld [vmem:[%s5912_s0 + $0x558] sm:$0xff] }
 0x16b   :  { %3010 = vmatprep.mubr.bf16.mxu0 %v3790_v56  ;;  %v3854_v56 = vcombine.high %v127_v51, %v131_v52  ;;  %v187_v44 = vld [vmem:[%s5912_s0 + $0x578] sm:$0xff] }
 0x171   :  { %2433 = vmatmul.mubr.bf16.gmra.mrb[24].mxu1 %v3785_v60  ;;  %v3849_v60 = vcombine.low %v125_v49, %v129_v50  ;;  %v189_v49 = vld [vmem:[%s5912_s0 + $0x588] sm:$0xff] }
 0x172   :  { %3011 = vmatmul.mubr.bf16.gmra.mrb[24].mxu0 %v3789_v61  ;;  %2440 = vmatprep.mubr.bf16.mxu1 %v3794_v62  ;;  %v3853_v61 = vcombine.low %v127_v51, %v131_v52  ;;  %v3858_v62 = vcombine.high %v133_v57, %v137_v0  ;;  %v193_v50 = vld [vmem:[%s5912_s0 + $0x5a8] sm:$0xff]  ;;  %v191_v51 = vld [vmem:[%s5912_s0 + $0x598] sm:$0xff] }
 0x173   :  { %3018 = vmatprep.mubr.bf16.mxu0 %v3798_v63  ;;  %v3862_v63 = vcombine.high %v135_v58, %v139_v59  ;;  %v195_v52 = vld [vmem:[%s5912_s0 + $0x5b8] sm:$0xff] }
 0x179   :  { %2441 = vmatmul.mubr.bf16.gmra.mrb[28].mxu1 %v3793_v5  ;;  %v3857_v5 = vcombine.low %v133_v57, %v137_v0  ;;  %v197_v57 = vld [vmem:[%s5912_s0 + $0x5c8] sm:$0xff] }
 0x17a   :  { %3019 = vmatmul.mubr.bf16.gmra.mrb[28].mxu0 %v3797_v6  ;;  %2448 = vmatprep.mubr.bf16.mxu1 %v3802_v7  ;;  %v3861_v6 = vcombine.low %v135_v58, %v139_v59  ;;  %v3866_v7 = vcombine.high %v141_v1, %v145_v2  ;;  %v201_v0 = vld [vmem:[%s5912_s0 + $0x5e8] sm:$0xff]  ;;  %v199_v58 = vld [vmem:[%s5912_s0 + $0x5d8] sm:$0xff] }
 0x17b   :  { %3026 = vmatprep.mubr.bf16.mxu0 %v3806_v8  ;;  %v3870_v8 = vcombine.high %v143_v3, %v147_v4  ;;  %v203_v59 = vld [vmem:[%s5912_s0 + $0x5f8] sm:$0xff] }
 0x181   :  { %2449 = vmatmul.mubr.bf16.gmra.mrb[32].mxu1 %v3801_v13  ;;  %v3865_v13 = vcombine.low %v141_v1, %v145_v2  ;;  %v205_v1 = vld [vmem:[%s5912_s0 + $0x608] sm:$0xff] }
 0x182   :  { %3027 = vmatmul.mubr.bf16.gmra.mrb[32].mxu0 %v3805_v14  ;;  %2456 = vmatprep.mubr.bf16.mxu1 %v3810_v15  ;;  %v3869_v14 = vcombine.low %v143_v3, %v147_v4  ;;  %v3874_v15 = vcombine.high %v149_v9, %v153_v10  ;;  %v209_v2 = vld [vmem:[%s5912_s0 + $0x628] sm:$0xff]  ;;  %v207_v3 = vld [vmem:[%s5912_s0 + $0x618] sm:$0xff] }
 0x183   :  { %3034 = vmatprep.mubr.bf16.mxu0 %v3814_v16  ;;  %v3878_v16 = vcombine.high %v151_v11, %v155_v12  ;;  %v211_v4 = vld [vmem:[%s5912_s0 + $0x638] sm:$0xff] }
 0x189   :  { %2457 = vmatmul.mubr.bf16.gmra.mrb[36].mxu1 %v3809_v21  ;;  %v3873_v21 = vcombine.low %v149_v9, %v153_v10  ;;  %v213_v9 = vld [vmem:[%s5912_s0 + $0x648] sm:$0xff] }
 0x18a   :  { %3035 = vmatmul.mubr.bf16.gmra.mrb[36].mxu0 %v3813_v22  ;;  %2464 = vmatprep.mubr.bf16.mxu1 %v3818_v23  ;;  %v3877_v22 = vcombine.low %v151_v11, %v155_v12  ;;  %v3882_v23 = vcombine.high %v157_v17, %v161_v18  ;;  %v217_v10 = vld [vmem:[%s5912_s0 + $0x668] sm:$0xff]  ;;  %v215_v11 = vld [vmem:[%s5912_s0 + $0x658] sm:$0xff] }
 0x18b   :  { %3042 = vmatprep.mubr.bf16.mxu0 %v3822_v24  ;;  %v3886_v24 = vcombine.high %v159_v19, %v163_v20  ;;  %v219_v12 = vld [vmem:[%s5912_s0 + $0x678] sm:$0xff] }
 0x191   :  { %2465 = vmatmul.mubr.bf16.gmra.mrb[40].mxu1 %v3817_v29  ;;  %v3881_v29 = vcombine.low %v157_v17, %v161_v18  ;;  %v221_v17 = vld [vmem:[%s5912_s0 + $0x688] sm:$0xff] }
 0x192   :  { %3043 = vmatmul.mubr.bf16.gmra.mrb[40].mxu0 %v3821_v30  ;;  %2472 = vmatprep.mubr.bf16.mxu1 %v3826_v31  ;;  %v3885_v30 = vcombine.low %v159_v19, %v163_v20  ;;  %v3890_v31 = vcombine.high %v165_v25, %v169_v26  ;;  %v225_v18 = vld [vmem:[%s5912_s0 + $0x6a8] sm:$0xff]  ;;  %v223_v19 = vld [vmem:[%s5912_s0 + $0x698] sm:$0xff] }
 0x193   :  { %3050 = vmatprep.mubr.bf16.mxu0 %v3830_v32  ;;  %v3894_v32 = vcombine.high %v167_v27, %v171_v28  ;;  %v227_v20 = vld [vmem:[%s5912_s0 + $0x6b8] sm:$0xff] }
 0x199   :  { %2473 = vmatmul.mubr.bf16.gmra.mrb[44].mxu1 %v3825_v37  ;;  %v3889_v37 = vcombine.low %v165_v25, %v169_v26  ;;  %v229_v25 = vld [vmem:[%s5912_s0 + $0x6c8] sm:$0xff] }
 0x19a   :  { %3051 = vmatmul.mubr.bf16.gmra.mrb[44].mxu0 %v3829_v38  ;;  %2480 = vmatprep.mubr.bf16.mxu1 %v3834_v39  ;;  %v3893_v38 = vcombine.low %v167_v27, %v171_v28  ;;  %v3898_v39 = vcombine.high %v173_v33, %v177_v34  ;;  %v233_v26 = vld [vmem:[%s5912_s0 + $0x6e8] sm:$0xff]  ;;  %v231_v27 = vld [vmem:[%s5912_s0 + $0x6d8] sm:$0xff] }
 0x19b   :  { %3058 = vmatprep.mubr.bf16.mxu0 %v3838_v40  ;;  %v3902_v40 = vcombine.high %v175_v35, %v179_v36  ;;  %v235_v28 = vld [vmem:[%s5912_s0 + $0x6f8] sm:$0xff] }
 0x1a1   :  { %2481 = vmatmul.mubr.bf16.gmra.mrb[48].mxu1 %v3833_v45  ;;  %v3897_v45 = vcombine.low %v173_v33, %v177_v34  ;;  %v237_v33 = vld [vmem:[%s5912_s0 + $0x708] sm:$0xff] }
 0x1a2   :  { %3059 = vmatmul.mubr.bf16.gmra.mrb[48].mxu0 %v3837_v46  ;;  %2488 = vmatprep.mubr.bf16.mxu1 %v3842_v47  ;;  %v3901_v46 = vcombine.low %v175_v35, %v179_v36  ;;  %v3906_v47 = vcombine.high %v181_v41, %v185_v42  ;;  %v241_v34 = vld [vmem:[%s5912_s0 + $0x728] sm:$0xff]  ;;  %v239_v36 = vld [vmem:[%s5912_s0 + $0x718] sm:$0xff] }
 0x1a3   :  { %3066 = vmatprep.mubr.bf16.mxu0 %v3846_v48  ;;  %v3910_v48 = vcombine.high %v183_v43, %v187_v44 }
 0x1a9   :  { %2489 = vmatmul.mubr.bf16.gmra.mrb[52].mxu1 %v3841_v53  ;;  %v3905_v53 = vcombine.low %v181_v41, %v185_v42 }
 0x1aa   :  { %3067 = vmatmul.mubr.bf16.gmra.mrb[52].mxu0 %v3845_v54  ;;  %2496 = vmatprep.mubr.bf16.mxu1 %v3850_v55  ;;  %v3909_v54 = vcombine.low %v183_v43, %v187_v44  ;;  %v3914_v55 = vcombine.high %v189_v49, %v193_v50  ;;  %v3957_v44 = vcombine.low %v231_v27, %v235_v28 }
 0x1ab   :  { %3074 = vmatprep.mubr.bf16.mxu0 %v3854_v56  ;;  %v3918_v56 = vcombine.high %v191_v51, %v195_v52 }
 0x1b1   :  { %2497 = vmatmul.mubr.bf16.gmra.mrb[56].mxu1 %v3849_v60  ;;  %v3913_v60 = vcombine.low %v189_v49, %v193_v50 }
 0x1b2   :  { %3075 = vmatmul.mubr.bf16.gmra.mrb[56].mxu0 %v3853_v61  ;;  %2504 = vmatprep.mubr.bf16.mxu1 %v3858_v62  ;;  %v3917_v61 = vcombine.low %v191_v51, %v195_v52  ;;  %v3922_v62 = vcombine.high %v197_v57, %v201_v0 }
 0x1b3   :  { %3082 = vmatprep.mubr.bf16.mxu0 %v3862_v63  ;;  %v3926_v63 = vcombine.high %v199_v58, %v203_v59 }
 0x1b9   :  { %2505 = vmatmul.mubr.bf16.gmra.mrb[60].mxu1 %v3857_v5  ;;  %v3921_v5 = vcombine.low %v197_v57, %v201_v0  ;;  %v247_v0 = vld [vmem:[%s5912_s0 + $0x758] sm:$0xff] }
 0x1ba   :  { %3083 = vmatmul.mubr.bf16.gmra.mrb[60].mxu0 %v3861_v6  ;;  %2512 = vmatprep.mubr.bf16.mxu1 %v3866_v7  ;;  %v3925_v6 = vcombine.low %v199_v58, %v203_v59  ;;  %v3930_v7 = vcombine.high %v205_v1, %v209_v2  ;;  %v251_v58 = vld [vmem:[%s5912_s0 + $0x778] sm:$0xff] }
 0x1bb   :  { %3090 = vmatprep.mubr.bf16.mxu0 %v3870_v8  ;;  %v3934_v8 = vcombine.high %v207_v3, %v211_v4 }
 0x1c1   :  { %2513 = vmatmul.mubr.bf16.gmra.mrb[64].mxu1 %v3865_v13  ;;  %v3929_v13 = vcombine.low %v205_v1, %v209_v2 }
 0x1c2   :  { %3091 = vmatmul.mubr.bf16.gmra.mrb[64].mxu0 %v3869_v14  ;;  %2520 = vmatprep.mubr.bf16.mxu1 %v3874_v15  ;;  %v3933_v14 = vcombine.low %v207_v3, %v211_v4  ;;  %v3938_v15 = vcombine.high %v213_v9, %v217_v10 }
 0x1c3   :  { %3098 = vmatprep.mubr.bf16.mxu0 %v3878_v16  ;;  %v3942_v16 = vcombine.high %v215_v11, %v219_v12 }
 0x1c9   :  { %2521 = vmatmul.mubr.bf16.gmra.mrb[68].mxu1 %v3873_v21  ;;  %v3937_v21 = vcombine.low %v213_v9, %v217_v10 }
 0x1ca   :  { %3099 = vmatmul.mubr.bf16.gmra.mrb[68].mxu0 %v3877_v22  ;;  %2528 = vmatprep.mubr.bf16.mxu1 %v3882_v23  ;;  %v3941_v22 = vcombine.low %v215_v11, %v219_v12  ;;  %v3946_v23 = vcombine.high %v221_v17, %v225_v18  ;;  %v253_v12 = vld [vmem:[%s5912_s0 + $0x788] sm:$0xff] }
 0x1cb   :  { %3106 = vmatprep.mubr.bf16.mxu0 %v3886_v24  ;;  %v3950_v24 = vcombine.high %v223_v19, %v227_v20 }
 0x1d1   :  { %2529 = vmatmul.mubr.bf16.gmra.mrb[72].mxu1 %v3881_v29  ;;  %v3945_v29 = vcombine.low %v221_v17, %v225_v18  ;;  %v255_v17 = vld [vmem:[%s5912_s0 + $0x798] sm:$0xff] }
 0x1d2   :  { %3107 = vmatmul.mubr.bf16.gmra.mrb[72].mxu0 %v3885_v30  ;;  %2536 = vmatprep.mubr.bf16.mxu1 %v3890_v31  ;;  %v3949_v30 = vcombine.low %v223_v19, %v227_v20  ;;  %v3954_v31 = vcombine.high %v229_v25, %v233_v26  ;;  %v259_v18 = vld [vmem:[%s5912_s0 + $0x7b8] sm:$0xff] }
 0x1d3   :  { %3114 = vmatprep.mubr.bf16.mxu0 %v3894_v32  ;;  %v3958_v32 = vcombine.high %v231_v27, %v235_v28 }
 0x1d9   :  { %2537 = vmatmul.mubr.bf16.gmra.mrb[76].mxu1 %v3889_v37  ;;  %v243_v37 = vld [vmem:[%s5912_s0 + $0x738] sm:$0xff] }
 0x1da   :  { %3115 = vmatmul.mubr.bf16.gmra.mrb[76].mxu0 %v3893_v38  ;;  %2544 = vmatprep.mubr.bf16.mxu1 %v3898_v39  ;;  %v3965_v3 = vcombine.low %v239_v36, %v243_v37 }
 0x1db   :  { %3122 = vmatprep.mubr.bf16.mxu0 %v3902_v40  ;;  %v3953_v40 = vcombine.low %v229_v25, %v233_v26  ;;  %v3973_v26 = vcombine.low %v247_v0, %v251_v58 }
 0x1e1   :  { %2545 = vmatmul.mubr.bf16.gmra.mrb[80].mxu1 %v3897_v45  ;;  %v3962_v45 = vcombine.high %v237_v33, %v241_v34 }
 0x1e2   :  { %3123 = vmatmul.mubr.bf16.gmra.mrb[80].mxu0 %v3901_v46  ;;  %2552 = vmatprep.mubr.bf16.mxu1 %v3906_v47 }
 0x1e3   :  { %3130 = vmatprep.mubr.bf16.mxu0 %v3910_v48  ;;  %v3966_v48 = vcombine.high %v239_v36, %v243_v37  ;;  %v265_v36 = vld [vmem:[%s5912_s0 + $0x7e8] sm:$0xff] }
 0x1e9   :  { %2553 = vmatmul.mubr.bf16.gmra.mrb[84].mxu1 %v3905_v53  ;;  %v245_v53 = vld [vmem:[%s5912_s0 + $0x748] sm:$0xff] }
 0x1ea   :  { %3131 = vmatmul.mubr.bf16.gmra.mrb[84].mxu0 %v3909_v54  ;;  %2560 = vmatprep.mubr.bf16.mxu1 %v3914_v55  ;;  %v249_v54 = vld [vmem:[%s5912_s0 + $0x768] sm:$0xff] }
 0x1eb   :  { %3138 = vmatprep.mubr.bf16.mxu0 %v3918_v56  ;;  %v3970_v4 = vcombine.high %v245_v53, %v249_v54 }
 0x1f1   :  { %2561 = vmatmul.mubr.bf16.gmra.mrb[88].mxu1 %v3913_v60 }
 0x1f2   :  { %3139 = vmatmul.mubr.bf16.gmra.mrb[88].mxu0 %v3917_v61  ;;  %2568 = vmatprep.mubr.bf16.mxu1 %v3922_v62  ;;  %v3961_v62 = vcombine.low %v237_v33, %v241_v34 }
 0x1f3   :  { %3146 = vmatprep.mubr.bf16.mxu0 %v3926_v63 }
 0x1f9   :  { %2569 = vmatmul.mubr.bf16.gmra.mrb[92].mxu1 %v3921_v5 }
 0x1fa   :  { %3147 = vmatmul.mubr.bf16.gmra.mrb[92].mxu0 %v3925_v6  ;;  %2576 = vmatprep.mubr.bf16.mxu1 %v3930_v7  ;;  %v3974_v7 = vcombine.high %v247_v0, %v251_v58 }
 0x1fb   :  { %3154 = vmatprep.mubr.bf16.mxu0 %v3934_v8 }
 0x201   :  { %2577 = vmatmul.mubr.bf16.gmra.mrb[96].mxu1 %v3929_v13  ;;  %v257_v13 = vld [vmem:[%s5912_s0 + $0x7a8] sm:$0xff] }
 0x202   :  { %3155 = vmatmul.mubr.bf16.gmra.mrb[96].mxu0 %v3933_v14  ;;  %2584 = vmatprep.mubr.bf16.mxu1 %v3938_v15  ;;  %v3978_v27 = vcombine.high %v253_v12, %v257_v13 }
 0x203   :  { %3162 = vmatprep.mubr.bf16.mxu0 %v3942_v16 }
 0x209   :  { %2585 = vmatmul.mubr.bf16.gmra.mrb[100].mxu1 %v3937_v21 }
 0x20a   :  { %3163 = vmatmul.mubr.bf16.gmra.mrb[100].mxu0 %v3941_v22  ;;  %2592 = vmatprep.mubr.bf16.mxu1 %v3946_v23  ;;  %v3969_v22 = vcombine.low %v245_v53, %v249_v54 }
 0x20b   :  { %3170 = vmatprep.mubr.bf16.mxu0 %v3950_v24 }
 0x211   :  { %2593 = vmatmul.mubr.bf16.gmra.mrb[104].mxu1 %v3945_v29 }
 0x212   :  { %3171 = vmatmul.mubr.bf16.gmra.mrb[104].mxu0 %v3949_v30  ;;  %2600 = vmatprep.mubr.bf16.mxu1 %v3954_v31  ;;  %v3982_v30 = vcombine.high %v255_v17, %v259_v18 }
 0x213   :  { %3178 = vmatprep.mubr.bf16.mxu0 %v3958_v32 }
 0x214   :  { %v2386_v35 = vpop.f32.mrb[0].mxu1 }
 0x215   :  { %v2964_v38 = vpop.f32.mrb[0].mxu0  ;;  %v2388_v39 = vpop.f32.mrb[1].mxu1 }
 0x216   :  { %v4374_v41 = vadd.f32 %v2964_v38, %v2386_v35  ;;  %v2966_v42 = vpop.f32.mrb[1].mxu0  ;;  %v2389_v43 = vpop.f32.mrb[2].mxu1  ;;  %v261_v35 = vld [vmem:[%s5912_s0 + $0x7c8] sm:$0xff] }
 0x217   :  { %v2967_v46 = vpop.f32.mrb[2].mxu0  ;;  %v2391_v47 = vpop.f32.mrb[3].mxu1 }
 0x218   :  { %v3283_v49 = vmul.f32 0.2, %v4374_v41  ;;  %v4375_v50 = vadd.f32 %v2967_v46, %v2389_v43  ;;  %v2969_v51 = vpop.f32.mrb[3].mxu0  ;;  %vm3219_vm0 = vcmp.gt.f32.partialorder %v4374_v41, 0.0 }
 0x219   :  { %2601 = vmatmul.mubr.bf16.gmra.mrb[108].mxu1 %v3953_v40  ;;  %v263_v40 = vld [vmem:[%s5912_s0 + $0x7d8] sm:$0xff] }
 0x21a   :  { %vm3220_vm1 = vcmp.gt.f32.partialorder %v4375_v50, 0.0  ;;  %v3284_v52 = vmul.f32 0.2, %v4375_v50  ;;  %3179 = vmatmul.mubr.bf16.gmra.mrb[108].mxu0 %v3957_v44  ;;  %2608 = vmatprep.mubr.bf16.mxu1 %v3962_v45  ;;  %v3347_v55 = vsel %vm3219_vm0, %v4374_v41, %v3283_v49  ;;  %v267_v41 = vld [vmem:[%s5912_s0 + $0x7f8] sm:$0xff]  ;;  %v3977_v45 = vcombine.low %v253_v12, %v257_v13 }
 0x21b   :  { %3186 = vmatprep.mubr.bf16.mxu0 %v3966_v48  ;;  %v3981_v49 = vcombine.low %v255_v17, %v259_v18  ;;  %v3990_v53 = vcombine.high %v263_v40, %v267_v41 }
 0x21c   :  { %v3348_v56 = vsel %vm3220_vm1, %v4375_v50, %v3284_v52  ;;  %v2394_v57 = vpop.f32.mrb[4].mxu1  ;;  %v3986_v50 = vcombine.high %v261_v35, %v265_v36 }
 0x21d   :  { %v4186_v59 = vpack.c.bf16 %v3348_v56, %v3347_v55  ;;  %v2972_v60 = vpop.f32.mrb[4].mxu0  ;;  %v2396_v61 = vpop.f32.mrb[5].mxu1 }
 0x21e   :  { %v4376_v63 = vadd.f32 %v2972_v60, %v2394_v57  ;;  %v2974_v1 = vpop.f32.mrb[5].mxu0  ;;  %v2397_v2 = vpop.f32.mrb[6].mxu1 }
 0x21f   :  { %4187 = vst [vmem:[%s5913_s2] sm:$0xff] %v4186_v59   ;;  %v2975_v5 = vpop.f32.mrb[6].mxu0  ;;  %v2399_v6 = vpop.f32.mrb[7].mxu1 }
 0x220   :  { %v3285_v8 = vmul.f32 0.2, %v4376_v63  ;;  %v4377_v9 = vadd.f32 %v2975_v5, %v2397_v2  ;;  %v2977_v10 = vpop.f32.mrb[7].mxu0  ;;  %vm3221_vm2 = vcmp.gt.f32.partialorder %v4376_v63, 0.0 }
 0x221   :  { %2609 = vmatmul.mubr.bf16.gmra.mrb[112].mxu1 %v3961_v62 }
 0x222   :  { %vm3222_vm3 = vcmp.gt.f32.partialorder %v4377_v9, 0.0  ;;  %v3286_v11 = vmul.f32 0.2, %v4377_v9  ;;  %3187 = vmatmul.mubr.bf16.gmra.mrb[112].mxu0 %v3965_v3  ;;  %2616 = vmatprep.mubr.bf16.mxu1 %v3970_v4  ;;  %v3349_v14 = vsel %vm3221_vm2, %v4376_v63, %v3285_v8  ;;  %v3985_v63 = vcombine.low %v261_v35, %v265_v36 }
 0x223   :  { %3194 = vmatprep.mubr.bf16.mxu0 %v3974_v7  ;;  %v3989_v4 = vcombine.low %v263_v40, %v267_v41 }
 0x224   :  { %v3350_v15 = vsel %vm3222_vm3, %v4377_v9, %v3286_v11  ;;  %v2402_v16 = vpop.f32.mrb[8].mxu1 }
 0x225   :  { %v4191_v19 = vpack.c.bf16 %v3350_v15, %v3349_v14  ;;  %v2980_v20 = vpop.f32.mrb[8].mxu0  ;;  %v2404_v21 = vpop.f32.mrb[9].mxu1 }
 0x226   :  { %v4378_v23 = vadd.f32 %v2980_v20, %v2402_v16  ;;  %v2982_v24 = vpop.f32.mrb[9].mxu0  ;;  %v2405_v25 = vpop.f32.mrb[10].mxu1 }
 0x227   :  { %4343 = vst [vmem:[%s5913_s2 + $0x8] sm:$0xff] %v4191_v19   ;;  %v2983_v28 = vpop.f32.mrb[10].mxu0  ;;  %v2407_v29 = vpop.f32.mrb[11].mxu1 }
 0x228   :  { %v3287_v31 = vmul.f32 0.2, %v4378_v23  ;;  %v4379_v32 = vadd.f32 %v2983_v28, %v2405_v25  ;;  %v2985_v33 = vpop.f32.mrb[11].mxu0  ;;  %vm3223_vm4 = vcmp.gt.f32.partialorder %v4378_v23, 0.0 }
 0x229   :  { %2617 = vmatmul.mubr.bf16.gmra.mrb[116].mxu1 %v3969_v22 }
 0x22a   :  { %vm3224_vm5 = vcmp.gt.f32.partialorder %v4379_v32, 0.0  ;;  %v3288_v34 = vmul.f32 0.2, %v4379_v32  ;;  %3195 = vmatmul.mubr.bf16.gmra.mrb[116].mxu0 %v3973_v26  ;;  %2624 = vmatprep.mubr.bf16.mxu1 %v3978_v27  ;;  %v3351_v37 = vsel %vm3223_vm4, %v4378_v23, %v3287_v31 }
 0x22b   :  { %3202 = vmatprep.mubr.bf16.mxu0 %v3982_v30 }
 0x22c   :  { %v3352_v38 = vsel %vm3224_vm5, %v4379_v32, %v3288_v34  ;;  %v2410_v39 = vpop.f32.mrb[12].mxu1 }
 0x22d   :  { %v4196_v42 = vpack.c.bf16 %v3352_v38, %v3351_v37  ;;  %v2988_v43 = vpop.f32.mrb[12].mxu0  ;;  %v2412_v44 = vpop.f32.mrb[13].mxu1 }
 0x22e   :  { %v4380_v46 = vadd.f32 %v2988_v43, %v2410_v39  ;;  %v2990_v47 = vpop.f32.mrb[13].mxu0  ;;  %v2413_v48 = vpop.f32.mrb[14].mxu1 }
 0x22f   :  { %4344 = vst [vmem:[%s5913_s2 + $0x10] sm:$0xff] %v4196_v42   ;;  %v2991_v51 = vpop.f32.mrb[14].mxu0  ;;  %v2415_v52 = vpop.f32.mrb[15].mxu1 }
 0x230   :  { %v3289_v54 = vmul.f32 0.2, %v4380_v46  ;;  %v4381_v55 = vadd.f32 %v2991_v51, %v2413_v48  ;;  %v2993_v56 = vpop.f32.mrb[15].mxu0  ;;  %vm3225_vm6 = vcmp.gt.f32.partialorder %v4380_v46, 0.0 }
 0x231   :  { %2625 = vmatmul.mubr.bf16.gmra.mrb[120].mxu1 %v3977_v45 }
 0x232   :  { %vm3226_vm7 = vcmp.gt.f32.partialorder %v4381_v55, 0.0  ;;  %v3290_v57 = vmul.f32 0.2, %v4381_v55  ;;  %3203 = vmatmul.mubr.bf16.gmra.mrb[120].mxu0 %v3981_v49  ;;  %2632 = vmatprep.mubr.bf16.mxu1 %v3986_v50  ;;  %v3353_v0 = vsel %vm3225_vm6, %v4380_v46, %v3289_v54 }
 0x233   :  { %3210 = vmatprep.mubr.bf16.mxu0 %v3990_v53 }
 0x234   :  { %v3354_v58 = vsel %vm3226_vm7, %v4381_v55, %v3290_v57  ;;  %v2418_v59 = vpop.f32.mrb[16].mxu1 }
 0x235   :  { %v4201_v60 = vpack.c.bf16 %v3354_v58, %v3353_v0  ;;  %v2996_v61 = vpop.f32.mrb[16].mxu0  ;;  %v2420_v62 = vpop.f32.mrb[17].mxu1 }
 0x236   :  { %v4382_v1 = vadd.f32 %v2996_v61, %v2418_v59  ;;  %v2998_v2 = vpop.f32.mrb[17].mxu0  ;;  %v2421_v3 = vpop.f32.mrb[18].mxu1 }
 0x237   :  { %4345 = vst [vmem:[%s5913_s2 + $0x18] sm:$0xff] %v4201_v60   ;;  %v2999_v5 = vpop.f32.mrb[18].mxu0  ;;  %v2423_v6 = vpop.f32.mrb[19].mxu1 }
 0x238   :  { %v3291_v7 = vmul.f32 0.2, %v4382_v1  ;;  %v4383_v8 = vadd.f32 %v2999_v5, %v2421_v3  ;;  %v3001_v9 = vpop.f32.mrb[19].mxu0  ;;  %vm3227_vm8 = vcmp.gt.f32.partialorder %v4382_v1, 0.0 }
 0x239   :  { %2633 = vmatmul.mubr.bf16.gmra.mrb[124].mxu1 %v3985_v63 }
 0x23a   :  { %vm3228_vm9 = vcmp.gt.f32.partialorder %v4383_v8, 0.0  ;;  %v3292_v10 = vmul.f32 0.2, %v4383_v8  ;;  %3211 = vmatmul.mubr.bf16.gmra.mrb[124].mxu0 %v3989_v4  ;;  %v3355_v11 = vsel %vm3227_vm8, %v4382_v1, %v3291_v7 }
 0x23c   :  { %v3356_v12 = vsel %vm3228_vm9, %v4383_v8, %v3292_v10  ;;  %v2426_v13 = vpop.f32.mrb[20].mxu1 }
 0x23d   :  { %v4206_v14 = vpack.c.bf16 %v3356_v12, %v3355_v11  ;;  %v3004_v15 = vpop.f32.mrb[20].mxu0  ;;  %v2428_v16 = vpop.f32.mrb[21].mxu1 }
 0x23e   :  { %v4384_v17 = vadd.f32 %v3004_v15, %v2426_v13  ;;  %v3006_v18 = vpop.f32.mrb[21].mxu0  ;;  %v2429_v19 = vpop.f32.mrb[22].mxu1 }
 0x23f   :  { %4346 = vst [vmem:[%s5913_s2 + $0x20] sm:$0xff] %v4206_v14   ;;  %v3007_v20 = vpop.f32.mrb[22].mxu0  ;;  %v2431_v21 = vpop.f32.mrb[23].mxu1 }
 0x240   :  { %v3293_v22 = vmul.f32 0.2, %v4384_v17  ;;  %v4385_v23 = vadd.f32 %v3007_v20, %v2429_v19  ;;  %v3009_v24 = vpop.f32.mrb[23].mxu0  ;;  %vm3229_vm10 = vcmp.gt.f32.partialorder %v4384_v17, 0.0 }
 0x242   :  { %vm3230_vm11 = vcmp.gt.f32.partialorder %v4385_v23, 0.0  ;;  %v3294_v25 = vmul.f32 0.2, %v4385_v23  ;;  %v3357_v26 = vsel %vm3229_vm10, %v4384_v17, %v3293_v22 }
 0x244   :  { %v3358_v27 = vsel %vm3230_vm11, %v4385_v23, %v3294_v25  ;;  %v2434_v28 = vpop.f32.mrb[24].mxu1 }
 0x245   :  { %v4211_v29 = vpack.c.bf16 %v3358_v27, %v3357_v26  ;;  %v3012_v30 = vpop.f32.mrb[24].mxu0  ;;  %v2436_v31 = vpop.f32.mrb[25].mxu1 }
 0x246   :  { %v4386_v32 = vadd.f32 %v3012_v30, %v2434_v28  ;;  %v3014_v33 = vpop.f32.mrb[25].mxu0  ;;  %v2437_v34 = vpop.f32.mrb[26].mxu1 }
 0x247   :  { %4347 = vst [vmem:[%s5913_s2 + $0x28] sm:$0xff] %v4211_v29   ;;  %v3015_v35 = vpop.f32.mrb[26].mxu0  ;;  %v2439_v36 = vpop.f32.mrb[27].mxu1 }
 0x248   :  { %v3295_v37 = vmul.f32 0.2, %v4386_v32  ;;  %v4387_v38 = vadd.f32 %v3015_v35, %v2437_v34  ;;  %v3017_v39 = vpop.f32.mrb[27].mxu0  ;;  %vm3231_vm12 = vcmp.gt.f32.partialorder %v4386_v32, 0.0 }
 0x24a   :  { %vm3232_vm13 = vcmp.gt.f32.partialorder %v4387_v38, 0.0  ;;  %v3296_v40 = vmul.f32 0.2, %v4387_v38  ;;  %v3359_v41 = vsel %vm3231_vm12, %v4386_v32, %v3295_v37 }
 0x24c   :  { %v3360_v42 = vsel %vm3232_vm13, %v4387_v38, %v3296_v40  ;;  %v2442_v43 = vpop.f32.mrb[28].mxu1 }
 0x24d   :  { %v4216_v44 = vpack.c.bf16 %v3360_v42, %v3359_v41  ;;  %v3020_v45 = vpop.f32.mrb[28].mxu0  ;;  %v2444_v46 = vpop.f32.mrb[29].mxu1 }
 0x24e   :  { %v4388_v47 = vadd.f32 %v3020_v45, %v2442_v43  ;;  %v3022_v48 = vpop.f32.mrb[29].mxu0  ;;  %v2445_v49 = vpop.f32.mrb[30].mxu1 }
 0x24f   :  { %4348 = vst [vmem:[%s5913_s2 + $0x30] sm:$0xff] %v4216_v44   ;;  %v3023_v50 = vpop.f32.mrb[30].mxu0  ;;  %v2447_v51 = vpop.f32.mrb[31].mxu1 }
 0x250   :  { %v3297_v52 = vmul.f32 0.2, %v4388_v47  ;;  %v4389_v53 = vadd.f32 %v3023_v50, %v2445_v49  ;;  %v3025_v54 = vpop.f32.mrb[31].mxu0  ;;  %vm3233_vm14 = vcmp.gt.f32.partialorder %v4388_v47, 0.0 }
 0x252   :  { %vm3234_vm15 = vcmp.gt.f32.partialorder %v4389_v53, 0.0  ;;  %v3298_v55 = vmul.f32 0.2, %v4389_v53  ;;  %v3361_v56 = vsel %vm3233_vm14, %v4388_v47, %v3297_v52 }
 0x254   :  { %v3362_v57 = vsel %vm3234_vm15, %v4389_v53, %v3298_v55  ;;  %v2450_v0 = vpop.f32.mrb[32].mxu1 }
 0x255   :  { %v4221_v58 = vpack.c.bf16 %v3362_v57, %v3361_v56  ;;  %v3028_v59 = vpop.f32.mrb[32].mxu0  ;;  %v2452_v60 = vpop.f32.mrb[33].mxu1 }
 0x256   :  { %v4390_v61 = vadd.f32 %v3028_v59, %v2450_v0  ;;  %v3030_v62 = vpop.f32.mrb[33].mxu0  ;;  %v2453_v63 = vpop.f32.mrb[34].mxu1 }
 0x257   :  { %4349 = vst [vmem:[%s5913_s2 + $0x38] sm:$0xff] %v4221_v58   ;;  %v3031_v1 = vpop.f32.mrb[34].mxu0  ;;  %v2455_v2 = vpop.f32.mrb[35].mxu1 }
 0x258   :  { %v3299_v3 = vmul.f32 0.2, %v4390_v61  ;;  %v4391_v4 = vadd.f32 %v3031_v1, %v2453_v63  ;;  %v3033_v5 = vpop.f32.mrb[35].mxu0  ;;  %vm3235_vm0 = vcmp.gt.f32.partialorder %v4390_v61, 0.0 }
 0x25a   :  { %vm3236_vm1 = vcmp.gt.f32.partialorder %v4391_v4, 0.0  ;;  %v3300_v6 = vmul.f32 0.2, %v4391_v4  ;;  %v3363_v7 = vsel %vm3235_vm0, %v4390_v61, %v3299_v3 }
 0x25c   :  { %v3364_v8 = vsel %vm3236_vm1, %v4391_v4, %v3300_v6  ;;  %v2458_v9 = vpop.f32.mrb[36].mxu1 }
 0x25d   :  { %v4226_v10 = vpack.c.bf16 %v3364_v8, %v3363_v7  ;;  %v3036_v11 = vpop.f32.mrb[36].mxu0  ;;  %v2460_v12 = vpop.f32.mrb[37].mxu1 }
 0x25e   :  { %v4392_v13 = vadd.f32 %v3036_v11, %v2458_v9  ;;  %v3038_v14 = vpop.f32.mrb[37].mxu0  ;;  %v2461_v15 = vpop.f32.mrb[38].mxu1 }
 0x25f   :  { %4350 = vst [vmem:[%s5913_s2 + $0x40] sm:$0xff] %v4226_v10   ;;  %v3039_v16 = vpop.f32.mrb[38].mxu0  ;;  %v2463_v17 = vpop.f32.mrb[39].mxu1 }
 0x260   :  { %v3301_v18 = vmul.f32 0.2, %v4392_v13  ;;  %v4393_v19 = vadd.f32 %v3039_v16, %v2461_v15  ;;  %v3041_v20 = vpop.f32.mrb[39].mxu0  ;;  %vm3237_vm2 = vcmp.gt.f32.partialorder %v4392_v13, 0.0 }
 0x262   :  { %vm3238_vm3 = vcmp.gt.f32.partialorder %v4393_v19, 0.0  ;;  %v3302_v21 = vmul.f32 0.2, %v4393_v19  ;;  %v3365_v22 = vsel %vm3237_vm2, %v4392_v13, %v3301_v18 }
 0x264   :  { %v3366_v23 = vsel %vm3238_vm3, %v4393_v19, %v3302_v21  ;;  %v2466_v24 = vpop.f32.mrb[40].mxu1 }
 0x265   :  { %v4231_v25 = vpack.c.bf16 %v3366_v23, %v3365_v22  ;;  %v3044_v26 = vpop.f32.mrb[40].mxu0  ;;  %v2468_v27 = vpop.f32.mrb[41].mxu1 }
 0x266   :  { %v4394_v28 = vadd.f32 %v3044_v26, %v2466_v24  ;;  %v3046_v29 = vpop.f32.mrb[41].mxu0  ;;  %v2469_v30 = vpop.f32.mrb[42].mxu1 }
 0x267   :  { %4351 = vst [vmem:[%s5913_s2 + $0x48] sm:$0xff] %v4231_v25   ;;  %v3047_v31 = vpop.f32.mrb[42].mxu0  ;;  %v2471_v32 = vpop.f32.mrb[43].mxu1 }
 0x268   :  { %v3303_v33 = vmul.f32 0.2, %v4394_v28  ;;  %v4395_v34 = vadd.f32 %v3047_v31, %v2469_v30  ;;  %v3049_v35 = vpop.f32.mrb[43].mxu0  ;;  %vm3239_vm4 = vcmp.gt.f32.partialorder %v4394_v28, 0.0 }
 0x26a   :  { %vm3240_vm5 = vcmp.gt.f32.partialorder %v4395_v34, 0.0  ;;  %v3304_v36 = vmul.f32 0.2, %v4395_v34  ;;  %v3367_v37 = vsel %vm3239_vm4, %v4394_v28, %v3303_v33 }
 0x26c   :  { %v3368_v38 = vsel %vm3240_vm5, %v4395_v34, %v3304_v36  ;;  %v2474_v39 = vpop.f32.mrb[44].mxu1 }
 0x26d   :  { %v4236_v40 = vpack.c.bf16 %v3368_v38, %v3367_v37  ;;  %v3052_v41 = vpop.f32.mrb[44].mxu0  ;;  %v2476_v42 = vpop.f32.mrb[45].mxu1 }
 0x26e   :  { %v4396_v43 = vadd.f32 %v3052_v41, %v2474_v39  ;;  %v3054_v44 = vpop.f32.mrb[45].mxu0  ;;  %v2477_v45 = vpop.f32.mrb[46].mxu1 }
 0x26f   :  { %4352 = vst [vmem:[%s5913_s2 + $0x50] sm:$0xff] %v4236_v40   ;;  %v3055_v46 = vpop.f32.mrb[46].mxu0  ;;  %v2479_v47 = vpop.f32.mrb[47].mxu1 }
 0x270   :  { %v3305_v48 = vmul.f32 0.2, %v4396_v43  ;;  %v4397_v49 = vadd.f32 %v3055_v46, %v2477_v45  ;;  %v3057_v50 = vpop.f32.mrb[47].mxu0  ;;  %vm3241_vm6 = vcmp.gt.f32.partialorder %v4396_v43, 0.0 }
 0x272   :  { %vm3242_vm7 = vcmp.gt.f32.partialorder %v4397_v49, 0.0  ;;  %v3306_v51 = vmul.f32 0.2, %v4397_v49  ;;  %v3369_v52 = vsel %vm3241_vm6, %v4396_v43, %v3305_v48 }
 0x274   :  { %v3370_v53 = vsel %vm3242_vm7, %v4397_v49, %v3306_v51  ;;  %v2482_v54 = vpop.f32.mrb[48].mxu1 }
 0x275   :  { %v4241_v55 = vpack.c.bf16 %v3370_v53, %v3369_v52  ;;  %v3060_v56 = vpop.f32.mrb[48].mxu0  ;;  %v2484_v57 = vpop.f32.mrb[49].mxu1 }
 0x276   :  { %v4398_v0 = vadd.f32 %v3060_v56, %v2482_v54  ;;  %v3062_v58 = vpop.f32.mrb[49].mxu0  ;;  %v2485_v59 = vpop.f32.mrb[50].mxu1 }
 0x277   :  { %4353 = vst [vmem:[%s5913_s2 + $0x58] sm:$0xff] %v4241_v55   ;;  %v3063_v60 = vpop.f32.mrb[50].mxu0  ;;  %v2487_v61 = vpop.f32.mrb[51].mxu1 }
 0x278   :  { %v3307_v62 = vmul.f32 0.2, %v4398_v0  ;;  %v4399_v63 = vadd.f32 %v3063_v60, %v2485_v59  ;;  %v3065_v1 = vpop.f32.mrb[51].mxu0  ;;  %vm3243_vm8 = vcmp.gt.f32.partialorder %v4398_v0, 0.0 }
 0x27a   :  { %vm3244_vm9 = vcmp.gt.f32.partialorder %v4399_v63, 0.0  ;;  %v3308_v2 = vmul.f32 0.2, %v4399_v63  ;;  %v3371_v3 = vsel %vm3243_vm8, %v4398_v0, %v3307_v62 }
 0x27c   :  { %v3372_v4 = vsel %vm3244_vm9, %v4399_v63, %v3308_v2  ;;  %v2490_v5 = vpop.f32.mrb[52].mxu1 }
 0x27d   :  { %v4246_v6 = vpack.c.bf16 %v3372_v4, %v3371_v3  ;;  %v3068_v7 = vpop.f32.mrb[52].mxu0  ;;  %v2492_v8 = vpop.f32.mrb[53].mxu1 }
 0x27e   :  { %v4400_v9 = vadd.f32 %v3068_v7, %v2490_v5  ;;  %v3070_v10 = vpop.f32.mrb[53].mxu0  ;;  %v2493_v11 = vpop.f32.mrb[54].mxu1 }
 0x27f   :  { %4354 = vst [vmem:[%s5913_s2 + $0x60] sm:$0xff] %v4246_v6   ;;  %v3071_v12 = vpop.f32.mrb[54].mxu0  ;;  %v2495_v13 = vpop.f32.mrb[55].mxu1 }
 0x280   :  { %v3309_v14 = vmul.f32 0.2, %v4400_v9  ;;  %v4401_v15 = vadd.f32 %v3071_v12, %v2493_v11  ;;  %v3073_v16 = vpop.f32.mrb[55].mxu0  ;;  %vm3245_vm10 = vcmp.gt.f32.partialorder %v4400_v9, 0.0 }
 0x282   :  { %vm3246_vm11 = vcmp.gt.f32.partialorder %v4401_v15, 0.0  ;;  %v3310_v17 = vmul.f32 0.2, %v4401_v15  ;;  %v3373_v18 = vsel %vm3245_vm10, %v4400_v9, %v3309_v14 }
 0x284   :  { %v3374_v19 = vsel %vm3246_vm11, %v4401_v15, %v3310_v17  ;;  %v2498_v20 = vpop.f32.mrb[56].mxu1 }
 0x285   :  { %v4251_v21 = vpack.c.bf16 %v3374_v19, %v3373_v18  ;;  %v3076_v22 = vpop.f32.mrb[56].mxu0  ;;  %v2500_v23 = vpop.f32.mrb[57].mxu1 }
 0x286   :  { %v4402_v24 = vadd.f32 %v3076_v22, %v2498_v20  ;;  %v3078_v25 = vpop.f32.mrb[57].mxu0  ;;  %v2501_v26 = vpop.f32.mrb[58].mxu1 }
 0x287   :  { %4355 = vst [vmem:[%s5913_s2 + $0x68] sm:$0xff] %v4251_v21   ;;  %v3079_v27 = vpop.f32.mrb[58].mxu0  ;;  %v2503_v28 = vpop.f32.mrb[59].mxu1 }
 0x288   :  { %v3311_v29 = vmul.f32 0.2, %v4402_v24  ;;  %v4403_v30 = vadd.f32 %v3079_v27, %v2501_v26  ;;  %v3081_v31 = vpop.f32.mrb[59].mxu0  ;;  %vm3247_vm12 = vcmp.gt.f32.partialorder %v4402_v24, 0.0 }
 0x28a   :  { %vm3248_vm13 = vcmp.gt.f32.partialorder %v4403_v30, 0.0  ;;  %v3312_v32 = vmul.f32 0.2, %v4403_v30  ;;  %v3375_v33 = vsel %vm3247_vm12, %v4402_v24, %v3311_v29 }
 0x28c   :  { %v3376_v34 = vsel %vm3248_vm13, %v4403_v30, %v3312_v32  ;;  %v2506_v35 = vpop.f32.mrb[60].mxu1 }
 0x28d   :  { %v4256_v36 = vpack.c.bf16 %v3376_v34, %v3375_v33  ;;  %v3084_v37 = vpop.f32.mrb[60].mxu0  ;;  %v2508_v38 = vpop.f32.mrb[61].mxu1 }
 0x28e   :  { %v4404_v39 = vadd.f32 %v3084_v37, %v2506_v35  ;;  %v3086_v40 = vpop.f32.mrb[61].mxu0  ;;  %v2509_v41 = vpop.f32.mrb[62].mxu1 }
 0x28f   :  { %4356 = vst [vmem:[%s5913_s2 + $0x70] sm:$0xff] %v4256_v36   ;;  %v3087_v42 = vpop.f32.mrb[62].mxu0  ;;  %v2511_v43 = vpop.f32.mrb[63].mxu1 }
 0x290   :  { %v3313_v44 = vmul.f32 0.2, %v4404_v39  ;;  %v4405_v45 = vadd.f32 %v3087_v42, %v2509_v41  ;;  %v3089_v46 = vpop.f32.mrb[63].mxu0  ;;  %vm3249_vm14 = vcmp.gt.f32.partialorder %v4404_v39, 0.0 }
 0x292   :  { %vm3250_vm15 = vcmp.gt.f32.partialorder %v4405_v45, 0.0  ;;  %v3314_v47 = vmul.f32 0.2, %v4405_v45  ;;  %v3377_v48 = vsel %vm3249_vm14, %v4404_v39, %v3313_v44 }
 0x294   :  { %v3378_v49 = vsel %vm3250_vm15, %v4405_v45, %v3314_v47  ;;  %v2514_v50 = vpop.f32.mrb[64].mxu1 }
 0x295   :  { %v4261_v51 = vpack.c.bf16 %v3378_v49, %v3377_v48  ;;  %v3092_v52 = vpop.f32.mrb[64].mxu0  ;;  %v2516_v53 = vpop.f32.mrb[65].mxu1 }
 0x296   :  { %v4406_v54 = vadd.f32 %v3092_v52, %v2514_v50  ;;  %v3094_v55 = vpop.f32.mrb[65].mxu0  ;;  %v2517_v56 = vpop.f32.mrb[66].mxu1 }
 0x297   :  { %4357 = vst [vmem:[%s5913_s2 + $0x78] sm:$0xff] %v4261_v51   ;;  %v3095_v57 = vpop.f32.mrb[66].mxu0  ;;  %v2519_v0 = vpop.f32.mrb[67].mxu1 }
 0x298   :  { %v3315_v58 = vmul.f32 0.2, %v4406_v54  ;;  %v4407_v59 = vadd.f32 %v3095_v57, %v2517_v56  ;;  %v3097_v60 = vpop.f32.mrb[67].mxu0  ;;  %vm3251_vm0 = vcmp.gt.f32.partialorder %v4406_v54, 0.0 }
 0x29a   :  { %vm3252_vm1 = vcmp.gt.f32.partialorder %v4407_v59, 0.0  ;;  %v3316_v61 = vmul.f32 0.2, %v4407_v59  ;;  %v3379_v62 = vsel %vm3251_vm0, %v4406_v54, %v3315_v58 }
 0x29c   :  { %v3380_v63 = vsel %vm3252_vm1, %v4407_v59, %v3316_v61  ;;  %v2522_v1 = vpop.f32.mrb[68].mxu1 }
 0x29d   :  { %v4266_v2 = vpack.c.bf16 %v3380_v63, %v3379_v62  ;;  %v3100_v3 = vpop.f32.mrb[68].mxu0  ;;  %v2524_v4 = vpop.f32.mrb[69].mxu1 }
 0x29e   :  { %v4408_v5 = vadd.f32 %v3100_v3, %v2522_v1  ;;  %v3102_v6 = vpop.f32.mrb[69].mxu0  ;;  %v2525_v7 = vpop.f32.mrb[70].mxu1 }
 0x29f   :  { %4358 = vst [vmem:[%s5913_s2 + $0x80] sm:$0xff] %v4266_v2   ;;  %v3103_v8 = vpop.f32.mrb[70].mxu0  ;;  %v2527_v9 = vpop.f32.mrb[71].mxu1 }
 0x2a0   :  { %v3317_v10 = vmul.f32 0.2, %v4408_v5  ;;  %v4409_v11 = vadd.f32 %v3103_v8, %v2525_v7  ;;  %v3105_v12 = vpop.f32.mrb[71].mxu0  ;;  %vm3253_vm2 = vcmp.gt.f32.partialorder %v4408_v5, 0.0 }
 0x2a2   :  { %vm3254_vm3 = vcmp.gt.f32.partialorder %v4409_v11, 0.0  ;;  %v3318_v13 = vmul.f32 0.2, %v4409_v11  ;;  %v3381_v14 = vsel %vm3253_vm2, %v4408_v5, %v3317_v10 }
 0x2a4   :  { %v3382_v15 = vsel %vm3254_vm3, %v4409_v11, %v3318_v13  ;;  %v2530_v16 = vpop.f32.mrb[72].mxu1 }
 0x2a5   :  { %v4271_v17 = vpack.c.bf16 %v3382_v15, %v3381_v14  ;;  %v3108_v18 = vpop.f32.mrb[72].mxu0  ;;  %v2532_v19 = vpop.f32.mrb[73].mxu1 }
 0x2a6   :  { %v4410_v20 = vadd.f32 %v3108_v18, %v2530_v16  ;;  %v3110_v21 = vpop.f32.mrb[73].mxu0  ;;  %v2533_v22 = vpop.f32.mrb[74].mxu1 }
 0x2a7   :  { %4359 = vst [vmem:[%s5913_s2 + $0x88] sm:$0xff] %v4271_v17   ;;  %v3111_v23 = vpop.f32.mrb[74].mxu0  ;;  %v2535_v24 = vpop.f32.mrb[75].mxu1 }
 0x2a8   :  { %v3319_v25 = vmul.f32 0.2, %v4410_v20  ;;  %v4411_v26 = vadd.f32 %v3111_v23, %v2533_v22  ;;  %v3113_v27 = vpop.f32.mrb[75].mxu0  ;;  %vm3255_vm4 = vcmp.gt.f32.partialorder %v4410_v20, 0.0 }
 0x2aa   :  { %vm3256_vm5 = vcmp.gt.f32.partialorder %v4411_v26, 0.0  ;;  %v3320_v28 = vmul.f32 0.2, %v4411_v26  ;;  %v3383_v29 = vsel %vm3255_vm4, %v4410_v20, %v3319_v25 }
 0x2ac   :  { %v3384_v30 = vsel %vm3256_vm5, %v4411_v26, %v3320_v28  ;;  %v2538_v31 = vpop.f32.mrb[76].mxu1 }
 0x2ad   :  { %v4276_v32 = vpack.c.bf16 %v3384_v30, %v3383_v29  ;;  %v3116_v33 = vpop.f32.mrb[76].mxu0  ;;  %v2540_v34 = vpop.f32.mrb[77].mxu1 }
 0x2ae   :  { %v4412_v35 = vadd.f32 %v3116_v33, %v2538_v31  ;;  %v3118_v36 = vpop.f32.mrb[77].mxu0  ;;  %v2541_v37 = vpop.f32.mrb[78].mxu1 }
 0x2af   :  { %4360 = vst [vmem:[%s5913_s2 + $0x90] sm:$0xff] %v4276_v32   ;;  %v3119_v38 = vpop.f32.mrb[78].mxu0  ;;  %v2543_v39 = vpop.f32.mrb[79].mxu1 }
 0x2b0   :  { %v3321_v40 = vmul.f32 0.2, %v4412_v35  ;;  %v4413_v41 = vadd.f32 %v3119_v38, %v2541_v37  ;;  %v3121_v42 = vpop.f32.mrb[79].mxu0  ;;  %vm3257_vm6 = vcmp.gt.f32.partialorder %v4412_v35, 0.0 }
 0x2b2   :  { %vm3258_vm7 = vcmp.gt.f32.partialorder %v4413_v41, 0.0  ;;  %v3322_v43 = vmul.f32 0.2, %v4413_v41  ;;  %v3385_v44 = vsel %vm3257_vm6, %v4412_v35, %v3321_v40 }
 0x2b4   :  { %v3386_v45 = vsel %vm3258_vm7, %v4413_v41, %v3322_v43  ;;  %v2546_v46 = vpop.f32.mrb[80].mxu1 }
 0x2b5   :  { %v4281_v47 = vpack.c.bf16 %v3386_v45, %v3385_v44  ;;  %v3124_v48 = vpop.f32.mrb[80].mxu0  ;;  %v2548_v49 = vpop.f32.mrb[81].mxu1 }
 0x2b6   :  { %v4414_v50 = vadd.f32 %v3124_v48, %v2546_v46  ;;  %v3126_v51 = vpop.f32.mrb[81].mxu0  ;;  %v2549_v52 = vpop.f32.mrb[82].mxu1 }
 0x2b7   :  { %4361 = vst [vmem:[%s5913_s2 + $0x98] sm:$0xff] %v4281_v47   ;;  %v3127_v53 = vpop.f32.mrb[82].mxu0  ;;  %v2551_v54 = vpop.f32.mrb[83].mxu1 }
 0x2b8   :  { %v3323_v55 = vmul.f32 0.2, %v4414_v50  ;;  %v4415_v56 = vadd.f32 %v3127_v53, %v2549_v52  ;;  %v3129_v57 = vpop.f32.mrb[83].mxu0  ;;  %vm3259_vm8 = vcmp.gt.f32.partialorder %v4414_v50, 0.0 }
 0x2ba   :  { %vm3260_vm9 = vcmp.gt.f32.partialorder %v4415_v56, 0.0  ;;  %v3324_v0 = vmul.f32 0.2, %v4415_v56  ;;  %v3387_v58 = vsel %vm3259_vm8, %v4414_v50, %v3323_v55 }
 0x2bc   :  { %v3388_v59 = vsel %vm3260_vm9, %v4415_v56, %v3324_v0  ;;  %v2554_v60 = vpop.f32.mrb[84].mxu1 }
 0x2bd   :  { %v4286_v61 = vpack.c.bf16 %v3388_v59, %v3387_v58  ;;  %v3132_v62 = vpop.f32.mrb[84].mxu0  ;;  %v2556_v63 = vpop.f32.mrb[85].mxu1 }
 0x2be   :  { %v4416_v1 = vadd.f32 %v3132_v62, %v2554_v60  ;;  %v3134_v2 = vpop.f32.mrb[85].mxu0  ;;  %v2557_v3 = vpop.f32.mrb[86].mxu1 }
 0x2bf   :  { %4362 = vst [vmem:[%s5913_s2 + $0xa0] sm:$0xff] %v4286_v61   ;;  %v3135_v4 = vpop.f32.mrb[86].mxu0  ;;  %v2559_v5 = vpop.f32.mrb[87].mxu1 }
 0x2c0   :  { %v3325_v6 = vmul.f32 0.2, %v4416_v1  ;;  %v4417_v7 = vadd.f32 %v3135_v4, %v2557_v3  ;;  %v3137_v8 = vpop.f32.mrb[87].mxu0  ;;  %vm3261_vm10 = vcmp.gt.f32.partialorder %v4416_v1, 0.0 }
 0x2c2   :  { %vm3262_vm11 = vcmp.gt.f32.partialorder %v4417_v7, 0.0  ;;  %v3326_v9 = vmul.f32 0.2, %v4417_v7  ;;  %v3389_v10 = vsel %vm3261_vm10, %v4416_v1, %v3325_v6 }
 0x2c4   :  { %v3390_v11 = vsel %vm3262_vm11, %v4417_v7, %v3326_v9  ;;  %v2562_v12 = vpop.f32.mrb[88].mxu1 }
 0x2c5   :  { %v4291_v13 = vpack.c.bf16 %v3390_v11, %v3389_v10  ;;  %v3140_v14 = vpop.f32.mrb[88].mxu0  ;;  %v2564_v15 = vpop.f32.mrb[89].mxu1 }
 0x2c6   :  { %v4418_v16 = vadd.f32 %v3140_v14, %v2562_v12  ;;  %v3142_v17 = vpop.f32.mrb[89].mxu0  ;;  %v2565_v18 = vpop.f32.mrb[90].mxu1 }
 0x2c7   :  { %4363 = vst [vmem:[%s5913_s2 + $0xa8] sm:$0xff] %v4291_v13   ;;  %v3143_v19 = vpop.f32.mrb[90].mxu0  ;;  %v2567_v20 = vpop.f32.mrb[91].mxu1 }
 0x2c8   :  { %v3327_v21 = vmul.f32 0.2, %v4418_v16  ;;  %v4419_v22 = vadd.f32 %v3143_v19, %v2565_v18  ;;  %v3145_v23 = vpop.f32.mrb[91].mxu0  ;;  %vm3263_vm12 = vcmp.gt.f32.partialorder %v4418_v16, 0.0 }
 0x2ca   :  { %vm3264_vm13 = vcmp.gt.f32.partialorder %v4419_v22, 0.0  ;;  %v3328_v24 = vmul.f32 0.2, %v4419_v22  ;;  %v3391_v25 = vsel %vm3263_vm12, %v4418_v16, %v3327_v21 }
 0x2cc   :  { %v3392_v26 = vsel %vm3264_vm13, %v4419_v22, %v3328_v24  ;;  %v2570_v27 = vpop.f32.mrb[92].mxu1 }
 0x2cd   :  { %v4296_v28 = vpack.c.bf16 %v3392_v26, %v3391_v25  ;;  %v3148_v29 = vpop.f32.mrb[92].mxu0  ;;  %v2572_v30 = vpop.f32.mrb[93].mxu1 }
 0x2ce   :  { %v4420_v31 = vadd.f32 %v3148_v29, %v2570_v27  ;;  %v3150_v32 = vpop.f32.mrb[93].mxu0  ;;  %v2573_v33 = vpop.f32.mrb[94].mxu1 }
 0x2cf   :  { %4364 = vst [vmem:[%s5913_s2 + $0xb0] sm:$0xff] %v4296_v28   ;;  %v3151_v34 = vpop.f32.mrb[94].mxu0  ;;  %v2575_v35 = vpop.f32.mrb[95].mxu1 }
 0x2d0   :  { %v3329_v36 = vmul.f32 0.2, %v4420_v31  ;;  %v4421_v37 = vadd.f32 %v3151_v34, %v2573_v33  ;;  %v3153_v38 = vpop.f32.mrb[95].mxu0  ;;  %vm3265_vm14 = vcmp.gt.f32.partialorder %v4420_v31, 0.0 }
 0x2d2   :  { %vm3266_vm15 = vcmp.gt.f32.partialorder %v4421_v37, 0.0  ;;  %v3330_v39 = vmul.f32 0.2, %v4421_v37  ;;  %v3393_v40 = vsel %vm3265_vm14, %v4420_v31, %v3329_v36 }
 0x2d4   :  { %v3394_v41 = vsel %vm3266_vm15, %v4421_v37, %v3330_v39  ;;  %v2578_v42 = vpop.f32.mrb[96].mxu1 }
 0x2d5   :  { %v4301_v43 = vpack.c.bf16 %v3394_v41, %v3393_v40  ;;  %v3156_v44 = vpop.f32.mrb[96].mxu0  ;;  %v2580_v45 = vpop.f32.mrb[97].mxu1 }
 0x2d6   :  { %v4422_v46 = vadd.f32 %v3156_v44, %v2578_v42  ;;  %v3158_v47 = vpop.f32.mrb[97].mxu0  ;;  %v2581_v48 = vpop.f32.mrb[98].mxu1 }
 0x2d7   :  { %4365 = vst [vmem:[%s5913_s2 + $0xb8] sm:$0xff] %v4301_v43   ;;  %v3159_v49 = vpop.f32.mrb[98].mxu0  ;;  %v2583_v50 = vpop.f32.mrb[99].mxu1 }
 0x2d8   :  { %v3331_v51 = vmul.f32 0.2, %v4422_v46  ;;  %v4423_v52 = vadd.f32 %v3159_v49, %v2581_v48  ;;  %v3161_v53 = vpop.f32.mrb[99].mxu0  ;;  %vm3267_vm0 = vcmp.gt.f32.partialorder %v4422_v46, 0.0 }
 0x2da   :  { %vm3268_vm1 = vcmp.gt.f32.partialorder %v4423_v52, 0.0  ;;  %v3332_v54 = vmul.f32 0.2, %v4423_v52  ;;  %v3395_v55 = vsel %vm3267_vm0, %v4422_v46, %v3331_v51 }
 0x2dc   :  { %v3396_v56 = vsel %vm3268_vm1, %v4423_v52, %v3332_v54  ;;  %v2586_v57 = vpop.f32.mrb[100].mxu1 }
 0x2dd   :  { %v4306_v0 = vpack.c.bf16 %v3396_v56, %v3395_v55  ;;  %v3164_v58 = vpop.f32.mrb[100].mxu0  ;;  %v2588_v59 = vpop.f32.mrb[101].mxu1 }
 0x2de   :  { %v4424_v60 = vadd.f32 %v3164_v58, %v2586_v57  ;;  %v3166_v61 = vpop.f32.mrb[101].mxu0  ;;  %v2589_v62 = vpop.f32.mrb[102].mxu1 }
 0x2df   :  { %4366 = vst [vmem:[%s5913_s2 + $0xc0] sm:$0xff] %v4306_v0   ;;  %v3167_v63 = vpop.f32.mrb[102].mxu0  ;;  %v2591_v1 = vpop.f32.mrb[103].mxu1 }
 0x2e0   :  { %v3333_v2 = vmul.f32 0.2, %v4424_v60  ;;  %v4425_v3 = vadd.f32 %v3167_v63, %v2589_v62  ;;  %v3169_v4 = vpop.f32.mrb[103].mxu0  ;;  %vm3269_vm2 = vcmp.gt.f32.partialorder %v4424_v60, 0.0 }
 0x2e2   :  { %vm3270_vm3 = vcmp.gt.f32.partialorder %v4425_v3, 0.0  ;;  %v3334_v5 = vmul.f32 0.2, %v4425_v3  ;;  %v3397_v6 = vsel %vm3269_vm2, %v4424_v60, %v3333_v2 }
 0x2e4   :  { %v3398_v7 = vsel %vm3270_vm3, %v4425_v3, %v3334_v5  ;;  %v2594_v8 = vpop.f32.mrb[104].mxu1 }
 0x2e5   :  { %v4311_v9 = vpack.c.bf16 %v3398_v7, %v3397_v6  ;;  %v3172_v10 = vpop.f32.mrb[104].mxu0  ;;  %v2596_v11 = vpop.f32.mrb[105].mxu1 }
 0x2e6   :  { %v4426_v12 = vadd.f32 %v3172_v10, %v2594_v8  ;;  %v3174_v13 = vpop.f32.mrb[105].mxu0  ;;  %v2597_v14 = vpop.f32.mrb[106].mxu1 }
 0x2e7   :  { %4367 = vst [vmem:[%s5913_s2 + $0xc8] sm:$0xff] %v4311_v9   ;;  %v3175_v15 = vpop.f32.mrb[106].mxu0  ;;  %v2599_v16 = vpop.f32.mrb[107].mxu1 }
 0x2e8   :  { %v3335_v17 = vmul.f32 0.2, %v4426_v12  ;;  %v4427_v18 = vadd.f32 %v3175_v15, %v2597_v14  ;;  %v3177_v19 = vpop.f32.mrb[107].mxu0  ;;  %vm3271_vm4 = vcmp.gt.f32.partialorder %v4426_v12, 0.0 }
 0x2ea   :  { %vm3272_vm5 = vcmp.gt.f32.partialorder %v4427_v18, 0.0  ;;  %v3336_v20 = vmul.f32 0.2, %v4427_v18  ;;  %v3399_v21 = vsel %vm3271_vm4, %v4426_v12, %v3335_v17 }
 0x2ec   :  { %v3400_v22 = vsel %vm3272_vm5, %v4427_v18, %v3336_v20  ;;  %v2602_v23 = vpop.f32.mrb[108].mxu1 }
 0x2ed   :  { %v4316_v24 = vpack.c.bf16 %v3400_v22, %v3399_v21  ;;  %v3180_v25 = vpop.f32.mrb[108].mxu0  ;;  %v2604_v26 = vpop.f32.mrb[109].mxu1 }
 0x2ee   :  { %v4428_v27 = vadd.f32 %v3180_v25, %v2602_v23  ;;  %v3182_v28 = vpop.f32.mrb[109].mxu0  ;;  %v2605_v29 = vpop.f32.mrb[110].mxu1 }
 0x2ef   :  { %4368 = vst [vmem:[%s5913_s2 + $0xd0] sm:$0xff] %v4316_v24   ;;  %v3183_v30 = vpop.f32.mrb[110].mxu0  ;;  %v2607_v31 = vpop.f32.mrb[111].mxu1 }
 0x2f0   :  { %v3337_v32 = vmul.f32 0.2, %v4428_v27  ;;  %v4429_v33 = vadd.f32 %v3183_v30, %v2605_v29  ;;  %v3185_v34 = vpop.f32.mrb[111].mxu0  ;;  %vm3273_vm6 = vcmp.gt.f32.partialorder %v4428_v27, 0.0 }
 0x2f2   :  { %vm3274_vm7 = vcmp.gt.f32.partialorder %v4429_v33, 0.0  ;;  %v3338_v35 = vmul.f32 0.2, %v4429_v33  ;;  %v3401_v36 = vsel %vm3273_vm6, %v4428_v27, %v3337_v32 }
 0x2f4   :  { %v3402_v37 = vsel %vm3274_vm7, %v4429_v33, %v3338_v35  ;;  %v2610_v38 = vpop.f32.mrb[112].mxu1 }
 0x2f5   :  { %v4321_v39 = vpack.c.bf16 %v3402_v37, %v3401_v36  ;;  %v3188_v40 = vpop.f32.mrb[112].mxu0  ;;  %v2612_v41 = vpop.f32.mrb[113].mxu1 }
 0x2f6   :  { %v4430_v42 = vadd.f32 %v3188_v40, %v2610_v38  ;;  %v3190_v43 = vpop.f32.mrb[113].mxu0  ;;  %v2613_v44 = vpop.f32.mrb[114].mxu1 }
 0x2f7   :  { %4369 = vst [vmem:[%s5913_s2 + $0xd8] sm:$0xff] %v4321_v39   ;;  %v3191_v45 = vpop.f32.mrb[114].mxu0  ;;  %v2615_v46 = vpop.f32.mrb[115].mxu1 }
 0x2f8   :  { %v3339_v47 = vmul.f32 0.2, %v4430_v42  ;;  %v4431_v48 = vadd.f32 %v3191_v45, %v2613_v44  ;;  %v3193_v49 = vpop.f32.mrb[115].mxu0  ;;  %vm3275_vm8 = vcmp.gt.f32.partialorder %v4430_v42, 0.0 }
 0x2fa   :  { %vm3276_vm9 = vcmp.gt.f32.partialorder %v4431_v48, 0.0  ;;  %v3340_v50 = vmul.f32 0.2, %v4431_v48  ;;  %v3403_v51 = vsel %vm3275_vm8, %v4430_v42, %v3339_v47 }
 0x2fc   :  { %v3404_v52 = vsel %vm3276_vm9, %v4431_v48, %v3340_v50  ;;  %v2618_v53 = vpop.f32.mrb[116].mxu1 }
 0x2fd   :  { %v4326_v54 = vpack.c.bf16 %v3404_v52, %v3403_v51  ;;  %v3196_v55 = vpop.f32.mrb[116].mxu0  ;;  %v2620_v56 = vpop.f32.mrb[117].mxu1 }
 0x2fe   :  { %v4432_v57 = vadd.f32 %v3196_v55, %v2618_v53  ;;  %v3198_v0 = vpop.f32.mrb[117].mxu0  ;;  %v2621_v58 = vpop.f32.mrb[118].mxu1 }
 0x2ff   :  { %4370 = vst [vmem:[%s5913_s2 + $0xe0] sm:$0xff] %v4326_v54   ;;  %v3199_v59 = vpop.f32.mrb[118].mxu0  ;;  %v2623_v60 = vpop.f32.mrb[119].mxu1 }
 0x300   :  { %v3341_v61 = vmul.f32 0.2, %v4432_v57  ;;  %v4433_v62 = vadd.f32 %v3199_v59, %v2621_v58  ;;  %v3201_v63 = vpop.f32.mrb[119].mxu0  ;;  %vm3277_vm10 = vcmp.gt.f32.partialorder %v4432_v57, 0.0 }
 0x302   :  { %vm3278_vm11 = vcmp.gt.f32.partialorder %v4433_v62, 0.0  ;;  %v3342_v1 = vmul.f32 0.2, %v4433_v62  ;;  %v3405_v2 = vsel %vm3277_vm10, %v4432_v57, %v3341_v61 }
 0x304   :  { %v3406_v3 = vsel %vm3278_vm11, %v4433_v62, %v3342_v1  ;;  %v2626_v4 = vpop.f32.mrb[120].mxu1 }
 0x305   :  { %v4331_v5 = vpack.c.bf16 %v3406_v3, %v3405_v2  ;;  %v3204_v6 = vpop.f32.mrb[120].mxu0  ;;  %v2628_v7 = vpop.f32.mrb[121].mxu1 }
 0x306   :  { %v4434_v8 = vadd.f32 %v3204_v6, %v2626_v4  ;;  %v3206_v9 = vpop.f32.mrb[121].mxu0  ;;  %v2629_v10 = vpop.f32.mrb[122].mxu1 }
 0x307   :  { %4371 = vst [vmem:[%s5913_s2 + $0xe8] sm:$0xff] %v4331_v5   ;;  %v3207_v11 = vpop.f32.mrb[122].mxu0  ;;  %v2631_v12 = vpop.f32.mrb[123].mxu1 }
 0x308   :  { %v3343_v13 = vmul.f32 0.2, %v4434_v8  ;;  %v4435_v14 = vadd.f32 %v3207_v11, %v2629_v10  ;;  %v3209_v15 = vpop.f32.mrb[123].mxu0  ;;  %vm3279_vm12 = vcmp.gt.f32.partialorder %v4434_v8, 0.0 }
 0x30a   :  { %vm3280_vm13 = vcmp.gt.f32.partialorder %v4435_v14, 0.0  ;;  %v3344_v16 = vmul.f32 0.2, %v4435_v14  ;;  %v3407_v17 = vsel %vm3279_vm12, %v4434_v8, %v3343_v13 }
 0x30c   :  { %v3408_v18 = vsel %vm3280_vm13, %v4435_v14, %v3344_v16  ;;  %v2634_v19 = vpop.f32.mrb[124].mxu1 }
 0x30d   :  { %v4336_v20 = vpack.c.bf16 %v3408_v18, %v3407_v17  ;;  %v3212_v21 = vpop.f32.mrb[124].mxu0  ;;  %v2636_v22 = vpop.f32.mrb[125].mxu1 }
 0x30e   :  { %v4436_v23 = vadd.f32 %v3212_v21, %v2634_v19  ;;  %v3214_v24 = vpop.f32.mrb[125].mxu0  ;;  %v2637_v25 = vpop.f32.mrb[126].mxu1 }
 0x30f   :  { %4372 = vst [vmem:[%s5913_s2 + $0xf0] sm:$0xff] %v4336_v20   ;;  %v3215_v26 = vpop.f32.mrb[126].mxu0  ;;  %v2639_v27 = vpop.f32.mrb[127].mxu1 }
 0x310   :  { %v3345_v28 = vmul.f32 0.2, %v4436_v23  ;;  %v4437_v29 = vadd.f32 %v3215_v26, %v2637_v25  ;;  %v3217_v30 = vpop.f32.mrb[127].mxu0  ;;  %vm3281_vm14 = vcmp.gt.f32.partialorder %v4436_v23, 0.0 }
 0x312   :  { %vm3282_vm15 = vcmp.gt.f32.partialorder %v4437_v29, 0.0  ;;  %v3346_v31 = vmul.f32 0.2, %v4437_v29  ;;  %v3409_v32 = vsel %vm3281_vm14, %v4436_v23, %v3345_v28 }
 0x314   :  { %v3410_v33 = vsel %vm3282_vm15, %v4437_v29, %v3346_v31 }
 0x315   :  { %v4341_v34 = vpack.c.bf16 %v3410_v33, %v3409_v32 }
 0x317   :  { %4373 = vst [vmem:[%s5913_s2 + $0xf8] sm:$0xff] %v4341_v34  }

// kernel: d_forward.6
= control target key start
LH: loop header
LB: loop body
LE: loop exit
PB: predicated region body
PF: predicated region fallthrough
CT: control target
= control target key end

     0   :  { %s5673_s1 = inlined_call_operand.vmem [shape: bf16[1,2048,256], index: 1, kind: input, shape index: {}]   ;;  %s5674_s0 = inlined_call_operand.vmem [shape: bf16[128,2048], index: 0, kind: input, shape index: {}]   ;;  %s5675_s2 = inlined_call_operand.vmem [shape: bf16[128,256], index: 2, kind: output, shape index: {}]  }
   0x1   :  { %v4074_v0 = vld [vmem:[%s5673_s1 + $0x4] ss:$8 sps:$4 sm:$0xff]   ;;  %v4078_v2 = vld [vmem:[%s5673_s1] ss:$8 sps:$4 sm:$0xff]   ;;  %v4080_v4 = vld [vmem:[%s5673_s1 + $0x14] ss:$8 sps:$4 sm:$0xff]  }
   0x2   :  { %v4076_v1 = vld [vmem:[%s5673_s1 + $0x404] ss:$8 sps:$4 sm:$0xff]   ;;  %2318 = vmatprep.subr.bf16.mxu1 %v4074_v0  ;;  %v4079_v3 = vld [vmem:[%s5673_s1 + $0x400] ss:$8 sps:$4 sm:$0xff]   ;;  %v4082_v5 = vld [vmem:[%s5673_s1 + $0x414] ss:$8 sps:$4 sm:$0xff]  }
   0x3   :  { %2770 = vmatprep.subr.bf16.mxu0 %v4076_v1  ;;  %2319 = vmatpush1.bf16.msra.mxu1 %v4078_v2  ;;  %v4084_v6 = vld [vmem:[%s5673_s1 + $0x10] ss:$8 sps:$4 sm:$0xff]   ;;  %v4086_v8 = vld [vmem:[%s5673_s1 + $0x24] ss:$8 sps:$4 sm:$0xff]   ;;  %v4090_v10 = vld [vmem:[%s5673_s1 + $0x20] ss:$8 sps:$4 sm:$0xff]  }
   0x4   :  { %2771 = vmatpush1.bf16.msra.mxu0 %v4079_v3  ;;  %2320 = vmatprep.subr.bf16.mxu1 %v4080_v4  ;;  %v4085_v7 = vld [vmem:[%s5673_s1 + $0x410] ss:$8 sps:$4 sm:$0xff]   ;;  %v4088_v9 = vld [vmem:[%s5673_s1 + $0x424] ss:$8 sps:$4 sm:$0xff]   ;;  %v4091_v11 = vld [vmem:[%s5673_s1 + $0x420] ss:$8 sps:$4 sm:$0xff]  }
   0x5   :  { %2772 = vmatprep.subr.bf16.mxu0 %v4082_v5  ;;  %v4092_v12 = vld [vmem:[%s5673_s1 + $0x34] ss:$8 sps:$4 sm:$0xff]   ;;  %v4096_v14 = vld [vmem:[%s5673_s1 + $0x30] ss:$8 sps:$4 sm:$0xff]   ;;  %v4098_v16 = vld [vmem:[%s5673_s1 + $0x44] ss:$8 sps:$4 sm:$0xff]  }
   0x6   :  { %v4094_v13 = vld [vmem:[%s5673_s1 + $0x434] ss:$8 sps:$4 sm:$0xff]   ;;  %v4097_v15 = vld [vmem:[%s5673_s1 + $0x430] ss:$8 sps:$4 sm:$0xff]   ;;  %v4100_v17 = vld [vmem:[%s5673_s1 + $0x444] ss:$8 sps:$4 sm:$0xff]  }
   0x7   :  { %2321 = vmatpush1.bf16.msra.mxu1 %v4084_v6  ;;  %v4102_v18 = vld [vmem:[%s5673_s1 + $0x40] ss:$8 sps:$4 sm:$0xff]   ;;  %v4104_v20 = vld [vmem:[%s5673_s1 + $0x54] ss:$8 sps:$4 sm:$0xff]   ;;  %v4108_v22 = vld [vmem:[%s5673_s1 + $0x50] ss:$8 sps:$4 sm:$0xff]  }
   0x8   :  { %2773 = vmatpush1.bf16.msra.mxu0 %v4085_v7  ;;  %2322 = vmatprep.subr.bf16.mxu1 %v4086_v8  ;;  %v4103_v19 = vld [vmem:[%s5673_s1 + $0x440] ss:$8 sps:$4 sm:$0xff]   ;;  %v4106_v21 = vld [vmem:[%s5673_s1 + $0x454] ss:$8 sps:$4 sm:$0xff]   ;;  %v4109_v23 = vld [vmem:[%s5673_s1 + $0x450] ss:$8 sps:$4 sm:$0xff]  }
   0x9   :  { %2774 = vmatprep.subr.bf16.mxu0 %v4088_v9  ;;  %v4110_v24 = vld [vmem:[%s5673_s1 + $0x64] ss:$8 sps:$4 sm:$0xff]   ;;  %v4114_v26 = vld [vmem:[%s5673_s1 + $0x60] ss:$8 sps:$4 sm:$0xff]   ;;  %v4116_v28 = vld [vmem:[%s5673_s1 + $0x74] ss:$8 sps:$4 sm:$0xff]  }
   0xa   :  { %v4112_v25 = vld [vmem:[%s5673_s1 + $0x464] ss:$8 sps:$4 sm:$0xff]   ;;  %v4115_v27 = vld [vmem:[%s5673_s1 + $0x460] ss:$8 sps:$4 sm:$0xff]   ;;  %v4118_v29 = vld [vmem:[%s5673_s1 + $0x474] ss:$8 sps:$4 sm:$0xff]  }
   0xb   :  { %2323 = vmatpush1.bf16.msra.mxu1 %v4090_v10  ;;  %v4120_v30 = vld [vmem:[%s5673_s1 + $0x70] ss:$8 sps:$4 sm:$0xff]   ;;  %v4122_v32 = vld [vmem:[%s5673_s1 + $0x84] ss:$8 sps:$4 sm:$0xff]   ;;  %v4126_v34 = vld [vmem:[%s5673_s1 + $0x80] ss:$8 sps:$4 sm:$0xff]  }
   0xc   :  { %2775 = vmatpush1.bf16.msra.mxu0 %v4091_v11  ;;  %2324 = vmatprep.subr.bf16.mxu1 %v4092_v12  ;;  %v4121_v31 = vld [vmem:[%s5673_s1 + $0x470] ss:$8 sps:$4 sm:$0xff]   ;;  %v4124_v33 = vld [vmem:[%s5673_s1 + $0x484] ss:$8 sps:$4 sm:$0xff]   ;;  %v4127_v35 = vld [vmem:[%s5673_s1 + $0x480] ss:$8 sps:$4 sm:$0xff]  }
   0xd   :  { %2776 = vmatprep.subr.bf16.mxu0 %v4094_v13  ;;  %v4128_v36 = vld [vmem:[%s5673_s1 + $0x94] ss:$8 sps:$4 sm:$0xff]   ;;  %v4132_v38 = vld [vmem:[%s5673_s1 + $0x90] ss:$8 sps:$4 sm:$0xff]   ;;  %v4134_v40 = vld [vmem:[%s5673_s1 + $0xa4] ss:$8 sps:$4 sm:$0xff]  }
   0xe   :  { %v4130_v37 = vld [vmem:[%s5673_s1 + $0x494] ss:$8 sps:$4 sm:$0xff]   ;;  %v4133_v39 = vld [vmem:[%s5673_s1 + $0x490] ss:$8 sps:$4 sm:$0xff]   ;;  %v4136_v41 = vld [vmem:[%s5673_s1 + $0x4a4] ss:$8 sps:$4 sm:$0xff]  }
   0xf   :  { %2325 = vmatpush1.bf16.msra.mxu1 %v4096_v14  ;;  %v4138_v42 = vld [vmem:[%s5673_s1 + $0xa0] ss:$8 sps:$4 sm:$0xff]   ;;  %v4140_v44 = vld [vmem:[%s5673_s1 + $0xb4] ss:$8 sps:$4 sm:$0xff]   ;;  %v4144_v46 = vld [vmem:[%s5673_s1 + $0xb0] ss:$8 sps:$4 sm:$0xff]  }
  0x10   :  { %2777 = vmatpush1.bf16.msra.mxu0 %v4097_v15  ;;  %2326 = vmatprep.subr.bf16.mxu1 %v4098_v16  ;;  %v4139_v43 = vld [vmem:[%s5673_s1 + $0x4a0] ss:$8 sps:$4 sm:$0xff]   ;;  %v4142_v45 = vld [vmem:[%s5673_s1 + $0x4b4] ss:$8 sps:$4 sm:$0xff]   ;;  %v4145_v47 = vld [vmem:[%s5673_s1 + $0x4b0] ss:$8 sps:$4 sm:$0xff]  }
  0x11   :  { %2778 = vmatprep.subr.bf16.mxu0 %v4100_v17  ;;  %v11_v48 = vld [vmem:[%s5674_s0] sm:$0xff]  ;;  %v4152_v58 = vld [vmem:[%s5673_s1 + $0xd4] ss:$8 sps:$4 sm:$0xff]   ;;  %v4156_v60 = vld [vmem:[%s5673_s1 + $0xd0] ss:$8 sps:$4 sm:$0xff]  }
  0x12   :  { %v19_v49 = vld [vmem:[%s5674_s0 + $0x40] sm:$0xff]  ;;  %v4154_v59 = vld [vmem:[%s5673_s1 + $0x4d4] ss:$8 sps:$4 sm:$0xff]   ;;  %v4157_v61 = vld [vmem:[%s5673_s1 + $0x4d0] ss:$8 sps:$4 sm:$0xff]  }
  0x13   :  { %2327 = vmatpush1.bf16.msra.mxu1 %v4102_v18  ;;  %v15_v50 = vld [vmem:[%s5674_s0 + $0x20] sm:$0xff]  ;;  %v3435_v53 = vcombine.high %v11_v48, %v19_v49  ;;  %v4164_v2 = vld [vmem:[%s5673_s1 + $0xf4] ss:$8 sps:$4 sm:$0xff]   ;;  %v4168_v4 = vld [vmem:[%s5673_s1 + $0xf0] ss:$8 sps:$4 sm:$0xff]   ;;  %v3434_v11 = vcombine.low %v11_v48, %v19_v49 }
  0x14   :  { %2779 = vmatpush1.bf16.msra.mxu0 %v4103_v19  ;;  %2328 = vmatprep.subr.bf16.mxu1 %v4104_v20  ;;  %v23_v51 = vld [vmem:[%s5674_s0 + $0x60] sm:$0xff]  ;;  %v4166_v3 = vld [vmem:[%s5673_s1 + $0x4f4] ss:$8 sps:$4 sm:$0xff]   ;;  %v4169_v5 = vld [vmem:[%s5673_s1 + $0x4f0] ss:$8 sps:$4 sm:$0xff]  }
  0x15   :  { %2780 = vmatprep.subr.bf16.mxu0 %v4106_v21  ;;  %v4146_v52 = vld [vmem:[%s5673_s1 + $0xc4] ss:$8 sps:$4 sm:$0xff]   ;;  %v3443_v55 = vcombine.high %v15_v50, %v23_v51  ;;  %2350 = vmatprep.mubr.bf16.mxu1 %v3435_v53  ;;  %v4150_v56 = vld [vmem:[%s5673_s1 + $0xc0] ss:$8 sps:$4 sm:$0xff]   ;;  %v3442_v12 = vcombine.low %v15_v50, %v23_v51  ;;  %v4178_v16 = vld [vmem:[%s5673_s1 + $0x114] ss:$8 sps:$4 sm:$0xff]  }
  0x16   :  { %v4148_v54 = vld [vmem:[%s5673_s1 + $0x4c4] ss:$8 sps:$4 sm:$0xff]   ;;  %v4151_v57 = vld [vmem:[%s5673_s1 + $0x4c0] ss:$8 sps:$4 sm:$0xff]   ;;  %v4181_v17 = vld [vmem:[%s5673_s1 + $0x514] ss:$8 sps:$4 sm:$0xff]  }
  0x17   :  { %2329 = vmatpush1.bf16.msra.mxu1 %v4108_v22  ;;  %2802 = vmatprep.mubr.bf16.mxu0 %v3443_v55  ;;  %v4158_v62 = vld [vmem:[%s5673_s1 + $0xe4] ss:$8 sps:$4 sm:$0xff]   ;;  %v4162_v0 = vld [vmem:[%s5673_s1 + $0xe0] ss:$8 sps:$4 sm:$0xff]   ;;  %v4176_v20 = vld [vmem:[%s5673_s1 + $0x110] ss:$8 sps:$4 sm:$0xff]  }
  0x18   :  { %2781 = vmatpush1.bf16.msra.mxu0 %v4109_v23  ;;  %2330 = vmatprep.subr.bf16.mxu1 %v4110_v24  ;;  %v4160_v63 = vld [vmem:[%s5673_s1 + $0x4e4] ss:$8 sps:$4 sm:$0xff]   ;;  %v4163_v1 = vld [vmem:[%s5673_s1 + $0x4e0] ss:$8 sps:$4 sm:$0xff]   ;;  %v4179_v21 = vld [vmem:[%s5673_s1 + $0x510] ss:$8 sps:$4 sm:$0xff]  }
  0x19   :  { %2782 = vmatprep.subr.bf16.mxu0 %v4112_v25  ;;  %v4172_v6 = vld [vmem:[%s5673_s1 + $0x104] ss:$8 sps:$4 sm:$0xff]   ;;  %v4170_v8 = vld [vmem:[%s5673_s1 + $0x100] ss:$8 sps:$4 sm:$0xff]   ;;  %v4202_v48 = vld [vmem:[%s5673_s1 + $0x154] ss:$8 sps:$4 sm:$0xff]  }
  0x1a   :  { %v4175_v7 = vld [vmem:[%s5673_s1 + $0x504] ss:$8 sps:$4 sm:$0xff]   ;;  %v4173_v9 = vld [vmem:[%s5673_s1 + $0x500] ss:$8 sps:$4 sm:$0xff]   ;;  %v4205_v49 = vld [vmem:[%s5673_s1 + $0x554] ss:$8 sps:$4 sm:$0xff]  }
  0x1b   :  { %2331 = vmatpush1.bf16.msra.mxu1 %v4114_v26  ;;  %v27_v10 = vld [vmem:[%s5674_s0 + $0x80] sm:$0xff]  ;;  %v4203_v53 = vld [vmem:[%s5673_s1 + $0x550] ss:$8 sps:$4 sm:$0xff]  }
  0x1c   :  { %2783 = vmatpush1.bf16.msra.mxu0 %v4115_v27  ;;  %2332 = vmatprep.subr.bf16.mxu1 %v4116_v28  ;;  %v35_v13 = vld [vmem:[%s5674_s0 + $0xc0] sm:$0xff] }
  0x1d   :  { %2784 = vmatprep.subr.bf16.mxu0 %v4118_v29  ;;  %v31_v14 = vld [vmem:[%s5674_s0 + $0xa0] sm:$0xff]  ;;  %v3451_v18 = vcombine.high %v27_v10, %v35_v13  ;;  %v3450_v28 = vcombine.low %v27_v10, %v35_v13 }
  0x1e   :  { %v39_v15 = vld [vmem:[%s5674_s0 + $0xe0] sm:$0xff] }
  0x1f   :  { %2333 = vmatpush1.bf16.msra.mxu1 %v4120_v30  ;;  %v3459_v19 = vcombine.high %v31_v14, %v39_v15  ;;  %v4184_v22 = vld [vmem:[%s5673_s1 + $0x124] ss:$8 sps:$4 sm:$0xff]   ;;  %v4182_v24 = vld [vmem:[%s5673_s1 + $0x120] ss:$8 sps:$4 sm:$0xff]   ;;  %v3458_v29 = vcombine.low %v31_v14, %v39_v15 }
  0x20   :  { %2785 = vmatpush1.bf16.msra.mxu0 %v4121_v31  ;;  %2334 = vmatprep.subr.bf16.mxu1 %v4122_v32  ;;  %v4187_v23 = vld [vmem:[%s5673_s1 + $0x524] ss:$8 sps:$4 sm:$0xff]   ;;  %v4185_v25 = vld [vmem:[%s5673_s1 + $0x520] ss:$8 sps:$4 sm:$0xff]   ;;  %v4190_v32 = vld [vmem:[%s5673_s1 + $0x134] ss:$8 sps:$4 sm:$0xff]  }
  0x21   :  { %2786 = vmatprep.subr.bf16.mxu0 %v4124_v33  ;;  %v43_v26 = vld [vmem:[%s5674_s0 + $0x100] sm:$0xff]  ;;  %v4193_v33 = vld [vmem:[%s5673_s1 + $0x534] ss:$8 sps:$4 sm:$0xff]  }
  0x22   :  { %v51_v27 = vld [vmem:[%s5674_s0 + $0x140] sm:$0xff] }
  0x23   :  { %2335 = vmatpush1.bf16.msra.mxu1 %v4126_v34  ;;  %v47_v30 = vld [vmem:[%s5674_s0 + $0x120] sm:$0xff]  ;;  %v3467_v34 = vcombine.high %v43_v26, %v51_v27 }
  0x24   :  { %2787 = vmatpush1.bf16.msra.mxu0 %v4127_v35  ;;  %2336 = vmatprep.subr.bf16.mxu1 %v4128_v36  ;;  %v55_v31 = vld [vmem:[%s5674_s0 + $0x160] sm:$0xff]  ;;  %v4188_v36 = vld [vmem:[%s5673_s1 + $0x130] ss:$8 sps:$4 sm:$0xff]  }
  0x25   :  { %2788 = vmatprep.subr.bf16.mxu0 %v4130_v37  ;;  %v3475_v35 = vcombine.high %v47_v30, %v55_v31  ;;  %v4191_v37 = vld [vmem:[%s5673_s1 + $0x530] ss:$8 sps:$4 sm:$0xff]   ;;  %v4211_v55 = vld [vmem:[%s5673_s1 + $0x564] ss:$8 sps:$4 sm:$0xff]   ;;  %v4218_v14 = vld [vmem:[%s5673_s1 + $0x180] ss:$8 sps:$4 sm:$0xff]  }
  0x26   :  { %v103_v13 = vld [vmem:[%s5674_s0 + $0x2e0] sm:$0xff] }
  0x27   :  { %2337 = vmatpush1.bf16.msra.mxu1 %v4132_v38  ;;  %v4196_v38 = vld [vmem:[%s5673_s1 + $0x144] ss:$8 sps:$4 sm:$0xff]   ;;  %v4221_v15 = vld [vmem:[%s5673_s1 + $0x580] ss:$8 sps:$4 sm:$0xff]  }
  0x28   :  { %2789 = vmatpush1.bf16.msra.mxu0 %v4133_v39  ;;  %2338 = vmatprep.subr.bf16.mxu1 %v4134_v40  ;;  %v4199_v39 = vld [vmem:[%s5673_s1 + $0x544] ss:$8 sps:$4 sm:$0xff]   ;;  %v4194_v40 = vld [vmem:[%s5673_s1 + $0x140] ss:$8 sps:$4 sm:$0xff]  }
  0x29   :  { %2790 = vmatprep.subr.bf16.mxu0 %v4136_v41  ;;  %v4197_v41 = vld [vmem:[%s5673_s1 + $0x540] ss:$8 sps:$4 sm:$0xff]  }
  0x2b   :  { %2339 = vmatpush1.bf16.msra.mxu1 %v4138_v42  ;;  %v59_v42 = vld [vmem:[%s5674_s0 + $0x180] sm:$0xff] }
  0x2c   :  { %2791 = vmatpush1.bf16.msra.mxu0 %v4139_v43  ;;  %2340 = vmatprep.subr.bf16.mxu1 %v4140_v44  ;;  %v67_v43 = vld [vmem:[%s5674_s0 + $0x1c0] sm:$0xff]  ;;  %v3466_v44 = vcombine.low %v43_v26, %v51_v27 }
  0x2d   :  { %2792 = vmatprep.subr.bf16.mxu0 %v4142_v45  ;;  %v3474_v45 = vcombine.low %v47_v30, %v55_v31  ;;  %v3483_v50 = vcombine.high %v59_v42, %v67_v43  ;;  %v107_v26 = vld [vmem:[%s5674_s0 + $0x300] sm:$0xff] }
  0x2e   :  { %v111_v30 = vld [vmem:[%s5674_s0 + $0x320] sm:$0xff] }
  0x2f   :  { %2341 = vmatpush1.bf16.msra.mxu1 %v4144_v46  ;;  %v63_v46 = vld [vmem:[%s5674_s0 + $0x1a0] sm:$0xff] }
  0x30   :  { %2793 = vmatpush1.bf16.msra.mxu0 %v4145_v47  ;;  %2342 = vmatprep.subr.bf16.mxu1 %v4146_v52  ;;  %v71_v47 = vld [vmem:[%s5674_s0 + $0x1e0] sm:$0xff]  ;;  %v4200_v52 = vld [vmem:[%s5673_s1 + $0x150] ss:$8 sps:$4 sm:$0xff]  }
  0x31   :  { %2794 = vmatprep.subr.bf16.mxu0 %v4148_v54  ;;  %v3491_v51 = vcombine.high %v63_v46, %v71_v47  ;;  %v4208_v54 = vld [vmem:[%s5673_s1 + $0x164] ss:$8 sps:$4 sm:$0xff]  }
  0x32   :  { %v119_v31 = vld [vmem:[%s5674_s0 + $0x360] sm:$0xff] }
  0x33   :  { %2343 = vmatpush1.bf16.msra.mxu1 %v4150_v56  ;;  %v4206_v56 = vld [vmem:[%s5673_s1 + $0x160] ss:$8 sps:$4 sm:$0xff]  }
  0x34   :  { %2795 = vmatpush1.bf16.msra.mxu0 %v4151_v57  ;;  %2344 = vmatprep.subr.bf16.mxu1 %v4152_v58  ;;  %v75_v57 = vld [vmem:[%s5674_s0 + $0x200] sm:$0xff] }
  0x35   :  { %2796 = vmatprep.subr.bf16.mxu0 %v4154_v59  ;;  %v83_v58 = vld [vmem:[%s5674_s0 + $0x240] sm:$0xff]  ;;  %v3482_v59 = vcombine.low %v59_v42, %v67_v43 }
  0x36   :  { %v3498_v10 = vcombine.low %v75_v57, %v83_v58  ;;  %v123_v42 = vld [vmem:[%s5674_s0 + $0x380] sm:$0xff] }
  0x37   :  { %2345 = vmatpush1.bf16.msra.mxu1 %v4156_v60  ;;  %v3490_v60 = vcombine.low %v63_v46, %v71_v47  ;;  %v131_v43 = vld [vmem:[%s5674_s0 + $0x3c0] sm:$0xff] }
  0x38   :  { %2797 = vmatpush1.bf16.msra.mxu0 %v4157_v61  ;;  %2346 = vmatprep.subr.bf16.mxu1 %v4158_v62  ;;  %v79_v61 = vld [vmem:[%s5674_s0 + $0x220] sm:$0xff] }
  0x39   :  { %2798 = vmatprep.subr.bf16.mxu0 %v4160_v63  ;;  %v87_v62 = vld [vmem:[%s5674_s0 + $0x260] sm:$0xff] }
  0x3a   :  { %v4209_v63 = vld [vmem:[%s5673_s1 + $0x560] ss:$8 sps:$4 sm:$0xff]  }
  0x3b   :  { %2347 = vmatpush1.bf16.msra.mxu1 %v4162_v0  ;;  %v4214_v0 = vld [vmem:[%s5673_s1 + $0x174] ss:$8 sps:$4 sm:$0xff]   ;;  %v127_v46 = vld [vmem:[%s5674_s0 + $0x3a0] sm:$0xff] }
  0x3c   :  { %2799 = vmatpush1.bf16.msra.mxu0 %v4163_v1  ;;  %2348 = vmatprep.subr.bf16.mxu1 %v4164_v2  ;;  %v4217_v1 = vld [vmem:[%s5673_s1 + $0x574] ss:$8 sps:$4 sm:$0xff]   ;;  %v3499_v2 = vcombine.high %v75_v57, %v83_v58  ;;  %v135_v47 = vld [vmem:[%s5674_s0 + $0x3e0] sm:$0xff]  ;;  %v12_v58 = vld [vmem:[%s5674_s0 + $0x8] sm:$0xff] }
  0x3d   :  { %2800 = vmatprep.subr.bf16.mxu0 %v4166_v3  ;;  %v3507_v3 = vcombine.high %v79_v61, %v87_v62  ;;  %v4257_v57 = vld [vmem:[%s5673_s1 + $0x5e0] ss:$8 sps:$4 sm:$0xff]  }
  0x3f   :  { %2349 = vmatpush1.bf16.msra.mxu1 %v4168_v4  ;;  %v4212_v4 = vld [vmem:[%s5673_s1 + $0x170] ss:$8 sps:$4 sm:$0xff]  }
  0x40   :  { %2801 = vmatpush1.bf16.msra.mxu0 %v4169_v5  ;;  %2431 = vmatprep.subr.bf16.mxu1 %v4172_v6  ;;  %v4215_v5 = vld [vmem:[%s5673_s1 + $0x570] ss:$8 sps:$4 sm:$0xff]   ;;  %v4220_v6 = vld [vmem:[%s5673_s1 + $0x184] ss:$8 sps:$4 sm:$0xff]  }
  0x41   :  { %2883 = vmatprep.subr.bf16.mxu0 %v4175_v7  ;;  %v4223_v7 = vld [vmem:[%s5673_s1 + $0x584] ss:$8 sps:$4 sm:$0xff]  }
  0x42   :  { %2351 = vmatmul.mubr.bf16.vlgmr.msra.gmra.mrb[0].mxu1 %v3434_v11  ;;  %v3506_v11 = vcombine.low %v79_v61, %v87_v62  ;;  %v3554_v61 = vcombine.low %v127_v46, %v135_v47  ;;  %v16_v62 = vld [vmem:[%s5674_s0 + $0x28] sm:$0xff] }
  0x43   :  { %2803 = vmatmul.mubr.bf16.vlgmr.msra.gmra.mrb[0].mxu0 %v3442_v12  ;;  %2432 = vmatpush1.bf16.msra.mxu1 %v4170_v8  ;;  %v91_v8 = vld [vmem:[%s5674_s0 + $0x280] sm:$0xff] }
  0x44   :  { %2884 = vmatpush1.bf16.msra.mxu0 %v4173_v9  ;;  %2433 = vmatprep.subr.bf16.mxu1 %v4178_v16  ;;  %v99_v9 = vld [vmem:[%s5674_s0 + $0x2c0] sm:$0xff]  ;;  %v4226_v16 = vld [vmem:[%s5673_s1 + $0x194] ss:$8 sps:$4 sm:$0xff]  }
  0x45   :  { %2885 = vmatprep.subr.bf16.mxu0 %v4181_v17  ;;  %2360 = vmatprep.mubr.bf16.mxu1 %v3451_v18  ;;  %v95_v12 = vld [vmem:[%s5674_s0 + $0x2a0] sm:$0xff]  ;;  %v4229_v17 = vld [vmem:[%s5673_s1 + $0x594] ss:$8 sps:$4 sm:$0xff]   ;;  %v3515_v18 = vcombine.high %v91_v8, %v99_v9  ;;  %v3514_v27 = vcombine.low %v91_v8, %v99_v9  ;;  %v28_v9 = vld [vmem:[%s5674_s0 + $0x88] sm:$0xff] }
  0x46   :  { %2812 = vmatprep.mubr.bf16.mxu0 %v3459_v19  ;;  %v3523_v19 = vcombine.high %v95_v12, %v103_v13  ;;  %v4266_v8 = vld [vmem:[%s5673_s1 + $0x200] ss:$8 sps:$4 sm:$0xff]  }
  0x47   :  { %2434 = vmatpush1.bf16.msra.mxu1 %v4176_v20  ;;  %v4224_v20 = vld [vmem:[%s5673_s1 + $0x190] ss:$8 sps:$4 sm:$0xff]  }
  0x48   :  { %2886 = vmatpush1.bf16.msra.mxu0 %v4179_v21  ;;  %2435 = vmatprep.subr.bf16.mxu1 %v4184_v22  ;;  %v4227_v21 = vld [vmem:[%s5673_s1 + $0x590] ss:$8 sps:$4 sm:$0xff]   ;;  %v4232_v22 = vld [vmem:[%s5673_s1 + $0x1a4] ss:$8 sps:$4 sm:$0xff]  }
  0x49   :  { %2887 = vmatprep.subr.bf16.mxu0 %v4187_v23  ;;  %v4235_v23 = vld [vmem:[%s5673_s1 + $0x5a4] ss:$8 sps:$4 sm:$0xff]  }
  0x4a   :  { %2361 = vmatmul.mubr.bf16.gmra.mrb[4].mxu1 %v3450_v28  ;;  %v3522_v28 = vcombine.low %v95_v12, %v103_v13  ;;  %v32_v13 = vld [vmem:[%s5674_s0 + $0xa8] sm:$0xff] }
  0x4b   :  { %2813 = vmatmul.mubr.bf16.gmra.mrb[4].mxu0 %v3458_v29  ;;  %2436 = vmatpush1.bf16.msra.mxu1 %v4182_v24  ;;  %v4230_v24 = vld [vmem:[%s5673_s1 + $0x1a0] ss:$8 sps:$4 sm:$0xff]  }
  0x4c   :  { %2888 = vmatpush1.bf16.msra.mxu0 %v4185_v25  ;;  %2437 = vmatprep.subr.bf16.mxu1 %v4190_v32  ;;  %v4233_v25 = vld [vmem:[%s5673_s1 + $0x5a0] ss:$8 sps:$4 sm:$0xff]   ;;  %v4238_v32 = vld [vmem:[%s5673_s1 + $0x1b4] ss:$8 sps:$4 sm:$0xff]  }
  0x4d   :  { %2889 = vmatprep.subr.bf16.mxu0 %v4193_v33  ;;  %2370 = vmatprep.mubr.bf16.mxu1 %v3467_v34  ;;  %v115_v29 = vld [vmem:[%s5674_s0 + $0x340] sm:$0xff]  ;;  %v4241_v33 = vld [vmem:[%s5673_s1 + $0x5b4] ss:$8 sps:$4 sm:$0xff]  }
  0x4e   :  { %2822 = vmatprep.mubr.bf16.mxu0 %v3475_v35  ;;  %v3531_v34 = vcombine.high %v107_v26, %v115_v29  ;;  %v3539_v35 = vcombine.high %v111_v30, %v119_v31 }
  0x4f   :  { %2438 = vmatpush1.bf16.msra.mxu1 %v4188_v36  ;;  %v4236_v36 = vld [vmem:[%s5673_s1 + $0x1b0] ss:$8 sps:$4 sm:$0xff]  }
  0x50   :  { %2890 = vmatpush1.bf16.msra.mxu0 %v4191_v37  ;;  %2439 = vmatprep.subr.bf16.mxu1 %v4196_v38  ;;  %v4239_v37 = vld [vmem:[%s5673_s1 + $0x5b0] ss:$8 sps:$4 sm:$0xff]   ;;  %v4244_v38 = vld [vmem:[%s5673_s1 + $0x1c4] ss:$8 sps:$4 sm:$0xff]  }
  0x51   :  { %2891 = vmatprep.subr.bf16.mxu0 %v4199_v39  ;;  %v4247_v39 = vld [vmem:[%s5673_s1 + $0x5c4] ss:$8 sps:$4 sm:$0xff]  }
  0x52   :  { %2371 = vmatmul.mubr.bf16.gmra.mrb[8].mxu1 %v3466_v44  ;;  %v3530_v44 = vcombine.low %v107_v26, %v115_v29  ;;  %v56_v29 = vld [vmem:[%s5674_s0 + $0x168] sm:$0xff] }
  0x53   :  { %2823 = vmatmul.mubr.bf16.gmra.mrb[8].mxu0 %v3474_v45  ;;  %2440 = vmatpush1.bf16.msra.mxu1 %v4194_v40  ;;  %v4242_v40 = vld [vmem:[%s5673_s1 + $0x1c0] ss:$8 sps:$4 sm:$0xff]   ;;  %v3538_v45 = vcombine.low %v111_v30, %v119_v31 }
  0x54   :  { %2892 = vmatpush1.bf16.msra.mxu0 %v4197_v41  ;;  %2441 = vmatprep.subr.bf16.mxu1 %v4202_v48  ;;  %v4245_v41 = vld [vmem:[%s5673_s1 + $0x5c0] ss:$8 sps:$4 sm:$0xff]   ;;  %v4250_v48 = vld [vmem:[%s5673_s1 + $0x1d4] ss:$8 sps:$4 sm:$0xff]  }
  0x55   :  { %2893 = vmatprep.subr.bf16.mxu0 %v4205_v49  ;;  %2380 = vmatprep.mubr.bf16.mxu1 %v3483_v50  ;;  %v4253_v49 = vld [vmem:[%s5673_s1 + $0x5d4] ss:$8 sps:$4 sm:$0xff]   ;;  %v3547_v50 = vcombine.high %v123_v42, %v131_v43  ;;  %v4278_v30 = vld [vmem:[%s5673_s1 + $0x220] ss:$8 sps:$4 sm:$0xff]  }
  0x56   :  { %2832 = vmatprep.mubr.bf16.mxu0 %v3491_v51  ;;  %v3555_v51 = vcombine.high %v127_v46, %v135_v47  ;;  %v4281_v31 = vld [vmem:[%s5673_s1 + $0x620] ss:$8 sps:$4 sm:$0xff]  }
  0x57   :  { %2442 = vmatpush1.bf16.msra.mxu1 %v4200_v52  ;;  %v4248_v52 = vld [vmem:[%s5673_s1 + $0x1d0] ss:$8 sps:$4 sm:$0xff]   ;;  %v64_v46 = vld [vmem:[%s5674_s0 + $0x1a8] sm:$0xff] }
  0x58   :  { %2894 = vmatpush1.bf16.msra.mxu0 %v4203_v53  ;;  %2443 = vmatprep.subr.bf16.mxu1 %v4208_v54  ;;  %v4251_v53 = vld [vmem:[%s5673_s1 + $0x5d0] ss:$8 sps:$4 sm:$0xff]   ;;  %v4256_v54 = vld [vmem:[%s5673_s1 + $0x1e4] ss:$8 sps:$4 sm:$0xff]  }
  0x59   :  { %2895 = vmatprep.subr.bf16.mxu0 %v4211_v55  ;;  %v4259_v55 = vld [vmem:[%s5673_s1 + $0x5e4] ss:$8 sps:$4 sm:$0xff]  }
  0x5a   :  { %2381 = vmatmul.mubr.bf16.gmra.mrb[12].mxu1 %v3482_v59  ;;  %v20_v59 = vld [vmem:[%s5674_s0 + $0x48] sm:$0xff] }
  0x5b   :  { %2833 = vmatmul.mubr.bf16.gmra.mrb[12].mxu0 %v3490_v60  ;;  %2444 = vmatpush1.bf16.msra.mxu1 %v4206_v56  ;;  %v4254_v56 = vld [vmem:[%s5673_s1 + $0x1e0] ss:$8 sps:$4 sm:$0xff]   ;;  %v3546_v60 = vcombine.low %v123_v42, %v131_v43 }
  0x5c   :  { %2896 = vmatpush1.bf16.msra.mxu0 %v4209_v63  ;;  %2445 = vmatprep.subr.bf16.mxu1 %v4214_v0  ;;  %v24_v63 = vld [vmem:[%s5674_s0 + $0x68] sm:$0xff]  ;;  %v4262_v0 = vld [vmem:[%s5673_s1 + $0x1f4] ss:$8 sps:$4 sm:$0xff]  }
  0x5d   :  { %2897 = vmatprep.subr.bf16.mxu0 %v4217_v1  ;;  %2390 = vmatprep.mubr.bf16.mxu1 %v3499_v2  ;;  %v4265_v1 = vld [vmem:[%s5673_s1 + $0x5f4] ss:$8 sps:$4 sm:$0xff]   ;;  %v3437_v2 = vcombine.high %v12_v58, %v20_v59  ;;  %v3444_v12 = vcombine.low %v16_v62, %v24_v63  ;;  %v60_v42 = vld [vmem:[%s5674_s0 + $0x188] sm:$0xff] }
  0x5e   :  { %2842 = vmatprep.mubr.bf16.mxu0 %v3507_v3  ;;  %v3445_v3 = vcombine.high %v16_v62, %v24_v63  ;;  %v72_v47 = vld [vmem:[%s5674_s0 + $0x1e8] sm:$0xff] }
  0x5f   :  { %2446 = vmatpush1.bf16.msra.mxu1 %v4212_v4  ;;  %v4260_v4 = vld [vmem:[%s5673_s1 + $0x1f0] ss:$8 sps:$4 sm:$0xff]   ;;  %v80_v62 = vld [vmem:[%s5674_s0 + $0x228] sm:$0xff] }
  0x60   :  { %2898 = vmatpush1.bf16.msra.mxu0 %v4215_v5  ;;  %2447 = vmatprep.subr.bf16.mxu1 %v4220_v6  ;;  %v4263_v5 = vld [vmem:[%s5673_s1 + $0x5f0] ss:$8 sps:$4 sm:$0xff]   ;;  %v4268_v6 = vld [vmem:[%s5673_s1 + $0x204] ss:$8 sps:$4 sm:$0xff]  }
  0x61   :  { %2899 = vmatprep.subr.bf16.mxu0 %v4223_v7  ;;  %v4271_v7 = vld [vmem:[%s5673_s1 + $0x604] ss:$8 sps:$4 sm:$0xff]  }
  0x62   :  { %2391 = vmatmul.mubr.bf16.gmra.mrb[16].mxu1 %v3498_v10  ;;  %v36_v10 = vld [vmem:[%s5674_s0 + $0xc8] sm:$0xff] }
  0x63   :  { %2843 = vmatmul.mubr.bf16.gmra.mrb[16].mxu0 %v3506_v11  ;;  %2448 = vmatpush1.bf16.msra.mxu1 %v4218_v14  ;;  %v3436_v11 = vcombine.low %v12_v58, %v20_v59  ;;  %v40_v14 = vld [vmem:[%s5674_s0 + $0xe8] sm:$0xff]  ;;  %v3452_v26 = vcombine.low %v28_v9, %v36_v10 }
  0x64   :  { %2900 = vmatpush1.bf16.msra.mxu0 %v4221_v15  ;;  %2449 = vmatprep.subr.bf16.mxu1 %v4226_v16  ;;  %v4269_v15 = vld [vmem:[%s5673_s1 + $0x600] ss:$8 sps:$4 sm:$0xff]   ;;  %v4274_v16 = vld [vmem:[%s5673_s1 + $0x214] ss:$8 sps:$4 sm:$0xff]  }
  0x65   :  { %2901 = vmatprep.subr.bf16.mxu0 %v4229_v17  ;;  %2400 = vmatprep.mubr.bf16.mxu1 %v3515_v18  ;;  %v4277_v17 = vld [vmem:[%s5673_s1 + $0x614] ss:$8 sps:$4 sm:$0xff]   ;;  %v3453_v18 = vcombine.high %v28_v9, %v36_v10  ;;  %v76_v58 = vld [vmem:[%s5674_s0 + $0x208] sm:$0xff] }
  0x66   :  { %2852 = vmatprep.mubr.bf16.mxu0 %v3523_v19  ;;  %v3461_v19 = vcombine.high %v32_v13, %v40_v14  ;;  %v84_v59 = vld [vmem:[%s5674_s0 + $0x248] sm:$0xff] }
  0x67   :  { %2450 = vmatpush1.bf16.msra.mxu1 %v4224_v20  ;;  %v4272_v20 = vld [vmem:[%s5673_s1 + $0x210] ss:$8 sps:$4 sm:$0xff]   ;;  %v88_v63 = vld [vmem:[%s5674_s0 + $0x268] sm:$0xff] }
  0x68   :  { %2902 = vmatpush1.bf16.msra.mxu0 %v4227_v21  ;;  %2451 = vmatprep.subr.bf16.mxu1 %v4232_v22  ;;  %v4275_v21 = vld [vmem:[%s5673_s1 + $0x610] ss:$8 sps:$4 sm:$0xff]   ;;  %v4280_v22 = vld [vmem:[%s5673_s1 + $0x224] ss:$8 sps:$4 sm:$0xff]   ;;  %v4317_v9 = vld [vmem:[%s5673_s1 + $0x680] ss:$8 sps:$4 sm:$0xff]  }
  0x69   :  { %2903 = vmatprep.subr.bf16.mxu0 %v4235_v23  ;;  %v4283_v23 = vld [vmem:[%s5673_s1 + $0x624] ss:$8 sps:$4 sm:$0xff]  }
  0x6a   :  { %2401 = vmatmul.mubr.bf16.gmra.mrb[20].mxu1 %v3514_v27  ;;  %v3460_v27 = vcombine.low %v32_v13, %v40_v14  ;;  %v92_v10 = vld [vmem:[%s5674_s0 + $0x288] sm:$0xff]  ;;  %v3508_v13 = vcombine.low %v80_v62, %v88_v63 }
  0x6b   :  { %2853 = vmatmul.mubr.bf16.gmra.mrb[20].mxu0 %v3522_v28  ;;  %2452 = vmatpush1.bf16.msra.mxu1 %v4230_v24  ;;  %v44_v24 = vld [vmem:[%s5674_s0 + $0x108] sm:$0xff] }
  0x6c   :  { %2904 = vmatpush1.bf16.msra.mxu0 %v4233_v25  ;;  %2453 = vmatprep.subr.bf16.mxu1 %v4238_v32  ;;  %v52_v25 = vld [vmem:[%s5674_s0 + $0x148] sm:$0xff]  ;;  %v4286_v32 = vld [vmem:[%s5673_s1 + $0x234] ss:$8 sps:$4 sm:$0xff]  }
  0x6d   :  { %2905 = vmatprep.subr.bf16.mxu0 %v4241_v33  ;;  %2410 = vmatprep.mubr.bf16.mxu1 %v3531_v34  ;;  %v48_v28 = vld [vmem:[%s5674_s0 + $0x128] sm:$0xff]  ;;  %v4289_v33 = vld [vmem:[%s5673_s1 + $0x634] ss:$8 sps:$4 sm:$0xff]   ;;  %v3469_v34 = vcombine.high %v44_v24, %v52_v25  ;;  %v3468_v43 = vcombine.low %v44_v24, %v52_v25 }
  0x6e   :  { %2862 = vmatprep.mubr.bf16.mxu0 %v3539_v35  ;;  %v3477_v35 = vcombine.high %v48_v28, %v56_v29  ;;  %v96_v14 = vld [vmem:[%s5674_s0 + $0x2a8] sm:$0xff] }
  0x6f   :  { %2454 = vmatpush1.bf16.msra.mxu1 %v4236_v36  ;;  %v4284_v36 = vld [vmem:[%s5673_s1 + $0x230] ss:$8 sps:$4 sm:$0xff]   ;;  %v4326_v24 = vld [vmem:[%s5673_s1 + $0x2a0] ss:$8 sps:$4 sm:$0xff]  }
  0x70   :  { %2906 = vmatpush1.bf16.msra.mxu0 %v4239_v37  ;;  %2455 = vmatprep.subr.bf16.mxu1 %v4244_v38  ;;  %v4287_v37 = vld [vmem:[%s5673_s1 + $0x630] ss:$8 sps:$4 sm:$0xff]   ;;  %v4292_v38 = vld [vmem:[%s5673_s1 + $0x244] ss:$8 sps:$4 sm:$0xff]  }
  0x71   :  { %2907 = vmatprep.subr.bf16.mxu0 %v4247_v39  ;;  %v4295_v39 = vld [vmem:[%s5673_s1 + $0x644] ss:$8 sps:$4 sm:$0xff]  }
  0x72   :  { %2411 = vmatmul.mubr.bf16.gmra.mrb[24].mxu1 %v3530_v44  ;;  %v3476_v44 = vcombine.low %v48_v28, %v56_v29  ;;  %v108_v25 = vld [vmem:[%s5674_s0 + $0x308] sm:$0xff] }
  0x73   :  { %2863 = vmatmul.mubr.bf16.gmra.mrb[24].mxu0 %v3538_v45  ;;  %2456 = vmatpush1.bf16.msra.mxu1 %v4242_v40  ;;  %v4290_v40 = vld [vmem:[%s5673_s1 + $0x240] ss:$8 sps:$4 sm:$0xff]  }
  0x74   :  { %2908 = vmatpush1.bf16.msra.mxu0 %v4245_v41  ;;  %2457 = vmatprep.subr.bf16.mxu1 %v4250_v48  ;;  %v4293_v41 = vld [vmem:[%s5673_s1 + $0x640] ss:$8 sps:$4 sm:$0xff]   ;;  %v4298_v48 = vld [vmem:[%s5673_s1 + $0x254] ss:$8 sps:$4 sm:$0xff]  }
  0x75   :  { %2909 = vmatprep.subr.bf16.mxu0 %v4253_v49  ;;  %2420 = vmatprep.mubr.bf16.mxu1 %v3547_v50  ;;  %v68_v45 = vld [vmem:[%s5674_s0 + $0x1c8] sm:$0xff]  ;;  %v4301_v49 = vld [vmem:[%s5673_s1 + $0x654] ss:$8 sps:$4 sm:$0xff]  }
  0x76   :  { %2872 = vmatprep.mubr.bf16.mxu0 %v3555_v51  ;;  %v3485_v50 = vcombine.high %v60_v42, %v68_v45  ;;  %v3493_v51 = vcombine.high %v64_v46, %v72_v47  ;;  %v112_v29 = vld [vmem:[%s5674_s0 + $0x328] sm:$0xff] }
  0x77   :  { %2458 = vmatpush1.bf16.msra.mxu1 %v4248_v52  ;;  %v4296_v52 = vld [vmem:[%s5673_s1 + $0x250] ss:$8 sps:$4 sm:$0xff]  }
  0x78   :  { %2910 = vmatpush1.bf16.msra.mxu0 %v4251_v53  ;;  %2459 = vmatprep.subr.bf16.mxu1 %v4256_v54  ;;  %v4299_v53 = vld [vmem:[%s5673_s1 + $0x650] ss:$8 sps:$4 sm:$0xff]   ;;  %v4304_v54 = vld [vmem:[%s5673_s1 + $0x264] ss:$8 sps:$4 sm:$0xff]  }
  0x79   :  { %2911 = vmatprep.subr.bf16.mxu0 %v4259_v55  ;;  %v4307_v55 = vld [vmem:[%s5673_s1 + $0x664] ss:$8 sps:$4 sm:$0xff]  }
  0x7a   :  { %2421 = vmatmul.mubr.bf16.gmra.mrb[28].mxu1 %v3546_v60  ;;  %v3484_v60 = vcombine.low %v60_v42, %v68_v45  ;;  %v136_v45 = vld [vmem:[%s5674_s0 + $0x3e8] sm:$0xff] }
  0x7b   :  { %2873 = vmatmul.mubr.bf16.gmra.mrb[28].mxu0 %v3554_v61  ;;  %2460 = vmatpush1.bf16.msra.mxu1 %v4254_v56  ;;  %v4302_v56 = vld [vmem:[%s5673_s1 + $0x260] ss:$8 sps:$4 sm:$0xff]   ;;  %v3492_v61 = vcombine.low %v64_v46, %v72_v47 }
  0x7c   :  { %2912 = vmatpush1.bf16.msra.mxu0 %v4257_v57  ;;  %2461 = vmatprep.subr.bf16.mxu1 %v4262_v0  ;;  %v4305_v57 = vld [vmem:[%s5673_s1 + $0x660] ss:$8 sps:$4 sm:$0xff]   ;;  %v4310_v0 = vld [vmem:[%s5673_s1 + $0x274] ss:$8 sps:$4 sm:$0xff]  }
  0x7d   :  { %2913 = vmatprep.subr.bf16.mxu0 %v4265_v1  ;;  %2463 = vmatprep.mubr.bf16.mxu1 %v3437_v2  ;;  %v4313_v1 = vld [vmem:[%s5673_s1 + $0x674] ss:$8 sps:$4 sm:$0xff]   ;;  %v3501_v2 = vcombine.high %v76_v58, %v84_v59  ;;  %v4338_v46 = vld [vmem:[%s5673_s1 + $0x2c0] ss:$8 sps:$4 sm:$0xff]  }
  0x7e   :  { %2915 = vmatprep.mubr.bf16.mxu0 %v3445_v3  ;;  %v3509_v3 = vcombine.high %v80_v62, %v88_v63  ;;  %v4341_v47 = vld [vmem:[%s5673_s1 + $0x6c0] ss:$8 sps:$4 sm:$0xff]   ;;  %v17_v62 = vld [vmem:[%s5674_s0 + $0x30] sm:$0xff] }
  0x7f   :  { %2462 = vmatpush1.bf16.msra.mxu1 %v4260_v4  ;;  %v4308_v4 = vld [vmem:[%s5673_s1 + $0x270] ss:$8 sps:$4 sm:$0xff]  }
  0x80   :  { %2914 = vmatpush1.bf16.msra.mxu0 %v4263_v5  ;;  %2544 = vmatprep.subr.bf16.mxu1 %v4268_v6  ;;  %v4311_v5 = vld [vmem:[%s5673_s1 + $0x670] ss:$8 sps:$4 sm:$0xff]   ;;  %v4316_v6 = vld [vmem:[%s5673_s1 + $0x284] ss:$8 sps:$4 sm:$0xff]  }
  0x81   :  { %2996 = vmatprep.subr.bf16.mxu0 %v4271_v7  ;;  %v4319_v7 = vld [vmem:[%s5673_s1 + $0x684] ss:$8 sps:$4 sm:$0xff]   ;;  %v25_v63 = vld [vmem:[%s5674_s0 + $0x70] sm:$0xff] }
  0x82   :  { %2464 = vmatmul.mubr.bf16.vlgmr.msra.gmra.mrb[0].mxu1 %v3436_v11  ;;  %v100_v11 = vld [vmem:[%s5674_s0 + $0x2c8] sm:$0xff] }
  0x83   :  { %2916 = vmatmul.mubr.bf16.vlgmr.msra.gmra.mrb[0].mxu0 %v3444_v12  ;;  %2545 = vmatpush1.bf16.msra.mxu1 %v4266_v8  ;;  %v4314_v8 = vld [vmem:[%s5673_s1 + $0x280] ss:$8 sps:$4 sm:$0xff]   ;;  %v3500_v12 = vcombine.low %v76_v58, %v84_v59  ;;  %v13_v58 = vld [vmem:[%s5674_s0 + $0x10] sm:$0xff] }
  0x84   :  { %2997 = vmatpush1.bf16.msra.mxu0 %v4269_v15  ;;  %2546 = vmatprep.subr.bf16.mxu1 %v4274_v16  ;;  %v104_v15 = vld [vmem:[%s5674_s0 + $0x2e8] sm:$0xff]  ;;  %v4322_v16 = vld [vmem:[%s5673_s1 + $0x294] ss:$8 sps:$4 sm:$0xff]  }
  0x85   :  { %2998 = vmatprep.subr.bf16.mxu0 %v4277_v17  ;;  %2473 = vmatprep.mubr.bf16.mxu1 %v3453_v18  ;;  %v4325_v17 = vld [vmem:[%s5673_s1 + $0x694] ss:$8 sps:$4 sm:$0xff]   ;;  %v3517_v18 = vcombine.high %v92_v10, %v100_v11  ;;  %v3524_v28 = vcombine.low %v96_v14, %v104_v15 }
  0x86   :  { %2925 = vmatprep.mubr.bf16.mxu0 %v3461_v19  ;;  %v3525_v19 = vcombine.high %v96_v14, %v104_v15  ;;  %v33_v14 = vld [vmem:[%s5674_s0 + $0xb0] sm:$0xff] }
  0x87   :  { %2547 = vmatpush1.bf16.msra.mxu1 %v4272_v20  ;;  %v4320_v20 = vld [vmem:[%s5673_s1 + $0x290] ss:$8 sps:$4 sm:$0xff]  }
  0x88   :  { %2999 = vmatpush1.bf16.msra.mxu0 %v4275_v21  ;;  %2548 = vmatprep.subr.bf16.mxu1 %v4280_v22  ;;  %v4323_v21 = vld [vmem:[%s5673_s1 + $0x690] ss:$8 sps:$4 sm:$0xff]   ;;  %v4328_v22 = vld [vmem:[%s5673_s1 + $0x2a4] ss:$8 sps:$4 sm:$0xff]  }
  0x89   :  { %3000 = vmatprep.subr.bf16.mxu0 %v4283_v23  ;;  %v4331_v23 = vld [vmem:[%s5673_s1 + $0x6a4] ss:$8 sps:$4 sm:$0xff]   ;;  %v41_v15 = vld [vmem:[%s5674_s0 + $0xf0] sm:$0xff] }
  0x8a   :  { %2474 = vmatmul.mubr.bf16.gmra.mrb[4].mxu1 %v3452_v26  ;;  %v116_v26 = vld [vmem:[%s5674_s0 + $0x348] sm:$0xff] }
  0x8b   :  { %2926 = vmatmul.mubr.bf16.gmra.mrb[4].mxu0 %v3460_v27  ;;  %2549 = vmatpush1.bf16.msra.mxu1 %v4278_v30  ;;  %v3516_v27 = vcombine.low %v92_v10, %v100_v11  ;;  %v120_v30 = vld [vmem:[%s5674_s0 + $0x368] sm:$0xff]  ;;  %v3532_v42 = vcombine.low %v108_v25, %v116_v26  ;;  %v29_v10 = vld [vmem:[%s5674_s0 + $0x90] sm:$0xff] }
  0x8c   :  { %3001 = vmatpush1.bf16.msra.mxu0 %v4281_v31  ;;  %2550 = vmatprep.subr.bf16.mxu1 %v4286_v32  ;;  %v4329_v31 = vld [vmem:[%s5673_s1 + $0x6a0] ss:$8 sps:$4 sm:$0xff]   ;;  %v4334_v32 = vld [vmem:[%s5673_s1 + $0x2b4] ss:$8 sps:$4 sm:$0xff]  }
  0x8d   :  { %3002 = vmatprep.subr.bf16.mxu0 %v4289_v33  ;;  %2483 = vmatprep.mubr.bf16.mxu1 %v3469_v34  ;;  %v4337_v33 = vld [vmem:[%s5673_s1 + $0x6b4] ss:$8 sps:$4 sm:$0xff]   ;;  %v3533_v34 = vcombine.high %v108_v25, %v116_v26  ;;  %v4377_v25 = vld [vmem:[%s5673_s1 + $0x720] ss:$8 sps:$4 sm:$0xff]  }
  0x8e   :  { %2935 = vmatprep.mubr.bf16.mxu0 %v3477_v35  ;;  %v3541_v35 = vcombine.high %v112_v29, %v120_v30  ;;  %v37_v11 = vld [vmem:[%s5674_s0 + $0xd0] sm:$0xff] }
  0x8f   :  { %2551 = vmatpush1.bf16.msra.mxu1 %v4284_v36  ;;  %v4332_v36 = vld [vmem:[%s5673_s1 + $0x2b0] ss:$8 sps:$4 sm:$0xff]  }
  0x90   :  { %3003 = vmatpush1.bf16.msra.mxu0 %v4287_v37  ;;  %2552 = vmatprep.subr.bf16.mxu1 %v4292_v38  ;;  %v4335_v37 = vld [vmem:[%s5673_s1 + $0x6b0] ss:$8 sps:$4 sm:$0xff]   ;;  %v4340_v38 = vld [vmem:[%s5673_s1 + $0x2c4] ss:$8 sps:$4 sm:$0xff]  }
  0x91   :  { %3004 = vmatprep.subr.bf16.mxu0 %v4295_v39  ;;  %v4343_v39 = vld [vmem:[%s5673_s1 + $0x6c4] ss:$8 sps:$4 sm:$0xff]   ;;  %v45_v26 = vld [vmem:[%s5674_s0 + $0x110] sm:$0xff] }
  0x92   :  { %2484 = vmatmul.mubr.bf16.gmra.mrb[8].mxu1 %v3468_v43  ;;  %v3540_v43 = vcombine.low %v112_v29, %v120_v30  ;;  %v3462_v29 = vcombine.low %v33_v14, %v41_v15  ;;  %v49_v30 = vld [vmem:[%s5674_s0 + $0x130] sm:$0xff] }
  0x93   :  { %2936 = vmatmul.mubr.bf16.gmra.mrb[8].mxu0 %v3476_v44  ;;  %2553 = vmatpush1.bf16.msra.mxu1 %v4290_v40  ;;  %v124_v40 = vld [vmem:[%s5674_s0 + $0x388] sm:$0xff] }
  0x94   :  { %3005 = vmatpush1.bf16.msra.mxu0 %v4293_v41  ;;  %2554 = vmatprep.subr.bf16.mxu1 %v4298_v48  ;;  %v132_v41 = vld [vmem:[%s5674_s0 + $0x3c8] sm:$0xff]  ;;  %v4346_v48 = vld [vmem:[%s5673_s1 + $0x2d4] ss:$8 sps:$4 sm:$0xff]  }
  0x95   :  { %3006 = vmatprep.subr.bf16.mxu0 %v4301_v49  ;;  %2493 = vmatprep.mubr.bf16.mxu1 %v3485_v50  ;;  %v128_v44 = vld [vmem:[%s5674_s0 + $0x3a8] sm:$0xff]  ;;  %v4349_v49 = vld [vmem:[%s5673_s1 + $0x6d4] ss:$8 sps:$4 sm:$0xff]   ;;  %v3549_v50 = vcombine.high %v124_v40, %v132_v41  ;;  %v3548_v59 = vcombine.low %v124_v40, %v132_v41 }
  0x96   :  { %2945 = vmatprep.mubr.bf16.mxu0 %v3493_v51  ;;  %v3557_v51 = vcombine.high %v128_v44, %v136_v45  ;;  %v61_v40 = vld [vmem:[%s5674_s0 + $0x190] sm:$0xff] }
  0x97   :  { %2555 = vmatpush1.bf16.msra.mxu1 %v4296_v52  ;;  %v4344_v52 = vld [vmem:[%s5673_s1 + $0x2d0] ss:$8 sps:$4 sm:$0xff]  }
  0x98   :  { %3007 = vmatpush1.bf16.msra.mxu0 %v4299_v53  ;;  %2556 = vmatprep.subr.bf16.mxu1 %v4304_v54  ;;  %v4347_v53 = vld [vmem:[%s5673_s1 + $0x6d0] ss:$8 sps:$4 sm:$0xff]   ;;  %v4352_v54 = vld [vmem:[%s5673_s1 + $0x2e4] ss:$8 sps:$4 sm:$0xff]  }
  0x99   :  { %3008 = vmatprep.subr.bf16.mxu0 %v4307_v55  ;;  %v4355_v55 = vld [vmem:[%s5673_s1 + $0x6e4] ss:$8 sps:$4 sm:$0xff]  }
  0x9a   :  { %2494 = vmatmul.mubr.bf16.gmra.mrb[12].mxu1 %v3484_v60  ;;  %v3556_v60 = vcombine.low %v128_v44, %v136_v45  ;;  %v65_v44 = vld [vmem:[%s5674_s0 + $0x1b0] sm:$0xff] }
  0x9b   :  { %2946 = vmatmul.mubr.bf16.gmra.mrb[12].mxu0 %v3492_v61  ;;  %2557 = vmatpush1.bf16.msra.mxu1 %v4302_v56  ;;  %v4350_v56 = vld [vmem:[%s5673_s1 + $0x2e0] ss:$8 sps:$4 sm:$0xff]   ;;  %v21_v61 = vld [vmem:[%s5674_s0 + $0x50] sm:$0xff] }
  0x9c   :  { %3009 = vmatpush1.bf16.msra.mxu0 %v4305_v57  ;;  %2558 = vmatprep.subr.bf16.mxu1 %v4310_v0  ;;  %v4353_v57 = vld [vmem:[%s5673_s1 + $0x6e0] ss:$8 sps:$4 sm:$0xff]   ;;  %v4358_v0 = vld [vmem:[%s5673_s1 + $0x2f4] ss:$8 sps:$4 sm:$0xff]  }
  0x9d   :  { %3010 = vmatprep.subr.bf16.mxu0 %v4313_v1  ;;  %2503 = vmatprep.mubr.bf16.mxu1 %v3501_v2  ;;  %v4361_v1 = vld [vmem:[%s5673_s1 + $0x6f4] ss:$8 sps:$4 sm:$0xff]   ;;  %v3439_v2 = vcombine.high %v13_v58, %v21_v61 }
  0x9e   :  { %2955 = vmatprep.mubr.bf16.mxu0 %v3509_v3  ;;  %v3447_v3 = vcombine.high %v17_v62, %v25_v63  ;;  %v73_v45 = vld [vmem:[%s5674_s0 + $0x1f0] sm:$0xff] }
  0x9f   :  { %2559 = vmatpush1.bf16.msra.mxu1 %v4308_v4  ;;  %v4356_v4 = vld [vmem:[%s5673_s1 + $0x2f0] ss:$8 sps:$4 sm:$0xff]  }
  0xa0   :  { %3011 = vmatpush1.bf16.msra.mxu0 %v4311_v5  ;;  %2560 = vmatprep.subr.bf16.mxu1 %v4316_v6  ;;  %v4359_v5 = vld [vmem:[%s5673_s1 + $0x6f0] ss:$8 sps:$4 sm:$0xff]   ;;  %v4364_v6 = vld [vmem:[%s5673_s1 + $0x304] ss:$8 sps:$4 sm:$0xff]  }
  0xa1   :  { %3012 = vmatprep.subr.bf16.mxu0 %v4319_v7  ;;  %v4367_v7 = vld [vmem:[%s5673_s1 + $0x704] ss:$8 sps:$4 sm:$0xff]  }
  0xa2   :  { %2504 = vmatmul.mubr.bf16.gmra.mrb[16].mxu1 %v3500_v12  ;;  %v3438_v12 = vcombine.low %v13_v58, %v21_v61  ;;  %v3494_v58 = vcombine.low %v65_v44, %v73_v45  ;;  %v89_v61 = vld [vmem:[%s5674_s0 + $0x270] sm:$0xff] }
  0xa3   :  { %2956 = vmatmul.mubr.bf16.gmra.mrb[16].mxu0 %v3508_v13  ;;  %2561 = vmatpush1.bf16.msra.mxu1 %v4314_v8  ;;  %v4362_v8 = vld [vmem:[%s5673_s1 + $0x300] ss:$8 sps:$4 sm:$0xff]   ;;  %v3446_v13 = vcombine.low %v17_v62, %v25_v63 }
  0xa4   :  { %3013 = vmatpush1.bf16.msra.mxu0 %v4317_v9  ;;  %2562 = vmatprep.subr.bf16.mxu1 %v4322_v16  ;;  %v4365_v9 = vld [vmem:[%s5673_s1 + $0x700] ss:$8 sps:$4 sm:$0xff]   ;;  %v4370_v16 = vld [vmem:[%s5673_s1 + $0x314] ss:$8 sps:$4 sm:$0xff]  }
  0xa5   :  { %3014 = vmatprep.subr.bf16.mxu0 %v4325_v17  ;;  %2513 = vmatprep.mubr.bf16.mxu1 %v3517_v18  ;;  %v4373_v17 = vld [vmem:[%s5673_s1 + $0x714] ss:$8 sps:$4 sm:$0xff]   ;;  %v3455_v18 = vcombine.high %v29_v10, %v37_v11  ;;  %v4398_v62 = vld [vmem:[%s5673_s1 + $0x360] ss:$8 sps:$4 sm:$0xff]  }
  0xa6   :  { %2965 = vmatprep.mubr.bf16.mxu0 %v3525_v19  ;;  %v3463_v19 = vcombine.high %v33_v14, %v41_v15  ;;  %v4401_v63 = vld [vmem:[%s5673_s1 + $0x760] ss:$8 sps:$4 sm:$0xff]  }
  0xa7   :  { %2563 = vmatpush1.bf16.msra.mxu1 %v4320_v20  ;;  %v4368_v20 = vld [vmem:[%s5673_s1 + $0x310] ss:$8 sps:$4 sm:$0xff]   ;;  %v4410_v14 = vld [vmem:[%s5673_s1 + $0x380] ss:$8 sps:$4 sm:$0xff]  }
  0xa8   :  { %3015 = vmatpush1.bf16.msra.mxu0 %v4323_v21  ;;  %2564 = vmatprep.subr.bf16.mxu1 %v4328_v22  ;;  %v4371_v21 = vld [vmem:[%s5673_s1 + $0x710] ss:$8 sps:$4 sm:$0xff]   ;;  %v4376_v22 = vld [vmem:[%s5673_s1 + $0x324] ss:$8 sps:$4 sm:$0xff]   ;;  %v4413_v15 = vld [vmem:[%s5673_s1 + $0x780] ss:$8 sps:$4 sm:$0xff]  }
  0xa9   :  { %3016 = vmatprep.subr.bf16.mxu0 %v4331_v23  ;;  %v4379_v23 = vld [vmem:[%s5673_s1 + $0x724] ss:$8 sps:$4 sm:$0xff]  }
  0xaa   :  { %2514 = vmatmul.mubr.bf16.gmra.mrb[20].mxu1 %v3516_v27  ;;  %v53_v27 = vld [vmem:[%s5674_s0 + $0x150] sm:$0xff] }
  0xab   :  { %2966 = vmatmul.mubr.bf16.gmra.mrb[20].mxu0 %v3524_v28  ;;  %2565 = vmatpush1.bf16.msra.mxu1 %v4326_v24  ;;  %v4374_v24 = vld [vmem:[%s5673_s1 + $0x320] ss:$8 sps:$4 sm:$0xff]   ;;  %v3454_v28 = vcombine.low %v29_v10, %v37_v11  ;;  %v3470_v41 = vcombine.low %v45_v26, %v53_v27  ;;  %v101_v11 = vld [vmem:[%s5674_s0 + $0x2d0] sm:$0xff] }
  0xac   :  { %3017 = vmatpush1.bf16.msra.mxu0 %v4329_v31  ;;  %2566 = vmatprep.subr.bf16.mxu1 %v4334_v32  ;;  %v57_v31 = vld [vmem:[%s5674_s0 + $0x170] sm:$0xff] }
  0xad   :  { %3018 = vmatprep.subr.bf16.mxu0 %v4337_v33  ;;  %2523 = vmatprep.mubr.bf16.mxu1 %v3533_v34  ;;  %v4382_v32 = vld [vmem:[%s5673_s1 + $0x334] ss:$8 sps:$4 sm:$0xff]   ;;  %v3471_v34 = vcombine.high %v45_v26, %v53_v27 }
  0xae   :  { %2975 = vmatprep.mubr.bf16.mxu0 %v3541_v35  ;;  %v4385_v33 = vld [vmem:[%s5673_s1 + $0x734] ss:$8 sps:$4 sm:$0xff]   ;;  %v3479_v35 = vcombine.high %v49_v30, %v57_v31 }
  0xaf   :  { %2567 = vmatpush1.bf16.msra.mxu1 %v4332_v36  ;;  %v4380_v36 = vld [vmem:[%s5673_s1 + $0x330] ss:$8 sps:$4 sm:$0xff]  }
  0xb0   :  { %3019 = vmatpush1.bf16.msra.mxu0 %v4335_v37  ;;  %2568 = vmatprep.subr.bf16.mxu1 %v4340_v38  ;;  %v4383_v37 = vld [vmem:[%s5673_s1 + $0x730] ss:$8 sps:$4 sm:$0xff]   ;;  %v4388_v38 = vld [vmem:[%s5673_s1 + $0x344] ss:$8 sps:$4 sm:$0xff]  }
  0xb1   :  { %3020 = vmatprep.subr.bf16.mxu0 %v4343_v39  ;;  %v4391_v39 = vld [vmem:[%s5673_s1 + $0x744] ss:$8 sps:$4 sm:$0xff]   ;;  %v117_v27 = vld [vmem:[%s5674_s0 + $0x350] sm:$0xff] }
  0xb2   :  { %2524 = vmatmul.mubr.bf16.gmra.mrb[24].mxu1 %v3532_v42  ;;  %v3478_v42 = vcombine.low %v49_v30, %v57_v31  ;;  %v4422_v30 = vld [vmem:[%s5673_s1 + $0x3a0] ss:$8 sps:$4 sm:$0xff]  }
  0xb3   :  { %2976 = vmatmul.mubr.bf16.gmra.mrb[24].mxu0 %v3540_v43  ;;  %2569 = vmatpush1.bf16.msra.mxu1 %v4338_v46  ;;  %v69_v43 = vld [vmem:[%s5674_s0 + $0x1d0] sm:$0xff]  ;;  %v4386_v46 = vld [vmem:[%s5673_s1 + $0x340] ss:$8 sps:$4 sm:$0xff]  }
  0xb4   :  { %3021 = vmatpush1.bf16.msra.mxu0 %v4341_v47  ;;  %2570 = vmatprep.subr.bf16.mxu1 %v4346_v48  ;;  %v4389_v47 = vld [vmem:[%s5673_s1 + $0x740] ss:$8 sps:$4 sm:$0xff]   ;;  %v4394_v48 = vld [vmem:[%s5673_s1 + $0x354] ss:$8 sps:$4 sm:$0xff]  }
  0xb5   :  { %3022 = vmatprep.subr.bf16.mxu0 %v4349_v49  ;;  %2533 = vmatprep.mubr.bf16.mxu1 %v3549_v50  ;;  %v4397_v49 = vld [vmem:[%s5673_s1 + $0x754] ss:$8 sps:$4 sm:$0xff]   ;;  %v3487_v50 = vcombine.high %v61_v40, %v69_v43  ;;  %v4425_v31 = vld [vmem:[%s5673_s1 + $0x7a0] ss:$8 sps:$4 sm:$0xff]  }
  0xb6   :  { %2985 = vmatprep.mubr.bf16.mxu0 %v3557_v51  ;;  %v3495_v51 = vcombine.high %v65_v44, %v73_v45  ;;  %v129_v44 = vld [vmem:[%s5674_s0 + $0x3b0] sm:$0xff] }
  0xb7   :  { %2571 = vmatpush1.bf16.msra.mxu1 %v4344_v52  ;;  %v4392_v52 = vld [vmem:[%s5673_s1 + $0x350] ss:$8 sps:$4 sm:$0xff]  }
  0xb8   :  { %3023 = vmatpush1.bf16.msra.mxu0 %v4347_v53  ;;  %2572 = vmatprep.subr.bf16.mxu1 %v4352_v54  ;;  %v4395_v53 = vld [vmem:[%s5673_s1 + $0x750] ss:$8 sps:$4 sm:$0xff]   ;;  %v4400_v54 = vld [vmem:[%s5673_s1 + $0x364] ss:$8 sps:$4 sm:$0xff]  }
  0xb9   :  { %3024 = vmatprep.subr.bf16.mxu0 %v4355_v55  ;;  %v4403_v55 = vld [vmem:[%s5673_s1 + $0x764] ss:$8 sps:$4 sm:$0xff]   ;;  %v137_v45 = vld [vmem:[%s5674_s0 + $0x3f0] sm:$0xff] }
  0xba   :  { %2534 = vmatmul.mubr.bf16.gmra.mrb[28].mxu1 %v3548_v59  ;;  %v85_v59 = vld [vmem:[%s5674_s0 + $0x250] sm:$0xff] }
  0xbb   :  { %2986 = vmatmul.mubr.bf16.gmra.mrb[28].mxu0 %v3556_v60  ;;  %2573 = vmatpush1.bf16.msra.mxu1 %v4350_v56  ;;  %v77_v56 = vld [vmem:[%s5674_s0 + $0x210] sm:$0xff] }
  0xbc   :  { %3025 = vmatpush1.bf16.msra.mxu0 %v4353_v57  ;;  %2574 = vmatprep.subr.bf16.mxu1 %v4358_v0  ;;  %v3486_v57 = vcombine.low %v61_v40, %v69_v43  ;;  %v81_v60 = vld [vmem:[%s5674_s0 + $0x230] sm:$0xff] }
  0xbd   :  { %3026 = vmatprep.subr.bf16.mxu0 %v4361_v1  ;;  %2576 = vmatprep.mubr.bf16.mxu1 %v3439_v2  ;;  %v4406_v0 = vld [vmem:[%s5673_s1 + $0x374] ss:$8 sps:$4 sm:$0xff]   ;;  %v3503_v2 = vcombine.high %v77_v56, %v85_v59  ;;  %v3510_v10 = vcombine.low %v81_v60, %v89_v61 }
  0xbe   :  { %3028 = vmatprep.mubr.bf16.mxu0 %v3447_v3  ;;  %v4409_v1 = vld [vmem:[%s5673_s1 + $0x774] ss:$8 sps:$4 sm:$0xff]   ;;  %v3511_v3 = vcombine.high %v81_v60, %v89_v61 }
  0xbf   :  { %2575 = vmatpush1.bf16.msra.mxu1 %v4356_v4  ;;  %v4404_v4 = vld [vmem:[%s5673_s1 + $0x370] ss:$8 sps:$4 sm:$0xff]  }
  0xc0   :  { %3027 = vmatpush1.bf16.msra.mxu0 %v4359_v5  ;;  %2657 = vmatprep.subr.bf16.mxu1 %v4364_v6  ;;  %v4407_v5 = vld [vmem:[%s5673_s1 + $0x770] ss:$8 sps:$4 sm:$0xff]   ;;  %v4412_v6 = vld [vmem:[%s5673_s1 + $0x384] ss:$8 sps:$4 sm:$0xff]  }
  0xc1   :  { %3109 = vmatprep.subr.bf16.mxu0 %v4367_v7  ;;  %v4415_v7 = vld [vmem:[%s5673_s1 + $0x784] ss:$8 sps:$4 sm:$0xff]   ;;  %v125_v40 = vld [vmem:[%s5674_s0 + $0x390] sm:$0xff]  ;;  %v18_v60 = vld [vmem:[%s5674_s0 + $0x38] sm:$0xff] }
  0xc2   :  { %2577 = vmatmul.mubr.bf16.vlgmr.msra.gmra.mrb[0].mxu1 %v3438_v12  ;;  %v97_v12 = vld [vmem:[%s5674_s0 + $0x2b0] sm:$0xff]  ;;  %v26_v61 = vld [vmem:[%s5674_s0 + $0x78] sm:$0xff] }
  0xc3   :  { %3029 = vmatmul.mubr.bf16.vlgmr.msra.gmra.mrb[0].mxu0 %v3446_v13  ;;  %2658 = vmatpush1.bf16.msra.mxu1 %v4362_v8  ;;  %v93_v8 = vld [vmem:[%s5674_s0 + $0x290] sm:$0xff] }
  0xc4   :  { %3110 = vmatpush1.bf16.msra.mxu0 %v4365_v9  ;;  %2659 = vmatprep.subr.bf16.mxu1 %v4370_v16  ;;  %v3502_v9 = vcombine.low %v77_v56, %v85_v59  ;;  %v105_v13 = vld [vmem:[%s5674_s0 + $0x2f0] sm:$0xff]  ;;  %v14_v56 = vld [vmem:[%s5674_s0 + $0x18] sm:$0xff] }
  0xc5   :  { %3111 = vmatprep.subr.bf16.mxu0 %v4373_v17  ;;  %2586 = vmatprep.mubr.bf16.mxu1 %v3455_v18  ;;  %v4418_v16 = vld [vmem:[%s5673_s1 + $0x394] ss:$8 sps:$4 sm:$0xff]   ;;  %v3519_v18 = vcombine.high %v93_v8, %v101_v11  ;;  %v3526_v26 = vcombine.low %v97_v12, %v105_v13 }
  0xc6   :  { %3038 = vmatprep.mubr.bf16.mxu0 %v3463_v19  ;;  %v4421_v17 = vld [vmem:[%s5673_s1 + $0x794] ss:$8 sps:$4 sm:$0xff]   ;;  %v3527_v19 = vcombine.high %v97_v12, %v105_v13 }
  0xc7   :  { %2660 = vmatpush1.bf16.msra.mxu1 %v4368_v20  ;;  %v4416_v20 = vld [vmem:[%s5673_s1 + $0x390] ss:$8 sps:$4 sm:$0xff]  }
  0xc8   :  { %3112 = vmatpush1.bf16.msra.mxu0 %v4371_v21  ;;  %2661 = vmatprep.subr.bf16.mxu1 %v4376_v22  ;;  %v4419_v21 = vld [vmem:[%s5673_s1 + $0x790] ss:$8 sps:$4 sm:$0xff]   ;;  %v4424_v22 = vld [vmem:[%s5673_s1 + $0x3a4] ss:$8 sps:$4 sm:$0xff]  }
  0xc9   :  { %3113 = vmatprep.subr.bf16.mxu0 %v4379_v23  ;;  %v4427_v23 = vld [vmem:[%s5673_s1 + $0x7a4] ss:$8 sps:$4 sm:$0xff]   ;;  %v133_v43 = vld [vmem:[%s5674_s0 + $0x3d0] sm:$0xff]  ;;  %v22_v59 = vld [vmem:[%s5674_s0 + $0x58] sm:$0xff] }
  0xca   :  { %2587 = vmatmul.mubr.bf16.gmra.mrb[4].mxu1 %v3454_v28  ;;  %v113_v28 = vld [vmem:[%s5674_s0 + $0x330] sm:$0xff] }
  0xcb   :  { %3039 = vmatmul.mubr.bf16.gmra.mrb[4].mxu0 %v3462_v29  ;;  %2662 = vmatpush1.bf16.msra.mxu1 %v4374_v24  ;;  %v109_v24 = vld [vmem:[%s5674_s0 + $0x310] sm:$0xff] }
  0xcc   :  { %3114 = vmatpush1.bf16.msra.mxu0 %v4377_v25  ;;  %2663 = vmatprep.subr.bf16.mxu1 %v4382_v32  ;;  %v3518_v25 = vcombine.low %v93_v8, %v101_v11  ;;  %v121_v29 = vld [vmem:[%s5674_s0 + $0x370] sm:$0xff]  ;;  %v34_v8 = vld [vmem:[%s5674_s0 + $0xb8] sm:$0xff]  ;;  %v3448_v11 = vcombine.low %v18_v60, %v26_v61 }
  0xcd   :  { %3115 = vmatprep.subr.bf16.mxu0 %v4385_v33  ;;  %2596 = vmatprep.mubr.bf16.mxu1 %v3471_v34  ;;  %v4430_v32 = vld [vmem:[%s5673_s1 + $0x3b4] ss:$8 sps:$4 sm:$0xff]   ;;  %v3535_v34 = vcombine.high %v109_v24, %v117_v27 }
  0xce   :  { %3048 = vmatprep.mubr.bf16.mxu0 %v3479_v35  ;;  %v4433_v33 = vld [vmem:[%s5673_s1 + $0x7b4] ss:$8 sps:$4 sm:$0xff]   ;;  %v3543_v35 = vcombine.high %v113_v28, %v121_v29 }
  0xcf   :  { %2664 = vmatpush1.bf16.msra.mxu1 %v4380_v36  ;;  %v4428_v36 = vld [vmem:[%s5673_s1 + $0x3b0] ss:$8 sps:$4 sm:$0xff]  }
  0xd0   :  { %3116 = vmatpush1.bf16.msra.mxu0 %v4383_v37  ;;  %2665 = vmatprep.subr.bf16.mxu1 %v4388_v38  ;;  %v4431_v37 = vld [vmem:[%s5673_s1 + $0x7b0] ss:$8 sps:$4 sm:$0xff]   ;;  %v4436_v38 = vld [vmem:[%s5673_s1 + $0x3c4] ss:$8 sps:$4 sm:$0xff]  }
  0xd1   :  { %3117 = vmatprep.subr.bf16.mxu0 %v4391_v39  ;;  %v4439_v39 = vld [vmem:[%s5673_s1 + $0x7c4] ss:$8 sps:$4 sm:$0xff]  }
  0xd2   :  { %2597 = vmatmul.mubr.bf16.gmra.mrb[8].mxu1 %v3470_v41  ;;  %v3534_v41 = vcombine.low %v109_v24, %v117_v27  ;;  %v66_v24 = vld [vmem:[%s5674_s0 + $0x1b8] sm:$0xff] }
  0xd3   :  { %3049 = vmatmul.mubr.bf16.gmra.mrb[8].mxu0 %v3478_v42  ;;  %2666 = vmatpush1.bf16.msra.mxu1 %v4386_v46  ;;  %v3542_v42 = vcombine.low %v113_v28, %v121_v29  ;;  %v4434_v46 = vld [vmem:[%s5673_s1 + $0x3c0] ss:$8 sps:$4 sm:$0xff]  }
  0xd4   :  { %3118 = vmatpush1.bf16.msra.mxu0 %v4389_v47  ;;  %2667 = vmatprep.subr.bf16.mxu1 %v4394_v48  ;;  %v4437_v47 = vld [vmem:[%s5673_s1 + $0x7c0] ss:$8 sps:$4 sm:$0xff]   ;;  %v4442_v48 = vld [vmem:[%s5673_s1 + $0x3d4] ss:$8 sps:$4 sm:$0xff]  }
  0xd5   :  { %3119 = vmatprep.subr.bf16.mxu0 %v4397_v49  ;;  %2606 = vmatprep.mubr.bf16.mxu1 %v3487_v50  ;;  %v4445_v49 = vld [vmem:[%s5673_s1 + $0x7d4] ss:$8 sps:$4 sm:$0xff]   ;;  %v3551_v50 = vcombine.high %v125_v40, %v133_v43 }
  0xd6   :  { %3058 = vmatprep.mubr.bf16.mxu0 %v3495_v51  ;;  %v3559_v51 = vcombine.high %v129_v44, %v137_v45 }
  0xd7   :  { %2668 = vmatpush1.bf16.msra.mxu1 %v4392_v52  ;;  %v4440_v52 = vld [vmem:[%s5673_s1 + $0x3d0] ss:$8 sps:$4 sm:$0xff]  }
  0xd8   :  { %3120 = vmatpush1.bf16.msra.mxu0 %v4395_v53  ;;  %2669 = vmatprep.subr.bf16.mxu1 %v4400_v54  ;;  %v4443_v53 = vld [vmem:[%s5673_s1 + $0x7d0] ss:$8 sps:$4 sm:$0xff]   ;;  %v4448_v54 = vld [vmem:[%s5673_s1 + $0x3e4] ss:$8 sps:$4 sm:$0xff]  }
  0xd9   :  { %3121 = vmatprep.subr.bf16.mxu0 %v4403_v55  ;;  %v4451_v55 = vld [vmem:[%s5673_s1 + $0x7e4] ss:$8 sps:$4 sm:$0xff]  }
  0xda   :  { %2607 = vmatmul.mubr.bf16.gmra.mrb[12].mxu1 %v3486_v57  ;;  %v3550_v57 = vcombine.low %v125_v40, %v133_v43  ;;  %v98_v40 = vld [vmem:[%s5674_s0 + $0x2b8] sm:$0xff] }
  0xdb   :  { %3059 = vmatmul.mubr.bf16.gmra.mrb[12].mxu0 %v3494_v58  ;;  %2670 = vmatpush1.bf16.msra.mxu1 %v4398_v62  ;;  %v3558_v58 = vcombine.low %v129_v44, %v137_v45  ;;  %v4446_v62 = vld [vmem:[%s5673_s1 + $0x3e0] ss:$8 sps:$4 sm:$0xff]  }
  0xdc   :  { %3122 = vmatpush1.bf16.msra.mxu0 %v4401_v63  ;;  %2671 = vmatprep.subr.bf16.mxu1 %v4406_v0  ;;  %v4449_v63 = vld [vmem:[%s5673_s1 + $0x7e0] ss:$8 sps:$4 sm:$0xff]   ;;  %v4454_v0 = vld [vmem:[%s5673_s1 + $0x3f4] ss:$8 sps:$4 sm:$0xff]  }
  0xdd   :  { %3123 = vmatprep.subr.bf16.mxu0 %v4409_v1  ;;  %2616 = vmatprep.mubr.bf16.mxu1 %v3503_v2  ;;  %v4457_v1 = vld [vmem:[%s5673_s1 + $0x7f4] ss:$8 sps:$4 sm:$0xff]   ;;  %v3441_v2 = vcombine.high %v14_v56, %v22_v59 }
  0xde   :  { %3068 = vmatprep.mubr.bf16.mxu0 %v3511_v3  ;;  %v3449_v3 = vcombine.high %v18_v60, %v26_v61 }
  0xdf   :  { %2672 = vmatpush1.bf16.msra.mxu1 %v4404_v4  ;;  %v4452_v4 = vld [vmem:[%s5673_s1 + $0x3f0] ss:$8 sps:$4 sm:$0xff]  }
  0xe0   :  { %3124 = vmatpush1.bf16.msra.mxu0 %v4407_v5  ;;  %2673 = vmatprep.subr.bf16.mxu1 %v4412_v6  ;;  %v4455_v5 = vld [vmem:[%s5673_s1 + $0x7f0] ss:$8 sps:$4 sm:$0xff]  }
  0xe1   :  { %3125 = vmatprep.subr.bf16.mxu0 %v4415_v7  ;;  %v30_v6 = vld [vmem:[%s5674_s0 + $0x98] sm:$0xff] }
  0xe2   :  { %2617 = vmatmul.mubr.bf16.gmra.mrb[16].mxu1 %v3502_v9  ;;  %v38_v7 = vld [vmem:[%s5674_s0 + $0xd8] sm:$0xff] }
  0xe3   :  { %3069 = vmatmul.mubr.bf16.gmra.mrb[16].mxu0 %v3510_v10  ;;  %2674 = vmatpush1.bf16.msra.mxu1 %v4410_v14  ;;  %v42_v9 = vld [vmem:[%s5674_s0 + $0xf8] sm:$0xff]  ;;  %v3440_v10 = vcombine.low %v14_v56, %v22_v59  ;;  %v3457_v12 = vcombine.high %v30_v6, %v38_v7 }
  0xe4   :  { %3126 = vmatpush1.bf16.msra.mxu0 %v4413_v15  ;;  %2675 = vmatprep.subr.bf16.mxu1 %v4418_v16  ;;  %v3465_v13 = vcombine.high %v34_v8, %v42_v9  ;;  %v46_v14 = vld [vmem:[%s5674_s0 + $0x118] sm:$0xff] }
  0xe5   :  { %3127 = vmatprep.subr.bf16.mxu0 %v4421_v17  ;;  %2626 = vmatprep.mubr.bf16.mxu1 %v3519_v18  ;;  %v54_v15 = vld [vmem:[%s5674_s0 + $0x158] sm:$0xff]  ;;  %v3456_v18 = vcombine.low %v30_v6, %v38_v7 }
  0xe6   :  { %3078 = vmatprep.mubr.bf16.mxu0 %v3527_v19  ;;  %v50_v16 = vld [vmem:[%s5674_s0 + $0x138] sm:$0xff]  ;;  %v3464_v19 = vcombine.low %v34_v8, %v42_v9 }
  0xe7   :  { %2676 = vmatpush1.bf16.msra.mxu1 %v4416_v20  ;;  %v58_v17 = vld [vmem:[%s5674_s0 + $0x178] sm:$0xff]  ;;  %v3473_v20 = vcombine.high %v46_v14, %v54_v15 }
  0xe8   :  { %3128 = vmatpush1.bf16.msra.mxu0 %v4419_v21  ;;  %2677 = vmatprep.subr.bf16.mxu1 %v4424_v22  ;;  %v3481_v21 = vcombine.high %v50_v16, %v58_v17  ;;  %v62_v22 = vld [vmem:[%s5674_s0 + $0x198] sm:$0xff]  ;;  %v3480_v27 = vcombine.low %v50_v16, %v58_v17 }
  0xe9   :  { %3129 = vmatprep.subr.bf16.mxu0 %v4427_v23  ;;  %v70_v23 = vld [vmem:[%s5674_s0 + $0x1d8] sm:$0xff] }
  0xea   :  { %2627 = vmatmul.mubr.bf16.gmra.mrb[20].mxu1 %v3518_v25  ;;  %v74_v25 = vld [vmem:[%s5674_s0 + $0x1f8] sm:$0xff]  ;;  %v3489_v28 = vcombine.high %v62_v22, %v70_v23 }
  0xeb   :  { %3079 = vmatmul.mubr.bf16.gmra.mrb[20].mxu0 %v3526_v26  ;;  %2678 = vmatpush1.bf16.msra.mxu1 %v4422_v30  ;;  %v3472_v26 = vcombine.low %v46_v14, %v54_v15  ;;  %v3497_v29 = vcombine.high %v66_v24, %v74_v25  ;;  %v78_v30 = vld [vmem:[%s5674_s0 + $0x218] sm:$0xff] }
  0xec   :  { %3130 = vmatpush1.bf16.msra.mxu0 %v4425_v31  ;;  %2679 = vmatprep.subr.bf16.mxu1 %v4430_v32  ;;  %v86_v31 = vld [vmem:[%s5674_s0 + $0x258] sm:$0xff] }
  0xed   :  { %3131 = vmatprep.subr.bf16.mxu0 %v4433_v33  ;;  %2636 = vmatprep.mubr.bf16.mxu1 %v3535_v34  ;;  %v82_v32 = vld [vmem:[%s5674_s0 + $0x238] sm:$0xff]  ;;  %v3488_v34 = vcombine.low %v62_v22, %v70_v23 }
  0xee   :  { %3088 = vmatprep.mubr.bf16.mxu0 %v3543_v35  ;;  %v90_v33 = vld [vmem:[%s5674_s0 + $0x278] sm:$0xff]  ;;  %v3496_v35 = vcombine.low %v66_v24, %v74_v25 }
  0xef   :  { %2680 = vmatpush1.bf16.msra.mxu1 %v4428_v36  ;;  %v3505_v36 = vcombine.high %v78_v30, %v86_v31  ;;  %v3512_v43 = vcombine.low %v82_v32, %v90_v33  ;;  %v130_v56 = vld [vmem:[%s5674_s0 + $0x3b8] sm:$0xff] }
  0xf0   :  { %3132 = vmatpush1.bf16.msra.mxu0 %v4431_v37  ;;  %2681 = vmatprep.subr.bf16.mxu1 %v4436_v38  ;;  %v3513_v37 = vcombine.high %v82_v32, %v90_v33  ;;  %v94_v38 = vld [vmem:[%s5674_s0 + $0x298] sm:$0xff] }
  0xf1   :  { %3133 = vmatprep.subr.bf16.mxu0 %v4439_v39  ;;  %v102_v39 = vld [vmem:[%s5674_s0 + $0x2d8] sm:$0xff] }
  0xf2   :  { %2637 = vmatmul.mubr.bf16.gmra.mrb[24].mxu1 %v3534_v41  ;;  %v106_v41 = vld [vmem:[%s5674_s0 + $0x2f8] sm:$0xff]  ;;  %v3521_v44 = vcombine.high %v94_v38, %v102_v39 }
  0xf3   :  { %3089 = vmatmul.mubr.bf16.gmra.mrb[24].mxu0 %v3542_v42  ;;  %2682 = vmatpush1.bf16.msra.mxu1 %v4434_v46  ;;  %v3504_v42 = vcombine.low %v78_v30, %v86_v31  ;;  %v3529_v45 = vcombine.high %v98_v40, %v106_v41  ;;  %v110_v46 = vld [vmem:[%s5674_s0 + $0x318] sm:$0xff] }
  0xf4   :  { %3134 = vmatpush1.bf16.msra.mxu0 %v4437_v47  ;;  %2683 = vmatprep.subr.bf16.mxu1 %v4442_v48  ;;  %v118_v47 = vld [vmem:[%s5674_s0 + $0x358] sm:$0xff] }
  0xf5   :  { %3135 = vmatprep.subr.bf16.mxu0 %v4445_v49  ;;  %2646 = vmatprep.mubr.bf16.mxu1 %v3551_v50  ;;  %v114_v48 = vld [vmem:[%s5674_s0 + $0x338] sm:$0xff]  ;;  %v3520_v50 = vcombine.low %v94_v38, %v102_v39 }
  0xf6   :  { %3098 = vmatprep.mubr.bf16.mxu0 %v3559_v51  ;;  %v122_v49 = vld [vmem:[%s5674_s0 + $0x378] sm:$0xff]  ;;  %v3528_v51 = vcombine.low %v98_v40, %v106_v41 }
  0xf7   :  { %2684 = vmatpush1.bf16.msra.mxu1 %v4440_v52  ;;  %v3537_v52 = vcombine.high %v110_v46, %v118_v47  ;;  %v3544_v59 = vcombine.low %v114_v48, %v122_v49 }
  0xf8   :  { %3136 = vmatpush1.bf16.msra.mxu0 %v4443_v53  ;;  %2685 = vmatprep.subr.bf16.mxu1 %v4448_v54  ;;  %v3545_v53 = vcombine.high %v114_v48, %v122_v49  ;;  %v126_v54 = vld [vmem:[%s5674_s0 + $0x398] sm:$0xff] }
  0xf9   :  { %3137 = vmatprep.subr.bf16.mxu0 %v4451_v55  ;;  %v134_v55 = vld [vmem:[%s5674_s0 + $0x3d8] sm:$0xff] }
  0xfa   :  { %2647 = vmatmul.mubr.bf16.gmra.mrb[28].mxu1 %v3550_v57  ;;  %v138_v57 = vld [vmem:[%s5674_s0 + $0x3f8] sm:$0xff]  ;;  %v3553_v60 = vcombine.high %v126_v54, %v134_v55 }
  0xfb   :  { %3099 = vmatmul.mubr.bf16.gmra.mrb[28].mxu0 %v3558_v58  ;;  %2686 = vmatpush1.bf16.msra.mxu1 %v4446_v62  ;;  %v3536_v58 = vcombine.low %v110_v46, %v118_v47  ;;  %v3561_v61 = vcombine.high %v130_v56, %v138_v57  ;;  %v3552_v62 = vcombine.low %v126_v54, %v134_v55 }
  0xfc   :  { %3138 = vmatpush1.bf16.msra.mxu0 %v4449_v63  ;;  %2687 = vmatprep.subr.bf16.mxu1 %v4454_v0  ;;  %v3560_v63 = vcombine.low %v130_v56, %v138_v57 }
  0xfd   :  { %3139 = vmatprep.subr.bf16.mxu0 %v4457_v1  ;;  %2689 = vmatprep.mubr.bf16.mxu1 %v3441_v2 }
  0xfe   :  { %3141 = vmatprep.mubr.bf16.mxu0 %v3449_v3 }
  0xff   :  { %2688 = vmatpush1.bf16.msra.mxu1 %v4452_v4 }
 0x100   :  { %3140 = vmatpush1.bf16.msra.mxu0 %v4455_v5 }
 0x102   :  { %2690 = vmatmul.mubr.bf16.vlgmr.msra.gmra.mrb[0].mxu1 %v3440_v10 }
 0x103   :  { %3142 = vmatmul.mubr.bf16.vlgmr.msra.gmra.mrb[0].mxu0 %v3448_v11  ;;  %2699 = vmatprep.mubr.bf16.mxu1 %v3457_v12 }
 0x104   :  { %3151 = vmatprep.mubr.bf16.mxu0 %v3465_v13 }
 0x10a   :  { %2700 = vmatmul.mubr.bf16.gmra.mrb[4].mxu1 %v3456_v18 }
 0x10b   :  { %3152 = vmatmul.mubr.bf16.gmra.mrb[4].mxu0 %v3464_v19  ;;  %2709 = vmatprep.mubr.bf16.mxu1 %v3473_v20 }
 0x10c   :  { %3161 = vmatprep.mubr.bf16.mxu0 %v3481_v21 }
 0x112   :  { %2710 = vmatmul.mubr.bf16.gmra.mrb[8].mxu1 %v3472_v26 }
 0x113   :  { %3162 = vmatmul.mubr.bf16.gmra.mrb[8].mxu0 %v3480_v27  ;;  %2719 = vmatprep.mubr.bf16.mxu1 %v3489_v28 }
 0x114   :  { %3171 = vmatprep.mubr.bf16.mxu0 %v3497_v29 }
 0x11a   :  { %2720 = vmatmul.mubr.bf16.gmra.mrb[12].mxu1 %v3488_v34 }
 0x11b   :  { %3172 = vmatmul.mubr.bf16.gmra.mrb[12].mxu0 %v3496_v35  ;;  %2729 = vmatprep.mubr.bf16.mxu1 %v3505_v36 }
 0x11c   :  { %3181 = vmatprep.mubr.bf16.mxu0 %v3513_v37 }
 0x122   :  { %2730 = vmatmul.mubr.bf16.gmra.mrb[16].mxu1 %v3504_v42 }
 0x123   :  { %3182 = vmatmul.mubr.bf16.gmra.mrb[16].mxu0 %v3512_v43  ;;  %2739 = vmatprep.mubr.bf16.mxu1 %v3521_v44 }
 0x124   :  { %3191 = vmatprep.mubr.bf16.mxu0 %v3529_v45 }
 0x12a   :  { %2740 = vmatmul.mubr.bf16.gmra.mrb[20].mxu1 %v3520_v50 }
 0x12b   :  { %3192 = vmatmul.mubr.bf16.gmra.mrb[20].mxu0 %v3528_v51  ;;  %2749 = vmatprep.mubr.bf16.mxu1 %v3537_v52 }
 0x12c   :  { %3201 = vmatprep.mubr.bf16.mxu0 %v3545_v53 }
 0x132   :  { %2750 = vmatmul.mubr.bf16.gmra.mrb[24].mxu1 %v3536_v58 }
 0x133   :  { %3202 = vmatmul.mubr.bf16.gmra.mrb[24].mxu0 %v3544_v59  ;;  %2759 = vmatprep.mubr.bf16.mxu1 %v3553_v60 }
 0x134   :  { %3211 = vmatprep.mubr.bf16.mxu0 %v3561_v61 }
 0x13a   :  { %2760 = vmatmul.mubr.bf16.gmra.mrb[28].mxu1 %v3552_v62 }
 0x13b   :  { %3212 = vmatmul.mubr.bf16.gmra.mrb[28].mxu0 %v3560_v63 }
 0x1d5   :  { %v2691_v0 = vpop.f32.mrb[0].mxu1 }
 0x1d6   :  { %v3143_v1 = vpop.f32.mrb[0].mxu0  ;;  %v2693_v3 = vpop.f32.mrb[1].mxu1 }
 0x1d7   :  { %v3850_v2 = vadd.f32 %v3143_v1, %v2691_v0  ;;  %v3145_v4 = vpop.f32.mrb[1].mxu0  ;;  %v2695_v6 = vpop.f32.mrb[2].mxu1 }
 0x1d8   :  { %v3851_v5 = vadd.f32 %v3145_v4, %v2693_v3  ;;  %v3147_v7 = vpop.f32.mrb[2].mxu0  ;;  %v2697_v10 = vpop.f32.mrb[3].mxu1 }
 0x1d9   :  { %vm3222_vm0 = vcmp.gt.f32.partialorder %v3850_v2, 0.0  ;;  %v3254_v8 = vmul.f32 0.2, %v3850_v2  ;;  %v3852_v9 = vadd.f32 %v3147_v7, %v2695_v6  ;;  %v3149_v11 = vpop.f32.mrb[3].mxu0 }
 0x1da   :  { %vm3223_vm1 = vcmp.gt.f32.partialorder %v3851_v5, 0.0  ;;  %v3255_v12 = vmul.f32 0.2, %v3851_v5  ;;  %v3853_v13 = vadd.f32 %v3149_v11, %v2697_v10 }
 0x1db   :  { %v3286_v14 = vsel %vm3222_vm0, %v3850_v2, %v3254_v8  ;;  %vm3224_vm2 = vcmp.gt.f32.partialorder %v3852_v9, 0.0  ;;  %v3256_v15 = vmul.f32 0.2, %v3852_v9 }
 0x1dc   :  { %v3287_v16 = vsel %vm3223_vm1, %v3851_v5, %v3255_v12  ;;  %vm3225_vm3 = vcmp.gt.f32.partialorder %v3853_v13, 0.0  ;;  %v3257_v17 = vmul.f32 0.2, %v3853_v13 }
 0x1dd   :  { %v3834_v18 = vpack.c.bf16 %v3287_v16, %v3286_v14  ;;  %v3288_v19 = vsel %vm3224_vm2, %v3852_v9, %v3256_v15  ;;  %v2701_v21 = vpop.f32.mrb[4].mxu1 }
 0x1de   :  { %v3289_v20 = vsel %vm3225_vm3, %v3853_v13, %v3257_v17  ;;  %v3153_v22 = vpop.f32.mrb[4].mxu0  ;;  %v2703_v25 = vpop.f32.mrb[5].mxu1 }
 0x1df   :  { %3414 = vst [vmem:[%s5675_s2] sm:$0xff] %v3834_v18  ;;  %v3835_v23 = vpack.c.bf16 %v3289_v20, %v3288_v19  ;;  %v3854_v24 = vadd.f32 %v3153_v22, %v2701_v21  ;;  %v3155_v26 = vpop.f32.mrb[5].mxu0  ;;  %v2705_v28 = vpop.f32.mrb[6].mxu1 }
 0x1e0   :  { %v3855_v27 = vadd.f32 %v3155_v26, %v2703_v25  ;;  %v3157_v29 = vpop.f32.mrb[6].mxu0  ;;  %v2707_v32 = vpop.f32.mrb[7].mxu1 }
 0x1e1   :  { %3415 = vst [vmem:[%s5675_s2 + $0x8] sm:$0xff] %v3835_v23  ;;  %vm3226_vm4 = vcmp.gt.f32.partialorder %v3854_v24, 0.0  ;;  %v3258_v30 = vmul.f32 0.2, %v3854_v24  ;;  %v3856_v31 = vadd.f32 %v3157_v29, %v2705_v28  ;;  %v3159_v33 = vpop.f32.mrb[7].mxu0 }
 0x1e2   :  { %vm3227_vm5 = vcmp.gt.f32.partialorder %v3855_v27, 0.0  ;;  %v3259_v34 = vmul.f32 0.2, %v3855_v27  ;;  %v3857_v35 = vadd.f32 %v3159_v33, %v2707_v32 }
 0x1e3   :  { %v3290_v36 = vsel %vm3226_vm4, %v3854_v24, %v3258_v30  ;;  %vm3228_vm6 = vcmp.gt.f32.partialorder %v3856_v31, 0.0  ;;  %v3260_v37 = vmul.f32 0.2, %v3856_v31 }
 0x1e4   :  { %v3291_v38 = vsel %vm3227_vm5, %v3855_v27, %v3259_v34  ;;  %vm3229_vm7 = vcmp.gt.f32.partialorder %v3857_v35, 0.0  ;;  %v3261_v39 = vmul.f32 0.2, %v3857_v35 }
 0x1e5   :  { %v3836_v40 = vpack.c.bf16 %v3291_v38, %v3290_v36  ;;  %v3292_v41 = vsel %vm3228_vm6, %v3856_v31, %v3260_v37  ;;  %v2711_v43 = vpop.f32.mrb[8].mxu1 }
 0x1e6   :  { %v3293_v42 = vsel %vm3229_vm7, %v3857_v35, %v3261_v39  ;;  %v3163_v44 = vpop.f32.mrb[8].mxu0  ;;  %v2713_v47 = vpop.f32.mrb[9].mxu1 }
 0x1e7   :  { %3416 = vst [vmem:[%s5675_s2 + $0x10] sm:$0xff] %v3836_v40  ;;  %v3837_v45 = vpack.c.bf16 %v3293_v42, %v3292_v41  ;;  %v3858_v46 = vadd.f32 %v3163_v44, %v2711_v43  ;;  %v3165_v48 = vpop.f32.mrb[9].mxu0  ;;  %v2715_v50 = vpop.f32.mrb[10].mxu1 }
 0x1e8   :  { %v3859_v49 = vadd.f32 %v3165_v48, %v2713_v47  ;;  %v3167_v51 = vpop.f32.mrb[10].mxu0  ;;  %v2717_v54 = vpop.f32.mrb[11].mxu1 }
 0x1e9   :  { %3417 = vst [vmem:[%s5675_s2 + $0x18] sm:$0xff] %v3837_v45  ;;  %vm3230_vm8 = vcmp.gt.f32.partialorder %v3858_v46, 0.0  ;;  %v3262_v52 = vmul.f32 0.2, %v3858_v46  ;;  %v3860_v53 = vadd.f32 %v3167_v51, %v2715_v50  ;;  %v3169_v55 = vpop.f32.mrb[11].mxu0 }
 0x1ea   :  { %vm3231_vm9 = vcmp.gt.f32.partialorder %v3859_v49, 0.0  ;;  %v3263_v56 = vmul.f32 0.2, %v3859_v49  ;;  %v3861_v57 = vadd.f32 %v3169_v55, %v2717_v54 }
 0x1eb   :  { %v3294_v58 = vsel %vm3230_vm8, %v3858_v46, %v3262_v52  ;;  %vm3232_vm10 = vcmp.gt.f32.partialorder %v3860_v53, 0.0  ;;  %v3264_v59 = vmul.f32 0.2, %v3860_v53 }
 0x1ec   :  { %v3295_v60 = vsel %vm3231_vm9, %v3859_v49, %v3263_v56  ;;  %vm3233_vm11 = vcmp.gt.f32.partialorder %v3861_v57, 0.0  ;;  %v3265_v61 = vmul.f32 0.2, %v3861_v57 }
 0x1ed   :  { %v3838_v62 = vpack.c.bf16 %v3295_v60, %v3294_v58  ;;  %v3296_v63 = vsel %vm3232_vm10, %v3860_v53, %v3264_v59  ;;  %v2721_v1 = vpop.f32.mrb[12].mxu1 }
 0x1ee   :  { %v3297_v0 = vsel %vm3233_vm11, %v3861_v57, %v3265_v61  ;;  %v3173_v2 = vpop.f32.mrb[12].mxu0  ;;  %v2723_v5 = vpop.f32.mrb[13].mxu1 }
 0x1ef   :  { %3418 = vst [vmem:[%s5675_s2 + $0x20] sm:$0xff] %v3838_v62  ;;  %v3839_v3 = vpack.c.bf16 %v3297_v0, %v3296_v63  ;;  %v3862_v4 = vadd.f32 %v3173_v2, %v2721_v1  ;;  %v3175_v6 = vpop.f32.mrb[13].mxu0  ;;  %v2725_v8 = vpop.f32.mrb[14].mxu1 }
 0x1f0   :  { %v3863_v7 = vadd.f32 %v3175_v6, %v2723_v5  ;;  %v3177_v9 = vpop.f32.mrb[14].mxu0  ;;  %v2727_v12 = vpop.f32.mrb[15].mxu1 }
 0x1f1   :  { %3419 = vst [vmem:[%s5675_s2 + $0x28] sm:$0xff] %v3839_v3  ;;  %vm3234_vm12 = vcmp.gt.f32.partialorder %v3862_v4, 0.0  ;;  %v3266_v10 = vmul.f32 0.2, %v3862_v4  ;;  %v3864_v11 = vadd.f32 %v3177_v9, %v2725_v8  ;;  %v3179_v13 = vpop.f32.mrb[15].mxu0 }
 0x1f2   :  { %vm3235_vm13 = vcmp.gt.f32.partialorder %v3863_v7, 0.0  ;;  %v3267_v14 = vmul.f32 0.2, %v3863_v7  ;;  %v3865_v15 = vadd.f32 %v3179_v13, %v2727_v12 }
 0x1f3   :  { %v3298_v16 = vsel %vm3234_vm12, %v3862_v4, %v3266_v10  ;;  %vm3236_vm14 = vcmp.gt.f32.partialorder %v3864_v11, 0.0  ;;  %v3268_v17 = vmul.f32 0.2, %v3864_v11 }
 0x1f4   :  { %v3299_v18 = vsel %vm3235_vm13, %v3863_v7, %v3267_v14  ;;  %vm3237_vm15 = vcmp.gt.f32.partialorder %v3865_v15, 0.0  ;;  %v3269_v19 = vmul.f32 0.2, %v3865_v15 }
 0x1f5   :  { %v3840_v20 = vpack.c.bf16 %v3299_v18, %v3298_v16  ;;  %v3300_v21 = vsel %vm3236_vm14, %v3864_v11, %v3268_v17  ;;  %v2731_v23 = vpop.f32.mrb[16].mxu1 }
 0x1f6   :  { %v3301_v22 = vsel %vm3237_vm15, %v3865_v15, %v3269_v19  ;;  %v3183_v24 = vpop.f32.mrb[16].mxu0  ;;  %v2733_v27 = vpop.f32.mrb[17].mxu1 }
 0x1f7   :  { %3420 = vst [vmem:[%s5675_s2 + $0x30] sm:$0xff] %v3840_v20  ;;  %v3841_v25 = vpack.c.bf16 %v3301_v22, %v3300_v21  ;;  %v3866_v26 = vadd.f32 %v3183_v24, %v2731_v23  ;;  %v3185_v28 = vpop.f32.mrb[17].mxu0  ;;  %v2735_v30 = vpop.f32.mrb[18].mxu1 }
 0x1f8   :  { %v3867_v29 = vadd.f32 %v3185_v28, %v2733_v27  ;;  %v3187_v31 = vpop.f32.mrb[18].mxu0  ;;  %v2737_v34 = vpop.f32.mrb[19].mxu1 }
 0x1f9   :  { %3421 = vst [vmem:[%s5675_s2 + $0x38] sm:$0xff] %v3841_v25  ;;  %vm3238_vm0 = vcmp.gt.f32.partialorder %v3866_v26, 0.0  ;;  %v3270_v32 = vmul.f32 0.2, %v3866_v26  ;;  %v3868_v33 = vadd.f32 %v3187_v31, %v2735_v30  ;;  %v3189_v35 = vpop.f32.mrb[19].mxu0 }
 0x1fa   :  { %vm3239_vm1 = vcmp.gt.f32.partialorder %v3867_v29, 0.0  ;;  %v3271_v36 = vmul.f32 0.2, %v3867_v29  ;;  %v3869_v37 = vadd.f32 %v3189_v35, %v2737_v34 }
 0x1fb   :  { %v3302_v38 = vsel %vm3238_vm0, %v3866_v26, %v3270_v32  ;;  %vm3240_vm2 = vcmp.gt.f32.partialorder %v3868_v33, 0.0  ;;  %v3272_v39 = vmul.f32 0.2, %v3868_v33 }
 0x1fc   :  { %v3303_v40 = vsel %vm3239_vm1, %v3867_v29, %v3271_v36  ;;  %vm3241_vm3 = vcmp.gt.f32.partialorder %v3869_v37, 0.0  ;;  %v3273_v41 = vmul.f32 0.2, %v3869_v37 }
 0x1fd   :  { %v3842_v42 = vpack.c.bf16 %v3303_v40, %v3302_v38  ;;  %v3304_v43 = vsel %vm3240_vm2, %v3868_v33, %v3272_v39  ;;  %v2741_v45 = vpop.f32.mrb[20].mxu1 }
 0x1fe   :  { %v3305_v44 = vsel %vm3241_vm3, %v3869_v37, %v3273_v41  ;;  %v3193_v46 = vpop.f32.mrb[20].mxu0  ;;  %v2743_v49 = vpop.f32.mrb[21].mxu1 }
 0x1ff   :  { %3422 = vst [vmem:[%s5675_s2 + $0x40] sm:$0xff] %v3842_v42  ;;  %v3843_v47 = vpack.c.bf16 %v3305_v44, %v3304_v43  ;;  %v3870_v48 = vadd.f32 %v3193_v46, %v2741_v45  ;;  %v3195_v50 = vpop.f32.mrb[21].mxu0  ;;  %v2745_v52 = vpop.f32.mrb[22].mxu1 }
 0x200   :  { %v3871_v51 = vadd.f32 %v3195_v50, %v2743_v49  ;;  %v3197_v53 = vpop.f32.mrb[22].mxu0  ;;  %v2747_v56 = vpop.f32.mrb[23].mxu1 }
 0x201   :  { %3423 = vst [vmem:[%s5675_s2 + $0x48] sm:$0xff] %v3843_v47  ;;  %vm3242_vm4 = vcmp.gt.f32.partialorder %v3870_v48, 0.0  ;;  %v3274_v54 = vmul.f32 0.2, %v3870_v48  ;;  %v3872_v55 = vadd.f32 %v3197_v53, %v2745_v52  ;;  %v3199_v57 = vpop.f32.mrb[23].mxu0 }
 0x202   :  { %vm3243_vm5 = vcmp.gt.f32.partialorder %v3871_v51, 0.0  ;;  %v3275_v58 = vmul.f32 0.2, %v3871_v51  ;;  %v3873_v59 = vadd.f32 %v3199_v57, %v2747_v56 }
 0x203   :  { %v3306_v60 = vsel %vm3242_vm4, %v3870_v48, %v3274_v54  ;;  %vm3244_vm6 = vcmp.gt.f32.partialorder %v3872_v55, 0.0  ;;  %v3276_v61 = vmul.f32 0.2, %v3872_v55 }
 0x204   :  { %v3307_v62 = vsel %vm3243_vm5, %v3871_v51, %v3275_v58  ;;  %vm3245_vm7 = vcmp.gt.f32.partialorder %v3873_v59, 0.0  ;;  %v3277_v63 = vmul.f32 0.2, %v3873_v59 }
 0x205   :  { %v3844_v0 = vpack.c.bf16 %v3307_v62, %v3306_v60  ;;  %v3308_v1 = vsel %vm3244_vm6, %v3872_v55, %v3276_v61  ;;  %v2751_v3 = vpop.f32.mrb[24].mxu1 }
 0x206   :  { %v3309_v2 = vsel %vm3245_vm7, %v3873_v59, %v3277_v63  ;;  %v3203_v4 = vpop.f32.mrb[24].mxu0  ;;  %v2753_v7 = vpop.f32.mrb[25].mxu1 }
 0x207   :  { %3424 = vst [vmem:[%s5675_s2 + $0x50] sm:$0xff] %v3844_v0  ;;  %v3845_v5 = vpack.c.bf16 %v3309_v2, %v3308_v1  ;;  %v3874_v6 = vadd.f32 %v3203_v4, %v2751_v3  ;;  %v3205_v8 = vpop.f32.mrb[25].mxu0  ;;  %v2755_v10 = vpop.f32.mrb[26].mxu1 }
 0x208   :  { %v3875_v9 = vadd.f32 %v3205_v8, %v2753_v7  ;;  %v3207_v11 = vpop.f32.mrb[26].mxu0  ;;  %v2757_v14 = vpop.f32.mrb[27].mxu1 }
 0x209   :  { %3425 = vst [vmem:[%s5675_s2 + $0x58] sm:$0xff] %v3845_v5  ;;  %vm3246_vm8 = vcmp.gt.f32.partialorder %v3874_v6, 0.0  ;;  %v3278_v12 = vmul.f32 0.2, %v3874_v6  ;;  %v3876_v13 = vadd.f32 %v3207_v11, %v2755_v10  ;;  %v3209_v15 = vpop.f32.mrb[27].mxu0 }
 0x20a   :  { %vm3247_vm9 = vcmp.gt.f32.partialorder %v3875_v9, 0.0  ;;  %v3279_v16 = vmul.f32 0.2, %v3875_v9  ;;  %v3877_v17 = vadd.f32 %v3209_v15, %v2757_v14 }
 0x20b   :  { %v3310_v18 = vsel %vm3246_vm8, %v3874_v6, %v3278_v12  ;;  %vm3248_vm10 = vcmp.gt.f32.partialorder %v3876_v13, 0.0  ;;  %v3280_v19 = vmul.f32 0.2, %v3876_v13 }
 0x20c   :  { %v3311_v20 = vsel %vm3247_vm9, %v3875_v9, %v3279_v16  ;;  %vm3249_vm11 = vcmp.gt.f32.partialorder %v3877_v17, 0.0  ;;  %v3281_v21 = vmul.f32 0.2, %v3877_v17 }
 0x20d   :  { %v3846_v22 = vpack.c.bf16 %v3311_v20, %v3310_v18  ;;  %v3312_v23 = vsel %vm3248_vm10, %v3876_v13, %v3280_v19  ;;  %v2761_v25 = vpop.f32.mrb[28].mxu1 }
 0x20e   :  { %v3313_v24 = vsel %vm3249_vm11, %v3877_v17, %v3281_v21  ;;  %v3213_v26 = vpop.f32.mrb[28].mxu0  ;;  %v2763_v29 = vpop.f32.mrb[29].mxu1 }
 0x20f   :  { %3426 = vst [vmem:[%s5675_s2 + $0x60] sm:$0xff] %v3846_v22  ;;  %v3847_v27 = vpack.c.bf16 %v3313_v24, %v3312_v23  ;;  %v3878_v28 = vadd.f32 %v3213_v26, %v2761_v25  ;;  %v3215_v30 = vpop.f32.mrb[29].mxu0  ;;  %v2765_v32 = vpop.f32.mrb[30].mxu1 }
 0x210   :  { %v3879_v31 = vadd.f32 %v3215_v30, %v2763_v29  ;;  %v3217_v33 = vpop.f32.mrb[30].mxu0  ;;  %v2767_v36 = vpop.f32.mrb[31].mxu1 }
 0x211   :  { %3427 = vst [vmem:[%s5675_s2 + $0x68] sm:$0xff] %v3847_v27  ;;  %vm3250_vm12 = vcmp.gt.f32.partialorder %v3878_v28, 0.0  ;;  %v3282_v34 = vmul.f32 0.2, %v3878_v28  ;;  %v3880_v35 = vadd.f32 %v3217_v33, %v2765_v32  ;;  %v3219_v37 = vpop.f32.mrb[31].mxu0 }
 0x212   :  { %vm3251_vm13 = vcmp.gt.f32.partialorder %v3879_v31, 0.0  ;;  %v3283_v38 = vmul.f32 0.2, %v3879_v31  ;;  %v3881_v39 = vadd.f32 %v3219_v37, %v2767_v36 }
 0x213   :  { %v3314_v40 = vsel %vm3250_vm12, %v3878_v28, %v3282_v34  ;;  %vm3252_vm14 = vcmp.gt.f32.partialorder %v3880_v35, 0.0  ;;  %v3284_v41 = vmul.f32 0.2, %v3880_v35 }
 0x214   :  { %v3315_v42 = vsel %vm3251_vm13, %v3879_v31, %v3283_v38  ;;  %vm3253_vm15 = vcmp.gt.f32.partialorder %v3881_v39, 0.0  ;;  %v3285_v43 = vmul.f32 0.2, %v3881_v39 }
 0x215   :  { %v3848_v44 = vpack.c.bf16 %v3315_v42, %v3314_v40  ;;  %v3316_v45 = vsel %vm3252_vm14, %v3880_v35, %v3284_v41 }
 0x216   :  { %v3317_v46 = vsel %vm3253_vm15, %v3881_v39, %v3285_v43 }
 0x217   :  { %3428 = vst [vmem:[%s5675_s2 + $0x70] sm:$0xff] %v3848_v44  ;;  %v3849_v47 = vpack.c.bf16 %v3317_v46, %v3316_v45 }
 0x219   :  { %3429 = vst [vmem:[%s5675_s2 + $0x78] sm:$0xff] %v3849_v47 }

// kernel: d_forward.7
= control target key start
LH: loop header
LB: loop body
LE: loop exit
PB: predicated region body
PF: predicated region fallthrough
CT: control target
= control target key end

     0   :  { %s6224_s9 = smov 0   ;;  %s6226_s10 = smov 0   ;;  %s7143_s0 = inlined_call_operand.vmem [shape: bf16[32,4096], index: 0, kind: input, shape index: {}]   ;;  %s7144_s1 = inlined_call_operand.vmem [shape: bf16[2,4096,256], index: 1, kind: input, shape index: {}]   ;;  %s7145_s2 = inlined_call_operand.vmem [shape: bf16[32,512], index: 2, kind: output, shape index: {}]  }
   0x1   :  { %s6228_s11 = smov 0   ;;  %s6230_s12 = smov 0  }
   0x2   :  { %s6232_s13 = smov 0  }
   0x3 LB: > { %s4642_s14 = sadd.s32 4294967295, %s6207_s13   ;;  %s21_s15 = sadd.s32 1, %s6203_s12  ;;  %s6207_s13 = sphi %s6232_s13, %s12_s13   ;;  %s6203_s12 = sphi %s6230_s12, %s7150_s12   ;;  %s6199_s11 = sphi %s6228_s11, %s7149_s11   ;;  %s6195_s10 = sphi %s6226_s10, %s7148_s10   ;;  %s6191_s9 = sphi %s6224_s9, %s7147_s9  }
   0x4   : > { %p22_p0 = scmp.ge.s32.totalorder %s21_s15, 2  ;;  %s80_s16 = sadd.s32 1, %s6195_s10 }
   0x5   : > { %p90_p1 = scmp.ne.s32.totalorder %s6195_s10, %s6191_s9  ;;  %p91_p2 = scmp.eq.s32.totalorder %s4642_s14, 1 }
   0x6   : > { %s7152_s15 = smov (%p22_p0, %s21_s15), 0  ;;  %p4646_p4 = scmp.ge.s32.totalorder %s6207_s13, 1 }
   0x7   : > { %p6256_p3 = por %p91_p2, %p90_p1  ;;  %s76_s18 = ssub.s32 %s6203_s12, %s7152_s15 }
   0x8   : > { %p128_p5 = scmp.lt.s32.totalorder %s6207_s13, 3  ;;  %p78_p6 = scmp.eq.s32.totalorder %s76_s18, 0 }
   0xa   : > { %p129_p7 = pnand %p4646_p4, %p128_p5 }
   0xb   : > { %s6265_s19 = scalar_select %p78_p6, %s6195_s10, %s80_s16  }
   0xc   : > { %132 = sbr.rel (%p129_p7) target bundleno = 769 (0x301), region = 28  ;;  %s5235_s20 = sshll.u32 (!%p129_p7), %s6199_s11, 12  ;;  %v6271_v0 = vld [vmem:[%s7143_s0] sm:$0xff] (!%p129_p7) }
   0xd   : > { %v6276_v1 = vld [vmem:[%s7143_s0 + $0x80] sm:$0xff] (!%p129_p7)  ;;  %s6286_s29 = scalar_lea.vmem (!%p129_p7), %s7144_s1, %s5235_s20 }
   0xe   : > { %v6281_v2 = vld [vmem:[%s7143_s0 + $0x40] sm:$0xff] (!%p129_p7)  ;;  %v4650_v3 = vcombine.low (!%p129_p7), %v6271_v0, %v6276_v1  ;;  %v4651_v4 = vcombine.high (!%p129_p7), %v6271_v0, %v6276_v1  ;;  %v5407_v12 = vld [vmem:[%s6286_s29 + $0x14] ss:$8 sps:$4 sm:$0xff] (!%p129_p7)   ;;  %v5411_v14 = vld [vmem:[%s6286_s29 + $0x10] ss:$8 sps:$4 sm:$0xff] (!%p129_p7)  }
   0xf   : > { %v6295_v5 = vld [vmem:[%s7143_s0 + $0xc0] sm:$0xff] (!%p129_p7)  ;;  %v5409_v13 = vld [vmem:[%s6286_s29 + $0x814] ss:$8 sps:$4 sm:$0xff] (!%p129_p7)   ;;  %v5412_v15 = vld [vmem:[%s6286_s29 + $0x810] ss:$8 sps:$4 sm:$0xff] (!%p129_p7)  }
  0x10   : > { %v5401_v6 = vld [vmem:[%s6286_s29 + $0x4] ss:$8 sps:$4 sm:$0xff] (!%p129_p7)   ;;  %v4666_v7 = vcombine.low (!%p129_p7), %v6281_v2, %v6295_v5  ;;  %v4667_v8 = vcombine.high (!%p129_p7), %v6281_v2, %v6295_v5  ;;  %3650 = vmatprep.mubr.bf16.mxu1 (!%p129_p7), %v4651_v4  ;;  %v5405_v10 = vld [vmem:[%s6286_s29] ss:$8 sps:$4 sm:$0xff] (!%p129_p7)   ;;  %v5419_v20 = vld [vmem:[%s6286_s29 + $0x34] ss:$8 sps:$4 sm:$0xff] (!%p129_p7)  }
  0x11   : > { %v5403_v9 = vld [vmem:[%s6286_s29 + $0x804] ss:$8 sps:$4 sm:$0xff] (!%p129_p7)   ;;  %3618 = vmatprep.subr.bf16.mxu1 (!%p129_p7), %v5401_v6  ;;  %v5406_v11 = vld [vmem:[%s6286_s29 + $0x800] ss:$8 sps:$4 sm:$0xff] (!%p129_p7)   ;;  %v5421_v21 = vld [vmem:[%s6286_s29 + $0x834] ss:$8 sps:$4 sm:$0xff] (!%p129_p7)  }
  0x12   : > { %4074 = vmatprep.mubr.bf16.mxu0 (!%p129_p7), %v4667_v8  ;;  %4042 = vmatprep.subr.bf16.mxu0 (!%p129_p7), %v5403_v9  ;;  %v5413_v16 = vld [vmem:[%s6286_s29 + $0x24] ss:$8 sps:$4 sm:$0xff] (!%p129_p7)   ;;  %v5417_v18 = vld [vmem:[%s6286_s29 + $0x20] ss:$8 sps:$4 sm:$0xff] (!%p129_p7)   ;;  %v5423_v22 = vld [vmem:[%s6286_s29 + $0x30] ss:$8 sps:$4 sm:$0xff] (!%p129_p7)  }
  0x13   : > { %3619 = vmatpush1.bf16.msra.mxu1 %v5405_v10  ;;  %4043 = vmatpush1.bf16.msra.mxu0 %v5406_v11  ;;  %v5415_v17 = vld [vmem:[%s6286_s29 + $0x824] ss:$8 sps:$4 sm:$0xff]   ;;  %v5418_v19 = vld [vmem:[%s6286_s29 + $0x820] ss:$8 sps:$4 sm:$0xff]   ;;  %v5424_v23 = vld [vmem:[%s6286_s29 + $0x830] ss:$8 sps:$4 sm:$0xff]  }
  0x14   : > { %3620 = vmatprep.subr.bf16.mxu1 %v5407_v12  ;;  %4044 = vmatprep.subr.bf16.mxu0 %v5409_v13  ;;  %v5425_v24 = vld [vmem:[%s6286_s29 + $0x44] ss:$8 sps:$4 sm:$0xff]   ;;  %v5429_v26 = vld [vmem:[%s6286_s29 + $0x40] ss:$8 sps:$4 sm:$0xff]   ;;  %v5431_v28 = vld [vmem:[%s6286_s29 + $0x54] ss:$8 sps:$4 sm:$0xff]  }
  0x15   : > { %v5427_v25 = vld [vmem:[%s6286_s29 + $0x844] ss:$8 sps:$4 sm:$0xff]   ;;  %v5430_v27 = vld [vmem:[%s6286_s29 + $0x840] ss:$8 sps:$4 sm:$0xff]   ;;  %v5433_v29 = vld [vmem:[%s6286_s29 + $0x854] ss:$8 sps:$4 sm:$0xff]  }
  0x16   : > { %v5435_v30 = vld [vmem:[%s6286_s29 + $0x50] ss:$8 sps:$4 sm:$0xff]   ;;  %v5437_v32 = vld [vmem:[%s6286_s29 + $0x64] ss:$8 sps:$4 sm:$0xff]   ;;  %v5441_v34 = vld [vmem:[%s6286_s29 + $0x60] ss:$8 sps:$4 sm:$0xff]  }
  0x17   : > { %3621 = vmatpush1.bf16.msra.mxu1 %v5411_v14  ;;  %4045 = vmatpush1.bf16.msra.mxu0 %v5412_v15  ;;  %v5436_v31 = vld [vmem:[%s6286_s29 + $0x850] ss:$8 sps:$4 sm:$0xff]   ;;  %v5439_v33 = vld [vmem:[%s6286_s29 + $0x864] ss:$8 sps:$4 sm:$0xff]   ;;  %v5442_v35 = vld [vmem:[%s6286_s29 + $0x860] ss:$8 sps:$4 sm:$0xff]  }
  0x18   : > { %3622 = vmatprep.subr.bf16.mxu1 %v5413_v16  ;;  %4046 = vmatprep.subr.bf16.mxu0 %v5415_v17  ;;  %v5443_v36 = vld [vmem:[%s6286_s29 + $0x74] ss:$8 sps:$4 sm:$0xff]   ;;  %v5447_v38 = vld [vmem:[%s6286_s29 + $0x70] ss:$8 sps:$4 sm:$0xff]   ;;  %v5449_v40 = vld [vmem:[%s6286_s29 + $0x84] ss:$8 sps:$4 sm:$0xff]  }
  0x19   : > { %v5445_v37 = vld [vmem:[%s6286_s29 + $0x874] ss:$8 sps:$4 sm:$0xff]   ;;  %v5448_v39 = vld [vmem:[%s6286_s29 + $0x870] ss:$8 sps:$4 sm:$0xff]   ;;  %v5451_v41 = vld [vmem:[%s6286_s29 + $0x884] ss:$8 sps:$4 sm:$0xff]  }
  0x1a   : > { %v5453_v42 = vld [vmem:[%s6286_s29 + $0x80] ss:$8 sps:$4 sm:$0xff]   ;;  %v5455_v44 = vld [vmem:[%s6286_s29 + $0x94] ss:$8 sps:$4 sm:$0xff]   ;;  %v5459_v46 = vld [vmem:[%s6286_s29 + $0x90] ss:$8 sps:$4 sm:$0xff]  }
  0x1b   : > { %3623 = vmatpush1.bf16.msra.mxu1 %v5417_v18  ;;  %4047 = vmatpush1.bf16.msra.mxu0 %v5418_v19  ;;  %v5454_v43 = vld [vmem:[%s6286_s29 + $0x880] ss:$8 sps:$4 sm:$0xff]   ;;  %v5457_v45 = vld [vmem:[%s6286_s29 + $0x894] ss:$8 sps:$4 sm:$0xff]   ;;  %v5460_v47 = vld [vmem:[%s6286_s29 + $0x890] ss:$8 sps:$4 sm:$0xff]  }
  0x1c   : > { %3624 = vmatprep.subr.bf16.mxu1 %v5419_v20  ;;  %4048 = vmatprep.subr.bf16.mxu0 %v5421_v21  ;;  %v5461_v48 = vld [vmem:[%s6286_s29 + $0xa4] ss:$8 sps:$4 sm:$0xff]   ;;  %v5465_v50 = vld [vmem:[%s6286_s29 + $0xa0] ss:$8 sps:$4 sm:$0xff]   ;;  %v5467_v52 = vld [vmem:[%s6286_s29 + $0xb4] ss:$8 sps:$4 sm:$0xff]  }
  0x1d   : > { %v5463_v49 = vld [vmem:[%s6286_s29 + $0x8a4] ss:$8 sps:$4 sm:$0xff]   ;;  %v5466_v51 = vld [vmem:[%s6286_s29 + $0x8a0] ss:$8 sps:$4 sm:$0xff]   ;;  %v5469_v53 = vld [vmem:[%s6286_s29 + $0x8b4] ss:$8 sps:$4 sm:$0xff]  }
  0x1e   : > { %v5471_v54 = vld [vmem:[%s6286_s29 + $0xb0] ss:$8 sps:$4 sm:$0xff]   ;;  %v5473_v56 = vld [vmem:[%s6286_s29 + $0xc4] ss:$8 sps:$4 sm:$0xff]   ;;  %v5477_v58 = vld [vmem:[%s6286_s29 + $0xc0] ss:$8 sps:$4 sm:$0xff]  }
  0x1f   : > { %3625 = vmatpush1.bf16.msra.mxu1 %v5423_v22  ;;  %4049 = vmatpush1.bf16.msra.mxu0 %v5424_v23  ;;  %v5472_v55 = vld [vmem:[%s6286_s29 + $0x8b0] ss:$8 sps:$4 sm:$0xff]   ;;  %v5475_v57 = vld [vmem:[%s6286_s29 + $0x8c4] ss:$8 sps:$4 sm:$0xff]   ;;  %v5478_v59 = vld [vmem:[%s6286_s29 + $0x8c0] ss:$8 sps:$4 sm:$0xff]  }
  0x20   : > { %3626 = vmatprep.subr.bf16.mxu1 %v5425_v24  ;;  %4050 = vmatprep.subr.bf16.mxu0 %v5427_v25  ;;  %v5479_v60 = vld [vmem:[%s6286_s29 + $0xd4] ss:$8 sps:$4 sm:$0xff]   ;;  %v5483_v62 = vld [vmem:[%s6286_s29 + $0xd0] ss:$8 sps:$4 sm:$0xff]   ;;  %v5485_v4 = vld [vmem:[%s6286_s29 + $0xe4] ss:$8 sps:$4 sm:$0xff]  }
  0x21   : > { %v5481_v61 = vld [vmem:[%s6286_s29 + $0x8d4] ss:$8 sps:$4 sm:$0xff]   ;;  %v5484_v63 = vld [vmem:[%s6286_s29 + $0x8d0] ss:$8 sps:$4 sm:$0xff]   ;;  %v5487_v6 = vld [vmem:[%s6286_s29 + $0x8e4] ss:$8 sps:$4 sm:$0xff]  }
  0x22   : > { %v5489_v8 = vld [vmem:[%s6286_s29 + $0xe0] ss:$8 sps:$4 sm:$0xff]   ;;  %v5491_v10 = vld [vmem:[%s6286_s29 + $0xf4] ss:$8 sps:$4 sm:$0xff]   ;;  %v5495_v12 = vld [vmem:[%s6286_s29 + $0xf0] ss:$8 sps:$4 sm:$0xff]  }
  0x23   : > { %3627 = vmatpush1.bf16.msra.mxu1 %v5429_v26  ;;  %4051 = vmatpush1.bf16.msra.mxu0 %v5430_v27  ;;  %v5490_v9 = vld [vmem:[%s6286_s29 + $0x8e0] ss:$8 sps:$4 sm:$0xff]   ;;  %v5493_v11 = vld [vmem:[%s6286_s29 + $0x8f4] ss:$8 sps:$4 sm:$0xff]   ;;  %v5496_v13 = vld [vmem:[%s6286_s29 + $0x8f0] ss:$8 sps:$4 sm:$0xff]  }
  0x24   : > { %3628 = vmatprep.subr.bf16.mxu1 %v5431_v28  ;;  %4052 = vmatprep.subr.bf16.mxu0 %v5433_v29  ;;  %v5499_v14 = vld [vmem:[%s6286_s29 + $0x104] ss:$8 sps:$4 sm:$0xff]   ;;  %v5497_v18 = vld [vmem:[%s6286_s29 + $0x100] ss:$8 sps:$4 sm:$0xff]   ;;  %v5505_v20 = vld [vmem:[%s6286_s29 + $0x114] ss:$8 sps:$4 sm:$0xff]  }
  0x25   : > { %v5502_v15 = vld [vmem:[%s6286_s29 + $0x904] ss:$8 sps:$4 sm:$0xff]   ;;  %v5500_v19 = vld [vmem:[%s6286_s29 + $0x900] ss:$8 sps:$4 sm:$0xff]   ;;  %v5508_v21 = vld [vmem:[%s6286_s29 + $0x914] ss:$8 sps:$4 sm:$0xff]  }
  0x26   : > { %v191_v16 = vld [vmem:[%s7143_s0 + $0x100] sm:$0xff]  ;;  %v5503_v23 = vld [vmem:[%s6286_s29 + $0x110] ss:$8 sps:$4 sm:$0xff]   ;;  %v5517_v2 = vld [vmem:[%s6286_s29 + $0x134] ss:$8 sps:$4 sm:$0xff]   ;;  %s5240_s18 = sshll.u32 (%p6256_p3), %s6199_s11, 3 }
  0x27   : > { %3629 = vmatpush1.bf16.msra.mxu1 %v5435_v30  ;;  %4053 = vmatpush1.bf16.msra.mxu0 %v5436_v31  ;;  %v207_v17 = vld [vmem:[%s7143_s0 + $0x180] sm:$0xff]  ;;  %v5506_v24 = vld [vmem:[%s6286_s29 + $0x910] ss:$8 sps:$4 sm:$0xff]   ;;  %v5520_v5 = vld [vmem:[%s6286_s29 + $0x934] ss:$8 sps:$4 sm:$0xff]   ;;  %s4530_s22 = scalar_lea.vmem (%p6256_p3), %s7145_s2, %s5240_s18 }
  0x28   : > { %3630 = vmatprep.subr.bf16.mxu1 %v5437_v32  ;;  %4054 = vmatprep.subr.bf16.mxu0 %v5439_v33  ;;  %v4683_v22 = vcombine.high %v191_v16, %v207_v17  ;;  %v5511_v25 = vld [vmem:[%s6286_s29 + $0x124] ss:$8 sps:$4 sm:$0xff]   ;;  %v5509_v0 = vld [vmem:[%s6286_s29 + $0x120] ss:$8 sps:$4 sm:$0xff]   ;;  %v5518_v27 = vld [vmem:[%s6286_s29 + $0x930] ss:$8 sps:$4 sm:$0xff]  }
  0x29   : > { %v5514_v26 = vld [vmem:[%s6286_s29 + $0x924] ss:$8 sps:$4 sm:$0xff]   ;;  %v5512_v1 = vld [vmem:[%s6286_s29 + $0x920] ss:$8 sps:$4 sm:$0xff]   ;;  %v5529_v32 = vld [vmem:[%s6286_s29 + $0x154] ss:$8 sps:$4 sm:$0xff]  }
  0x2a   : > { %v5523_v28 = vld [vmem:[%s6286_s29 + $0x144] ss:$8 sps:$4 sm:$0xff]   ;;  %v5521_v30 = vld [vmem:[%s6286_s29 + $0x140] ss:$8 sps:$4 sm:$0xff]   ;;  %v5532_v33 = vld [vmem:[%s6286_s29 + $0x954] ss:$8 sps:$4 sm:$0xff]  }
  0x2b   : > { %3631 = vmatpush1.bf16.msra.mxu1 %v5441_v34  ;;  %4055 = vmatpush1.bf16.msra.mxu0 %v5442_v35  ;;  %v5526_v29 = vld [vmem:[%s6286_s29 + $0x944] ss:$8 sps:$4 sm:$0xff]   ;;  %v5524_v31 = vld [vmem:[%s6286_s29 + $0x940] ss:$8 sps:$4 sm:$0xff]  }
  0x2c   : > { %3632 = vmatprep.subr.bf16.mxu1 %v5443_v36  ;;  %4056 = vmatprep.subr.bf16.mxu0 %v5445_v37  ;;  %v199_v34 = vld [vmem:[%s7143_s0 + $0x140] sm:$0xff] }
  0x2d   : > { %v215_v35 = vld [vmem:[%s7143_s0 + $0x1c0] sm:$0xff] }
  0x2e   : > { %v4699_v36 = vcombine.high %v199_v34, %v215_v35  ;;  %v4698_v37 = vcombine.low %v199_v34, %v215_v35 }
  0x2f   : > { %3633 = vmatpush1.bf16.msra.mxu1 %v5447_v38  ;;  %4057 = vmatpush1.bf16.msra.mxu0 %v5448_v39  ;;  %v5527_v38 = vld [vmem:[%s6286_s29 + $0x150] ss:$8 sps:$4 sm:$0xff]  }
  0x30   : > { %3634 = vmatprep.subr.bf16.mxu1 %v5449_v40  ;;  %4058 = vmatprep.subr.bf16.mxu0 %v5451_v41  ;;  %v5530_v39 = vld [vmem:[%s6286_s29 + $0x950] ss:$8 sps:$4 sm:$0xff]   ;;  %v5535_v40 = vld [vmem:[%s6286_s29 + $0x164] ss:$8 sps:$4 sm:$0xff]  }
  0x31   : > { %v5538_v41 = vld [vmem:[%s6286_s29 + $0x964] ss:$8 sps:$4 sm:$0xff]  }
  0x33   : > { %3635 = vmatpush1.bf16.msra.mxu1 %v5453_v42  ;;  %4059 = vmatpush1.bf16.msra.mxu0 %v5454_v43  ;;  %v6412_v42 = vld [vmem:[%s7143_s0 + $0x8] sm:$0xff] }
  0x34   : > { %3636 = vmatprep.subr.bf16.mxu1 %v5455_v44  ;;  %4060 = vmatprep.subr.bf16.mxu0 %v5457_v45  ;;  %v6417_v43 = vld [vmem:[%s7143_s0 + $0x88] sm:$0xff] }
  0x35   : > { %v5533_v44 = vld [vmem:[%s6286_s29 + $0x160] ss:$8 sps:$4 sm:$0xff]  }
  0x36   : > { %v5536_v45 = vld [vmem:[%s6286_s29 + $0x960] ss:$8 sps:$4 sm:$0xff]  }
  0x37   : > { %3637 = vmatpush1.bf16.msra.mxu1 %v5459_v46  ;;  %4061 = vmatpush1.bf16.msra.mxu0 %v5460_v47  ;;  %v4653_v46 = vcombine.high %v6412_v42, %v6417_v43  ;;  %v6426_v47 = vld [vmem:[%s7143_s0 + $0x48] sm:$0xff] }
  0x38   : > { %3638 = vmatprep.subr.bf16.mxu1 %v5461_v48  ;;  %4062 = vmatprep.subr.bf16.mxu0 %v5463_v49  ;;  %v6431_v48 = vld [vmem:[%s7143_s0 + $0xc8] sm:$0xff]  ;;  %v5541_v49 = vld [vmem:[%s6286_s29 + $0x174] ss:$8 sps:$4 sm:$0xff]  }
  0x3b   : > { %3639 = vmatpush1.bf16.msra.mxu1 %v5465_v50  ;;  %4063 = vmatpush1.bf16.msra.mxu0 %v5466_v51  ;;  %v5544_v50 = vld [vmem:[%s6286_s29 + $0x974] ss:$8 sps:$4 sm:$0xff]   ;;  %v4669_v51 = vcombine.high %v6426_v47, %v6431_v48 }
  0x3c   : > { %3640 = vmatprep.subr.bf16.mxu1 %v5467_v52  ;;  %4064 = vmatprep.subr.bf16.mxu0 %v5469_v53  ;;  %v5539_v52 = vld [vmem:[%s6286_s29 + $0x170] ss:$8 sps:$4 sm:$0xff]  }
  0x3d   : > { %v5542_v53 = vld [vmem:[%s6286_s29 + $0x970] ss:$8 sps:$4 sm:$0xff]  }
  0x3f   : > { %3641 = vmatpush1.bf16.msra.mxu1 %v5471_v54  ;;  %4065 = vmatpush1.bf16.msra.mxu0 %v5472_v55  ;;  %v5547_v54 = vld [vmem:[%s6286_s29 + $0x184] ss:$8 sps:$4 sm:$0xff]  }
  0x40   : > { %3642 = vmatprep.subr.bf16.mxu1 %v5473_v56  ;;  %4066 = vmatprep.subr.bf16.mxu0 %v5475_v57  ;;  %v5550_v55 = vld [vmem:[%s6286_s29 + $0x984] ss:$8 sps:$4 sm:$0xff]   ;;  %v5545_v56 = vld [vmem:[%s6286_s29 + $0x180] ss:$8 sps:$4 sm:$0xff]  }
  0x41   : > { %v5548_v57 = vld [vmem:[%s6286_s29 + $0x980] ss:$8 sps:$4 sm:$0xff]  }
  0x43   : > { %3643 = vmatpush1.bf16.msra.mxu1 %v5477_v58  ;;  %4067 = vmatpush1.bf16.msra.mxu0 %v5478_v59  ;;  %v5553_v58 = vld [vmem:[%s6286_s29 + $0x194] ss:$8 sps:$4 sm:$0xff]  }
  0x44   : > { %3644 = vmatprep.subr.bf16.mxu1 %v5479_v60  ;;  %4068 = vmatprep.subr.bf16.mxu0 %v5481_v61  ;;  %v5556_v59 = vld [vmem:[%s6286_s29 + $0x994] ss:$8 sps:$4 sm:$0xff]   ;;  %v5551_v60 = vld [vmem:[%s6286_s29 + $0x190] ss:$8 sps:$4 sm:$0xff]  }
  0x45   : > { %v5554_v61 = vld [vmem:[%s6286_s29 + $0x990] ss:$8 sps:$4 sm:$0xff]  }
  0x47   : > { %3645 = vmatpush1.bf16.msra.mxu1 %v5483_v62  ;;  %4069 = vmatpush1.bf16.msra.mxu0 %v5484_v63  ;;  %v5559_v62 = vld [vmem:[%s6286_s29 + $0x1a4] ss:$8 sps:$4 sm:$0xff]  }
  0x48   : > { %3646 = vmatprep.subr.bf16.mxu1 %v5485_v4  ;;  %4070 = vmatprep.subr.bf16.mxu0 %v5487_v6  ;;  %v5562_v63 = vld [vmem:[%s6286_s29 + $0x9a4] ss:$8 sps:$4 sm:$0xff]   ;;  %v5557_v4 = vld [vmem:[%s6286_s29 + $0x1a0] ss:$8 sps:$4 sm:$0xff]  }
  0x49   : > { %v5560_v6 = vld [vmem:[%s6286_s29 + $0x9a0] ss:$8 sps:$4 sm:$0xff]  }
  0x4b   : > { %3647 = vmatpush1.bf16.msra.mxu1 %v5489_v8  ;;  %4071 = vmatpush1.bf16.msra.mxu0 %v5490_v9  ;;  %v5565_v8 = vld [vmem:[%s6286_s29 + $0x1b4] ss:$8 sps:$4 sm:$0xff]  }
  0x4c   : > { %3648 = vmatprep.subr.bf16.mxu1 %v5491_v10  ;;  %4072 = vmatprep.subr.bf16.mxu0 %v5493_v11  ;;  %v5568_v9 = vld [vmem:[%s6286_s29 + $0x9b4] ss:$8 sps:$4 sm:$0xff]   ;;  %v5563_v10 = vld [vmem:[%s6286_s29 + $0x1b0] ss:$8 sps:$4 sm:$0xff]  }
  0x4d   : > { %v5566_v11 = vld [vmem:[%s6286_s29 + $0x9b0] ss:$8 sps:$4 sm:$0xff]  }
  0x4f   : > { %3649 = vmatpush1.bf16.msra.mxu1 %v5495_v12  ;;  %4073 = vmatpush1.bf16.msra.mxu0 %v5496_v13  ;;  %v5571_v12 = vld [vmem:[%s6286_s29 + $0x1c4] ss:$8 sps:$4 sm:$0xff]  }
  0x50   : > { %3671 = vmatprep.subr.bf16.mxu1 %v5499_v14  ;;  %4095 = vmatprep.subr.bf16.mxu0 %v5502_v15  ;;  %v5574_v13 = vld [vmem:[%s6286_s29 + $0x9c4] ss:$8 sps:$4 sm:$0xff]   ;;  %v5569_v14 = vld [vmem:[%s6286_s29 + $0x1c0] ss:$8 sps:$4 sm:$0xff]  }
  0x51   : > { %v5572_v15 = vld [vmem:[%s6286_s29 + $0x9c0] ss:$8 sps:$4 sm:$0xff]  }
  0x52   : > { %3651 = vmatmul.mubr.bf16.vlgmr.msra.gmra.mrb[0].mxu1 %v4650_v3  ;;  %4075 = vmatmul.mubr.bf16.vlgmr.msra.gmra.mrb[0].mxu0 %v4666_v7  ;;  %v4682_v3 = vcombine.low %v191_v16, %v207_v17  ;;  %v5515_v7 = vld [vmem:[%s6286_s29 + $0x130] ss:$8 sps:$4 sm:$0xff]   ;;  %v5577_v16 = vld [vmem:[%s6286_s29 + $0x1d4] ss:$8 sps:$4 sm:$0xff]  }
  0x53   : > { %3672 = vmatpush1.bf16.msra.mxu1 %v5497_v18  ;;  %4096 = vmatpush1.bf16.msra.mxu0 %v5500_v19  ;;  %v5580_v17 = vld [vmem:[%s6286_s29 + $0x9d4] ss:$8 sps:$4 sm:$0xff]   ;;  %v5575_v18 = vld [vmem:[%s6286_s29 + $0x1d0] ss:$8 sps:$4 sm:$0xff]  }
  0x54   : > { %3673 = vmatprep.subr.bf16.mxu1 %v5505_v20  ;;  %4097 = vmatprep.subr.bf16.mxu0 %v5508_v21  ;;  %v5578_v19 = vld [vmem:[%s6286_s29 + $0x9d0] ss:$8 sps:$4 sm:$0xff]   ;;  %v5583_v20 = vld [vmem:[%s6286_s29 + $0x1e4] ss:$8 sps:$4 sm:$0xff]  }
  0x55   : > { %3660 = vmatprep.mubr.bf16.mxu1 %v4683_v22  ;;  %4084 = vmatprep.mubr.bf16.mxu0 %v4699_v36  ;;  %v5586_v21 = vld [vmem:[%s6286_s29 + $0x9e4] ss:$8 sps:$4 sm:$0xff]   ;;  %v5581_v22 = vld [vmem:[%s6286_s29 + $0x1e0] ss:$8 sps:$4 sm:$0xff]   ;;  %v5599_v36 = vld [vmem:[%s6286_s29 + $0x210] ss:$8 sps:$4 sm:$0xff]  }
  0x57   : > { %3674 = vmatpush1.bf16.msra.mxu1 %v5503_v23  ;;  %4098 = vmatpush1.bf16.msra.mxu0 %v5506_v24  ;;  %v5584_v23 = vld [vmem:[%s6286_s29 + $0x9e0] ss:$8 sps:$4 sm:$0xff]   ;;  %v5589_v24 = vld [vmem:[%s6286_s29 + $0x1f4] ss:$8 sps:$4 sm:$0xff]  }
  0x58   : > { %3675 = vmatprep.subr.bf16.mxu1 %v5511_v25  ;;  %4099 = vmatprep.subr.bf16.mxu0 %v5514_v26  ;;  %v5592_v25 = vld [vmem:[%s6286_s29 + $0x9f4] ss:$8 sps:$4 sm:$0xff]   ;;  %v5587_v26 = vld [vmem:[%s6286_s29 + $0x1f0] ss:$8 sps:$4 sm:$0xff]  }
  0x5a   : > { %3661 = vmatmul.mubr.bf16.gmra.mrb[4].mxu1 %v4682_v3  ;;  %4085 = vmatmul.mubr.bf16.gmra.mrb[4].mxu0 %v4698_v37  ;;  %v5598_v3 = vld [vmem:[%s6286_s29 + $0xa04] ss:$8 sps:$4 sm:$0xff]   ;;  %v5602_v37 = vld [vmem:[%s6286_s29 + $0xa10] ss:$8 sps:$4 sm:$0xff]  }
  0x5b   : > { %3676 = vmatpush1.bf16.msra.mxu1 %v5509_v0  ;;  %4100 = vmatpush1.bf16.msra.mxu0 %v5512_v1  ;;  %v5590_v0 = vld [vmem:[%s6286_s29 + $0x9f0] ss:$8 sps:$4 sm:$0xff]   ;;  %v5595_v1 = vld [vmem:[%s6286_s29 + $0x204] ss:$8 sps:$4 sm:$0xff]  }
  0x5c   : > { %3677 = vmatprep.subr.bf16.mxu1 %v5517_v2  ;;  %4101 = vmatprep.subr.bf16.mxu0 %v5520_v5  ;;  %v192_v2 = vld [vmem:[%s7143_s0 + $0x108] sm:$0xff] }
  0x5d   : > { %3703 = vmatprep.mubr.bf16.mxu1 %v4653_v46  ;;  %4127 = vmatprep.mubr.bf16.mxu0 %v4669_v51  ;;  %v208_v5 = vld [vmem:[%s7143_s0 + $0x188] sm:$0xff] }
  0x5e   : > { %v4685_v34 = vcombine.high %v192_v2, %v208_v5  ;;  %v5605_v46 = vld [vmem:[%s6286_s29 + $0x220] ss:$8 sps:$4 sm:$0xff]  }
  0x5f   : > { %3678 = vmatpush1.bf16.msra.mxu1 %v5515_v7  ;;  %4102 = vmatpush1.bf16.msra.mxu0 %v5518_v27  ;;  %v200_v7 = vld [vmem:[%s7143_s0 + $0x148] sm:$0xff]  ;;  %v4652_v27 = vcombine.low %v6412_v42, %v6417_v43  ;;  %v6510_v42 = vld [vmem:[%s7143_s0 + $0x50] sm:$0xff]  ;;  %v4684_v43 = vcombine.low %v192_v2, %v208_v5 }
  0x60   : > { %3679 = vmatprep.subr.bf16.mxu1 %v5523_v28  ;;  %4103 = vmatprep.subr.bf16.mxu0 %v5526_v29  ;;  %v4668_v28 = vcombine.low %v6426_v47, %v6431_v48  ;;  %v216_v29 = vld [vmem:[%s7143_s0 + $0x1c8] sm:$0xff]  ;;  %v5613_v48 = vld [vmem:[%s6286_s29 + $0x234] ss:$8 sps:$4 sm:$0xff]  }
  0x61   : > { %v4701_v35 = vcombine.high %v200_v7, %v216_v29  ;;  %v5608_v47 = vld [vmem:[%s6286_s29 + $0xa20] ss:$8 sps:$4 sm:$0xff]  }
  0x62   : > { %v5665_v2 = vld [vmem:[%s6286_s29 + $0x2c0] ss:$8 sps:$4 sm:$0xff]  }
  0x63   : > { %3680 = vmatpush1.bf16.msra.mxu1 %v5521_v30  ;;  %4104 = vmatpush1.bf16.msra.mxu0 %v5524_v31  ;;  %v5593_v30 = vld [vmem:[%s6286_s29 + $0x200] ss:$8 sps:$4 sm:$0xff]  }
  0x64   : > { %3681 = vmatprep.subr.bf16.mxu1 %v5529_v32  ;;  %4105 = vmatprep.subr.bf16.mxu0 %v5532_v33  ;;  %v5596_v31 = vld [vmem:[%s6286_s29 + $0xa00] ss:$8 sps:$4 sm:$0xff]   ;;  %v5601_v32 = vld [vmem:[%s6286_s29 + $0x214] ss:$8 sps:$4 sm:$0xff]  }
  0x65   : > { %v5604_v33 = vld [vmem:[%s6286_s29 + $0xa14] ss:$8 sps:$4 sm:$0xff]   ;;  %v5668_v5 = vld [vmem:[%s6286_s29 + $0xac0] ss:$8 sps:$4 sm:$0xff]  }
  0x67   : > { %3682 = vmatpush1.bf16.msra.mxu1 %v5527_v38  ;;  %4106 = vmatpush1.bf16.msra.mxu0 %v5530_v39  ;;  %v5607_v38 = vld [vmem:[%s6286_s29 + $0x224] ss:$8 sps:$4 sm:$0xff]  }
  0x68   : > { %3683 = vmatprep.subr.bf16.mxu1 %v5535_v40  ;;  %4107 = vmatprep.subr.bf16.mxu0 %v5538_v41  ;;  %v5610_v39 = vld [vmem:[%s6286_s29 + $0xa24] ss:$8 sps:$4 sm:$0xff]   ;;  %v6500_v40 = vld [vmem:[%s7143_s0 + $0x10] sm:$0xff] }
  0x69   : > { %v6505_v41 = vld [vmem:[%s7143_s0 + $0x90] sm:$0xff] }
  0x6b   : > { %3684 = vmatpush1.bf16.msra.mxu1 %v5533_v44  ;;  %4108 = vmatpush1.bf16.msra.mxu0 %v5536_v45  ;;  %v4700_v44 = vcombine.low %v200_v7, %v216_v29  ;;  %v6515_v45 = vld [vmem:[%s7143_s0 + $0xd0] sm:$0xff] }
  0x6c   : > { %3685 = vmatprep.subr.bf16.mxu1 %v5541_v49  ;;  %4109 = vmatprep.subr.bf16.mxu0 %v5544_v50  ;;  %v5616_v49 = vld [vmem:[%s6286_s29 + $0xa34] ss:$8 sps:$4 sm:$0xff]   ;;  %v4655_v50 = vcombine.high %v6500_v40, %v6505_v41  ;;  %v4671_v51 = vcombine.high %v6510_v42, %v6515_v45  ;;  %v5674_v29 = vld [vmem:[%s6286_s29 + $0xad0] ss:$8 sps:$4 sm:$0xff]  }
  0x6d   : > { %v5673_v7 = vld [vmem:[%s6286_s29 + $0x2d4] ss:$8 sps:$4 sm:$0xff]  }
  0x6f   : > { %3686 = vmatpush1.bf16.msra.mxu1 %v5539_v52  ;;  %4110 = vmatpush1.bf16.msra.mxu0 %v5542_v53  ;;  %v5611_v52 = vld [vmem:[%s6286_s29 + $0x230] ss:$8 sps:$4 sm:$0xff]  }
  0x70   : > { %3687 = vmatprep.subr.bf16.mxu1 %v5547_v54  ;;  %4111 = vmatprep.subr.bf16.mxu0 %v5550_v55  ;;  %v5614_v53 = vld [vmem:[%s6286_s29 + $0xa30] ss:$8 sps:$4 sm:$0xff]   ;;  %v5619_v54 = vld [vmem:[%s6286_s29 + $0x244] ss:$8 sps:$4 sm:$0xff]  }
  0x71   : > { %v5622_v55 = vld [vmem:[%s6286_s29 + $0xa44] ss:$8 sps:$4 sm:$0xff]  }
  0x73   : > { %3688 = vmatpush1.bf16.msra.mxu1 %v5545_v56  ;;  %4112 = vmatpush1.bf16.msra.mxu0 %v5548_v57  ;;  %v5617_v56 = vld [vmem:[%s6286_s29 + $0x240] ss:$8 sps:$4 sm:$0xff]  }
  0x74   : > { %3689 = vmatprep.subr.bf16.mxu1 %v5553_v58  ;;  %4113 = vmatprep.subr.bf16.mxu0 %v5556_v59  ;;  %v5620_v57 = vld [vmem:[%s6286_s29 + $0xa40] ss:$8 sps:$4 sm:$0xff]   ;;  %v5625_v58 = vld [vmem:[%s6286_s29 + $0x254] ss:$8 sps:$4 sm:$0xff]  }
  0x75   : > { %v5628_v59 = vld [vmem:[%s6286_s29 + $0xa54] ss:$8 sps:$4 sm:$0xff]  }
  0x77   : > { %3690 = vmatpush1.bf16.msra.mxu1 %v5551_v60  ;;  %4114 = vmatpush1.bf16.msra.mxu0 %v5554_v61  ;;  %v5623_v60 = vld [vmem:[%s6286_s29 + $0x250] ss:$8 sps:$4 sm:$0xff]  }
  0x78   : > { %3691 = vmatprep.subr.bf16.mxu1 %v5559_v62  ;;  %4115 = vmatprep.subr.bf16.mxu0 %v5562_v63  ;;  %v5626_v61 = vld [vmem:[%s6286_s29 + $0xa50] ss:$8 sps:$4 sm:$0xff]   ;;  %v5631_v62 = vld [vmem:[%s6286_s29 + $0x264] ss:$8 sps:$4 sm:$0xff]  }
  0x79   : > { %v5634_v63 = vld [vmem:[%s6286_s29 + $0xa64] ss:$8 sps:$4 sm:$0xff]  }
  0x7b   : > { %3692 = vmatpush1.bf16.msra.mxu1 %v5557_v4  ;;  %4116 = vmatpush1.bf16.msra.mxu0 %v5560_v6  ;;  %v5629_v4 = vld [vmem:[%s6286_s29 + $0x260] ss:$8 sps:$4 sm:$0xff]  }
  0x7c   : > { %3693 = vmatprep.subr.bf16.mxu1 %v5565_v8  ;;  %4117 = vmatprep.subr.bf16.mxu0 %v5568_v9  ;;  %v5632_v6 = vld [vmem:[%s6286_s29 + $0xa60] ss:$8 sps:$4 sm:$0xff]   ;;  %v5637_v8 = vld [vmem:[%s6286_s29 + $0x274] ss:$8 sps:$4 sm:$0xff]  }
  0x7d   : > { %v5640_v9 = vld [vmem:[%s6286_s29 + $0xa74] ss:$8 sps:$4 sm:$0xff]  }
  0x7f   : > { %3694 = vmatpush1.bf16.msra.mxu1 %v5563_v10  ;;  %4118 = vmatpush1.bf16.msra.mxu0 %v5566_v11  ;;  %v5635_v10 = vld [vmem:[%s6286_s29 + $0x270] ss:$8 sps:$4 sm:$0xff]  }
  0x80   : > { %3695 = vmatprep.subr.bf16.mxu1 %v5571_v12  ;;  %4119 = vmatprep.subr.bf16.mxu0 %v5574_v13  ;;  %v5638_v11 = vld [vmem:[%s6286_s29 + $0xa70] ss:$8 sps:$4 sm:$0xff]   ;;  %v5643_v12 = vld [vmem:[%s6286_s29 + $0x284] ss:$8 sps:$4 sm:$0xff]  }
  0x81   : > { %v5646_v13 = vld [vmem:[%s6286_s29 + $0xa84] ss:$8 sps:$4 sm:$0xff]  }
  0x83   : > { %3696 = vmatpush1.bf16.msra.mxu1 %v5569_v14  ;;  %4120 = vmatpush1.bf16.msra.mxu0 %v5572_v15  ;;  %v5641_v14 = vld [vmem:[%s6286_s29 + $0x280] ss:$8 sps:$4 sm:$0xff]  }
  0x84   : > { %3697 = vmatprep.subr.bf16.mxu1 %v5577_v16  ;;  %4121 = vmatprep.subr.bf16.mxu0 %v5580_v17  ;;  %v5644_v15 = vld [vmem:[%s6286_s29 + $0xa80] ss:$8 sps:$4 sm:$0xff]   ;;  %v5649_v16 = vld [vmem:[%s6286_s29 + $0x294] ss:$8 sps:$4 sm:$0xff]  }
  0x85   : > { %v5652_v17 = vld [vmem:[%s6286_s29 + $0xa94] ss:$8 sps:$4 sm:$0xff]  }
  0x87   : > { %3698 = vmatpush1.bf16.msra.mxu1 %v5575_v18  ;;  %4122 = vmatpush1.bf16.msra.mxu0 %v5578_v19  ;;  %v5647_v18 = vld [vmem:[%s6286_s29 + $0x290] ss:$8 sps:$4 sm:$0xff]  }
  0x88   : > { %3699 = vmatprep.subr.bf16.mxu1 %v5583_v20  ;;  %4123 = vmatprep.subr.bf16.mxu0 %v5586_v21  ;;  %v5650_v19 = vld [vmem:[%s6286_s29 + $0xa90] ss:$8 sps:$4 sm:$0xff]   ;;  %v5655_v20 = vld [vmem:[%s6286_s29 + $0x2a4] ss:$8 sps:$4 sm:$0xff]  }
  0x89   : > { %v5658_v21 = vld [vmem:[%s6286_s29 + $0xaa4] ss:$8 sps:$4 sm:$0xff]  }
  0x8b   : > { %3700 = vmatpush1.bf16.msra.mxu1 %v5581_v22  ;;  %4124 = vmatpush1.bf16.msra.mxu0 %v5584_v23  ;;  %v5653_v22 = vld [vmem:[%s6286_s29 + $0x2a0] ss:$8 sps:$4 sm:$0xff]  }
  0x8c   : > { %3701 = vmatprep.subr.bf16.mxu1 %v5589_v24  ;;  %4125 = vmatprep.subr.bf16.mxu0 %v5592_v25  ;;  %v5656_v23 = vld [vmem:[%s6286_s29 + $0xaa0] ss:$8 sps:$4 sm:$0xff]   ;;  %v5661_v24 = vld [vmem:[%s6286_s29 + $0x2b4] ss:$8 sps:$4 sm:$0xff]  }
  0x8d   : > { %v5664_v25 = vld [vmem:[%s6286_s29 + $0xab4] ss:$8 sps:$4 sm:$0xff]  }
  0x8f   : > { %3702 = vmatpush1.bf16.msra.mxu1 %v5587_v26  ;;  %4126 = vmatpush1.bf16.msra.mxu0 %v5590_v0  ;;  %v5659_v26 = vld [vmem:[%s6286_s29 + $0x2b0] ss:$8 sps:$4 sm:$0xff]  }
  0x90   : > { %3724 = vmatprep.subr.bf16.mxu1 %v5595_v1  ;;  %4148 = vmatprep.subr.bf16.mxu0 %v5598_v3  ;;  %v5662_v0 = vld [vmem:[%s6286_s29 + $0xab0] ss:$8 sps:$4 sm:$0xff]   ;;  %v5667_v1 = vld [vmem:[%s6286_s29 + $0x2c4] ss:$8 sps:$4 sm:$0xff]  }
  0x91   : > { %v5670_v3 = vld [vmem:[%s6286_s29 + $0xac4] ss:$8 sps:$4 sm:$0xff]  }
  0x92   : > { %3704 = vmatmul.mubr.bf16.vlgmr.msra.gmra.mrb[0].mxu1 %v4652_v27  ;;  %4128 = vmatmul.mubr.bf16.vlgmr.msra.gmra.mrb[0].mxu0 %v4668_v28  ;;  %v5676_v27 = vld [vmem:[%s6286_s29 + $0xad4] ss:$8 sps:$4 sm:$0xff]   ;;  %v5671_v28 = vld [vmem:[%s6286_s29 + $0x2d0] ss:$8 sps:$4 sm:$0xff]  }
  0x93   : > { %3725 = vmatpush1.bf16.msra.mxu1 %v5593_v30  ;;  %4149 = vmatpush1.bf16.msra.mxu0 %v5596_v31  ;;  %v5679_v30 = vld [vmem:[%s6286_s29 + $0x2e4] ss:$8 sps:$4 sm:$0xff]  }
  0x94   : > { %3726 = vmatprep.subr.bf16.mxu1 %v5601_v32  ;;  %4150 = vmatprep.subr.bf16.mxu0 %v5604_v33  ;;  %v5682_v31 = vld [vmem:[%s6286_s29 + $0xae4] ss:$8 sps:$4 sm:$0xff]   ;;  %v5677_v32 = vld [vmem:[%s6286_s29 + $0x2e0] ss:$8 sps:$4 sm:$0xff]  }
  0x95   : > { %3713 = vmatprep.mubr.bf16.mxu1 %v4685_v34  ;;  %4137 = vmatprep.mubr.bf16.mxu0 %v4701_v35  ;;  %v5680_v33 = vld [vmem:[%s6286_s29 + $0xae0] ss:$8 sps:$4 sm:$0xff]   ;;  %v5685_v34 = vld [vmem:[%s6286_s29 + $0x2f4] ss:$8 sps:$4 sm:$0xff]  }
  0x96   : > { %v5688_v35 = vld [vmem:[%s6286_s29 + $0xaf4] ss:$8 sps:$4 sm:$0xff]  }
  0x97   : > { %3727 = vmatpush1.bf16.msra.mxu1 %v5599_v36  ;;  %4151 = vmatpush1.bf16.msra.mxu0 %v5602_v37  ;;  %v5683_v36 = vld [vmem:[%s6286_s29 + $0x2f0] ss:$8 sps:$4 sm:$0xff]  }
  0x98   : > { %3728 = vmatprep.subr.bf16.mxu1 %v5607_v38  ;;  %4152 = vmatprep.subr.bf16.mxu0 %v5610_v39  ;;  %v5686_v37 = vld [vmem:[%s6286_s29 + $0xaf0] ss:$8 sps:$4 sm:$0xff]   ;;  %v5691_v38 = vld [vmem:[%s6286_s29 + $0x304] ss:$8 sps:$4 sm:$0xff]  }
  0x99   : > { %v5694_v39 = vld [vmem:[%s6286_s29 + $0xb04] ss:$8 sps:$4 sm:$0xff]  }
  0x9a   : > { %3714 = vmatmul.mubr.bf16.gmra.mrb[4].mxu1 %v4684_v43  ;;  %4138 = vmatmul.mubr.bf16.gmra.mrb[4].mxu0 %v4700_v44  ;;  %v193_v43 = vld [vmem:[%s7143_s0 + $0x110] sm:$0xff] }
  0x9b   : > { %3729 = vmatpush1.bf16.msra.mxu1 %v5605_v46  ;;  %4153 = vmatpush1.bf16.msra.mxu0 %v5608_v47  ;;  %v209_v44 = vld [vmem:[%s7143_s0 + $0x190] sm:$0xff]  ;;  %v4654_v47 = vcombine.low %v6500_v40, %v6505_v41 }
  0x9c   : > { %3730 = vmatprep.subr.bf16.mxu1 %v5613_v48  ;;  %4154 = vmatprep.subr.bf16.mxu0 %v5616_v49  ;;  %v201_v46 = vld [vmem:[%s7143_s0 + $0x150] sm:$0xff]  ;;  %v4670_v48 = vcombine.low %v6510_v42, %v6515_v45  ;;  %v4687_v40 = vcombine.high %v193_v43, %v209_v44  ;;  %v5703_v45 = vld [vmem:[%s6286_s29 + $0x324] ss:$8 sps:$4 sm:$0xff]  }
  0x9d   : > { %3756 = vmatprep.mubr.bf16.mxu1 %v4655_v50  ;;  %4180 = vmatprep.mubr.bf16.mxu0 %v4671_v51  ;;  %v217_v49 = vld [vmem:[%s7143_s0 + $0x1d0] sm:$0xff]  ;;  %v5689_v50 = vld [vmem:[%s6286_s29 + $0x300] ss:$8 sps:$4 sm:$0xff]  }
  0x9e   : > { %v5692_v51 = vld [vmem:[%s6286_s29 + $0xb00] ss:$8 sps:$4 sm:$0xff]   ;;  %v4703_v41 = vcombine.high %v201_v46, %v217_v49  ;;  %v5698_v42 = vld [vmem:[%s6286_s29 + $0xb10] ss:$8 sps:$4 sm:$0xff]  }
  0x9f   : > { %3731 = vmatpush1.bf16.msra.mxu1 %v5611_v52  ;;  %4155 = vmatpush1.bf16.msra.mxu0 %v5614_v53  ;;  %v5697_v52 = vld [vmem:[%s6286_s29 + $0x314] ss:$8 sps:$4 sm:$0xff]  }
  0xa0   : > { %3732 = vmatprep.subr.bf16.mxu1 %v5619_v54  ;;  %4156 = vmatprep.subr.bf16.mxu0 %v5622_v55  ;;  %v5700_v53 = vld [vmem:[%s6286_s29 + $0xb14] ss:$8 sps:$4 sm:$0xff]   ;;  %v5695_v54 = vld [vmem:[%s6286_s29 + $0x310] ss:$8 sps:$4 sm:$0xff]   ;;  %v5706_v55 = vld [vmem:[%s6286_s29 + $0xb24] ss:$8 sps:$4 sm:$0xff]  }
  0xa3   : > { %3733 = vmatpush1.bf16.msra.mxu1 %v5617_v56  ;;  %4157 = vmatpush1.bf16.msra.mxu0 %v5620_v57  ;;  %v6604_v56 = vld [vmem:[%s7143_s0 + $0x18] sm:$0xff] }
  0xa4   : > { %3734 = vmatprep.subr.bf16.mxu1 %v5625_v58  ;;  %4158 = vmatprep.subr.bf16.mxu0 %v5628_v59  ;;  %v6609_v57 = vld [vmem:[%s7143_s0 + $0x98] sm:$0xff]  ;;  %v4686_v59 = vcombine.low %v193_v43, %v209_v44  ;;  %v5761_v43 = vld [vmem:[%s6286_s29 + $0x3c0] ss:$8 sps:$4 sm:$0xff]  }
  0xa5   : > { %v6614_v58 = vld [vmem:[%s7143_s0 + $0x58] sm:$0xff]  ;;  %v5764_v44 = vld [vmem:[%s6286_s29 + $0xbc0] ss:$8 sps:$4 sm:$0xff]  }
  0xa7   : > { %3735 = vmatpush1.bf16.msra.mxu1 %v5623_v60  ;;  %4159 = vmatpush1.bf16.msra.mxu0 %v5626_v61  ;;  %v4702_v60 = vcombine.low %v201_v46, %v217_v49  ;;  %v6619_v61 = vld [vmem:[%s7143_s0 + $0xd8] sm:$0xff] }
  0xa8   : > { %3736 = vmatprep.subr.bf16.mxu1 %v5631_v62  ;;  %4160 = vmatprep.subr.bf16.mxu0 %v5634_v63  ;;  %v5701_v62 = vld [vmem:[%s6286_s29 + $0x320] ss:$8 sps:$4 sm:$0xff]   ;;  %v5769_v46 = vld [vmem:[%s6286_s29 + $0x3d4] ss:$8 sps:$4 sm:$0xff]   ;;  %v5770_v49 = vld [vmem:[%s6286_s29 + $0xbd0] ss:$8 sps:$4 sm:$0xff]  }
  0xa9   : > { %v5704_v63 = vld [vmem:[%s6286_s29 + $0xb20] ss:$8 sps:$4 sm:$0xff]  }
  0xab   : > { %3737 = vmatpush1.bf16.msra.mxu1 %v5629_v4  ;;  %4161 = vmatpush1.bf16.msra.mxu0 %v5632_v6  ;;  %v5709_v4 = vld [vmem:[%s6286_s29 + $0x334] ss:$8 sps:$4 sm:$0xff]  }
  0xac   : > { %3738 = vmatprep.subr.bf16.mxu1 %v5637_v8  ;;  %4162 = vmatprep.subr.bf16.mxu0 %v5640_v9  ;;  %v5712_v6 = vld [vmem:[%s6286_s29 + $0xb34] ss:$8 sps:$4 sm:$0xff]   ;;  %v4657_v8 = vcombine.high %v6604_v56, %v6609_v57  ;;  %v4673_v9 = vcombine.high %v6614_v58, %v6619_v61 }
  0xaf   : > { %3739 = vmatpush1.bf16.msra.mxu1 %v5635_v10  ;;  %4163 = vmatpush1.bf16.msra.mxu0 %v5638_v11  ;;  %v5707_v10 = vld [vmem:[%s6286_s29 + $0x330] ss:$8 sps:$4 sm:$0xff]  }
  0xb0   : > { %3740 = vmatprep.subr.bf16.mxu1 %v5643_v12  ;;  %4164 = vmatprep.subr.bf16.mxu0 %v5646_v13  ;;  %v5710_v11 = vld [vmem:[%s6286_s29 + $0xb30] ss:$8 sps:$4 sm:$0xff]   ;;  %v5715_v12 = vld [vmem:[%s6286_s29 + $0x344] ss:$8 sps:$4 sm:$0xff]  }
  0xb1   : > { %v5718_v13 = vld [vmem:[%s6286_s29 + $0xb44] ss:$8 sps:$4 sm:$0xff]  }
  0xb3   : > { %3741 = vmatpush1.bf16.msra.mxu1 %v5641_v14  ;;  %4165 = vmatpush1.bf16.msra.mxu0 %v5644_v15  ;;  %v5713_v14 = vld [vmem:[%s6286_s29 + $0x340] ss:$8 sps:$4 sm:$0xff]  }
  0xb4   : > { %3742 = vmatprep.subr.bf16.mxu1 %v5649_v16  ;;  %4166 = vmatprep.subr.bf16.mxu0 %v5652_v17  ;;  %v5716_v15 = vld [vmem:[%s6286_s29 + $0xb40] ss:$8 sps:$4 sm:$0xff]   ;;  %v5721_v16 = vld [vmem:[%s6286_s29 + $0x354] ss:$8 sps:$4 sm:$0xff]  }
  0xb5   : > { %v5724_v17 = vld [vmem:[%s6286_s29 + $0xb54] ss:$8 sps:$4 sm:$0xff]  }
  0xb7   : > { %3743 = vmatpush1.bf16.msra.mxu1 %v5647_v18  ;;  %4167 = vmatpush1.bf16.msra.mxu0 %v5650_v19  ;;  %v5719_v18 = vld [vmem:[%s6286_s29 + $0x350] ss:$8 sps:$4 sm:$0xff]  }
  0xb8   : > { %3744 = vmatprep.subr.bf16.mxu1 %v5655_v20  ;;  %4168 = vmatprep.subr.bf16.mxu0 %v5658_v21  ;;  %v5722_v19 = vld [vmem:[%s6286_s29 + $0xb50] ss:$8 sps:$4 sm:$0xff]   ;;  %v5727_v20 = vld [vmem:[%s6286_s29 + $0x364] ss:$8 sps:$4 sm:$0xff]  }
  0xb9   : > { %v5730_v21 = vld [vmem:[%s6286_s29 + $0xb64] ss:$8 sps:$4 sm:$0xff]  }
  0xbb   : > { %3745 = vmatpush1.bf16.msra.mxu1 %v5653_v22  ;;  %4169 = vmatpush1.bf16.msra.mxu0 %v5656_v23  ;;  %v5725_v22 = vld [vmem:[%s6286_s29 + $0x360] ss:$8 sps:$4 sm:$0xff]  }
  0xbc   : > { %3746 = vmatprep.subr.bf16.mxu1 %v5661_v24  ;;  %4170 = vmatprep.subr.bf16.mxu0 %v5664_v25  ;;  %v5728_v23 = vld [vmem:[%s6286_s29 + $0xb60] ss:$8 sps:$4 sm:$0xff]   ;;  %v5733_v24 = vld [vmem:[%s6286_s29 + $0x374] ss:$8 sps:$4 sm:$0xff]  }
  0xbd   : > { %v5736_v25 = vld [vmem:[%s6286_s29 + $0xb74] ss:$8 sps:$4 sm:$0xff]  }
  0xbf   : > { %3747 = vmatpush1.bf16.msra.mxu1 %v5659_v26  ;;  %4171 = vmatpush1.bf16.msra.mxu0 %v5662_v0  ;;  %v5731_v26 = vld [vmem:[%s6286_s29 + $0x370] ss:$8 sps:$4 sm:$0xff]  }
  0xc0   : > { %3748 = vmatprep.subr.bf16.mxu1 %v5667_v1  ;;  %4172 = vmatprep.subr.bf16.mxu0 %v5670_v3  ;;  %v5734_v0 = vld [vmem:[%s6286_s29 + $0xb70] ss:$8 sps:$4 sm:$0xff]   ;;  %v5739_v1 = vld [vmem:[%s6286_s29 + $0x384] ss:$8 sps:$4 sm:$0xff]  }
  0xc1   : > { %v5742_v3 = vld [vmem:[%s6286_s29 + $0xb84] ss:$8 sps:$4 sm:$0xff]  }
  0xc3   : > { %3749 = vmatpush1.bf16.msra.mxu1 %v5665_v2  ;;  %4173 = vmatpush1.bf16.msra.mxu0 %v5668_v5  ;;  %v5737_v2 = vld [vmem:[%s6286_s29 + $0x380] ss:$8 sps:$4 sm:$0xff]  }
  0xc4   : > { %3750 = vmatprep.subr.bf16.mxu1 %v5673_v7  ;;  %4174 = vmatprep.subr.bf16.mxu0 %v5676_v27  ;;  %v5740_v5 = vld [vmem:[%s6286_s29 + $0xb80] ss:$8 sps:$4 sm:$0xff]   ;;  %v5745_v7 = vld [vmem:[%s6286_s29 + $0x394] ss:$8 sps:$4 sm:$0xff]  }
  0xc5   : > { %v5748_v27 = vld [vmem:[%s6286_s29 + $0xb94] ss:$8 sps:$4 sm:$0xff]  }
  0xc7   : > { %3751 = vmatpush1.bf16.msra.mxu1 %v5671_v28  ;;  %4175 = vmatpush1.bf16.msra.mxu0 %v5674_v29  ;;  %v5743_v28 = vld [vmem:[%s6286_s29 + $0x390] ss:$8 sps:$4 sm:$0xff]  }
  0xc8   : > { %3752 = vmatprep.subr.bf16.mxu1 %v5679_v30  ;;  %4176 = vmatprep.subr.bf16.mxu0 %v5682_v31  ;;  %v5746_v29 = vld [vmem:[%s6286_s29 + $0xb90] ss:$8 sps:$4 sm:$0xff]   ;;  %v5751_v30 = vld [vmem:[%s6286_s29 + $0x3a4] ss:$8 sps:$4 sm:$0xff]  }
  0xc9   : > { %v5754_v31 = vld [vmem:[%s6286_s29 + $0xba4] ss:$8 sps:$4 sm:$0xff]  }
  0xcb   : > { %3753 = vmatpush1.bf16.msra.mxu1 %v5677_v32  ;;  %4177 = vmatpush1.bf16.msra.mxu0 %v5680_v33  ;;  %v5749_v32 = vld [vmem:[%s6286_s29 + $0x3a0] ss:$8 sps:$4 sm:$0xff]  }
  0xcc   : > { %3754 = vmatprep.subr.bf16.mxu1 %v5685_v34  ;;  %4178 = vmatprep.subr.bf16.mxu0 %v5688_v35  ;;  %v5752_v33 = vld [vmem:[%s6286_s29 + $0xba0] ss:$8 sps:$4 sm:$0xff]   ;;  %v5757_v34 = vld [vmem:[%s6286_s29 + $0x3b4] ss:$8 sps:$4 sm:$0xff]  }
  0xcd   : > { %v5760_v35 = vld [vmem:[%s6286_s29 + $0xbb4] ss:$8 sps:$4 sm:$0xff]  }
  0xcf   : > { %3755 = vmatpush1.bf16.msra.mxu1 %v5683_v36  ;;  %4179 = vmatpush1.bf16.msra.mxu0 %v5686_v37  ;;  %v5755_v36 = vld [vmem:[%s6286_s29 + $0x3b0] ss:$8 sps:$4 sm:$0xff]  }
  0xd0   : > { %3777 = vmatprep.subr.bf16.mxu1 %v5691_v38  ;;  %4201 = vmatprep.subr.bf16.mxu0 %v5694_v39  ;;  %v5758_v37 = vld [vmem:[%s6286_s29 + $0xbb0] ss:$8 sps:$4 sm:$0xff]   ;;  %v5763_v38 = vld [vmem:[%s6286_s29 + $0x3c4] ss:$8 sps:$4 sm:$0xff]  }
  0xd1   : > { %v5766_v39 = vld [vmem:[%s6286_s29 + $0xbc4] ss:$8 sps:$4 sm:$0xff]  }
  0xd2   : > { %3757 = vmatmul.mubr.bf16.vlgmr.msra.gmra.mrb[0].mxu1 %v4654_v47  ;;  %4181 = vmatmul.mubr.bf16.vlgmr.msra.gmra.mrb[0].mxu0 %v4670_v48  ;;  %v5772_v47 = vld [vmem:[%s6286_s29 + $0xbd4] ss:$8 sps:$4 sm:$0xff]   ;;  %v5767_v48 = vld [vmem:[%s6286_s29 + $0x3d0] ss:$8 sps:$4 sm:$0xff]  }
  0xd3   : > { %3778 = vmatpush1.bf16.msra.mxu1 %v5689_v50  ;;  %4202 = vmatpush1.bf16.msra.mxu0 %v5692_v51  ;;  %v5775_v50 = vld [vmem:[%s6286_s29 + $0x3e4] ss:$8 sps:$4 sm:$0xff]  }
  0xd4   : > { %3779 = vmatprep.subr.bf16.mxu1 %v5697_v52  ;;  %4203 = vmatprep.subr.bf16.mxu0 %v5700_v53  ;;  %v5778_v51 = vld [vmem:[%s6286_s29 + $0xbe4] ss:$8 sps:$4 sm:$0xff]   ;;  %v5773_v52 = vld [vmem:[%s6286_s29 + $0x3e0] ss:$8 sps:$4 sm:$0xff]  }
  0xd5   : > { %3766 = vmatprep.mubr.bf16.mxu1 %v4687_v40  ;;  %4190 = vmatprep.mubr.bf16.mxu0 %v4703_v41  ;;  %v5776_v53 = vld [vmem:[%s6286_s29 + $0xbe0] ss:$8 sps:$4 sm:$0xff]   ;;  %v5784_v40 = vld [vmem:[%s6286_s29 + $0xbf4] ss:$8 sps:$4 sm:$0xff]   ;;  %v5779_v41 = vld [vmem:[%s6286_s29 + $0x3f0] ss:$8 sps:$4 sm:$0xff]  }
  0xd7   : > { %3780 = vmatpush1.bf16.msra.mxu1 %v5695_v54  ;;  %4204 = vmatpush1.bf16.msra.mxu0 %v5698_v42  ;;  %v5781_v54 = vld [vmem:[%s6286_s29 + $0x3f4] ss:$8 sps:$4 sm:$0xff]   ;;  %v5782_v42 = vld [vmem:[%s6286_s29 + $0xbf0] ss:$8 sps:$4 sm:$0xff]  }
  0xd8   : > { %3781 = vmatprep.subr.bf16.mxu1 %v5703_v45  ;;  %4205 = vmatprep.subr.bf16.mxu0 %v5706_v55  ;;  %v5787_v45 = vld [vmem:[%s6286_s29 + $0x404] ss:$8 sps:$4 sm:$0xff]  }
  0xd9   : > { %v5790_v55 = vld [vmem:[%s6286_s29 + $0xc04] ss:$8 sps:$4 sm:$0xff]  }
  0xda   : > { %3767 = vmatmul.mubr.bf16.gmra.mrb[4].mxu1 %v4686_v59  ;;  %4191 = vmatmul.mubr.bf16.gmra.mrb[4].mxu0 %v4702_v60  ;;  %v194_v59 = vld [vmem:[%s7143_s0 + $0x118] sm:$0xff] }
  0xdb   : > { %3782 = vmatpush1.bf16.msra.mxu1 %v5701_v62  ;;  %4206 = vmatpush1.bf16.msra.mxu0 %v5704_v63  ;;  %v210_v60 = vld [vmem:[%s7143_s0 + $0x198] sm:$0xff]  ;;  %v4656_v63 = vcombine.low %v6604_v56, %v6609_v57 }
  0xdc   : > { %3783 = vmatprep.subr.bf16.mxu1 %v5709_v4  ;;  %4207 = vmatprep.subr.bf16.mxu0 %v5712_v6  ;;  %v202_v62 = vld [vmem:[%s7143_s0 + $0x158] sm:$0xff]  ;;  %v4672_v4 = vcombine.low %v6614_v58, %v6619_v61  ;;  %v4689_v56 = vcombine.high %v194_v59, %v210_v60 }
  0xdd   : > { %3809 = vmatprep.mubr.bf16.mxu1 %v4657_v8  ;;  %4233 = vmatprep.mubr.bf16.mxu0 %v4673_v9  ;;  %v218_v6 = vld [vmem:[%s7143_s0 + $0x1d8] sm:$0xff]  ;;  %v5785_v8 = vld [vmem:[%s6286_s29 + $0x400] ss:$8 sps:$4 sm:$0xff]  }
  0xde   : > { %v5788_v9 = vld [vmem:[%s6286_s29 + $0xc00] ss:$8 sps:$4 sm:$0xff]   ;;  %v4705_v57 = vcombine.high %v202_v62, %v218_v6  ;;  %v5791_v58 = vld [vmem:[%s6286_s29 + $0x410] ss:$8 sps:$4 sm:$0xff]  }
  0xdf   : > { %3784 = vmatpush1.bf16.msra.mxu1 %v5707_v10  ;;  %4208 = vmatpush1.bf16.msra.mxu0 %v5710_v11  ;;  %v5793_v10 = vld [vmem:[%s6286_s29 + $0x414] ss:$8 sps:$4 sm:$0xff]   ;;  %v5794_v61 = vld [vmem:[%s6286_s29 + $0xc10] ss:$8 sps:$4 sm:$0xff]  }
  0xe0   : > { %3785 = vmatprep.subr.bf16.mxu1 %v5715_v12  ;;  %4209 = vmatprep.subr.bf16.mxu0 %v5718_v13  ;;  %v5796_v11 = vld [vmem:[%s6286_s29 + $0xc14] ss:$8 sps:$4 sm:$0xff]   ;;  %v5799_v12 = vld [vmem:[%s6286_s29 + $0x424] ss:$8 sps:$4 sm:$0xff]  }
  0xe1   : > { %v5802_v13 = vld [vmem:[%s6286_s29 + $0xc24] ss:$8 sps:$4 sm:$0xff]  }
  0xe3   : > { %3786 = vmatpush1.bf16.msra.mxu1 %v5713_v14  ;;  %4210 = vmatpush1.bf16.msra.mxu0 %v5716_v15  ;;  %v6708_v14 = vld [vmem:[%s7143_s0 + $0x20] sm:$0xff] }
  0xe4   : > { %3787 = vmatprep.subr.bf16.mxu1 %v5721_v16  ;;  %4211 = vmatprep.subr.bf16.mxu0 %v5724_v17  ;;  %v6713_v15 = vld [vmem:[%s7143_s0 + $0xa0] sm:$0xff]  ;;  %v4688_v17 = vcombine.low %v194_v59, %v210_v60 }
  0xe5   : > { %v6718_v16 = vld [vmem:[%s7143_s0 + $0x60] sm:$0xff] }
  0xe6   : > { %v5857_v59 = vld [vmem:[%s6286_s29 + $0x4c0] ss:$8 sps:$4 sm:$0xff]  }
  0xe7   : > { %3788 = vmatpush1.bf16.msra.mxu1 %v5719_v18  ;;  %4212 = vmatpush1.bf16.msra.mxu0 %v5722_v19  ;;  %v4704_v18 = vcombine.low %v202_v62, %v218_v6  ;;  %v6723_v19 = vld [vmem:[%s7143_s0 + $0xe0] sm:$0xff]  ;;  %v5865_v62 = vld [vmem:[%s6286_s29 + $0x4d4] ss:$8 sps:$4 sm:$0xff]   ;;  %v5866_v6 = vld [vmem:[%s6286_s29 + $0xcd0] ss:$8 sps:$4 sm:$0xff]  }
  0xe8   : > { %3789 = vmatprep.subr.bf16.mxu1 %v5727_v20  ;;  %4213 = vmatprep.subr.bf16.mxu0 %v5730_v21  ;;  %v5797_v20 = vld [vmem:[%s6286_s29 + $0x420] ss:$8 sps:$4 sm:$0xff]  }
  0xe9   : > { %v5800_v21 = vld [vmem:[%s6286_s29 + $0xc20] ss:$8 sps:$4 sm:$0xff]  }
  0xea   : > { %v5860_v60 = vld [vmem:[%s6286_s29 + $0xcc0] ss:$8 sps:$4 sm:$0xff]  }
  0xeb   : > { %3790 = vmatpush1.bf16.msra.mxu1 %v5725_v22  ;;  %4214 = vmatpush1.bf16.msra.mxu0 %v5728_v23  ;;  %v5805_v22 = vld [vmem:[%s6286_s29 + $0x434] ss:$8 sps:$4 sm:$0xff]  }
  0xec   : > { %3791 = vmatprep.subr.bf16.mxu1 %v5733_v24  ;;  %4215 = vmatprep.subr.bf16.mxu0 %v5736_v25  ;;  %v5808_v23 = vld [vmem:[%s6286_s29 + $0xc34] ss:$8 sps:$4 sm:$0xff]   ;;  %v4659_v24 = vcombine.high %v6708_v14, %v6713_v15  ;;  %v4675_v25 = vcombine.high %v6718_v16, %v6723_v19 }
  0xef   : > { %3792 = vmatpush1.bf16.msra.mxu1 %v5731_v26  ;;  %4216 = vmatpush1.bf16.msra.mxu0 %v5734_v0  ;;  %v5803_v26 = vld [vmem:[%s6286_s29 + $0x430] ss:$8 sps:$4 sm:$0xff]  }
  0xf0   : > { %3793 = vmatprep.subr.bf16.mxu1 %v5739_v1  ;;  %4217 = vmatprep.subr.bf16.mxu0 %v5742_v3  ;;  %v5806_v0 = vld [vmem:[%s6286_s29 + $0xc30] ss:$8 sps:$4 sm:$0xff]   ;;  %v5811_v1 = vld [vmem:[%s6286_s29 + $0x444] ss:$8 sps:$4 sm:$0xff]  }
  0xf1   : > { %v5814_v3 = vld [vmem:[%s6286_s29 + $0xc44] ss:$8 sps:$4 sm:$0xff]  }
  0xf3   : > { %3794 = vmatpush1.bf16.msra.mxu1 %v5737_v2  ;;  %4218 = vmatpush1.bf16.msra.mxu0 %v5740_v5  ;;  %v5809_v2 = vld [vmem:[%s6286_s29 + $0x440] ss:$8 sps:$4 sm:$0xff]  }
  0xf4   : > { %3795 = vmatprep.subr.bf16.mxu1 %v5745_v7  ;;  %4219 = vmatprep.subr.bf16.mxu0 %v5748_v27  ;;  %v5812_v5 = vld [vmem:[%s6286_s29 + $0xc40] ss:$8 sps:$4 sm:$0xff]   ;;  %v5817_v7 = vld [vmem:[%s6286_s29 + $0x454] ss:$8 sps:$4 sm:$0xff]  }
  0xf5   : > { %v5820_v27 = vld [vmem:[%s6286_s29 + $0xc54] ss:$8 sps:$4 sm:$0xff]  }
  0xf7   : > { %3796 = vmatpush1.bf16.msra.mxu1 %v5743_v28  ;;  %4220 = vmatpush1.bf16.msra.mxu0 %v5746_v29  ;;  %v5815_v28 = vld [vmem:[%s6286_s29 + $0x450] ss:$8 sps:$4 sm:$0xff]  }
  0xf8   : > { %3797 = vmatprep.subr.bf16.mxu1 %v5751_v30  ;;  %4221 = vmatprep.subr.bf16.mxu0 %v5754_v31  ;;  %v5818_v29 = vld [vmem:[%s6286_s29 + $0xc50] ss:$8 sps:$4 sm:$0xff]   ;;  %v5823_v30 = vld [vmem:[%s6286_s29 + $0x464] ss:$8 sps:$4 sm:$0xff]  }
  0xf9   : > { %v5826_v31 = vld [vmem:[%s6286_s29 + $0xc64] ss:$8 sps:$4 sm:$0xff]  }
  0xfb   : > { %3798 = vmatpush1.bf16.msra.mxu1 %v5749_v32  ;;  %4222 = vmatpush1.bf16.msra.mxu0 %v5752_v33  ;;  %v5821_v32 = vld [vmem:[%s6286_s29 + $0x460] ss:$8 sps:$4 sm:$0xff]  }
  0xfc   : > { %3799 = vmatprep.subr.bf16.mxu1 %v5757_v34  ;;  %4223 = vmatprep.subr.bf16.mxu0 %v5760_v35  ;;  %v5824_v33 = vld [vmem:[%s6286_s29 + $0xc60] ss:$8 sps:$4 sm:$0xff]   ;;  %v5829_v34 = vld [vmem:[%s6286_s29 + $0x474] ss:$8 sps:$4 sm:$0xff]  }
  0xfd   : > { %v5832_v35 = vld [vmem:[%s6286_s29 + $0xc74] ss:$8 sps:$4 sm:$0xff]  }
  0xff   : > { %3800 = vmatpush1.bf16.msra.mxu1 %v5755_v36  ;;  %4224 = vmatpush1.bf16.msra.mxu0 %v5758_v37  ;;  %v5827_v36 = vld [vmem:[%s6286_s29 + $0x470] ss:$8 sps:$4 sm:$0xff]  }
 0x100   : > { %3801 = vmatprep.subr.bf16.mxu1 %v5763_v38  ;;  %4225 = vmatprep.subr.bf16.mxu0 %v5766_v39  ;;  %v5830_v37 = vld [vmem:[%s6286_s29 + $0xc70] ss:$8 sps:$4 sm:$0xff]   ;;  %v5835_v38 = vld [vmem:[%s6286_s29 + $0x484] ss:$8 sps:$4 sm:$0xff]  }
 0x101   : > { %v5838_v39 = vld [vmem:[%s6286_s29 + $0xc84] ss:$8 sps:$4 sm:$0xff]  }
 0x103   : > { %3802 = vmatpush1.bf16.msra.mxu1 %v5761_v43  ;;  %4226 = vmatpush1.bf16.msra.mxu0 %v5764_v44  ;;  %v5833_v43 = vld [vmem:[%s6286_s29 + $0x480] ss:$8 sps:$4 sm:$0xff]  }
 0x104   : > { %3803 = vmatprep.subr.bf16.mxu1 %v5769_v46  ;;  %4227 = vmatprep.subr.bf16.mxu0 %v5772_v47  ;;  %v5836_v44 = vld [vmem:[%s6286_s29 + $0xc80] ss:$8 sps:$4 sm:$0xff]   ;;  %v5841_v46 = vld [vmem:[%s6286_s29 + $0x494] ss:$8 sps:$4 sm:$0xff]  }
 0x105   : > { %v5844_v47 = vld [vmem:[%s6286_s29 + $0xc94] ss:$8 sps:$4 sm:$0xff]  }
 0x107   : > { %3804 = vmatpush1.bf16.msra.mxu1 %v5767_v48  ;;  %4228 = vmatpush1.bf16.msra.mxu0 %v5770_v49  ;;  %v5839_v48 = vld [vmem:[%s6286_s29 + $0x490] ss:$8 sps:$4 sm:$0xff]  }
 0x108   : > { %3805 = vmatprep.subr.bf16.mxu1 %v5775_v50  ;;  %4229 = vmatprep.subr.bf16.mxu0 %v5778_v51  ;;  %v5842_v49 = vld [vmem:[%s6286_s29 + $0xc90] ss:$8 sps:$4 sm:$0xff]   ;;  %v5847_v50 = vld [vmem:[%s6286_s29 + $0x4a4] ss:$8 sps:$4 sm:$0xff]  }
 0x109   : > { %v5850_v51 = vld [vmem:[%s6286_s29 + $0xca4] ss:$8 sps:$4 sm:$0xff]  }
 0x10b   : > { %3806 = vmatpush1.bf16.msra.mxu1 %v5773_v52  ;;  %4230 = vmatpush1.bf16.msra.mxu0 %v5776_v53  ;;  %v5845_v52 = vld [vmem:[%s6286_s29 + $0x4a0] ss:$8 sps:$4 sm:$0xff]  }
 0x10c   : > { %3807 = vmatprep.subr.bf16.mxu1 %v5781_v54  ;;  %4231 = vmatprep.subr.bf16.mxu0 %v5784_v40  ;;  %v5848_v53 = vld [vmem:[%s6286_s29 + $0xca0] ss:$8 sps:$4 sm:$0xff]   ;;  %v5853_v54 = vld [vmem:[%s6286_s29 + $0x4b4] ss:$8 sps:$4 sm:$0xff]  }
 0x10d   : > { %v5856_v40 = vld [vmem:[%s6286_s29 + $0xcb4] ss:$8 sps:$4 sm:$0xff]  }
 0x10f   : > { %3808 = vmatpush1.bf16.msra.mxu1 %v5779_v41  ;;  %4232 = vmatpush1.bf16.msra.mxu0 %v5782_v42  ;;  %v5851_v41 = vld [vmem:[%s6286_s29 + $0x4b0] ss:$8 sps:$4 sm:$0xff]  }
 0x110   : > { %3830 = vmatprep.subr.bf16.mxu1 %v5787_v45  ;;  %4254 = vmatprep.subr.bf16.mxu0 %v5790_v55  ;;  %v5854_v42 = vld [vmem:[%s6286_s29 + $0xcb0] ss:$8 sps:$4 sm:$0xff]   ;;  %v5859_v45 = vld [vmem:[%s6286_s29 + $0x4c4] ss:$8 sps:$4 sm:$0xff]  }
 0x111   : > { %v5862_v55 = vld [vmem:[%s6286_s29 + $0xcc4] ss:$8 sps:$4 sm:$0xff]  }
 0x112   : > { %3810 = vmatmul.mubr.bf16.vlgmr.msra.gmra.mrb[0].mxu1 %v4656_v63  ;;  %4234 = vmatmul.mubr.bf16.vlgmr.msra.gmra.mrb[0].mxu0 %v4672_v4  ;;  %v5868_v63 = vld [vmem:[%s6286_s29 + $0xcd4] ss:$8 sps:$4 sm:$0xff]   ;;  %v5863_v4 = vld [vmem:[%s6286_s29 + $0x4d0] ss:$8 sps:$4 sm:$0xff]  }
 0x113   : > { %3831 = vmatpush1.bf16.msra.mxu1 %v5785_v8  ;;  %4255 = vmatpush1.bf16.msra.mxu0 %v5788_v9  ;;  %v5871_v8 = vld [vmem:[%s6286_s29 + $0x4e4] ss:$8 sps:$4 sm:$0xff]  }
 0x114   : > { %3832 = vmatprep.subr.bf16.mxu1 %v5793_v10  ;;  %4256 = vmatprep.subr.bf16.mxu0 %v5796_v11  ;;  %v5874_v9 = vld [vmem:[%s6286_s29 + $0xce4] ss:$8 sps:$4 sm:$0xff]   ;;  %v5869_v10 = vld [vmem:[%s6286_s29 + $0x4e0] ss:$8 sps:$4 sm:$0xff]  }
 0x115   : > { %3819 = vmatprep.mubr.bf16.mxu1 %v4689_v56  ;;  %4243 = vmatprep.mubr.bf16.mxu0 %v4705_v57  ;;  %v5872_v11 = vld [vmem:[%s6286_s29 + $0xce0] ss:$8 sps:$4 sm:$0xff]   ;;  %v5877_v56 = vld [vmem:[%s6286_s29 + $0x4f4] ss:$8 sps:$4 sm:$0xff]  }
 0x116   : > { %v5880_v57 = vld [vmem:[%s6286_s29 + $0xcf4] ss:$8 sps:$4 sm:$0xff]  }
 0x117   : > { %3833 = vmatpush1.bf16.msra.mxu1 %v5791_v58  ;;  %4257 = vmatpush1.bf16.msra.mxu0 %v5794_v61  ;;  %v5875_v58 = vld [vmem:[%s6286_s29 + $0x4f0] ss:$8 sps:$4 sm:$0xff]  }
 0x118   : > { %3834 = vmatprep.subr.bf16.mxu1 %v5799_v12  ;;  %4258 = vmatprep.subr.bf16.mxu0 %v5802_v13  ;;  %v5878_v61 = vld [vmem:[%s6286_s29 + $0xcf0] ss:$8 sps:$4 sm:$0xff]   ;;  %v5883_v12 = vld [vmem:[%s6286_s29 + $0x504] ss:$8 sps:$4 sm:$0xff]  }
 0x119   : > { %v5886_v13 = vld [vmem:[%s6286_s29 + $0xd04] ss:$8 sps:$4 sm:$0xff]  }
 0x11a   : > { %3820 = vmatmul.mubr.bf16.gmra.mrb[4].mxu1 %v4688_v17  ;;  %4244 = vmatmul.mubr.bf16.gmra.mrb[4].mxu0 %v4704_v18  ;;  %v195_v17 = vld [vmem:[%s7143_s0 + $0x120] sm:$0xff] }
 0x11b   : > { %3835 = vmatpush1.bf16.msra.mxu1 %v5797_v20  ;;  %4259 = vmatpush1.bf16.msra.mxu0 %v5800_v21  ;;  %v211_v18 = vld [vmem:[%s7143_s0 + $0x1a0] sm:$0xff] }
 0x11c   : > { %3836 = vmatprep.subr.bf16.mxu1 %v5805_v22  ;;  %4260 = vmatprep.subr.bf16.mxu0 %v5808_v23  ;;  %v203_v20 = vld [vmem:[%s7143_s0 + $0x160] sm:$0xff]  ;;  %v4658_v22 = vcombine.low %v6708_v14, %v6713_v15  ;;  %v4674_v23 = vcombine.low %v6718_v16, %v6723_v19  ;;  %v6812_v16 = vld [vmem:[%s7143_s0 + $0x28] sm:$0xff] }
 0x11d   : > { %3862 = vmatprep.mubr.bf16.mxu1 %v4659_v24  ;;  %4286 = vmatprep.mubr.bf16.mxu0 %v4675_v25  ;;  %v219_v21 = vld [vmem:[%s7143_s0 + $0x1e0] sm:$0xff]  ;;  %v6817_v19 = vld [vmem:[%s7143_s0 + $0xa8] sm:$0xff] }
 0x11e   : > { %v5881_v24 = vld [vmem:[%s6286_s29 + $0x500] ss:$8 sps:$4 sm:$0xff]   ;;  %v5895_v14 = vld [vmem:[%s6286_s29 + $0x524] ss:$8 sps:$4 sm:$0xff]  }
 0x11f   : > { %3837 = vmatpush1.bf16.msra.mxu1 %v5803_v26  ;;  %4261 = vmatpush1.bf16.msra.mxu0 %v5806_v0  ;;  %v5884_v25 = vld [vmem:[%s6286_s29 + $0xd00] ss:$8 sps:$4 sm:$0xff]   ;;  %v5889_v26 = vld [vmem:[%s6286_s29 + $0x514] ss:$8 sps:$4 sm:$0xff]   ;;  %v5898_v15 = vld [vmem:[%s6286_s29 + $0xd24] ss:$8 sps:$4 sm:$0xff]  }
 0x120   : > { %3838 = vmatprep.subr.bf16.mxu1 %v5811_v1  ;;  %4262 = vmatprep.subr.bf16.mxu0 %v5814_v3  ;;  %v5892_v0 = vld [vmem:[%s6286_s29 + $0xd14] ss:$8 sps:$4 sm:$0xff]   ;;  %v5887_v1 = vld [vmem:[%s6286_s29 + $0x510] ss:$8 sps:$4 sm:$0xff]  }
 0x121   : > { %v5890_v3 = vld [vmem:[%s6286_s29 + $0xd10] ss:$8 sps:$4 sm:$0xff]  }
 0x123   : > { %3839 = vmatpush1.bf16.msra.mxu1 %v5809_v2  ;;  %4263 = vmatpush1.bf16.msra.mxu0 %v5812_v5  ;;  %v4691_v2 = vcombine.high %v195_v17, %v211_v18  ;;  %v4707_v5 = vcombine.high %v203_v20, %v219_v21 }
 0x124   : > { %3840 = vmatprep.subr.bf16.mxu1 %v5817_v7  ;;  %4264 = vmatprep.subr.bf16.mxu0 %v5820_v27  ;;  %v6822_v7 = vld [vmem:[%s7143_s0 + $0x68] sm:$0xff] }
 0x125   : > { %v6827_v27 = vld [vmem:[%s7143_s0 + $0xe8] sm:$0xff] }
 0x127   : > { %3841 = vmatpush1.bf16.msra.mxu1 %v5815_v28  ;;  %4265 = vmatpush1.bf16.msra.mxu0 %v5818_v29  ;;  %v4690_v28 = vcombine.low %v195_v17, %v211_v18  ;;  %v4706_v29 = vcombine.low %v203_v20, %v219_v21  ;;  %v5953_v17 = vld [vmem:[%s6286_s29 + $0x5c0] ss:$8 sps:$4 sm:$0xff]   ;;  %v5961_v20 = vld [vmem:[%s6286_s29 + $0x5d4] ss:$8 sps:$4 sm:$0xff]  }
 0x128   : > { %3842 = vmatprep.subr.bf16.mxu1 %v5823_v30  ;;  %4266 = vmatprep.subr.bf16.mxu0 %v5826_v31  ;;  %v5893_v30 = vld [vmem:[%s6286_s29 + $0x520] ss:$8 sps:$4 sm:$0xff]   ;;  %v5964_v21 = vld [vmem:[%s6286_s29 + $0xdd4] ss:$8 sps:$4 sm:$0xff]  }
 0x129   : > { %v5896_v31 = vld [vmem:[%s6286_s29 + $0xd20] ss:$8 sps:$4 sm:$0xff]  }
 0x12a   : > { %v5956_v18 = vld [vmem:[%s6286_s29 + $0xdc0] ss:$8 sps:$4 sm:$0xff]  }
 0x12b   : > { %3843 = vmatpush1.bf16.msra.mxu1 %v5821_v32  ;;  %4267 = vmatpush1.bf16.msra.mxu0 %v5824_v33  ;;  %v5901_v32 = vld [vmem:[%s6286_s29 + $0x534] ss:$8 sps:$4 sm:$0xff]  }
 0x12c   : > { %3844 = vmatprep.subr.bf16.mxu1 %v5829_v34  ;;  %4268 = vmatprep.subr.bf16.mxu0 %v5832_v35  ;;  %v5904_v33 = vld [vmem:[%s6286_s29 + $0xd34] ss:$8 sps:$4 sm:$0xff]   ;;  %v4661_v34 = vcombine.high %v6812_v16, %v6817_v19  ;;  %v4677_v35 = vcombine.high %v6822_v7, %v6827_v27 }
 0x12f   : > { %3845 = vmatpush1.bf16.msra.mxu1 %v5827_v36  ;;  %4269 = vmatpush1.bf16.msra.mxu0 %v5830_v37  ;;  %v5899_v36 = vld [vmem:[%s6286_s29 + $0x530] ss:$8 sps:$4 sm:$0xff]  }
 0x130   : > { %3846 = vmatprep.subr.bf16.mxu1 %v5835_v38  ;;  %4270 = vmatprep.subr.bf16.mxu0 %v5838_v39  ;;  %v5902_v37 = vld [vmem:[%s6286_s29 + $0xd30] ss:$8 sps:$4 sm:$0xff]   ;;  %v5907_v38 = vld [vmem:[%s6286_s29 + $0x544] ss:$8 sps:$4 sm:$0xff]  }
 0x131   : > { %v5910_v39 = vld [vmem:[%s6286_s29 + $0xd44] ss:$8 sps:$4 sm:$0xff]  }
 0x133   : > { %3847 = vmatpush1.bf16.msra.mxu1 %v5833_v43  ;;  %4271 = vmatpush1.bf16.msra.mxu0 %v5836_v44  ;;  %v5905_v43 = vld [vmem:[%s6286_s29 + $0x540] ss:$8 sps:$4 sm:$0xff]  }
 0x134   : > { %3848 = vmatprep.subr.bf16.mxu1 %v5841_v46  ;;  %4272 = vmatprep.subr.bf16.mxu0 %v5844_v47  ;;  %v5908_v44 = vld [vmem:[%s6286_s29 + $0xd40] ss:$8 sps:$4 sm:$0xff]   ;;  %v5913_v46 = vld [vmem:[%s6286_s29 + $0x554] ss:$8 sps:$4 sm:$0xff]  }
 0x135   : > { %v5916_v47 = vld [vmem:[%s6286_s29 + $0xd54] ss:$8 sps:$4 sm:$0xff]  }
 0x137   : > { %3849 = vmatpush1.bf16.msra.mxu1 %v5839_v48  ;;  %4273 = vmatpush1.bf16.msra.mxu0 %v5842_v49  ;;  %v5911_v48 = vld [vmem:[%s6286_s29 + $0x550] ss:$8 sps:$4 sm:$0xff]  }
 0x138   : > { %3850 = vmatprep.subr.bf16.mxu1 %v5847_v50  ;;  %4274 = vmatprep.subr.bf16.mxu0 %v5850_v51  ;;  %v5914_v49 = vld [vmem:[%s6286_s29 + $0xd50] ss:$8 sps:$4 sm:$0xff]   ;;  %v5919_v50 = vld [vmem:[%s6286_s29 + $0x564] ss:$8 sps:$4 sm:$0xff]  }
 0x139   : > { %v5922_v51 = vld [vmem:[%s6286_s29 + $0xd64] ss:$8 sps:$4 sm:$0xff]  }
 0x13b   : > { %3851 = vmatpush1.bf16.msra.mxu1 %v5845_v52  ;;  %4275 = vmatpush1.bf16.msra.mxu0 %v5848_v53  ;;  %v5917_v52 = vld [vmem:[%s6286_s29 + $0x560] ss:$8 sps:$4 sm:$0xff]  }
 0x13c   : > { %3852 = vmatprep.subr.bf16.mxu1 %v5853_v54  ;;  %4276 = vmatprep.subr.bf16.mxu0 %v5856_v40  ;;  %v5920_v53 = vld [vmem:[%s6286_s29 + $0xd60] ss:$8 sps:$4 sm:$0xff]   ;;  %v5925_v54 = vld [vmem:[%s6286_s29 + $0x574] ss:$8 sps:$4 sm:$0xff]  }
 0x13d   : > { %v5928_v40 = vld [vmem:[%s6286_s29 + $0xd74] ss:$8 sps:$4 sm:$0xff]  }
 0x13f   : > { %3853 = vmatpush1.bf16.msra.mxu1 %v5851_v41  ;;  %4277 = vmatpush1.bf16.msra.mxu0 %v5854_v42  ;;  %v5923_v41 = vld [vmem:[%s6286_s29 + $0x570] ss:$8 sps:$4 sm:$0xff]  }
 0x140   : > { %3854 = vmatprep.subr.bf16.mxu1 %v5859_v45  ;;  %4278 = vmatprep.subr.bf16.mxu0 %v5862_v55  ;;  %v5926_v42 = vld [vmem:[%s6286_s29 + $0xd70] ss:$8 sps:$4 sm:$0xff]   ;;  %v5931_v45 = vld [vmem:[%s6286_s29 + $0x584] ss:$8 sps:$4 sm:$0xff]  }
 0x141   : > { %v5934_v55 = vld [vmem:[%s6286_s29 + $0xd84] ss:$8 sps:$4 sm:$0xff]  }
 0x143   : > { %3855 = vmatpush1.bf16.msra.mxu1 %v5857_v59  ;;  %4279 = vmatpush1.bf16.msra.mxu0 %v5860_v60  ;;  %v5929_v59 = vld [vmem:[%s6286_s29 + $0x580] ss:$8 sps:$4 sm:$0xff]  }
 0x144   : > { %3856 = vmatprep.subr.bf16.mxu1 %v5865_v62  ;;  %4280 = vmatprep.subr.bf16.mxu0 %v5868_v63  ;;  %v5932_v60 = vld [vmem:[%s6286_s29 + $0xd80] ss:$8 sps:$4 sm:$0xff]   ;;  %v5937_v62 = vld [vmem:[%s6286_s29 + $0x594] ss:$8 sps:$4 sm:$0xff]  }
 0x145   : > { %v5940_v63 = vld [vmem:[%s6286_s29 + $0xd94] ss:$8 sps:$4 sm:$0xff]  }
 0x147   : > { %3857 = vmatpush1.bf16.msra.mxu1 %v5863_v4  ;;  %4281 = vmatpush1.bf16.msra.mxu0 %v5866_v6  ;;  %v5935_v4 = vld [vmem:[%s6286_s29 + $0x590] ss:$8 sps:$4 sm:$0xff]  }
 0x148   : > { %3858 = vmatprep.subr.bf16.mxu1 %v5871_v8  ;;  %4282 = vmatprep.subr.bf16.mxu0 %v5874_v9  ;;  %v5938_v6 = vld [vmem:[%s6286_s29 + $0xd90] ss:$8 sps:$4 sm:$0xff]   ;;  %v5943_v8 = vld [vmem:[%s6286_s29 + $0x5a4] ss:$8 sps:$4 sm:$0xff]  }
 0x149   : > { %v5946_v9 = vld [vmem:[%s6286_s29 + $0xda4] ss:$8 sps:$4 sm:$0xff]  }
 0x14b   : > { %3859 = vmatpush1.bf16.msra.mxu1 %v5869_v10  ;;  %4283 = vmatpush1.bf16.msra.mxu0 %v5872_v11  ;;  %v5941_v10 = vld [vmem:[%s6286_s29 + $0x5a0] ss:$8 sps:$4 sm:$0xff]  }
 0x14c   : > { %3860 = vmatprep.subr.bf16.mxu1 %v5877_v56  ;;  %4284 = vmatprep.subr.bf16.mxu0 %v5880_v57  ;;  %v5944_v11 = vld [vmem:[%s6286_s29 + $0xda0] ss:$8 sps:$4 sm:$0xff]   ;;  %v5949_v56 = vld [vmem:[%s6286_s29 + $0x5b4] ss:$8 sps:$4 sm:$0xff]  }
 0x14d   : > { %v5952_v57 = vld [vmem:[%s6286_s29 + $0xdb4] ss:$8 sps:$4 sm:$0xff]  }
 0x14f   : > { %3861 = vmatpush1.bf16.msra.mxu1 %v5875_v58  ;;  %4285 = vmatpush1.bf16.msra.mxu0 %v5878_v61  ;;  %v5947_v58 = vld [vmem:[%s6286_s29 + $0x5b0] ss:$8 sps:$4 sm:$0xff]  }
 0x150   : > { %3883 = vmatprep.subr.bf16.mxu1 %v5883_v12  ;;  %4307 = vmatprep.subr.bf16.mxu0 %v5886_v13  ;;  %v5950_v61 = vld [vmem:[%s6286_s29 + $0xdb0] ss:$8 sps:$4 sm:$0xff]   ;;  %v5955_v12 = vld [vmem:[%s6286_s29 + $0x5c4] ss:$8 sps:$4 sm:$0xff]  }
 0x151   : > { %v5958_v13 = vld [vmem:[%s6286_s29 + $0xdc4] ss:$8 sps:$4 sm:$0xff]  }
 0x152   : > { %3863 = vmatmul.mubr.bf16.vlgmr.msra.gmra.mrb[0].mxu1 %v4658_v22  ;;  %4287 = vmatmul.mubr.bf16.vlgmr.msra.gmra.mrb[0].mxu0 %v4674_v23  ;;  %v5959_v22 = vld [vmem:[%s6286_s29 + $0x5d0] ss:$8 sps:$4 sm:$0xff]  }
 0x153   : > { %3884 = vmatpush1.bf16.msra.mxu1 %v5881_v24  ;;  %4308 = vmatpush1.bf16.msra.mxu0 %v5884_v25  ;;  %v5962_v23 = vld [vmem:[%s6286_s29 + $0xdd0] ss:$8 sps:$4 sm:$0xff]   ;;  %v5967_v24 = vld [vmem:[%s6286_s29 + $0x5e4] ss:$8 sps:$4 sm:$0xff]  }
 0x154   : > { %3885 = vmatprep.subr.bf16.mxu1 %v5889_v26  ;;  %4309 = vmatprep.subr.bf16.mxu0 %v5892_v0  ;;  %v5970_v25 = vld [vmem:[%s6286_s29 + $0xde4] ss:$8 sps:$4 sm:$0xff]   ;;  %v5965_v26 = vld [vmem:[%s6286_s29 + $0x5e0] ss:$8 sps:$4 sm:$0xff]  }
 0x155   : > { %3872 = vmatprep.mubr.bf16.mxu1 %v4691_v2  ;;  %4296 = vmatprep.mubr.bf16.mxu0 %v4707_v5  ;;  %v5968_v0 = vld [vmem:[%s6286_s29 + $0xde0] ss:$8 sps:$4 sm:$0xff]   ;;  %v5971_v2 = vld [vmem:[%s6286_s29 + $0x5f0] ss:$8 sps:$4 sm:$0xff]  }
 0x156   : > { %v5974_v5 = vld [vmem:[%s6286_s29 + $0xdf0] ss:$8 sps:$4 sm:$0xff]  }
 0x157   : > { %3886 = vmatpush1.bf16.msra.mxu1 %v5887_v1  ;;  %4310 = vmatpush1.bf16.msra.mxu0 %v5890_v3  ;;  %v5973_v1 = vld [vmem:[%s6286_s29 + $0x5f4] ss:$8 sps:$4 sm:$0xff]  }
 0x158   : > { %3887 = vmatprep.subr.bf16.mxu1 %v5895_v14  ;;  %4311 = vmatprep.subr.bf16.mxu0 %v5898_v15  ;;  %v5976_v3 = vld [vmem:[%s6286_s29 + $0xdf4] ss:$8 sps:$4 sm:$0xff]   ;;  %v5979_v14 = vld [vmem:[%s6286_s29 + $0x604] ss:$8 sps:$4 sm:$0xff]  }
 0x159   : > { %v5982_v15 = vld [vmem:[%s6286_s29 + $0xe04] ss:$8 sps:$4 sm:$0xff]  }
 0x15a   : > { %3873 = vmatmul.mubr.bf16.gmra.mrb[4].mxu1 %v4690_v28  ;;  %4297 = vmatmul.mubr.bf16.gmra.mrb[4].mxu0 %v4706_v29  ;;  %v196_v28 = vld [vmem:[%s7143_s0 + $0x128] sm:$0xff]  ;;  %v4660_v29 = vcombine.low %v6812_v16, %v6817_v19 }
 0x15b   : > { %3888 = vmatpush1.bf16.msra.mxu1 %v5893_v30  ;;  %4312 = vmatpush1.bf16.msra.mxu0 %v5896_v31  ;;  %v4676_v30 = vcombine.low %v6822_v7, %v6827_v27  ;;  %v212_v31 = vld [vmem:[%s7143_s0 + $0x1a8] sm:$0xff]  ;;  %v5985_v7 = vld [vmem:[%s6286_s29 + $0x614] ss:$8 sps:$4 sm:$0xff]  }
 0x15c   : > { %3889 = vmatprep.subr.bf16.mxu1 %v5901_v32  ;;  %4313 = vmatprep.subr.bf16.mxu0 %v5904_v33  ;;  %v204_v32 = vld [vmem:[%s7143_s0 + $0x168] sm:$0xff]  ;;  %v5988_v27 = vld [vmem:[%s6286_s29 + $0xe14] ss:$8 sps:$4 sm:$0xff]  }
 0x15d   : > { %3915 = vmatprep.mubr.bf16.mxu1 %v4661_v34  ;;  %4339 = vmatprep.mubr.bf16.mxu0 %v4677_v35  ;;  %v220_v33 = vld [vmem:[%s7143_s0 + $0x1e8] sm:$0xff]  ;;  %v4693_v34 = vcombine.high %v196_v28, %v212_v31 }
 0x15e   : > { %v5977_v16 = vld [vmem:[%s6286_s29 + $0x600] ss:$8 sps:$4 sm:$0xff]   ;;  %v4709_v35 = vcombine.high %v204_v32, %v220_v33 }
 0x15f   : > { %3890 = vmatpush1.bf16.msra.mxu1 %v5899_v36  ;;  %4314 = vmatpush1.bf16.msra.mxu0 %v5902_v37  ;;  %v5980_v19 = vld [vmem:[%s6286_s29 + $0xe00] ss:$8 sps:$4 sm:$0xff]   ;;  %v5983_v36 = vld [vmem:[%s6286_s29 + $0x610] ss:$8 sps:$4 sm:$0xff]  }
 0x160   : > { %3891 = vmatprep.subr.bf16.mxu1 %v5907_v38  ;;  %4315 = vmatprep.subr.bf16.mxu0 %v5910_v39  ;;  %v5986_v37 = vld [vmem:[%s6286_s29 + $0xe10] ss:$8 sps:$4 sm:$0xff]   ;;  %v5991_v38 = vld [vmem:[%s6286_s29 + $0x624] ss:$8 sps:$4 sm:$0xff]  }
 0x161   : > { %v5994_v39 = vld [vmem:[%s6286_s29 + $0xe24] ss:$8 sps:$4 sm:$0xff]  }
 0x163   : > { %3892 = vmatpush1.bf16.msra.mxu1 %v5905_v43  ;;  %4316 = vmatpush1.bf16.msra.mxu0 %v5908_v44  ;;  %v6916_v43 = vld [vmem:[%s7143_s0 + $0x30] sm:$0xff]  ;;  %v4692_v44 = vcombine.low %v196_v28, %v212_v31  ;;  %v6049_v28 = vld [vmem:[%s6286_s29 + $0x6c0] ss:$8 sps:$4 sm:$0xff]  }
 0x164   : > { %3893 = vmatprep.subr.bf16.mxu1 %v5913_v46  ;;  %4317 = vmatprep.subr.bf16.mxu0 %v5916_v47  ;;  %v4708_v46 = vcombine.low %v204_v32, %v220_v33  ;;  %v6921_v47 = vld [vmem:[%s7143_s0 + $0xb0] sm:$0xff] }
 0x165   : > { %v6060_v31 = vld [vmem:[%s6286_s29 + $0xed4] ss:$8 sps:$4 sm:$0xff]   ;;  %v6055_v32 = vld [vmem:[%s6286_s29 + $0x6d0] ss:$8 sps:$4 sm:$0xff]  }
 0x166   : > { %v6058_v33 = vld [vmem:[%s6286_s29 + $0xed0] ss:$8 sps:$4 sm:$0xff]  }
 0x167   : > { %3894 = vmatpush1.bf16.msra.mxu1 %v5911_v48  ;;  %4318 = vmatpush1.bf16.msra.mxu0 %v5914_v49  ;;  %v6926_v48 = vld [vmem:[%s7143_s0 + $0x70] sm:$0xff] }
 0x168   : > { %3895 = vmatprep.subr.bf16.mxu1 %v5919_v50  ;;  %4319 = vmatprep.subr.bf16.mxu0 %v5922_v51  ;;  %v6931_v49 = vld [vmem:[%s7143_s0 + $0xf0] sm:$0xff]  ;;  %v5989_v50 = vld [vmem:[%s6286_s29 + $0x620] ss:$8 sps:$4 sm:$0xff]  }
 0x169   : > { %v5992_v51 = vld [vmem:[%s6286_s29 + $0xe20] ss:$8 sps:$4 sm:$0xff]  }
 0x16b   : > { %3896 = vmatpush1.bf16.msra.mxu1 %v5917_v52  ;;  %4320 = vmatpush1.bf16.msra.mxu0 %v5920_v53  ;;  %v5997_v52 = vld [vmem:[%s6286_s29 + $0x634] ss:$8 sps:$4 sm:$0xff]  }
 0x16c   : > { %3897 = vmatprep.subr.bf16.mxu1 %v5925_v54  ;;  %4321 = vmatprep.subr.bf16.mxu0 %v5928_v40  ;;  %v6000_v53 = vld [vmem:[%s6286_s29 + $0xe34] ss:$8 sps:$4 sm:$0xff]   ;;  %v4663_v54 = vcombine.high %v6916_v43, %v6921_v47  ;;  %v4679_v40 = vcombine.high %v6926_v48, %v6931_v49 }
 0x16f   : > { %3898 = vmatpush1.bf16.msra.mxu1 %v5923_v41  ;;  %4322 = vmatpush1.bf16.msra.mxu0 %v5926_v42  ;;  %v5995_v41 = vld [vmem:[%s6286_s29 + $0x630] ss:$8 sps:$4 sm:$0xff]  }
 0x170   : > { %3899 = vmatprep.subr.bf16.mxu1 %v5931_v45  ;;  %4323 = vmatprep.subr.bf16.mxu0 %v5934_v55  ;;  %v5998_v42 = vld [vmem:[%s6286_s29 + $0xe30] ss:$8 sps:$4 sm:$0xff]   ;;  %v6003_v45 = vld [vmem:[%s6286_s29 + $0x644] ss:$8 sps:$4 sm:$0xff]  }
 0x171   : > { %v6006_v55 = vld [vmem:[%s6286_s29 + $0xe44] ss:$8 sps:$4 sm:$0xff]  }
 0x173   : > { %3900 = vmatpush1.bf16.msra.mxu1 %v5929_v59  ;;  %4324 = vmatpush1.bf16.msra.mxu0 %v5932_v60  ;;  %v6001_v59 = vld [vmem:[%s6286_s29 + $0x640] ss:$8 sps:$4 sm:$0xff]  }
 0x174   : > { %3901 = vmatprep.subr.bf16.mxu1 %v5937_v62  ;;  %4325 = vmatprep.subr.bf16.mxu0 %v5940_v63  ;;  %v6004_v60 = vld [vmem:[%s6286_s29 + $0xe40] ss:$8 sps:$4 sm:$0xff]   ;;  %v6009_v62 = vld [vmem:[%s6286_s29 + $0x654] ss:$8 sps:$4 sm:$0xff]  }
 0x175   : > { %v6012_v63 = vld [vmem:[%s6286_s29 + $0xe54] ss:$8 sps:$4 sm:$0xff]  }
 0x177   : > { %3902 = vmatpush1.bf16.msra.mxu1 %v5935_v4  ;;  %4326 = vmatpush1.bf16.msra.mxu0 %v5938_v6  ;;  %v6007_v4 = vld [vmem:[%s6286_s29 + $0x650] ss:$8 sps:$4 sm:$0xff]  }
 0x178   : > { %3903 = vmatprep.subr.bf16.mxu1 %v5943_v8  ;;  %4327 = vmatprep.subr.bf16.mxu0 %v5946_v9  ;;  %v6010_v6 = vld [vmem:[%s6286_s29 + $0xe50] ss:$8 sps:$4 sm:$0xff]   ;;  %v6015_v8 = vld [vmem:[%s6286_s29 + $0x664] ss:$8 sps:$4 sm:$0xff]  }
 0x179   : > { %v6018_v9 = vld [vmem:[%s6286_s29 + $0xe64] ss:$8 sps:$4 sm:$0xff]  }
 0x17b   : > { %3904 = vmatpush1.bf16.msra.mxu1 %v5941_v10  ;;  %4328 = vmatpush1.bf16.msra.mxu0 %v5944_v11  ;;  %v6013_v10 = vld [vmem:[%s6286_s29 + $0x660] ss:$8 sps:$4 sm:$0xff]  }
 0x17c   : > { %3905 = vmatprep.subr.bf16.mxu1 %v5949_v56  ;;  %4329 = vmatprep.subr.bf16.mxu0 %v5952_v57  ;;  %v6016_v11 = vld [vmem:[%s6286_s29 + $0xe60] ss:$8 sps:$4 sm:$0xff]   ;;  %v6021_v56 = vld [vmem:[%s6286_s29 + $0x674] ss:$8 sps:$4 sm:$0xff]  }
 0x17d   : > { %v6024_v57 = vld [vmem:[%s6286_s29 + $0xe74] ss:$8 sps:$4 sm:$0xff]  }
 0x17f   : > { %3906 = vmatpush1.bf16.msra.mxu1 %v5947_v58  ;;  %4330 = vmatpush1.bf16.msra.mxu0 %v5950_v61  ;;  %v6019_v58 = vld [vmem:[%s6286_s29 + $0x670] ss:$8 sps:$4 sm:$0xff]  }
 0x180   : > { %3907 = vmatprep.subr.bf16.mxu1 %v5955_v12  ;;  %4331 = vmatprep.subr.bf16.mxu0 %v5958_v13  ;;  %v6022_v61 = vld [vmem:[%s6286_s29 + $0xe70] ss:$8 sps:$4 sm:$0xff]   ;;  %v6027_v12 = vld [vmem:[%s6286_s29 + $0x684] ss:$8 sps:$4 sm:$0xff]  }
 0x181   : > { %v6030_v13 = vld [vmem:[%s6286_s29 + $0xe84] ss:$8 sps:$4 sm:$0xff]  }
 0x183   : > { %3908 = vmatpush1.bf16.msra.mxu1 %v5953_v17  ;;  %4332 = vmatpush1.bf16.msra.mxu0 %v5956_v18  ;;  %v6025_v17 = vld [vmem:[%s6286_s29 + $0x680] ss:$8 sps:$4 sm:$0xff]  }
 0x184   : > { %3909 = vmatprep.subr.bf16.mxu1 %v5961_v20  ;;  %4333 = vmatprep.subr.bf16.mxu0 %v5964_v21  ;;  %v6028_v18 = vld [vmem:[%s6286_s29 + $0xe80] ss:$8 sps:$4 sm:$0xff]   ;;  %v6033_v20 = vld [vmem:[%s6286_s29 + $0x694] ss:$8 sps:$4 sm:$0xff]  }
 0x185   : > { %v6036_v21 = vld [vmem:[%s6286_s29 + $0xe94] ss:$8 sps:$4 sm:$0xff]  }
 0x187   : > { %3910 = vmatpush1.bf16.msra.mxu1 %v5959_v22  ;;  %4334 = vmatpush1.bf16.msra.mxu0 %v5962_v23  ;;  %v6031_v22 = vld [vmem:[%s6286_s29 + $0x690] ss:$8 sps:$4 sm:$0xff]  }
 0x188   : > { %3911 = vmatprep.subr.bf16.mxu1 %v5967_v24  ;;  %4335 = vmatprep.subr.bf16.mxu0 %v5970_v25  ;;  %v6034_v23 = vld [vmem:[%s6286_s29 + $0xe90] ss:$8 sps:$4 sm:$0xff]   ;;  %v6039_v24 = vld [vmem:[%s6286_s29 + $0x6a4] ss:$8 sps:$4 sm:$0xff]  }
 0x189   : > { %v6042_v25 = vld [vmem:[%s6286_s29 + $0xea4] ss:$8 sps:$4 sm:$0xff]  }
 0x18b   : > { %3912 = vmatpush1.bf16.msra.mxu1 %v5965_v26  ;;  %4336 = vmatpush1.bf16.msra.mxu0 %v5968_v0  ;;  %v6037_v26 = vld [vmem:[%s6286_s29 + $0x6a0] ss:$8 sps:$4 sm:$0xff]  }
 0x18c   : > { %3913 = vmatprep.subr.bf16.mxu1 %v5973_v1  ;;  %4337 = vmatprep.subr.bf16.mxu0 %v5976_v3  ;;  %v6040_v0 = vld [vmem:[%s6286_s29 + $0xea0] ss:$8 sps:$4 sm:$0xff]   ;;  %v6045_v1 = vld [vmem:[%s6286_s29 + $0x6b4] ss:$8 sps:$4 sm:$0xff]  }
 0x18d   : > { %v6048_v3 = vld [vmem:[%s6286_s29 + $0xeb4] ss:$8 sps:$4 sm:$0xff]  }
 0x18f   : > { %3914 = vmatpush1.bf16.msra.mxu1 %v5971_v2  ;;  %4338 = vmatpush1.bf16.msra.mxu0 %v5974_v5  ;;  %v6043_v2 = vld [vmem:[%s6286_s29 + $0x6b0] ss:$8 sps:$4 sm:$0xff]  }
 0x190   : > { %3936 = vmatprep.subr.bf16.mxu1 %v5979_v14  ;;  %4360 = vmatprep.subr.bf16.mxu0 %v5982_v15  ;;  %v6046_v5 = vld [vmem:[%s6286_s29 + $0xeb0] ss:$8 sps:$4 sm:$0xff]   ;;  %v6051_v14 = vld [vmem:[%s6286_s29 + $0x6c4] ss:$8 sps:$4 sm:$0xff]  }
 0x191   : > { %v6054_v15 = vld [vmem:[%s6286_s29 + $0xec4] ss:$8 sps:$4 sm:$0xff]  }
 0x192   : > { %3916 = vmatmul.mubr.bf16.vlgmr.msra.gmra.mrb[0].mxu1 %v4660_v29  ;;  %4340 = vmatmul.mubr.bf16.vlgmr.msra.gmra.mrb[0].mxu0 %v4676_v30  ;;  %v6052_v29 = vld [vmem:[%s6286_s29 + $0xec0] ss:$8 sps:$4 sm:$0xff]   ;;  %v6057_v30 = vld [vmem:[%s6286_s29 + $0x6d4] ss:$8 sps:$4 sm:$0xff]  }
 0x193   : > { %3937 = vmatpush1.bf16.msra.mxu1 %v5977_v16  ;;  %4361 = vmatpush1.bf16.msra.mxu0 %v5980_v19  ;;  %v6063_v16 = vld [vmem:[%s6286_s29 + $0x6e4] ss:$8 sps:$4 sm:$0xff]  }
 0x194   : > { %3938 = vmatprep.subr.bf16.mxu1 %v5985_v7  ;;  %4362 = vmatprep.subr.bf16.mxu0 %v5988_v27  ;;  %v6066_v19 = vld [vmem:[%s6286_s29 + $0xee4] ss:$8 sps:$4 sm:$0xff]   ;;  %v6061_v7 = vld [vmem:[%s6286_s29 + $0x6e0] ss:$8 sps:$4 sm:$0xff]  }
 0x195   : > { %3925 = vmatprep.mubr.bf16.mxu1 %v4693_v34  ;;  %4349 = vmatprep.mubr.bf16.mxu0 %v4709_v35  ;;  %v6064_v27 = vld [vmem:[%s6286_s29 + $0xee0] ss:$8 sps:$4 sm:$0xff]   ;;  %v6069_v34 = vld [vmem:[%s6286_s29 + $0x6f4] ss:$8 sps:$4 sm:$0xff]  }
 0x196   : > { %v6072_v35 = vld [vmem:[%s6286_s29 + $0xef4] ss:$8 sps:$4 sm:$0xff]  }
 0x197   : > { %3939 = vmatpush1.bf16.msra.mxu1 %v5983_v36  ;;  %4363 = vmatpush1.bf16.msra.mxu0 %v5986_v37  ;;  %v6067_v36 = vld [vmem:[%s6286_s29 + $0x6f0] ss:$8 sps:$4 sm:$0xff]  }
 0x198   : > { %3940 = vmatprep.subr.bf16.mxu1 %v5991_v38  ;;  %4364 = vmatprep.subr.bf16.mxu0 %v5994_v39  ;;  %v6070_v37 = vld [vmem:[%s6286_s29 + $0xef0] ss:$8 sps:$4 sm:$0xff]   ;;  %v6075_v38 = vld [vmem:[%s6286_s29 + $0x704] ss:$8 sps:$4 sm:$0xff]  }
 0x199   : > { %v6078_v39 = vld [vmem:[%s6286_s29 + $0xf04] ss:$8 sps:$4 sm:$0xff]  }
 0x19a   : > { %3926 = vmatmul.mubr.bf16.gmra.mrb[4].mxu1 %v4692_v44  ;;  %4350 = vmatmul.mubr.bf16.gmra.mrb[4].mxu0 %v4708_v46  ;;  %v197_v44 = vld [vmem:[%s7143_s0 + $0x130] sm:$0xff]  ;;  %v4662_v46 = vcombine.low %v6916_v43, %v6921_v47  ;;  %v6073_v43 = vld [vmem:[%s6286_s29 + $0x700] ss:$8 sps:$4 sm:$0xff]  }
 0x19b   : > { %3941 = vmatpush1.bf16.msra.mxu1 %v5989_v50  ;;  %4365 = vmatpush1.bf16.msra.mxu0 %v5992_v51  ;;  %v4678_v50 = vcombine.low %v6926_v48, %v6931_v49  ;;  %v213_v51 = vld [vmem:[%s7143_s0 + $0x1b0] sm:$0xff]  ;;  %v6076_v47 = vld [vmem:[%s6286_s29 + $0xf00] ss:$8 sps:$4 sm:$0xff]  }
 0x19c   : > { %3942 = vmatprep.subr.bf16.mxu1 %v5997_v52  ;;  %4366 = vmatprep.subr.bf16.mxu0 %v6000_v53  ;;  %v205_v52 = vld [vmem:[%s7143_s0 + $0x170] sm:$0xff] }
 0x19d   : > { %3968 = vmatprep.mubr.bf16.mxu1 %v4663_v54  ;;  %4392 = vmatprep.mubr.bf16.mxu0 %v4679_v40  ;;  %v221_v53 = vld [vmem:[%s7143_s0 + $0x1f0] sm:$0xff]  ;;  %v4695_v54 = vcombine.high %v197_v44, %v213_v51 }
 0x19e   : > { %v6081_v48 = vld [vmem:[%s6286_s29 + $0x714] ss:$8 sps:$4 sm:$0xff]   ;;  %v4711_v40 = vcombine.high %v205_v52, %v221_v53 }
 0x19f   : > { %3943 = vmatpush1.bf16.msra.mxu1 %v5995_v41  ;;  %4367 = vmatpush1.bf16.msra.mxu0 %v5998_v42  ;;  %v6084_v49 = vld [vmem:[%s6286_s29 + $0xf14] ss:$8 sps:$4 sm:$0xff]   ;;  %v6079_v41 = vld [vmem:[%s6286_s29 + $0x710] ss:$8 sps:$4 sm:$0xff]  }
 0x1a0   : > { %3944 = vmatprep.subr.bf16.mxu1 %v6003_v45  ;;  %4368 = vmatprep.subr.bf16.mxu0 %v6006_v55  ;;  %v6082_v42 = vld [vmem:[%s6286_s29 + $0xf10] ss:$8 sps:$4 sm:$0xff]   ;;  %v6087_v45 = vld [vmem:[%s6286_s29 + $0x724] ss:$8 sps:$4 sm:$0xff]  }
 0x1a1   : > { %v6090_v55 = vld [vmem:[%s6286_s29 + $0xf24] ss:$8 sps:$4 sm:$0xff]  }
 0x1a3   : > { %3945 = vmatpush1.bf16.msra.mxu1 %v6001_v59  ;;  %4369 = vmatpush1.bf16.msra.mxu0 %v6004_v60  ;;  %v7020_v59 = vld [vmem:[%s7143_s0 + $0x38] sm:$0xff]  ;;  %v4694_v60 = vcombine.low %v197_v44, %v213_v51  ;;  %v6145_v44 = vld [vmem:[%s6286_s29 + $0x7c0] ss:$8 sps:$4 sm:$0xff]  }
 0x1a4   : > { %3946 = vmatprep.subr.bf16.mxu1 %v6009_v62  ;;  %4370 = vmatprep.subr.bf16.mxu0 %v6012_v63  ;;  %v4710_v62 = vcombine.low %v205_v52, %v221_v53  ;;  %v7025_v63 = vld [vmem:[%s7143_s0 + $0xb8] sm:$0xff] }
 0x1a5   : > { %v6156_v51 = vld [vmem:[%s6286_s29 + $0xfd4] ss:$8 sps:$4 sm:$0xff]   ;;  %v6151_v52 = vld [vmem:[%s6286_s29 + $0x7d0] ss:$8 sps:$4 sm:$0xff]  }
 0x1a6   : > { %v6154_v53 = vld [vmem:[%s6286_s29 + $0xfd0] ss:$8 sps:$4 sm:$0xff]  }
 0x1a7   : > { %3947 = vmatpush1.bf16.msra.mxu1 %v6007_v4  ;;  %4371 = vmatpush1.bf16.msra.mxu0 %v6010_v6  ;;  %v7030_v4 = vld [vmem:[%s7143_s0 + $0x78] sm:$0xff] }
 0x1a8   : > { %3948 = vmatprep.subr.bf16.mxu1 %v6015_v8  ;;  %4372 = vmatprep.subr.bf16.mxu0 %v6018_v9  ;;  %v7035_v6 = vld [vmem:[%s7143_s0 + $0xf8] sm:$0xff]  ;;  %v6085_v8 = vld [vmem:[%s6286_s29 + $0x720] ss:$8 sps:$4 sm:$0xff]  }
 0x1a9   : > { %v6088_v9 = vld [vmem:[%s6286_s29 + $0xf20] ss:$8 sps:$4 sm:$0xff]  }
 0x1ab   : > { %3949 = vmatpush1.bf16.msra.mxu1 %v6013_v10  ;;  %4373 = vmatpush1.bf16.msra.mxu0 %v6016_v11  ;;  %v6093_v10 = vld [vmem:[%s6286_s29 + $0x734] ss:$8 sps:$4 sm:$0xff]  }
 0x1ac   : > { %3950 = vmatprep.subr.bf16.mxu1 %v6021_v56  ;;  %4374 = vmatprep.subr.bf16.mxu0 %v6024_v57  ;;  %v6096_v11 = vld [vmem:[%s6286_s29 + $0xf34] ss:$8 sps:$4 sm:$0xff]   ;;  %v4665_v56 = vcombine.high %v7020_v59, %v7025_v63  ;;  %v4681_v57 = vcombine.high %v7030_v4, %v7035_v6 }
 0x1af   : > { %3951 = vmatpush1.bf16.msra.mxu1 %v6019_v58  ;;  %4375 = vmatpush1.bf16.msra.mxu0 %v6022_v61  ;;  %v6091_v58 = vld [vmem:[%s6286_s29 + $0x730] ss:$8 sps:$4 sm:$0xff]  }
 0x1b0   : > { %3952 = vmatprep.subr.bf16.mxu1 %v6027_v12  ;;  %4376 = vmatprep.subr.bf16.mxu0 %v6030_v13  ;;  %v6094_v61 = vld [vmem:[%s6286_s29 + $0xf30] ss:$8 sps:$4 sm:$0xff]   ;;  %v6099_v12 = vld [vmem:[%s6286_s29 + $0x744] ss:$8 sps:$4 sm:$0xff]  }
 0x1b1   : > { %v6102_v13 = vld [vmem:[%s6286_s29 + $0xf44] ss:$8 sps:$4 sm:$0xff]  }
 0x1b3   : > { %3953 = vmatpush1.bf16.msra.mxu1 %v6025_v17  ;;  %4377 = vmatpush1.bf16.msra.mxu0 %v6028_v18  ;;  %v6097_v17 = vld [vmem:[%s6286_s29 + $0x740] ss:$8 sps:$4 sm:$0xff]  }
 0x1b4   : > { %3954 = vmatprep.subr.bf16.mxu1 %v6033_v20  ;;  %4378 = vmatprep.subr.bf16.mxu0 %v6036_v21  ;;  %v6100_v18 = vld [vmem:[%s6286_s29 + $0xf40] ss:$8 sps:$4 sm:$0xff]   ;;  %v6105_v20 = vld [vmem:[%s6286_s29 + $0x754] ss:$8 sps:$4 sm:$0xff]  }
 0x1b5   : > { %v6108_v21 = vld [vmem:[%s6286_s29 + $0xf54] ss:$8 sps:$4 sm:$0xff]  }
 0x1b7   : > { %3955 = vmatpush1.bf16.msra.mxu1 %v6031_v22  ;;  %4379 = vmatpush1.bf16.msra.mxu0 %v6034_v23  ;;  %v6103_v22 = vld [vmem:[%s6286_s29 + $0x750] ss:$8 sps:$4 sm:$0xff]  }
 0x1b8   : > { %3956 = vmatprep.subr.bf16.mxu1 %v6039_v24  ;;  %4380 = vmatprep.subr.bf16.mxu0 %v6042_v25  ;;  %v6106_v23 = vld [vmem:[%s6286_s29 + $0xf50] ss:$8 sps:$4 sm:$0xff]   ;;  %v6111_v24 = vld [vmem:[%s6286_s29 + $0x764] ss:$8 sps:$4 sm:$0xff]  }
 0x1b9   : > { %v6114_v25 = vld [vmem:[%s6286_s29 + $0xf64] ss:$8 sps:$4 sm:$0xff]  }
 0x1bb   : > { %3957 = vmatpush1.bf16.msra.mxu1 %v6037_v26  ;;  %4381 = vmatpush1.bf16.msra.mxu0 %v6040_v0  ;;  %v6109_v26 = vld [vmem:[%s6286_s29 + $0x760] ss:$8 sps:$4 sm:$0xff]  }
 0x1bc   : > { %3958 = vmatprep.subr.bf16.mxu1 %v6045_v1  ;;  %4382 = vmatprep.subr.bf16.mxu0 %v6048_v3  ;;  %v6112_v0 = vld [vmem:[%s6286_s29 + $0xf60] ss:$8 sps:$4 sm:$0xff]   ;;  %v6117_v1 = vld [vmem:[%s6286_s29 + $0x774] ss:$8 sps:$4 sm:$0xff]  }
 0x1bd   : > { %v6120_v3 = vld [vmem:[%s6286_s29 + $0xf74] ss:$8 sps:$4 sm:$0xff]  }
 0x1bf   : > { %3959 = vmatpush1.bf16.msra.mxu1 %v6043_v2  ;;  %4383 = vmatpush1.bf16.msra.mxu0 %v6046_v5  ;;  %v6115_v2 = vld [vmem:[%s6286_s29 + $0x770] ss:$8 sps:$4 sm:$0xff]  }
 0x1c0   : > { %3960 = vmatprep.subr.bf16.mxu1 %v6051_v14  ;;  %4384 = vmatprep.subr.bf16.mxu0 %v6054_v15  ;;  %v6118_v5 = vld [vmem:[%s6286_s29 + $0xf70] ss:$8 sps:$4 sm:$0xff]   ;;  %v6123_v14 = vld [vmem:[%s6286_s29 + $0x784] ss:$8 sps:$4 sm:$0xff]  }
 0x1c1   : > { %v6126_v15 = vld [vmem:[%s6286_s29 + $0xf84] ss:$8 sps:$4 sm:$0xff]  }
 0x1c3   : > { %3961 = vmatpush1.bf16.msra.mxu1 %v6049_v28  ;;  %4385 = vmatpush1.bf16.msra.mxu0 %v6052_v29  ;;  %v6121_v28 = vld [vmem:[%s6286_s29 + $0x780] ss:$8 sps:$4 sm:$0xff]  }
 0x1c4   : > { %3962 = vmatprep.subr.bf16.mxu1 %v6057_v30  ;;  %4386 = vmatprep.subr.bf16.mxu0 %v6060_v31  ;;  %v6124_v29 = vld [vmem:[%s6286_s29 + $0xf80] ss:$8 sps:$4 sm:$0xff]   ;;  %v6129_v30 = vld [vmem:[%s6286_s29 + $0x794] ss:$8 sps:$4 sm:$0xff]  }
 0x1c5   : > { %v6132_v31 = vld [vmem:[%s6286_s29 + $0xf94] ss:$8 sps:$4 sm:$0xff]  }
 0x1c7   : > { %3963 = vmatpush1.bf16.msra.mxu1 %v6055_v32  ;;  %4387 = vmatpush1.bf16.msra.mxu0 %v6058_v33  ;;  %v6127_v32 = vld [vmem:[%s6286_s29 + $0x790] ss:$8 sps:$4 sm:$0xff]  }
 0x1c8   : > { %3964 = vmatprep.subr.bf16.mxu1 %v6063_v16  ;;  %4388 = vmatprep.subr.bf16.mxu0 %v6066_v19  ;;  %v6130_v33 = vld [vmem:[%s6286_s29 + $0xf90] ss:$8 sps:$4 sm:$0xff]   ;;  %v6135_v16 = vld [vmem:[%s6286_s29 + $0x7a4] ss:$8 sps:$4 sm:$0xff]  }
 0x1c9   : > { %v6138_v19 = vld [vmem:[%s6286_s29 + $0xfa4] ss:$8 sps:$4 sm:$0xff]  }
 0x1cb   : > { %3965 = vmatpush1.bf16.msra.mxu1 %v6061_v7  ;;  %4389 = vmatpush1.bf16.msra.mxu0 %v6064_v27  ;;  %v6133_v7 = vld [vmem:[%s6286_s29 + $0x7a0] ss:$8 sps:$4 sm:$0xff]  }
 0x1cc   : > { %3966 = vmatprep.subr.bf16.mxu1 %v6069_v34  ;;  %4390 = vmatprep.subr.bf16.mxu0 %v6072_v35  ;;  %v6136_v27 = vld [vmem:[%s6286_s29 + $0xfa0] ss:$8 sps:$4 sm:$0xff]   ;;  %v6141_v34 = vld [vmem:[%s6286_s29 + $0x7b4] ss:$8 sps:$4 sm:$0xff]  }
 0x1cd   : > { %v6144_v35 = vld [vmem:[%s6286_s29 + $0xfb4] ss:$8 sps:$4 sm:$0xff]  }
 0x1cf   : > { %3967 = vmatpush1.bf16.msra.mxu1 %v6067_v36  ;;  %4391 = vmatpush1.bf16.msra.mxu0 %v6070_v37  ;;  %v6139_v36 = vld [vmem:[%s6286_s29 + $0x7b0] ss:$8 sps:$4 sm:$0xff]  }
 0x1d0   : > { %3989 = vmatprep.subr.bf16.mxu1 %v6075_v38  ;;  %4413 = vmatprep.subr.bf16.mxu0 %v6078_v39  ;;  %v6142_v37 = vld [vmem:[%s6286_s29 + $0xfb0] ss:$8 sps:$4 sm:$0xff]   ;;  %v6147_v38 = vld [vmem:[%s6286_s29 + $0x7c4] ss:$8 sps:$4 sm:$0xff]  }
 0x1d1   : > { %v6150_v39 = vld [vmem:[%s6286_s29 + $0xfc4] ss:$8 sps:$4 sm:$0xff]  }
 0x1d2   : > { %3969 = vmatmul.mubr.bf16.vlgmr.msra.gmra.mrb[0].mxu1 %v4662_v46  ;;  %4393 = vmatmul.mubr.bf16.vlgmr.msra.gmra.mrb[0].mxu0 %v4678_v50  ;;  %v6148_v46 = vld [vmem:[%s6286_s29 + $0xfc0] ss:$8 sps:$4 sm:$0xff]   ;;  %v6153_v50 = vld [vmem:[%s6286_s29 + $0x7d4] ss:$8 sps:$4 sm:$0xff]  }
 0x1d3   : > { %3990 = vmatpush1.bf16.msra.mxu1 %v6073_v43  ;;  %4414 = vmatpush1.bf16.msra.mxu0 %v6076_v47  ;;  %v6159_v43 = vld [vmem:[%s6286_s29 + $0x7e4] ss:$8 sps:$4 sm:$0xff]  }
 0x1d4   : > { %3991 = vmatprep.subr.bf16.mxu1 %v6081_v48  ;;  %4415 = vmatprep.subr.bf16.mxu0 %v6084_v49  ;;  %v6162_v47 = vld [vmem:[%s6286_s29 + $0xfe4] ss:$8 sps:$4 sm:$0xff]   ;;  %v6157_v48 = vld [vmem:[%s6286_s29 + $0x7e0] ss:$8 sps:$4 sm:$0xff]  }
 0x1d5   : > { %3978 = vmatprep.mubr.bf16.mxu1 %v4695_v54  ;;  %4402 = vmatprep.mubr.bf16.mxu0 %v4711_v40  ;;  %v6160_v49 = vld [vmem:[%s6286_s29 + $0xfe0] ss:$8 sps:$4 sm:$0xff]   ;;  %v6165_v54 = vld [vmem:[%s6286_s29 + $0x7f4] ss:$8 sps:$4 sm:$0xff]  }
 0x1d6   : > { %v6168_v40 = vld [vmem:[%s6286_s29 + $0xff4] ss:$8 sps:$4 sm:$0xff]  }
 0x1d7   : > { %3992 = vmatpush1.bf16.msra.mxu1 %v6079_v41  ;;  %4416 = vmatpush1.bf16.msra.mxu0 %v6082_v42  ;;  %v6163_v41 = vld [vmem:[%s6286_s29 + $0x7f0] ss:$8 sps:$4 sm:$0xff]  }
 0x1d8   : > { %3993 = vmatprep.subr.bf16.mxu1 %v6087_v45  ;;  %4417 = vmatprep.subr.bf16.mxu0 %v6090_v55  ;;  %v6166_v42 = vld [vmem:[%s6286_s29 + $0xff0] ss:$8 sps:$4 sm:$0xff]   ;;  %s147_s29 = sand.u32 1, %s6191_s9  }
 0x1d9   : > { %v198_v45 = vld [vmem:[%s7143_s0 + $0x138] sm:$0xff]  ;;  %s4647_s16 = sshll.u32 %s147_s29, 5 }
 0x1da   : > { %3979 = vmatmul.mubr.bf16.gmra.mrb[4].mxu1 %v4694_v60  ;;  %4403 = vmatmul.mubr.bf16.gmra.mrb[4].mxu0 %v4710_v62  ;;  %v214_v55 = vld [vmem:[%s7143_s0 + $0x1b8] sm:$0xff]  ;;  %s7112_s9 = scalar_lea.vmem [#allocation2], %s4647_s16 }
 0x1db   : > { %3994 = vmatpush1.bf16.msra.mxu1 %v6085_v8  ;;  %4418 = vmatpush1.bf16.msra.mxu0 %v6088_v9  ;;  %v206_v60 = vld [vmem:[%s7143_s0 + $0x178] sm:$0xff]  ;;  %v4664_v8 = vcombine.low %v7020_v59, %v7025_v63  ;;  %v4680_v9 = vcombine.low %v7030_v4, %v7035_v6 }
 0x1dc   : > { %3995 = vmatprep.subr.bf16.mxu1 %v6093_v10  ;;  %4419 = vmatprep.subr.bf16.mxu0 %v6096_v11  ;;  %v222_v62 = vld [vmem:[%s7143_s0 + $0x1f8] sm:$0xff]  ;;  %v4697_v10 = vcombine.high %v198_v45, %v214_v55 }
 0x1dd   : > { %4021 = vmatprep.mubr.bf16.mxu1 %v4665_v56  ;;  %4445 = vmatprep.mubr.bf16.mxu0 %v4681_v57  ;;  %v4713_v11 = vcombine.high %v206_v60, %v222_v62  ;;  %v4696_v56 = vcombine.low %v198_v45, %v214_v55  ;;  %v4712_v57 = vcombine.low %v206_v60, %v222_v62 }
 0x1df   : > { %3996 = vmatpush1.bf16.msra.mxu1 %v6091_v58  ;;  %4420 = vmatpush1.bf16.msra.mxu0 %v6094_v61 }
 0x1e0   : > { %3997 = vmatprep.subr.bf16.mxu1 %v6099_v12  ;;  %4421 = vmatprep.subr.bf16.mxu0 %v6102_v13 }
 0x1e3   : > { %3998 = vmatpush1.bf16.msra.mxu1 %v6097_v17  ;;  %4422 = vmatpush1.bf16.msra.mxu0 %v6100_v18 }
 0x1e4   : > { %3999 = vmatprep.subr.bf16.mxu1 %v6105_v20  ;;  %4423 = vmatprep.subr.bf16.mxu0 %v6108_v21 }
 0x1e7   : > { %4000 = vmatpush1.bf16.msra.mxu1 %v6103_v22  ;;  %4424 = vmatpush1.bf16.msra.mxu0 %v6106_v23 }
 0x1e8   : > { %4001 = vmatprep.subr.bf16.mxu1 %v6111_v24  ;;  %4425 = vmatprep.subr.bf16.mxu0 %v6114_v25 }
 0x1eb   : > { %4002 = vmatpush1.bf16.msra.mxu1 %v6109_v26  ;;  %4426 = vmatpush1.bf16.msra.mxu0 %v6112_v0 }
 0x1ec   : > { %4003 = vmatprep.subr.bf16.mxu1 %v6117_v1  ;;  %4427 = vmatprep.subr.bf16.mxu0 %v6120_v3 }
 0x1ef   : > { %4004 = vmatpush1.bf16.msra.mxu1 %v6115_v2  ;;  %4428 = vmatpush1.bf16.msra.mxu0 %v6118_v5 }
 0x1f0   : > { %4005 = vmatprep.subr.bf16.mxu1 %v6123_v14  ;;  %4429 = vmatprep.subr.bf16.mxu0 %v6126_v15 }
 0x1f3   : > { %4006 = vmatpush1.bf16.msra.mxu1 %v6121_v28  ;;  %4430 = vmatpush1.bf16.msra.mxu0 %v6124_v29 }
 0x1f4   : > { %4007 = vmatprep.subr.bf16.mxu1 %v6129_v30  ;;  %4431 = vmatprep.subr.bf16.mxu0 %v6132_v31 }
 0x1f7   : > { %4008 = vmatpush1.bf16.msra.mxu1 %v6127_v32  ;;  %4432 = vmatpush1.bf16.msra.mxu0 %v6130_v33 }
 0x1f8   : > { %4009 = vmatprep.subr.bf16.mxu1 %v6135_v16  ;;  %4433 = vmatprep.subr.bf16.mxu0 %v6138_v19 }
 0x1fb   : > { %4010 = vmatpush1.bf16.msra.mxu1 %v6133_v7  ;;  %4434 = vmatpush1.bf16.msra.mxu0 %v6136_v27 }
 0x1fc   : > { %4011 = vmatprep.subr.bf16.mxu1 %v6141_v34  ;;  %4435 = vmatprep.subr.bf16.mxu0 %v6144_v35 }
 0x1ff   : > { %4012 = vmatpush1.bf16.msra.mxu1 %v6139_v36  ;;  %4436 = vmatpush1.bf16.msra.mxu0 %v6142_v37 }
 0x200   : > { %4013 = vmatprep.subr.bf16.mxu1 %v6147_v38  ;;  %4437 = vmatprep.subr.bf16.mxu0 %v6150_v39 }
 0x203   : > { %4014 = vmatpush1.bf16.msra.mxu1 %v6145_v44  ;;  %4438 = vmatpush1.bf16.msra.mxu0 %v6148_v46 }
 0x204   : > { %4015 = vmatprep.subr.bf16.mxu1 %v6153_v50  ;;  %4439 = vmatprep.subr.bf16.mxu0 %v6156_v51 }
 0x207   : > { %4016 = vmatpush1.bf16.msra.mxu1 %v6151_v52  ;;  %4440 = vmatpush1.bf16.msra.mxu0 %v6154_v53 }
 0x208   : > { %4017 = vmatprep.subr.bf16.mxu1 %v6159_v43  ;;  %4441 = vmatprep.subr.bf16.mxu0 %v6162_v47 }
 0x20b   : > { %4018 = vmatpush1.bf16.msra.mxu1 %v6157_v48  ;;  %4442 = vmatpush1.bf16.msra.mxu0 %v6160_v49 }
 0x20c   : > { %4019 = vmatprep.subr.bf16.mxu1 %v6165_v54  ;;  %4443 = vmatprep.subr.bf16.mxu0 %v6168_v40 }
 0x20f   : > { %4020 = vmatpush1.bf16.msra.mxu1 %v6163_v41  ;;  %4444 = vmatpush1.bf16.msra.mxu0 %v6166_v42 }
 0x212   : > { %4022 = vmatmul.mubr.bf16.vlgmr.msra.gmra.mrb[0].mxu1 %v4664_v8  ;;  %4446 = vmatmul.mubr.bf16.vlgmr.msra.gmra.mrb[0].mxu0 %v4680_v9 }
 0x213   : > { %4031 = vmatprep.mubr.bf16.mxu1 %v4697_v10  ;;  %4455 = vmatprep.mubr.bf16.mxu0 %v4713_v11 }
 0x21a   : > { %4032 = vmatmul.mubr.bf16.gmra.mrb[4].mxu1 %v4696_v56  ;;  %4456 = vmatmul.mubr.bf16.gmra.mrb[4].mxu0 %v4712_v57 }
 0x2e5   : > { %v4023_v58 = vpop.f32.mrb[0].mxu1  ;;  %v4447_v61 = vpop.f32.mrb[0].mxu0 }
 0x2e6   : > { %v5241_v59 = vadd.f32 %v4447_v61, %v4023_v58  ;;  %v4025_v63 = vpop.f32.mrb[1].mxu1  ;;  %v4449_v12 = vpop.f32.mrb[1].mxu0 }
 0x2e7   : > { %v5242_v13 = vadd.f32 %v4449_v12, %v4025_v63  ;;  %v4027_v4 = vpop.f32.mrb[2].mxu1  ;;  %v4451_v6 = vpop.f32.mrb[2].mxu0 }
 0x2e8   : > { %vm4466_vm0 = vcmp.gt.f32.partialorder %v5241_v59, 0.0  ;;  %v4474_v17 = vmul.f32 0.2, %v5241_v59  ;;  %v5243_v18 = vadd.f32 %v4451_v6, %v4027_v4  ;;  %v4029_v20 = vpop.f32.mrb[3].mxu1  ;;  %v4453_v21 = vpop.f32.mrb[3].mxu0 }
 0x2e9   : > { %vm4467_vm1 = vcmp.gt.f32.partialorder %v5242_v13, 0.0  ;;  %v4475_v22 = vmul.f32 0.2, %v5242_v13  ;;  %v5244_v23 = vadd.f32 %v4453_v21, %v4029_v20 }
 0x2ea   : > { %v4482_v24 = vsel %vm4466_vm0, %v5241_v59, %v4474_v17  ;;  %vm4468_vm2 = vcmp.gt.f32.partialorder %v5243_v18, 0.0  ;;  %v4476_v25 = vmul.f32 0.2, %v5243_v18 }
 0x2eb   : > { %v4483_v26 = vsel %vm4467_vm1, %v5242_v13, %v4475_v22  ;;  %vm4469_vm3 = vcmp.gt.f32.partialorder %v5244_v23, 0.0  ;;  %v4477_v0 = vmul.f32 0.2, %v5244_v23 }
 0x2ec   : > { %v5236_v1 = vpack.c.bf16 %v4483_v26, %v4482_v24  ;;  %v4484_v3 = vsel %vm4468_vm2, %v5243_v18, %v4476_v25 }
 0x2ed   : > { %v4485_v2 = vsel %vm4469_vm3, %v5244_v23, %v4477_v0  ;;  %v4033_v5 = vpop.f32.mrb[4].mxu1  ;;  %v4457_v14 = vpop.f32.mrb[4].mxu0 }
 0x2ee   : > { %4514 = vst [vmem:[%s7112_s9] sm:$0xff] %v5236_v1  ;;  %v5237_v15 = vpack.c.bf16 %v4485_v2, %v4484_v3  ;;  %v5245_v28 = vadd.f32 %v4457_v14, %v4033_v5  ;;  %v4035_v29 = vpop.f32.mrb[5].mxu1  ;;  %v4459_v30 = vpop.f32.mrb[5].mxu0 }
 0x2ef   : > { %v5246_v31 = vadd.f32 %v4459_v30, %v4035_v29  ;;  %v4037_v32 = vpop.f32.mrb[6].mxu1  ;;  %v4461_v33 = vpop.f32.mrb[6].mxu0 }
 0x2f0   : > { %4515 = vst [vmem:[%s7112_s9 + $0x8] sm:$0xff] %v5237_v15  ;;  %vm4470_vm4 = vcmp.gt.f32.partialorder %v5245_v28, 0.0  ;;  %v4478_v16 = vmul.f32 0.2, %v5245_v28  ;;  %v5247_v19 = vadd.f32 %v4461_v33, %v4037_v32  ;;  %v4039_v7 = vpop.f32.mrb[7].mxu1  ;;  %v4463_v27 = vpop.f32.mrb[7].mxu0 }
 0x2f1   : > { %vm4471_vm5 = vcmp.gt.f32.partialorder %v5246_v31, 0.0  ;;  %v4479_v34 = vmul.f32 0.2, %v5246_v31  ;;  %v5248_v35 = vadd.f32 %v4463_v27, %v4039_v7 }
 0x2f2   : > { %v4486_v36 = vsel %vm4470_vm4, %v5245_v28, %v4478_v16  ;;  %vm4472_vm6 = vcmp.gt.f32.partialorder %v5247_v19, 0.0  ;;  %v4480_v37 = vmul.f32 0.2, %v5247_v19  ;;  %4524 = sbr.rel (!%p6256_p3) target bundleno = 769 (0x301), region = 32 }
 0x2f3   : > { %v4487_v38 = vsel %vm4471_vm5, %v5246_v31, %v4479_v34  ;;  %vm4473_vm7 = vcmp.gt.f32.partialorder %v5248_v35, 0.0  ;;  %v4481_v39 = vmul.f32 0.2, %v5248_v35 }
 0x2f4   : > { %v5238_v44 = vpack.c.bf16 %v4487_v38, %v4486_v36  ;;  %v4488_v46 = vsel %vm4472_vm6, %v5247_v19, %v4480_v37 }
 0x2f5   : > { %v4489_v50 = vsel %vm4473_vm7, %v5248_v35, %v4481_v39  ;;  %v4564_v52 = vld [vmem:[%s7112_s9] sm:$0xff] (%p6256_p3) }
 0x2f6   : > { %4516 = vst [vmem:[%s7112_s9 + $0x10] sm:$0xff] %v5238_v44  ;;  %v5239_v51 = vpack.c.bf16 %v4489_v50, %v4488_v46  ;;  %4565 = vst [vmem:[%s4530_s22] sm:$0xff] (%p6256_p3), %v4564_v52 }
 0x2f7   : > { %v4566_v53 = vld [vmem:[%s7112_s9 + $0x8] sm:$0xff] (%p6256_p3) }
 0x2f8   : > { %4517 = vst [vmem:[%s7112_s9 + $0x18] sm:$0xff] %v5239_v51  ;;  %4567 = vst [vmem:[%s4530_s22 + $0x10] sm:$0xff] (%p6256_p3), %v4566_v53 }
 0x2fd   : > { %v4568_v43 = vld [vmem:[%s7112_s9 + $0x10] sm:$0xff] }
 0x2fe   : > { %4569 = vst [vmem:[%s4530_s22 + $0x20] sm:$0xff] %v4568_v43 }
 0x2ff   : > { %v4570_v47 = vld [vmem:[%s7112_s9 + $0x18] sm:$0xff] }
 0x300   : > { %4571 = vst [vmem:[%s4530_s22 + $0x30] sm:$0xff] %v4570_v47 }
 0x301 PF: > { %s12_s13 = sadd.s32 1, %s6207_s13   ;;  %s7147_s9 = smov %s6195_s10 }
 0x302   : > { %p9_p8 = scmp.ge.s32.totalorder %s12_s13, 4   ;;  %s7148_s10 = smov %s6265_s19 }
 0x303   : > { %s7149_s11 = smov %s6203_s12  ;;  %s7150_s12 = smov %s7152_s15 }
 0x304   :  { %11 = sbr.rel (!%p9_p8) target bundleno = 3 (0x3), region = 97 }

</bundles_post_ra>
